<compile_context>
chip_gen: v5e
topology: v5e:2x2
jax: 0.10.0
libtpu: 0.0.40
codegen_flags: <defaults>
</compile_context>

<pallas_src>
import functools

import jax
import jax.numpy as jnp
from jax.experimental import pallas as pl
from jax.experimental.pallas import tpu as pltpu

# (in_features, out_features) for enc1..enc7, dec1..dec8
LAYER_DIMS = [
    (301, 150), (150, 80), (80, 40), (40, 20), (20, 10), (10, 5), (5, 2),       # encoder
    (2, 5), (5, 10), (10, 20), (20, 40), (40, 80), (80, 120), (120, 150), (150, 301),  # decoder
]
# activation after each layer (matches the torch forward)
ACTS = (["relu"] * 5 + ["sigmoid", "none"]        # enc1-5 relu, enc6 sigmoid, enc7 none (-> z)
        + ["relu"] * 6 + ["sigmoid", "none"])     # dec1-6 relu, dec7 sigmoid, dec8 none
Z_LAYER_IDX = 6
N_LAYERS = len(LAYER_DIMS)
IN_FEATURES = 301
Z_FEATURES = 2

LANE = 128
SUBLANE = 8


def _round_up(x, m):
    return (x + m - 1) // m * m


def _cdiv(a, b):
    return -(-a // b)


PADDED_DIMS = [(_round_up(fi, LANE), _round_up(fo, LANE)) for fi, fo in LAYER_DIMS]
IN_PAD = _round_up(IN_FEATURES, LANE)   # 384
Z_PAD = _round_up(Z_FEATURES, LANE)     # 128

# Layer -> packed-weight / packed-bias bookkeeping.
#   weights: layer0 (384,256), layer1 (256,128), layers2..12 -> (11,128,128) pack,
#            layer13 (128,256), layer14 (256,384)
#   biases : 256-wide pack (layers 0, 13), 128-wide pack (layers 1..12), 384-wide (layer 14)
PACKED_W_LAYERS = tuple(range(2, 13))     # the eleven (128,128) weights
B128_LAYERS = tuple(range(1, 13))         # the twelve 128-wide biases


def autoencoder_kernel(x_ref, w_enc1_ref, w_enc2_ref, w_pack_ref, w_dec7_ref,
                       w_dec8_ref, b256_ref, b128_ref, b384_ref,
                       out_ref, z_ref):
    """x_ref: (TB, 384) bf16.  Weights bf16 (lane-padded), biases f32.

    MXU runs bf16 x bf16 -> f32 (preferred_element_type); bias add / sigmoid in
    f32; relu applied on the bf16 value the next dot would consume anyway.
    """
    def weight(i):                         # (fin_pad, fout_pad) bf16
        if i == 0:
            return w_enc1_ref[...]
        if i == 1:
            return w_enc2_ref[...]
        if i <= 12:
            return w_pack_ref[i - 2]       # static index into (11,128,128)
        if i == 13:
            return w_dec7_ref[...]
        return w_dec8_ref[...]

    def bias(i):                           # (1, fout_pad) f32
        if i == 0:
            return b256_ref[0:1, :]
        if i == 13:
            return b256_ref[1:2, :]
        if i == 14:
            return b384_ref[0:1, :]
        return b128_ref[i - 1:i, :]

    h = x_ref[...]                          # bf16 on entry
    for i in range(N_LAYERS):
        acc = jnp.dot(h, weight(i), preferred_element_type=jnp.float32) + bias(i)
        if ACTS[i] == "relu":
            # bf16 relu: bit-identical to f32 relu + the bf16 cast the next dot
            # needs anyway; packed bf16 halves VPU passes on v6e/v7x.
            h = jnp.maximum(acc.astype(jnp.bfloat16), 0.0)
        elif ACTS[i] == "sigmoid":
            h = jax.nn.sigmoid(acc).astype(jnp.bfloat16)   # EUP exp in f32
        else:
            h = acc                                        # enc7 (-> z) / dec8 (-> out)
        if i == Z_LAYER_IDX:
            z_ref[...] = h.astype(z_ref.dtype)             # bf16 writeback
            h = h.astype(jnp.bfloat16)
    out_ref[...] = h.astype(out_ref.dtype)                 # bf16 writeback


def init_params(key):
    """PyTorch nn.Linear-style uniform(-1/sqrt(fan_in), 1/sqrt(fan_in)) init.

    Weights stored as (in_features, out_features) so the forward is x @ W + b.
    """
    params = []
    for (fin, fout) in LAYER_DIMS:
        key, kw, kb = jax.random.split(key, 3)
        bound = 1.0 / (fin ** 0.5)
        w = jax.random.uniform(kw, (fin, fout), jnp.float32, -bound, bound)
        b = jax.random.uniform(kb, (fout,), jnp.float32, -bound, bound)
        params.append((w, b))
    return params


def pad_params(params):
    """Zero-pad to lane multiples and pack same-shaped layers together.

    Returns (w_enc1, w_enc2, w_pack(11,128,128), w_dec7, w_dec8,
             b256(2,256), b128(12,128), b384(1,384)).
    Weights bf16, biases f32.  Padded regions MUST stay zero (see
    check_padding_invariant).
    """
    w_list, b_list = [], []
    for (fin, fout), (w, b) in zip(LAYER_DIMS, params):
        fin_p, fout_p = _round_up(fin, LANE), _round_up(fout, LANE)
        wp = jnp.zeros((fin_p, fout_p), jnp.float32).at[:fin, :fout].set(w)
        bp = jnp.zeros((fout_p,), jnp.float32).at[:fout].set(b.reshape(-1))
        w_list.append(wp.astype(jnp.bfloat16))
        b_list.append(bp)
    w_pack = jnp.stack([w_list[i] for i in PACKED_W_LAYERS])      # (11,128,128)
    b256 = jnp.stack([b_list[0], b_list[13]])                     # (2,256)
    b128 = jnp.stack([b_list[i] for i in B128_LAYERS])            # (12,128)
    b384 = b_list[14][None, :]                                    # (1,384)
    return (w_list[0], w_list[1], w_pack, w_list[13], w_list[14], b256, b128, b384)


def check_padding_invariant(flat_params):
    """Assert all padded weight/bias regions are exactly zero (numerical exactness)."""
    w_enc1, w_enc2, w_pack, w_dec7, w_dec8, b256, b128, b384 = flat_params
    per_w = [w_enc1, w_enc2] + [w_pack[j] for j in range(len(PACKED_W_LAYERS))] + [w_dec7, w_dec8]
    per_b = [b256[0]] + [b128[j] for j in range(len(B128_LAYERS))] + [b256[1], b384[0]]
    for (fi, fo), w, b in zip(LAYER_DIMS, per_w, per_b):
        assert not bool(jnp.any(w[fi:, :] != 0)), "padded weight rows must be zero"
        assert not bool(jnp.any(w[:, fo:] != 0)), "padded weight cols must be zero"
        assert not bool(jnp.any(b[fo:] != 0)), "padded bias lanes must be zero"


@functools.partial(jax.jit, static_argnames=("tb",))
def net_forward(x, flat_params, *, tb=1024):
    """Returns (reconstruction (B, 301) f32, latent z (B, 2) f32)."""
    B, F = x.shape
    assert F == IN_FEATURES

    # Balanced batch tiling: choose the number of tiles from tb (upper bound),
    # then size tiles to the actual batch so padded-row waste is a few percent
    # at most.  Multiple of 8 sublanes.  (B=600, tb=512 -> 2 tiles of 304 rows.)
    tb_max = max(SUBLANE, int(tb))
    n_tiles = _cdiv(B, tb_max)
    tb_eff = _round_up(_cdiv(B, n_tiles), SUBLANE)
    grid = _cdiv(B, tb_eff)
    b_pad = grid * tb_eff

    # Lane-pad + bf16 cast the input (first matmul operand is bf16 anyway; the
    # batch pad is minimal thanks to the balanced tile size).
    x_pad = jnp.pad(x.astype(jnp.bfloat16), ((0, b_pad - B), (0, IN_PAD - F)))

    in_specs = [pl.BlockSpec((tb_eff, IN_PAD), lambda i: (i, 0))]
    for arr in flat_params:
        # Grid-invariant param blocks: DMA'd once; Buffered(1) avoids pointless
        # double-buffering of the (constant) weights/biases (~1 MiB VMEM saved).
        in_specs.append(
            pl.BlockSpec(arr.shape, lambda i, _n=arr.ndim: (0,) * _n,
                         pipeline_mode=pl.Buffered(1)))

    out_specs = (
        pl.BlockSpec((tb_eff, IN_PAD), lambda i: (i, 0)),
        pl.BlockSpec((tb_eff, Z_PAD), lambda i: (i, 0)),
    )
    # bf16 outputs halve the dominant writeback traffic; upcast after slicing.
    out_shape = (
        jax.ShapeDtypeStruct((b_pad, IN_PAD), jnp.bfloat16),
        jax.ShapeDtypeStruct((b_pad, Z_PAD), jnp.bfloat16),
    )

    # Advisory cost estimate for XLA's scheduler.
    flops = 2 * b_pad * sum(fi * fo for fi, fo in PADDED_DIMS)
    transcendentals = b_pad * (PADDED_DIMS[5][1] + PADDED_DIMS[13][1])  # 2 sigmoids
    weight_bytes = sum(fi * fo * 2 + fo * 4 for fi, fo in PADDED_DIMS)
    bytes_accessed = (b_pad * IN_PAD * 2        # x (bf16)
                      + b_pad * IN_PAD * 2      # reconstruction (bf16)
                      + b_pad * Z_PAD * 2       # latent (bf16)
                      + weight_bytes)

    # 48 MiB is safe on every generation (v7x: 64 MiB physical per TC).  Only
    # raise it for very large tiles, which are advisable only on v5e/v6e
    # (128 MiB physical VMEM).
    vmem_limit = (48 if tb_eff <= 2048 else 100) * 1024 * 1024

    out_pad, z_pad = pl.pallas_call(
        autoencoder_kernel,
        out_shape=out_shape,
        grid_spec=pltpu.PrefetchScalarGridSpec(
            num_scalar_prefetch=0,
            grid=(grid,),
            in_specs=in_specs,
            out_specs=out_specs,
        ),
        compiler_params=pltpu.CompilerParams(
            # Batch tiles are independent -> shard across v7x's 2 TensorCores.
            dimension_semantics=("parallel",),
            vmem_limit_bytes=vmem_limit,
        ),
        cost_estimate=pl.CostEstimate(
            flops=flops,
            transcendentals=transcendentals,
            bytes_accessed=bytes_accessed,
        ),
    )(x_pad, *flat_params)

    # Strip batch/lane padding and restore the torch-like f32 API.
    return (out_pad[:B, :IN_FEATURES].astype(jnp.float32),
            z_pad[:B, :Z_FEATURES].astype(jnp.float32))


def net_forward_ref(x, params):
    """Pure-JAX reference mirroring the kernel's numerics exactly (bf16 MXU
    operands, f32 accumulation, bf16 activation storage, bf16 outputs)."""
    h = x.astype(jnp.bfloat16)
    z = None
    for i, (w, b) in enumerate(params):
        acc = jnp.dot(h, w.astype(jnp.bfloat16),
                      preferred_element_type=jnp.float32) + b
        if ACTS[i] == "relu":
            h = jnp.maximum(acc.astype(jnp.bfloat16), 0.0)
        elif ACTS[i] == "sigmoid":
            h = jax.nn.sigmoid(acc).astype(jnp.bfloat16)
        else:
            h = acc
        if i == Z_LAYER_IDX:
            z = acc.astype(jnp.bfloat16).astype(jnp.float32)
            h = acc.astype(jnp.bfloat16)
    out = h.astype(jnp.bfloat16).astype(jnp.float32)
    return out, z


if __name__ == "__main__":
    key = jax.random.PRNGKey(0)
    kx, kp = jax.random.split(key)

    # B=600 with tb=512 -> balanced tiling: grid of 2 tiles of 304 rows
    # (even grid for the two v7x TensorCores, only 8 padded rows).
    B = 600
    x = jax.random.normal(kx, (B, IN_FEATURES), dtype=jnp.float32)

    params = init_params(kp)
    flat_params = pad_params(params)
    check_padding_invariant(flat_params)

    out, z = net_forward(x, flat_params, tb=512)
    out = jax.block_until_ready(out)
    z = jax.block_until_ready(z)

    ref_out, ref_z = net_forward_ref(x, params)
    assert out.shape == (B, IN_FEATURES) and z.shape == (B, Z_FEATURES)
    # NOTE: parity is against the bf16-MXU reference above; a strict f32 torch
    # forward differs by the usual bf16 matmul rounding.
    assert jnp.allclose(out, ref_out, atol=2e-3, rtol=2e-3)
    assert jnp.allclose(z, ref_z, atol=2e-3, rtol=2e-3)

    print("KERNEL_OK")
</pallas_src>

<mosaic_0001>
module attributes {stable_mosaic.version = 11 : i64} {
  func.func @autoencoder_kernel(%arg0: i32, %arg1: memref<304x384xbf16, #tpu.memory_space<vmem>>, %arg2: memref<384x256xbf16, #tpu.memory_space<vmem>>, %arg3: memref<256x128xbf16, #tpu.memory_space<vmem>>, %arg4: memref<11x128x128xbf16, #tpu.memory_space<vmem>>, %arg5: memref<128x256xbf16, #tpu.memory_space<vmem>>, %arg6: memref<256x384xbf16, #tpu.memory_space<vmem>>, %arg7: memref<2x256xf32, #tpu.memory_space<vmem>>, %arg8: memref<12x128xf32, #tpu.memory_space<vmem>>, %arg9: memref<1x384xf32, #tpu.memory_space<vmem>>, %arg10: memref<304x384xbf16, #tpu.memory_space<vmem>>, %arg11: memref<304x128xbf16, #tpu.memory_space<vmem>>) attributes {dimension_semantics = [#tpu.dimension_semantics<parallel>], iteration_bounds = array<i64: 2>, scalar_prefetch = 0 : i64, scratch_operands = 0 : i64, tpu.core_type = #tpu.core_type<tc>, window_params = [{transform_indices = @transform_0, window_bounds = array<i64: 304, 384>}, {pipeline_mode = #tpu.pipeline_mode<synchronous>, transform_indices = @transform_1, window_bounds = array<i64: 384, 256>}, {pipeline_mode = #tpu.pipeline_mode<synchronous>, transform_indices = @transform_2, window_bounds = array<i64: 256, 128>}, {pipeline_mode = #tpu.pipeline_mode<synchronous>, transform_indices = @transform_3, window_bounds = array<i64: 11, 128, 128>}, {pipeline_mode = #tpu.pipeline_mode<synchronous>, transform_indices = @transform_4, window_bounds = array<i64: 128, 256>}, {pipeline_mode = #tpu.pipeline_mode<synchronous>, transform_indices = @transform_5, window_bounds = array<i64: 256, 384>}, {pipeline_mode = #tpu.pipeline_mode<synchronous>, transform_indices = @transform_6, window_bounds = array<i64: 2, 256>}, {pipeline_mode = #tpu.pipeline_mode<synchronous>, transform_indices = @transform_7, window_bounds = array<i64: 12, 128>}, {pipeline_mode = #tpu.pipeline_mode<synchronous>, transform_indices = @transform_8, window_bounds = array<i64: 1, 384>}, {transform_indices = @transform_9, window_bounds = array<i64: 304, 384>}, {transform_indices = @transform_10, window_bounds = array<i64: 304, 128>}]} {
    %c0 = arith.constant 0 : index
    %c0_0 = arith.constant 0 : index
    %0 = vector.load %arg1[%c0, %c0_0] : memref<304x384xbf16, #tpu.memory_space<vmem>>, vector<304x384xbf16>
    %c0_1 = arith.constant 0 : index
    %c0_2 = arith.constant 0 : index
    %1 = vector.load %arg2[%c0_1, %c0_2] : memref<384x256xbf16, #tpu.memory_space<vmem>>, vector<384x256xbf16>
    %cst = arith.constant dense<0.000000e+00> : vector<304x256xf32>
    %2 = tpu.matmul %0, %1, %cst {dimension_numbers = #tpu.dot_dimension_numbers<[1], [0], [0], [1], [0, 0, 1, 1], [], []>} : vector<304x384xbf16>, vector<384x256xbf16>, vector<304x256xf32> -> vector<304x256xf32>
    %c0_3 = arith.constant 0 : index
    %c0_4 = arith.constant 0 : index
    %3 = vector.load %arg7[%c0_3, %c0_4] : memref<2x256xf32, #tpu.memory_space<vmem>>, vector<1x256xf32>
    %4 = vector.broadcast %3 : vector<1x256xf32> to vector<304x256xf32>
    %5 = arith.addf %2, %4 : vector<304x256xf32>
    %6 = arith.truncf %5 : vector<304x256xf32> to vector<304x256xbf16>
    %cst_5 = arith.constant 0.000000e+00 : bf16
    %7 = vector.broadcast %cst_5 : bf16 to vector<304x256xbf16>
    %8 = arith.maximumf %6, %7 : vector<304x256xbf16>
    %c0_6 = arith.constant 0 : index
    %c0_7 = arith.constant 0 : index
    %9 = vector.load %arg3[%c0_6, %c0_7] : memref<256x128xbf16, #tpu.memory_space<vmem>>, vector<256x128xbf16>
    %cst_8 = arith.constant dense<0.000000e+00> : vector<304x128xf32>
    %10 = tpu.matmul %8, %9, %cst_8 {dimension_numbers = #tpu.dot_dimension_numbers<[1], [0], [0], [1], [0, 0, 1, 1], [], []>} : vector<304x256xbf16>, vector<256x128xbf16>, vector<304x128xf32> -> vector<304x128xf32>
    %c0_9 = arith.constant 0 : index
    %c0_10 = arith.constant 0 : index
    %11 = vector.load %arg8[%c0_9, %c0_10] : memref<12x128xf32, #tpu.memory_space<vmem>>, vector<1x128xf32>
    %12 = vector.broadcast %11 : vector<1x128xf32> to vector<304x128xf32>
    %13 = arith.addf %10, %12 : vector<304x128xf32>
    %14 = arith.truncf %13 : vector<304x128xf32> to vector<304x128xbf16>
    %cst_11 = arith.constant 0.000000e+00 : bf16
    %15 = vector.broadcast %cst_11 : bf16 to vector<304x128xbf16>
    %16 = arith.maximumf %14, %15 : vector<304x128xbf16>
    %c0_12 = arith.constant 0 : index
    %c0_13 = arith.constant 0 : index
    %c0_14 = arith.constant 0 : index
    %17 = vector.load %arg4[%c0_12, %c0_13, %c0_14] : memref<11x128x128xbf16, #tpu.memory_space<vmem>>, vector<1x128x128xbf16>
    %18 = vector.shape_cast %17 : vector<1x128x128xbf16> to vector<128x128xbf16>
    %cst_15 = arith.constant dense<0.000000e+00> : vector<304x128xf32>
    %19 = tpu.matmul %16, %18, %cst_15 {dimension_numbers = #tpu.dot_dimension_numbers<[1], [0], [0], [1], [0, 0, 1, 1], [], []>} : vector<304x128xbf16>, vector<128x128xbf16>, vector<304x128xf32> -> vector<304x128xf32>
    %c1 = arith.constant 1 : index
    %c0_16 = arith.constant 0 : index
    %20 = vector.load %arg8[%c1, %c0_16] : memref<12x128xf32, #tpu.memory_space<vmem>>, vector<1x128xf32>
    %21 = vector.broadcast %20 : vector<1x128xf32> to vector<304x128xf32>
    %22 = arith.addf %19, %21 : vector<304x128xf32>
    %23 = arith.truncf %22 : vector<304x128xf32> to vector<304x128xbf16>
    %cst_17 = arith.constant 0.000000e+00 : bf16
    %24 = vector.broadcast %cst_17 : bf16 to vector<304x128xbf16>
    %25 = arith.maximumf %23, %24 : vector<304x128xbf16>
    %c1_18 = arith.constant 1 : index
    %c0_19 = arith.constant 0 : index
    %c0_20 = arith.constant 0 : index
    %26 = vector.load %arg4[%c1_18, %c0_19, %c0_20] : memref<11x128x128xbf16, #tpu.memory_space<vmem>>, vector<1x128x128xbf16>
    %27 = vector.shape_cast %26 : vector<1x128x128xbf16> to vector<128x128xbf16>
    %cst_21 = arith.constant dense<0.000000e+00> : vector<304x128xf32>
    %28 = tpu.matmul %25, %27, %cst_21 {dimension_numbers = #tpu.dot_dimension_numbers<[1], [0], [0], [1], [0, 0, 1, 1], [], []>} : vector<304x128xbf16>, vector<128x128xbf16>, vector<304x128xf32> -> vector<304x128xf32>
    %c2 = arith.constant 2 : index
    %c0_22 = arith.constant 0 : index
    %29 = vector.load %arg8[%c2, %c0_22] : memref<12x128xf32, #tpu.memory_space<vmem>>, vector<1x128xf32>
    %30 = vector.broadcast %29 : vector<1x128xf32> to vector<304x128xf32>
    %31 = arith.addf %28, %30 : vector<304x128xf32>
    %32 = arith.truncf %31 : vector<304x128xf32> to vector<304x128xbf16>
    %cst_23 = arith.constant 0.000000e+00 : bf16
    %33 = vector.broadcast %cst_23 : bf16 to vector<304x128xbf16>
    %34 = arith.maximumf %32, %33 : vector<304x128xbf16>
    %c2_24 = arith.constant 2 : index
    %c0_25 = arith.constant 0 : index
    %c0_26 = arith.constant 0 : index
    %35 = vector.load %arg4[%c2_24, %c0_25, %c0_26] : memref<11x128x128xbf16, #tpu.memory_space<vmem>>, vector<1x128x128xbf16>
    %36 = vector.shape_cast %35 : vector<1x128x128xbf16> to vector<128x128xbf16>
    %cst_27 = arith.constant dense<0.000000e+00> : vector<304x128xf32>
    %37 = tpu.matmul %34, %36, %cst_27 {dimension_numbers = #tpu.dot_dimension_numbers<[1], [0], [0], [1], [0, 0, 1, 1], [], []>} : vector<304x128xbf16>, vector<128x128xbf16>, vector<304x128xf32> -> vector<304x128xf32>
    %c3 = arith.constant 3 : index
    %c0_28 = arith.constant 0 : index
    %38 = vector.load %arg8[%c3, %c0_28] : memref<12x128xf32, #tpu.memory_space<vmem>>, vector<1x128xf32>
    %39 = vector.broadcast %38 : vector<1x128xf32> to vector<304x128xf32>
    %40 = arith.addf %37, %39 : vector<304x128xf32>
    %41 = arith.truncf %40 : vector<304x128xf32> to vector<304x128xbf16>
    %cst_29 = arith.constant 0.000000e+00 : bf16
    %42 = vector.broadcast %cst_29 : bf16 to vector<304x128xbf16>
    %43 = arith.maximumf %41, %42 : vector<304x128xbf16>
    %c3_30 = arith.constant 3 : index
    %c0_31 = arith.constant 0 : index
    %c0_32 = arith.constant 0 : index
    %44 = vector.load %arg4[%c3_30, %c0_31, %c0_32] : memref<11x128x128xbf16, #tpu.memory_space<vmem>>, vector<1x128x128xbf16>
    %45 = vector.shape_cast %44 : vector<1x128x128xbf16> to vector<128x128xbf16>
    %cst_33 = arith.constant dense<0.000000e+00> : vector<304x128xf32>
    %46 = tpu.matmul %43, %45, %cst_33 {dimension_numbers = #tpu.dot_dimension_numbers<[1], [0], [0], [1], [0, 0, 1, 1], [], []>} : vector<304x128xbf16>, vector<128x128xbf16>, vector<304x128xf32> -> vector<304x128xf32>
    %c4 = arith.constant 4 : index
    %c0_34 = arith.constant 0 : index
    %47 = vector.load %arg8[%c4, %c0_34] : memref<12x128xf32, #tpu.memory_space<vmem>>, vector<1x128xf32>
    %48 = vector.broadcast %47 : vector<1x128xf32> to vector<304x128xf32>
    %49 = arith.addf %46, %48 : vector<304x128xf32>
    %50 = arith.negf %49 : vector<304x128xf32>
    %51 = math.exp %50 : vector<304x128xf32>
    %cst_35 = arith.constant 1.000000e+00 : f32
    %52 = vector.broadcast %cst_35 : f32 to vector<304x128xf32>
    %53 = arith.addf %52, %51 : vector<304x128xf32>
    %54 = arith.divf %52, %53 : vector<304x128xf32>
    %55 = arith.truncf %54 : vector<304x128xf32> to vector<304x128xbf16>
    %c4_36 = arith.constant 4 : index
    %c0_37 = arith.constant 0 : index
    %c0_38 = arith.constant 0 : index
    %56 = vector.load %arg4[%c4_36, %c0_37, %c0_38] : memref<11x128x128xbf16, #tpu.memory_space<vmem>>, vector<1x128x128xbf16>
    %57 = vector.shape_cast %56 : vector<1x128x128xbf16> to vector<128x128xbf16>
    %cst_39 = arith.constant dense<0.000000e+00> : vector<304x128xf32>
    %58 = tpu.matmul %55, %57, %cst_39 {dimension_numbers = #tpu.dot_dimension_numbers<[1], [0], [0], [1], [0, 0, 1, 1], [], []>} : vector<304x128xbf16>, vector<128x128xbf16>, vector<304x128xf32> -> vector<304x128xf32>
    %c5 = arith.constant 5 : index
    %c0_40 = arith.constant 0 : index
    %59 = vector.load %arg8[%c5, %c0_40] : memref<12x128xf32, #tpu.memory_space<vmem>>, vector<1x128xf32>
    %60 = vector.broadcast %59 : vector<1x128xf32> to vector<304x128xf32>
    %61 = arith.addf %58, %60 : vector<304x128xf32>
    %62 = arith.truncf %61 : vector<304x128xf32> to vector<304x128xbf16>
    %c0_41 = arith.constant 0 : index
    %c0_42 = arith.constant 0 : index
    %63 = vector.load %arg11[%c0_41, %c0_42] : memref<304x128xbf16, #tpu.memory_space<vmem>>, vector<304x128xbf16>
    tpu.vector_store %arg11[%c0_41, %c0_42], %62 {strides = array<i32>} : memref<304x128xbf16, #tpu.memory_space<vmem>>, vector<304x128xbf16>,
    %64 = arith.truncf %61 : vector<304x128xf32> to vector<304x128xbf16>
    %c5_43 = arith.constant 5 : index
    %c0_44 = arith.constant 0 : index
    %c0_45 = arith.constant 0 : index
    %65 = vector.load %arg4[%c5_43, %c0_44, %c0_45] : memref<11x128x128xbf16, #tpu.memory_space<vmem>>, vector<1x128x128xbf16>
    %66 = vector.shape_cast %65 : vector<1x128x128xbf16> to vector<128x128xbf16>
    %cst_46 = arith.constant dense<0.000000e+00> : vector<304x128xf32>
    %67 = tpu.matmul %64, %66, %cst_46 {dimension_numbers = #tpu.dot_dimension_numbers<[1], [0], [0], [1], [0, 0, 1, 1], [], []>} : vector<304x128xbf16>, vector<128x128xbf16>, vector<304x128xf32> -> vector<304x128xf32>
    %c6 = arith.constant 6 : index
    %c0_47 = arith.constant 0 : index
    %68 = vector.load %arg8[%c6, %c0_47] : memref<12x128xf32, #tpu.memory_space<vmem>>, vector<1x128xf32>
    %69 = vector.broadcast %68 : vector<1x128xf32> to vector<304x128xf32>
    %70 = arith.addf %67, %69 : vector<304x128xf32>
    %71 = arith.truncf %70 : vector<304x128xf32> to vector<304x128xbf16>
    %cst_48 = arith.constant 0.000000e+00 : bf16
    %72 = vector.broadcast %cst_48 : bf16 to vector<304x128xbf16>
    %73 = arith.maximumf %71, %72 : vector<304x128xbf16>
    %c6_49 = arith.constant 6 : index
    %c0_50 = arith.constant 0 : index
    %c0_51 = arith.constant 0 : index
    %74 = vector.load %arg4[%c6_49, %c0_50, %c0_51] : memref<11x128x128xbf16, #tpu.memory_space<vmem>>, vector<1x128x128xbf16>
    %75 = vector.shape_cast %74 : vector<1x128x128xbf16> to vector<128x128xbf16>
    %cst_52 = arith.constant dense<0.000000e+00> : vector<304x128xf32>
    %76 = tpu.matmul %73, %75, %cst_52 {dimension_numbers = #tpu.dot_dimension_numbers<[1], [0], [0], [1], [0, 0, 1, 1], [], []>} : vector<304x128xbf16>, vector<128x128xbf16>, vector<304x128xf32> -> vector<304x128xf32>
    %c7 = arith.constant 7 : index
    %c0_53 = arith.constant 0 : index
    %77 = vector.load %arg8[%c7, %c0_53] : memref<12x128xf32, #tpu.memory_space<vmem>>, vector<1x128xf32>
    %78 = vector.broadcast %77 : vector<1x128xf32> to vector<304x128xf32>
    %79 = arith.addf %76, %78 : vector<304x128xf32>
    %80 = arith.truncf %79 : vector<304x128xf32> to vector<304x128xbf16>
    %cst_54 = arith.constant 0.000000e+00 : bf16
    %81 = vector.broadcast %cst_54 : bf16 to vector<304x128xbf16>
    %82 = arith.maximumf %80, %81 : vector<304x128xbf16>
    %c7_55 = arith.constant 7 : index
    %c0_56 = arith.constant 0 : index
    %c0_57 = arith.constant 0 : index
    %83 = vector.load %arg4[%c7_55, %c0_56, %c0_57] : memref<11x128x128xbf16, #tpu.memory_space<vmem>>, vector<1x128x128xbf16>
    %84 = vector.shape_cast %83 : vector<1x128x128xbf16> to vector<128x128xbf16>
    %cst_58 = arith.constant dense<0.000000e+00> : vector<304x128xf32>
    %85 = tpu.matmul %82, %84, %cst_58 {dimension_numbers = #tpu.dot_dimension_numbers<[1], [0], [0], [1], [0, 0, 1, 1], [], []>} : vector<304x128xbf16>, vector<128x128xbf16>, vector<304x128xf32> -> vector<304x128xf32>
    %c8 = arith.constant 8 : index
    %c0_59 = arith.constant 0 : index
    %86 = vector.load %arg8[%c8, %c0_59] : memref<12x128xf32, #tpu.memory_space<vmem>>, vector<1x128xf32>
    %87 = vector.broadcast %86 : vector<1x128xf32> to vector<304x128xf32>
    %88 = arith.addf %85, %87 : vector<304x128xf32>
    %89 = arith.truncf %88 : vector<304x128xf32> to vector<304x128xbf16>
    %cst_60 = arith.constant 0.000000e+00 : bf16
    %90 = vector.broadcast %cst_60 : bf16 to vector<304x128xbf16>
    %91 = arith.maximumf %89, %90 : vector<304x128xbf16>
    %c8_61 = arith.constant 8 : index
    %c0_62 = arith.constant 0 : index
    %c0_63 = arith.constant 0 : index
    %92 = vector.load %arg4[%c8_61, %c0_62, %c0_63] : memref<11x128x128xbf16, #tpu.memory_space<vmem>>, vector<1x128x128xbf16>
    %93 = vector.shape_cast %92 : vector<1x128x128xbf16> to vector<128x128xbf16>
    %cst_64 = arith.constant dense<0.000000e+00> : vector<304x128xf32>
    %94 = tpu.matmul %91, %93, %cst_64 {dimension_numbers = #tpu.dot_dimension_numbers<[1], [0], [0], [1], [0, 0, 1, 1], [], []>} : vector<304x128xbf16>, vector<128x128xbf16>, vector<304x128xf32> -> vector<304x128xf32>
    %c9 = arith.constant 9 : index
    %c0_65 = arith.constant 0 : index
    %95 = vector.load %arg8[%c9, %c0_65] : memref<12x128xf32, #tpu.memory_space<vmem>>, vector<1x128xf32>
    %96 = vector.broadcast %95 : vector<1x128xf32> to vector<304x128xf32>
    %97 = arith.addf %94, %96 : vector<304x128xf32>
    %98 = arith.truncf %97 : vector<304x128xf32> to vector<304x128xbf16>
    %cst_66 = arith.constant 0.000000e+00 : bf16
    %99 = vector.broadcast %cst_66 : bf16 to vector<304x128xbf16>
    %100 = arith.maximumf %98, %99 : vector<304x128xbf16>
    %c9_67 = arith.constant 9 : index
    %c0_68 = arith.constant 0 : index
    %c0_69 = arith.constant 0 : index
    %101 = vector.load %arg4[%c9_67, %c0_68, %c0_69] : memref<11x128x128xbf16, #tpu.memory_space<vmem>>, vector<1x128x128xbf16>
    %102 = vector.shape_cast %101 : vector<1x128x128xbf16> to vector<128x128xbf16>
    %cst_70 = arith.constant dense<0.000000e+00> : vector<304x128xf32>
    %103 = tpu.matmul %100, %102, %cst_70 {dimension_numbers = #tpu.dot_dimension_numbers<[1], [0], [0], [1], [0, 0, 1, 1], [], []>} : vector<304x128xbf16>, vector<128x128xbf16>, vector<304x128xf32> -> vector<304x128xf32>
    %c10 = arith.constant 10 : index
    %c0_71 = arith.constant 0 : index
    %104 = vector.load %arg8[%c10, %c0_71] : memref<12x128xf32, #tpu.memory_space<vmem>>, vector<1x128xf32>
    %105 = vector.broadcast %104 : vector<1x128xf32> to vector<304x128xf32>
    %106 = arith.addf %103, %105 : vector<304x128xf32>
    %107 = arith.truncf %106 : vector<304x128xf32> to vector<304x128xbf16>
    %cst_72 = arith.constant 0.000000e+00 : bf16
    %108 = vector.broadcast %cst_72 : bf16 to vector<304x128xbf16>
    %109 = arith.maximumf %107, %108 : vector<304x128xbf16>
    %c10_73 = arith.constant 10 : index
    %c0_74 = arith.constant 0 : index
    %c0_75 = arith.constant 0 : index
    %110 = vector.load %arg4[%c10_73, %c0_74, %c0_75] : memref<11x128x128xbf16, #tpu.memory_space<vmem>>, vector<1x128x128xbf16>
    %111 = vector.shape_cast %110 : vector<1x128x128xbf16> to vector<128x128xbf16>
    %cst_76 = arith.constant dense<0.000000e+00> : vector<304x128xf32>
    %112 = tpu.matmul %109, %111, %cst_76 {dimension_numbers = #tpu.dot_dimension_numbers<[1], [0], [0], [1], [0, 0, 1, 1], [], []>} : vector<304x128xbf16>, vector<128x128xbf16>, vector<304x128xf32> -> vector<304x128xf32>
    %c11 = arith.constant 11 : index
    %c0_77 = arith.constant 0 : index
    %113 = vector.load %arg8[%c11, %c0_77] : memref<12x128xf32, #tpu.memory_space<vmem>>, vector<1x128xf32>
    %114 = vector.broadcast %113 : vector<1x128xf32> to vector<304x128xf32>
    %115 = arith.addf %112, %114 : vector<304x128xf32>
    %116 = arith.truncf %115 : vector<304x128xf32> to vector<304x128xbf16>
    %cst_78 = arith.constant 0.000000e+00 : bf16
    %117 = vector.broadcast %cst_78 : bf16 to vector<304x128xbf16>
    %118 = arith.maximumf %116, %117 : vector<304x128xbf16>
    %c0_79 = arith.constant 0 : index
    %c0_80 = arith.constant 0 : index
    %119 = vector.load %arg5[%c0_79, %c0_80] : memref<128x256xbf16, #tpu.memory_space<vmem>>, vector<128x256xbf16>
    %cst_81 = arith.constant dense<0.000000e+00> : vector<304x256xf32>
    %120 = tpu.matmul %118, %119, %cst_81 {dimension_numbers = #tpu.dot_dimension_numbers<[1], [0], [0], [1], [0, 0, 1, 1], [], []>} : vector<304x128xbf16>, vector<128x256xbf16>, vector<304x256xf32> -> vector<304x256xf32>
    %c1_82 = arith.constant 1 : index
    %c0_83 = arith.constant 0 : index
    %121 = vector.load %arg7[%c1_82, %c0_83] : memref<2x256xf32, #tpu.memory_space<vmem>>, vector<1x256xf32>
    %122 = vector.broadcast %121 : vector<1x256xf32> to vector<304x256xf32>
    %123 = arith.addf %120, %122 : vector<304x256xf32>
    %124 = arith.negf %123 : vector<304x256xf32>
    %125 = math.exp %124 : vector<304x256xf32>
    %cst_84 = arith.constant 1.000000e+00 : f32
    %126 = vector.broadcast %cst_84 : f32 to vector<304x256xf32>
    %127 = arith.addf %126, %125 : vector<304x256xf32>
    %128 = arith.divf %126, %127 : vector<304x256xf32>
    %129 = arith.truncf %128 : vector<304x256xf32> to vector<304x256xbf16>
    %c0_85 = arith.constant 0 : index
    %c0_86 = arith.constant 0 : index
    %130 = vector.load %arg6[%c0_85, %c0_86] : memref<256x384xbf16, #tpu.memory_space<vmem>>, vector<256x384xbf16>
    %cst_87 = arith.constant dense<0.000000e+00> : vector<304x384xf32>
    %131 = tpu.matmul %129, %130, %cst_87 {dimension_numbers = #tpu.dot_dimension_numbers<[1], [0], [0], [1], [0, 0, 1, 1], [], []>} : vector<304x256xbf16>, vector<256x384xbf16>, vector<304x384xf32> -> vector<304x384xf32>
    %c0_88 = arith.constant 0 : index
    %c0_89 = arith.constant 0 : index
    %132 = vector.load %arg9[%c0_88, %c0_89] : memref<1x384xf32, #tpu.memory_space<vmem>>, vector<1x384xf32>
    %133 = vector.broadcast %132 : vector<1x384xf32> to vector<304x384xf32>
    %134 = arith.addf %131, %133 : vector<304x384xf32>
    %135 = arith.truncf %134 : vector<304x384xf32> to vector<304x384xbf16>
    %c0_90 = arith.constant 0 : index
    %c0_91 = arith.constant 0 : index
    %136 = vector.load %arg10[%c0_90, %c0_91] : memref<304x384xbf16, #tpu.memory_space<vmem>>, vector<304x384xbf16>
    tpu.vector_store %arg10[%c0_90, %c0_91], %135 {strides = array<i32>} : memref<304x384xbf16, #tpu.memory_space<vmem>>, vector<304x384xbf16>,
    return
  }
  func.func @transform_0(%arg0: i32) -> (i32, i32) {
    %c0_i32 = arith.constant 0 : i32
    %c0_i32_0 = arith.constant 0 : i32
    return %arg0, %c0_i32 : i32, i32
  }
  func.func @transform_1(%arg0: i32) -> (i32, i32) {
    %c0_i32 = arith.constant 0 : i32
    %c0_i32_0 = arith.constant 0 : i32
    %c0_i32_1 = arith.constant 0 : i32
    return %c0_i32, %c0_i32_0 : i32, i32
  }
  func.func @transform_2(%arg0: i32) -> (i32, i32) {
    %c0_i32 = arith.constant 0 : i32
    %c0_i32_0 = arith.constant 0 : i32
    %c0_i32_1 = arith.constant 0 : i32
    return %c0_i32, %c0_i32_0 : i32, i32
  }
  func.func @transform_3(%arg0: i32) -> (i32, i32, i32) {
    %c0_i32 = arith.constant 0 : i32
    %c0_i32_0 = arith.constant 0 : i32
    %c0_i32_1 = arith.constant 0 : i32
    %c0_i32_2 = arith.constant 0 : i32
    return %c0_i32, %c0_i32_0, %c0_i32_1 : i32, i32, i32
  }
  func.func @transform_4(%arg0: i32) -> (i32, i32) {
    %c0_i32 = arith.constant 0 : i32
    %c0_i32_0 = arith.constant 0 : i32
    %c0_i32_1 = arith.constant 0 : i32
    return %c0_i32, %c0_i32_0 : i32, i32
  }
  func.func @transform_5(%arg0: i32) -> (i32, i32) {
    %c0_i32 = arith.constant 0 : i32
    %c0_i32_0 = arith.constant 0 : i32
    %c0_i32_1 = arith.constant 0 : i32
    return %c0_i32, %c0_i32_0 : i32, i32
  }
  func.func @transform_6(%arg0: i32) -> (i32, i32) {
    %c0_i32 = arith.constant 0 : i32
    %c0_i32_0 = arith.constant 0 : i32
    %c0_i32_1 = arith.constant 0 : i32
    return %c0_i32, %c0_i32_0 : i32, i32
  }
  func.func @transform_7(%arg0: i32) -> (i32, i32) {
    %c0_i32 = arith.constant 0 : i32
    %c0_i32_0 = arith.constant 0 : i32
    %c0_i32_1 = arith.constant 0 : i32
    return %c0_i32, %c0_i32_0 : i32, i32
  }
  func.func @transform_8(%arg0: i32) -> (i32, i32) {
    %c0_i32 = arith.constant 0 : i32
    %c0_i32_0 = arith.constant 0 : i32
    %c0_i32_1 = arith.constant 0 : i32
    return %c0_i32, %c0_i32_0 : i32, i32
  }
  func.func @transform_9(%arg0: i32) -> (i32, i32) {
    %c0_i32 = arith.constant 0 : i32
    %c0_i32_0 = arith.constant 0 : i32
    return %arg0, %c0_i32 : i32, i32
  }
  func.func @transform_10(%arg0: i32) -> (i32, i32) {
    %c0_i32 = arith.constant 0 : i32
    %c0_i32_0 = arith.constant 0 : i32
    return %arg0, %c0_i32 : i32, i32
  }
}

</mosaic_0001>

<bundles_post_ra>
// kernel: net_forward.1
= control target key start
LH: loop header
LB: loop body
LE: loop exit
PB: predicated region body
PF: predicated region fallthrough
CT: control target
= control target key end

     0   :  { %s11709_s13 = smov 0   ;;  %s17169_s0 = inlined_call_operand.vmem [shape: bf16[608,384], index: 0, kind: input, shape index: {}]   ;;  %s17170_s1 = inlined_call_operand.vmem [shape: bf16[384,256], index: 1, kind: input, shape index: {}]   ;;  %s17171_s2 = inlined_call_operand.vmem [shape: bf16[256,128], index: 2, kind: input, shape index: {}]   ;;  %s17172_s3 = inlined_call_operand.vmem [shape: bf16[11,128,128], index: 3, kind: input, shape index: {}]   ;;  %s17173_s4 = inlined_call_operand.vmem [shape: bf16[128,256], index: 4, kind: input, shape index: {}]   ;;  %s17174_s5 = inlined_call_operand.vmem [shape: bf16[256,384], index: 5, kind: input, shape index: {}]   ;;  %s17175_s6 = inlined_call_operand.vmem [shape: f32[2,256], index: 6, kind: input, shape index: {}]   ;;  %s17176_s7 = inlined_call_operand.vmem [shape: f32[12,128], index: 7, kind: input, shape index: {}]   ;;  %s17177_s8 = inlined_call_operand.vmem [shape: f32[1,384], index: 8, kind: input, shape index: {}]   ;;  %s17178_s9 = inlined_call_operand.vmem [shape: bf16[608,384], index: 9, kind: output, shape index: {0}]   ;;  %s17179_s10 = inlined_call_operand.vmem [shape: bf16[608,128], index: 10, kind: output, shape index: {1}]  }
   0x1 LB: > { %s9376_s14 = sadd.s32 4294967295, %s11652_s13   ;;  %p9380_p0 = scmp.ge.s32.totalorder %s11652_s13, 1  ;;  %s11652_s13 = sphi %s11709_s13, %s21_s13  }
   0x2   : > { %p317_p1 = scmp.lt.s32.totalorder %s11652_s13, 3 }
   0x4   : > { %p318_p2 = pnand %p9380_p0, %p317_p1 }
   0x6   : > { %321 = sbr.rel (%p318_p2) target bundleno = 3239 (0xca7), region = 56 }
   0xb   : > { %v9670_v0 = vld [vmem:[%s17170_s1 + $0x70] sm:$0xf]  ;;  %v10825_v1 = vld [vmem:[%s17170_s1 + $0x74] sm:$0xf0]  ;;  %v9662_v9 = vld [vmem:[%s17170_s1 + $0x60] sm:$0xf] }
   0xc   : > { %v9798_v2 = vld [vmem:[%s17170_s1 + $0x170] sm:$0xf]  ;;  %v9671_v3 = vor.u32 %v10825_v1, %v9670_v0  ;;  %v10857_v4 = vld [vmem:[%s17170_s1 + $0x174] sm:$0xf0]  ;;  %v10823_v10 = vld [vmem:[%s17170_s1 + $0x64] sm:$0xf0] }
   0xd   : > { %v9734_v5 = vld [vmem:[%s17170_s1 + $0xf0] sm:$0xf]  ;;  %v10841_v6 = vld [vmem:[%s17170_s1 + $0xf4] sm:$0xf0]  ;;  %v11735_v7 = vor.u32 %v10857_v4, %v9798_v2  ;;  %v9790_v11 = vld [vmem:[%s17170_s1 + $0x160] sm:$0xf]  ;;  %v9663_v12 = vor.u32 %v10823_v10, %v9662_v9 }
   0xe   : > { %v11737_v8 = vor.u32 %v10841_v6, %v9734_v5  ;;  %1056 = vmatpush.bf16.msra.mxu0 %v9671_v3  ;;  %11139 = vmatpush.bf16.msra.mxu3 %v9671_v3  ;;  %v10855_v13 = vld [vmem:[%s17170_s1 + $0x164] sm:$0xf0]  ;;  %v9726_v14 = vld [vmem:[%s17170_s1 + $0xe0] sm:$0xf]  ;;  %v9654_v18 = vld [vmem:[%s17170_s1 + $0x50] sm:$0xf] }
   0xf   : > { %v10839_v15 = vld [vmem:[%s17170_s1 + $0xe4] sm:$0xf0]  ;;  %1264 = vmatpush.bf16.msra.mxu2 %v11735_v7  ;;  %v11759_v16 = vor.u32 %v10855_v13, %v9790_v11  ;;  %v10821_v19 = vld [vmem:[%s17170_s1 + $0x54] sm:$0xf0]  ;;  %v9782_v20 = vld [vmem:[%s17170_s1 + $0x150] sm:$0xf] }
  0x10   : > { %1160 = vmatpush.bf16.msra.mxu1 %v11737_v8  ;;  %v11761_v17 = vor.u32 %v10839_v15, %v9726_v14  ;;  %v10853_v21 = vld [vmem:[%s17170_s1 + $0x154] sm:$0xf0]  ;;  %v9718_v22 = vld [vmem:[%s17170_s1 + $0xd0] sm:$0xf]  ;;  %v9655_v24 = vor.u32 %v10821_v19, %v9654_v18  ;;  %v9646_v27 = vld [vmem:[%s17170_s1 + $0x40] sm:$0xf] }
  0x11   : > { %v10837_v23 = vld [vmem:[%s17170_s1 + $0xd4] sm:$0xf0]  ;;  %v11783_v25 = vor.u32 %v10853_v21, %v9782_v20  ;;  %v10819_v28 = vld [vmem:[%s17170_s1 + $0x44] sm:$0xf0]  ;;  %v9774_v29 = vld [vmem:[%s17170_s1 + $0x140] sm:$0xf] }
  0x12   : > { %1057 = vmatpush.bf16.msra.mxu0 %v9663_v12  ;;  %11140 = vmatpush.bf16.msra.mxu3 %v9663_v12  ;;  %v11785_v26 = vor.u32 %v10837_v23, %v9718_v22  ;;  %v10851_v30 = vld [vmem:[%s17170_s1 + $0x144] sm:$0xf0]  ;;  %v9710_v31 = vld [vmem:[%s17170_s1 + $0xc0] sm:$0xf]  ;;  %v9647_v33 = vor.u32 %v10819_v28, %v9646_v27  ;;  %v9638_v36 = vld [vmem:[%s17170_s1 + $0x30] sm:$0xf] }
  0x13   : > { %1265 = vmatpush.bf16.msra.mxu2 %v11759_v16  ;;  %v10835_v32 = vld [vmem:[%s17170_s1 + $0xc4] sm:$0xf0]  ;;  %v11807_v34 = vor.u32 %v10851_v30, %v9774_v29  ;;  %v10817_v37 = vld [vmem:[%s17170_s1 + $0x34] sm:$0xf0]  ;;  %v9766_v38 = vld [vmem:[%s17170_s1 + $0x130] sm:$0xf] }
  0x14   : > { %1161 = vmatpush.bf16.msra.mxu1 %v11761_v17  ;;  %v11809_v35 = vor.u32 %v10835_v32, %v9710_v31  ;;  %v10849_v39 = vld [vmem:[%s17170_s1 + $0x134] sm:$0xf0]  ;;  %v9702_v40 = vld [vmem:[%s17170_s1 + $0xb0] sm:$0xf]  ;;  %v9630_v42 = vld [vmem:[%s17170_s1 + $0x20] sm:$0xf]  ;;  %v9639_v44 = vor.u32 %v10817_v37, %v9638_v36 }
  0x15   : > { %v10833_v41 = vld [vmem:[%s17170_s1 + $0xb4] sm:$0xf0]  ;;  %v10815_v43 = vld [vmem:[%s17170_s1 + $0x24] sm:$0xf0]  ;;  %v9758_v45 = vld [vmem:[%s17170_s1 + $0x120] sm:$0xf]  ;;  %v11849_v49 = vor.u32 %v10849_v39, %v9766_v38 }
  0x16   : > { %1058 = vmatpush.bf16.msra.mxu0 %v9655_v24  ;;  %11141 = vmatpush.bf16.msra.mxu3 %v9655_v24  ;;  %v10847_v46 = vld [vmem:[%s17170_s1 + $0x124] sm:$0xf0]  ;;  %v9694_v47 = vld [vmem:[%s17170_s1 + $0xa0] sm:$0xf]  ;;  %v11851_v50 = vor.u32 %v10833_v41, %v9702_v40  ;;  %s362_s15 = smul.u32 38, %s9376_s14  ;;  %v9631_v53 = vor.u32 %v10815_v43, %v9630_v42 }
  0x17   : > { %1266 = vmatpush.bf16.msra.mxu2 %v11783_v25  ;;  %v10831_v48 = vld [vmem:[%s17170_s1 + $0xa4] sm:$0xf0]  ;;  %v9622_v51 = vld [vmem:[%s17170_s1 + $0x10] sm:$0xf]  ;;  %v10813_v52 = vld [vmem:[%s17170_s1 + $0x14] sm:$0xf0]  ;;  %v11866_v55 = vor.u32 %v10847_v46, %v9758_v45 }
  0x18   : > { %1162 = vmatpush.bf16.msra.mxu1 %v11785_v26  ;;  %p363_p3 = scmp.lt.s32.totalorder %s362_s15, 75  ;;  %v9750_v54 = vld [vmem:[%s17170_s1 + $0x110] sm:$0xf]  ;;  %v11868_v56 = vor.u32 %v10831_v48, %v9694_v47  ;;  %v10845_v57 = vld [vmem:[%s17170_s1 + $0x114] sm:$0xf0]  ;;  %v9623_v60 = vor.u32 %v10813_v52, %v9622_v51 }
  0x19   : > { %v9686_v58 = vld [vmem:[%s17170_s1 + $0x90] sm:$0xf]  ;;  %v10829_v59 = vld [vmem:[%s17170_s1 + $0x94] sm:$0xf0]  ;;  %v11884_v61 = vor.u32 %v10845_v57, %v9750_v54  ;;  %v9614_v63 = vld [vmem:[%s17170_s1] sm:$0xf] }
  0x1a   : > { %1059 = vmatpush.bf16.msra.mxu0 %v9647_v33  ;;  %11142 = vmatpush.bf16.msra.mxu3 %v9647_v33  ;;  %s17586_s15 = smov (!%p363_p3, %s362_s15), 75  ;;  %v9687_v62 = vor.u32 %v10829_v59, %v9686_v58  ;;  %v10811_v0 = vld [vmem:[%s17170_s1 + $0x4] sm:$0xf0]  ;;  %v9742_v1 = vld [vmem:[%s17170_s1 + $0x100] sm:$0xf] }
  0x1b   : > { %1267 = vmatpush.bf16.msra.mxu2 %v11807_v34  ;;  %s11163_s27 = smul.u32 12, %s17586_s15  ;;  %v10843_v2 = vld [vmem:[%s17170_s1 + $0x104] sm:$0xf0]  ;;  %v9678_v3 = vld [vmem:[%s17170_s1 + $0x80] sm:$0xf]  ;;  %v9615_v9 = vor.u32 %v10811_v0, %v9614_v63 }
  0x1c   : > { %1163 = vmatpush.bf16.msra.mxu1 %v11809_v35  ;;  %v10827_v4 = vld [vmem:[%s17170_s1 + $0x84] sm:$0xf0]  ;;  %v11917_v13 = vor.u32 %v10843_v2, %v9742_v1 }
  0x1d   : > { %s11900_s19 = scalar_lea.vmem %s17169_s0, %s11163_s27  ;;  %v9679_v14 = vor.u32 %v10827_v4, %v9678_v3  ;;  %v10840_v4 = vld [vmem:[%s17170_s1 + $0xf4] sm:$0xf]  ;;  %s16680_s26 = scalar_lea.vmem %s17178_s9, %s11163_s27 }
  0x1e   : > { %1060 = vmatpush.bf16.msra.mxu0 %v9639_v44  ;;  %11143 = vmatpush.bf16.msra.mxu3 %v9639_v44  ;;  %v9386_v5 = vld [vmem:[%s11900_s19] sm:$0xf]  ;;  %v10754_v6 = vld [vmem:[%s11900_s19 + $0x8] sm:$0xf0]  ;;  %v9566_v10 = vld [vmem:[%s11900_s19 + $0x168] sm:$0xf] }
  0x1f   : > { %1268 = vmatpush.bf16.msra.mxu2 %v11849_v49  ;;  %v10799_v11 = vld [vmem:[%s11900_s19 + $0x170] sm:$0xf0]  ;;  %v9394_v12 = vld [vmem:[%s11900_s19 + $0x8] sm:$0xf]  ;;  %v10753_v18 = vld [vmem:[%s11900_s19 + $0x4] sm:$0xf]  ;;  %v11922_v20 = vor.u32 %v10754_v6, %v9386_v5 }
  0x20   : > { %1164 = vmatpush.bf16.msra.mxu1 %v11851_v50  ;;  %v10755_v15 = vld [vmem:[%s11900_s19 + $0x10] sm:$0xf0]  ;;  %v9388_v19 = vld [vmem:[%s11900_s19 + $0xc] sm:$0xf0]  ;;  %v11924_v21 = vor.u32 %v10799_v11, %v9566_v10  ;;  %v9398_v24 = vld [vmem:[%s11900_s19 + $0x18] sm:$0xf] }
  0x21   : > { %v11926_v22 = vor.u32 %v10755_v15, %v9394_v12  ;;  %v11928_v23 = vor.u32 %v10753_v18, %v9388_v19  ;;  %v10757_v27 = vld [vmem:[%s11900_s19 + $0x20] sm:$0xf0]  ;;  %v9578_v28 = vld [vmem:[%s11900_s19 + $0x180] sm:$0xf]  ;;  %v10802_v29 = vld [vmem:[%s11900_s19 + $0x188] sm:$0xf0] }
  0x22   : > { %1061 = vmatpush.bf16.msra.mxu0 %v9631_v53  ;;  %11144 = vmatpush.bf16.msra.mxu3 %v9631_v53  ;;  %17247 = vst [vmem:[#allocation2_spill] sm:$0xff] %v11924_v21  ;;  %v9406_v30 = vld [vmem:[%s11900_s19 + $0x20] sm:$0xf]  ;;  %v10758_v31 = vld [vmem:[%s11900_s19 + $0x28] sm:$0xf0]  ;;  %v11947_v33 = vor.u32 %v10757_v27, %v9398_v24 }
  0x23   : > { %1269 = vmatpush.bf16.msra.mxu2 %v11866_v55  ;;  %v9400_v32 = vld [vmem:[%s11900_s19 + $0x24] sm:$0xf0]  ;;  %v10760_v37 = vld [vmem:[%s11900_s19 + $0x38] sm:$0xf0]  ;;  %v9590_v38 = vld [vmem:[%s11900_s19 + $0x198] sm:$0xf] }
  0x24   : > { %1165 = vmatpush.bf16.msra.mxu1 %v11868_v56  ;;  %v10805_v39 = vld [vmem:[%s11900_s19 + $0x1a0] sm:$0xf0]  ;;  %v9418_v40 = vld [vmem:[%s11900_s19 + $0x38] sm:$0xf]  ;;  %v10759_v42 = vld [vmem:[%s11900_s19 + $0x34] sm:$0xf] }
  0x25   : > { %v10761_v41 = vld [vmem:[%s11900_s19 + $0x40] sm:$0xf0]  ;;  %v9412_v43 = vld [vmem:[%s11900_s19 + $0x3c] sm:$0xf0]  ;;  %v11971_v45 = vor.u32 %v10805_v39, %v9590_v38  ;;  %v9422_v48 = vld [vmem:[%s11900_s19 + $0x48] sm:$0xf] }
  0x26   : > { %1062 = vmatpush.bf16.msra.mxu0 %v9623_v60  ;;  %11145 = vmatpush.bf16.msra.mxu3 %v9623_v60  ;;  %v11974_v46 = vor.u32 %v10761_v41, %v9418_v40  ;;  %v11976_v47 = vor.u32 %v10759_v42, %v9412_v43  ;;  %v10808_v51 = vld [vmem:[%s11900_s19 + $0x1b8] sm:$0xf0]  ;;  %v9430_v52 = vld [vmem:[%s11900_s19 + $0x50] sm:$0xf]  ;;  %v10762_v54 = vld [vmem:[%s11900_s19 + $0x4c] sm:$0xf] }
  0x27   : > { %1270 = vmatpush.bf16.msra.mxu2 %v11884_v61  ;;  %17249 = vst [vmem:[#allocation4_spill] sm:$0xff] %v11971_v45  ;;  %v10764_v53 = vld [vmem:[%s11900_s19 + $0x58] sm:$0xf0]  ;;  %v10766_v59 = vld [vmem:[%s11900_s19 + $0x68] sm:$0xf0] }
  0x28   : > { %1166 = vmatpush.bf16.msra.mxu1 %v9687_v62  ;;  %v10798_v60 = vld [vmem:[%s11900_s19 + $0x16c] sm:$0xf]  ;;  %v9442_v63 = vld [vmem:[%s11900_s19 + $0x68] sm:$0xf]  ;;  %v10767_v0 = vld [vmem:[%s11900_s19 + $0x70] sm:$0xf0] }
  0x29   : > { %v9436_v1 = vld [vmem:[%s11900_s19 + $0x6c] sm:$0xf0]  ;;  %v9736_v5 = vld [vmem:[%s17170_s1 + $0xf8] sm:$0xf0]  ;;  %v10769_v10 = vld [vmem:[%s11900_s19 + $0x80] sm:$0xf0] }
  0x2a   : > { %1063 = vmatpush.bf16.msra.mxu0 %v9615_v9  ;;  %11146 = vmatpush.bf16.msra.mxu3 %v9615_v9  ;;  %v9739_v6 = vor.u32 %v10840_v4, %v9736_v5  ;;  %v9446_v9 = vld [vmem:[%s11900_s19 + $0x78] sm:$0xf]  ;;  %v10801_v11 = vld [vmem:[%s11900_s19 + $0x184] sm:$0xf]  ;;  %v9580_v12 = vld [vmem:[%s11900_s19 + $0x18c] sm:$0xf0] }
  0x2b   : > { %1271 = vmatpush.bf16.msra.mxu2 %v11917_v13  ;;  %v10768_v15 = vld [vmem:[%s11900_s19 + $0x7c] sm:$0xf]  ;;  %v9448_v18 = vld [vmem:[%s11900_s19 + $0x84] sm:$0xf0]  ;;  %v12043_v19 = vor.u32 %v10769_v10, %v9446_v9  ;;  %v12045_v24 = vor.u32 %v10801_v11, %v9580_v12  ;;  %v9466_v38 = vld [vmem:[%s11900_s19 + $0x98] sm:$0xf] }
  0x2c   : > { %1167 = vmatpush.bf16.msra.mxu1 %v9679_v14  ;;  %v10773_v39 = vld [vmem:[%s11900_s19 + $0xa0] sm:$0xf0]  ;;  %v10771_v40 = vld [vmem:[%s11900_s19 + $0x94] sm:$0xf]  ;;  %v9460_v41 = vld [vmem:[%s11900_s19 + $0x9c] sm:$0xf0] }
  0x2d   : > { %1064 = vmatmul.bf16.vlgmr.msra.gmra.mxu0 %v11922_v20  ;;  %1139 = vmatmul.bf16.vlgmr.msra.gmra.mxu3 %v11924_v21  ;;  %17256 = vst [vmem:[#allocation11_spill] sm:$0xff] %v12045_v24  ;;  %v10776_v4 = vld [vmem:[%s11900_s19 + $0xb8] sm:$0xf0]  ;;  %v10774_v5 = vld [vmem:[%s11900_s19 + $0xac] sm:$0xf] }
  0x2e   : > { %11147 = vmatpush.bf16.msrb.mxu3 %v11737_v8  ;;  %1272 = vmatmul.bf16.vlgmr.msra.gmra.mxu2 %v11926_v22  ;;  %v10756_v8 = vld [vmem:[%s11900_s19 + $0x1c] sm:$0xf]  ;;  %v10786_v21 = vld [vmem:[%s11900_s19 + $0x10c] sm:$0xf] }
  0x2f   : > { %1168 = vmatmul.bf16.vlgmr.msra.gmra.mxu1 %v11928_v23  ;;  %v11953_v36 = vor.u32 %v10756_v8, %v9400_v32  ;;  %1472 = vmatpush.bf16.msrb.mxu0 %v9739_v6  ;;  %v9458_v8 = vld [vmem:[%s11900_s19 + $0x90] sm:$0xf]  ;;  %v10772_v32 = vld [vmem:[%s11900_s19 + $0x98] sm:$0xf0]  ;;  %v9472_v6 = vld [vmem:[%s11900_s19 + $0xb4] sm:$0xf0] }
  0x30   : > { %v12069_v42 = vor.u32 %v10772_v32, %v9458_v8  ;;  %v12113_v12 = vor.u32 %v10774_v5, %v9472_v6  ;;  %v10778_v8 = vld [vmem:[%s11900_s19 + $0xc8] sm:$0xf0]  ;;  %v10818_v32 = vld [vmem:[%s17170_s1 + $0x44] sm:$0xf] }
  0x32   : > { %11148 = vmatpush.bf16.msrb.mxu3 %v11761_v17  ;;  %v11949_v17 = vor.u32 %v10802_v29, %v9578_v28  ;;  %v12049_v28 = vor.u32 %v10768_v15, %v9448_v18  ;;  %v10856_v29 = vld [vmem:[%s17170_s1 + $0x174] sm:$0xf]  ;;  %17259 = vst [vmem:[#allocation14_spill] sm:$0xff] %v12069_v42  ;;  %v10854_v15 = vld [vmem:[%s17170_s1 + $0x164] sm:$0xf] }
  0x33   : > { %17266 = vst [vmem:[#allocation21_spill] sm:$0xff] %v12113_v12 }
  0x34   : > { %17248 = vst [vmem:[#allocation3_spill] sm:$0xff] %v11949_v17 }
  0x35   : > { %17258 = vst [vmem:[#allocation13_spill] sm:$0xff] %v12049_v28 }
  0x36   : > { %11149 = vmatpush.bf16.msrb.mxu3 %v11785_v26  ;;  %v11951_v26 = vor.u32 %v10758_v31, %v9406_v30  ;;  %v9800_v30 = vld [vmem:[%s17170_s1 + $0x178] sm:$0xf0] }
  0x37   : > { %v9803_v31 = vor.u32 %v10856_v29, %v9800_v30  ;;  %v9792_v29 = vld [vmem:[%s17170_s1 + $0x168] sm:$0xf0] }
  0x38   : > { %v9795_v30 = vor.u32 %v10854_v15, %v9792_v29  ;;  %v10781_v15 = vld [vmem:[%s11900_s19 + $0xe0] sm:$0xf0]  ;;  %v9632_v29 = vld [vmem:[%s17170_s1 + $0x28] sm:$0xf0] }
  0x39   : > { %1576 = vmatpush.bf16.msrb.mxu1 %v9803_v31  ;;  %v9482_v31 = vld [vmem:[%s11900_s19 + $0xc0] sm:$0xf] }
  0x3a   : > { %11150 = vmatpush.bf16.msrb.mxu3 %v11809_v35  ;;  %v9410_v35 = vld [vmem:[%s11900_s19 + $0x30] sm:$0xf] }
  0x3b   : > { %v11969_v44 = vor.u32 %v10760_v37, %v9410_v35  ;;  %v10804_v35 = vld [vmem:[%s11900_s19 + $0x19c] sm:$0xf]  ;;  %v9592_v37 = vld [vmem:[%s11900_s19 + $0x1a4] sm:$0xf0] }
  0x3c   : > { %v12071_v43 = vor.u32 %v10804_v35, %v9592_v37  ;;  %v9648_v35 = vld [vmem:[%s17170_s1 + $0x48] sm:$0xf0]  ;;  %v9490_v37 = vld [vmem:[%s11900_s19 + $0xc8] sm:$0xf] }
  0x3d   : > { %1069 = vmatmul.bf16.gmra.mxu0 %v11947_v33  ;;  %1144 = vmatmul.bf16.gmra.mxu3 %v11949_v17  ;;  %v10788_v17 = vld [vmem:[%s11900_s19 + $0x118] sm:$0xf0] }
  0x3e   : > { %11151 = vmatpush.bf16.msrb.mxu3 %v11851_v50  ;;  %1277 = vmatmul.bf16.gmra.mxu2 %v11951_v26  ;;  %v10763_v50 = vld [vmem:[%s11900_s19 + $0x50] sm:$0xf0]  ;;  %17260 = vst [vmem:[#allocation15_spill] sm:$0xff] %v12071_v43 }
  0x3f   : > { %1173 = vmatmul.bf16.gmra.mxu1 %v11953_v36  ;;  %v11993_v57 = vor.u32 %v10763_v50, %v9422_v48  ;;  %v12073_v48 = vor.u32 %v10773_v39, %v9466_v38  ;;  %v12075_v50 = vor.u32 %v10771_v40, %v9460_v41  ;;  %v9574_v38 = vld [vmem:[%s11900_s19 + $0x170] sm:$0xf]  ;;  %v10800_v39 = vld [vmem:[%s11900_s19 + $0x178] sm:$0xf0]  ;;  %v9651_v40 = vor.u32 %v10818_v32, %v9648_v35  ;;  %v10779_v41 = vld [vmem:[%s11900_s19 + $0xd0] sm:$0xf0] }
  0x40   : > { %1577 = vmatpush.bf16.msrb.mxu1 %v9795_v30  ;;  %v9502_v30 = vld [vmem:[%s11900_s19 + $0xe0] sm:$0xf]  ;;  %v10782_v35 = vld [vmem:[%s11900_s19 + $0xe8] sm:$0xf0] }
  0x41   : > { %17261 = vst [vmem:[#allocation16_spill] sm:$0xff] %v12073_v48 }
  0x42   : > { %11152 = vmatpush.bf16.msrb.mxu3 %v11868_v56  ;;  %v9424_v56 = vld [vmem:[%s11900_s19 + $0x54] sm:$0xf0]  ;;  %17262 = vst [vmem:[#allocation17_spill] sm:$0xff] %v12075_v50 }
  0x43   : > { %v11999_v58 = vor.u32 %v10762_v54, %v9424_v56  ;;  %v9728_v54 = vld [vmem:[%s17170_s1 + $0xe8] sm:$0xf0] }
  0x45   : > { %17252 = vst [vmem:[#allocation7_spill] sm:$0xff] %v11999_v58 }
  0x46   : > { %11153 = vmatpush.bf16.msrb.mxu3 %v9687_v62  ;;  %v9568_v62 = vld [vmem:[%s11900_s19 + $0x174] sm:$0xf0] }
  0x4a   : > { %11154 = vmatpush.bf16.msrb.mxu3 %v9679_v14  ;;  %v10770_v14 = vld [vmem:[%s11900_s19 + $0x88] sm:$0xf0] }
  0x4d   : > { %1074 = vmatmul.bf16.gmra.mxu0 %v11969_v44  ;;  %1149 = vmatmul.bf16.gmra.mxu3 %v11971_v45 }
  0x4e   : > { %11155 = vmatpush.bf16.msra.mxu3 %v11735_v7  ;;  %1282 = vmatmul.bf16.gmra.mxu2 %v11974_v46  ;;  %v9602_v7 = vld [vmem:[%s11900_s19 + $0x1b0] sm:$0xf] }
  0x4f   : > { %1178 = vmatmul.bf16.gmra.mxu1 %v11976_v47 }
  0x52   : > { %11156 = vmatpush.bf16.msra.mxu3 %v11759_v16  ;;  %v11995_v16 = vor.u32 %v10808_v51, %v9602_v7  ;;  %v10824_v7 = vld [vmem:[%s17170_s1 + $0x74] sm:$0xf]  ;;  %v9672_v51 = vld [vmem:[%s17170_s1 + $0x78] sm:$0xf0] }
  0x54   : > { %17250 = vst [vmem:[#allocation5_spill] sm:$0xff] %v11995_v16 }
  0x56   : > { %11157 = vmatpush.bf16.msra.mxu3 %v11783_v25  ;;  %v11997_v25 = vor.u32 %v10764_v53, %v9430_v52  ;;  %v10838_v52 = vld [vmem:[%s17170_s1 + $0xe4] sm:$0xf]  ;;  %v9675_v53 = vor.u32 %v10824_v7, %v9672_v51  ;;  %v9484_v51 = vld [vmem:[%s11900_s19 + $0xcc] sm:$0xf0] }
  0x57   : > { %v9731_v56 = vor.u32 %v10838_v52, %v9728_v54  ;;  %v10777_v7 = vld [vmem:[%s11900_s19 + $0xc4] sm:$0xf]  ;;  %v12145_v52 = vor.u32 %v10778_v8, %v9482_v31  ;;  %v9586_v31 = vld [vmem:[%s11900_s19 + $0x188] sm:$0xf]  ;;  %v10803_v8 = vld [vmem:[%s11900_s19 + $0x190] sm:$0xf0] }
  0x58   : > { %17251 = vst [vmem:[#allocation6_spill] sm:$0xff] %v11997_v25 }
  0x59   : > { %1473 = vmatpush.bf16.msrb.mxu0 %v9731_v56  ;;  %17267 = vst [vmem:[#allocation22_spill] sm:$0xff] %v12145_v52  ;;  %v12151_v56 = vor.u32 %v10779_v41, %v9490_v37  ;;  %v10780_v37 = vld [vmem:[%s11900_s19 + $0xdc] sm:$0xf] }
  0x5a   : > { %11158 = vmatpush.bf16.msra.mxu3 %v11807_v34  ;;  %v9434_v34 = vld [vmem:[%s11900_s19 + $0x60] sm:$0xf] }
  0x5b   : > { %v12017_v2 = vor.u32 %v10766_v59, %v9434_v34  ;;  %v9470_v34 = vld [vmem:[%s11900_s19 + $0xa8] sm:$0xf]  ;;  %v10775_v59 = vld [vmem:[%s11900_s19 + $0xb0] sm:$0xf0]  ;;  %17269 = vst [vmem:[#allocation24_spill] sm:$0xff] %v12151_v56 }
  0x5c   : > { %v12107_v9 = vor.u32 %v10775_v59, %v9470_v34  ;;  %v12153_v34 = vor.u32 %v10777_v7, %v9484_v51  ;;  %v12201_v7 = vor.u32 %v10803_v8, %v9586_v31 }
  0x5d   : > { %1079 = vmatmul.bf16.gmra.mxu0 %v11993_v57  ;;  %1154 = vmatmul.bf16.gmra.mxu3 %v11995_v16 }
  0x5e   : > { %11159 = vmatpush.bf16.msra.mxu3 %v11849_v49  ;;  %1287 = vmatmul.bf16.gmra.mxu2 %v11997_v25  ;;  %v10765_v49 = vld [vmem:[%s11900_s19 + $0x64] sm:$0xf]  ;;  %17263 = vst [vmem:[#allocation18_spill] sm:$0xff] %v12107_v9 }
  0x5f   : > { %1183 = vmatmul.bf16.gmra.mxu1 %v11999_v58  ;;  %v12023_v3 = vor.u32 %v10765_v49, %v9436_v1  ;;  %v9478_v49 = vld [vmem:[%s11900_s19 + $0xb0] sm:$0xf]  ;;  %17270 = vst [vmem:[#allocation25_spill] sm:$0xff] %v12153_v34 }
  0x60   : > { %v12111_v11 = vor.u32 %v10776_v4, %v9478_v49  ;;  %v9640_v49 = vld [vmem:[%s17170_s1 + $0x38] sm:$0xf0]  ;;  %17272 = vst [vmem:[#allocation27_spill] sm:$0xff] %v12201_v7 }
  0x61   : > { %17255 = vst [vmem:[#allocation10_spill] sm:$0xff] %v12023_v3 }
  0x62   : > { %11160 = vmatpush.bf16.msra.mxu3 %v11866_v55  ;;  %v12019_v55 = vor.u32 %v10798_v60, %v9568_v62  ;;  %v10822_v60 = vld [vmem:[%s17170_s1 + $0x64] sm:$0xf]  ;;  %v9664_v62 = vld [vmem:[%s17170_s1 + $0x68] sm:$0xf0]  ;;  %17265 = vst [vmem:[#allocation20_spill] sm:$0xff] %v12111_v11 }
  0x63   : > { %v9667_v1 = vor.u32 %v10822_v60, %v9664_v62  ;;  %v10836_v60 = vld [vmem:[%s17170_s1 + $0xd4] sm:$0xf]  ;;  %v9720_v62 = vld [vmem:[%s17170_s1 + $0xd8] sm:$0xf0] }
  0x64   : > { %17253 = vst [vmem:[#allocation8_spill] sm:$0xff] %v12019_v55 }
  0x66   : > { %11161 = vmatpush.bf16.msra.mxu3 %v11884_v61  ;;  %v12021_v61 = vor.u32 %v10767_v0, %v9442_v63  ;;  %v10807_v63 = vld [vmem:[%s11900_s19 + $0x1b4] sm:$0xf]  ;;  %v9604_v0 = vld [vmem:[%s11900_s19 + $0x1bc] sm:$0xf0] }
  0x67   : > { %v12109_v10 = vor.u32 %v10807_v63, %v9604_v0  ;;  %v9723_v63 = vor.u32 %v10836_v60, %v9720_v62  ;;  %v10816_v0 = vld [vmem:[%s17170_s1 + $0x34] sm:$0xf]  ;;  %v12205_v60 = vor.u32 %v10782_v35, %v9502_v30  ;;  %v10784_v35 = vld [vmem:[%s11900_s19 + $0xf8] sm:$0xf0] }
  0x68   : > { %17254 = vst [vmem:[#allocation9_spill] sm:$0xff] %v12021_v61 }
  0x69   : > { %17264 = vst [vmem:[#allocation19_spill] sm:$0xff] %v12109_v10  ;;  %1474 = vmatpush.bf16.msrb.mxu0 %v9723_v63 }
  0x6a   : > { %11162 = vmatpush.bf16.msra.mxu3 %v11917_v13  ;;  %v9454_v13 = vld [vmem:[%s11900_s19 + $0x80] sm:$0xf]  ;;  %17273 = vst [vmem:[#allocation28_spill] sm:$0xff] %v12205_v60 }
  0x6b   : > { %v12047_v27 = vor.u32 %v10770_v14, %v9454_v13  ;;  %v10820_v13 = vld [vmem:[%s17170_s1 + $0x54] sm:$0xf]  ;;  %v9656_v14 = vld [vmem:[%s17170_s1 + $0x58] sm:$0xf0] }
  0x6c   : > { %v9659_v18 = vor.u32 %v10820_v13, %v9656_v14  ;;  %v9494_v14 = vld [vmem:[%s11900_s19 + $0xd8] sm:$0xf] }
  0x6d   : > { %1084 = vmatmul.bf16.gmra.mxu0 %v12017_v2  ;;  %1243 = vmatmul.bf16.vlgmr.msrb.gmra.mxu3 %v12019_v55  ;;  %17257 = vst [vmem:[#allocation12_spill] sm:$0xff] %v12047_v27  ;;  %v12199_v41 = vor.u32 %v10781_v15, %v9494_v14  ;;  %v9784_v15 = vld [vmem:[%s17170_s1 + $0x158] sm:$0xf0] }
  0x6e   : > { %1292 = vmatmul.bf16.gmra.mxu2 %v12021_v61  ;;  %1368 = vmatpush.bf16.msrb.mxu3 %v9675_v53  ;;  %v12147_v53 = vor.u32 %v10800_v39, %v9574_v38  ;;  %v9496_v38 = vld [vmem:[%s11900_s19 + $0xe4] sm:$0xf0] }
  0x6f   : > { %1188 = vmatmul.bf16.gmra.mxu1 %v12023_v3  ;;  %17271 = vst [vmem:[#allocation26_spill] sm:$0xff] %v12199_v41  ;;  %v12207_v62 = vor.u32 %v10780_v37, %v9496_v38  ;;  %v10810_v37 = vld [vmem:[%s17170_s1 + $0x4] sm:$0xf]  ;;  %v9616_v38 = vld [vmem:[%s17170_s1 + $0x8] sm:$0xf0] }
  0x70   : > { %17268 = vst [vmem:[#allocation23_spill] sm:$0xff] %v12147_v53  ;;  %v9752_v3 = vld [vmem:[%s17170_s1 + $0x118] sm:$0xf0] }
  0x71   : > { %17274 = vst [vmem:[#allocation29_spill] sm:$0xff] %v12207_v62 }
  0x72   : > { %1369 = vmatpush.bf16.msrb.mxu3 %v9667_v1  ;;  %v9643_v1 = vor.u32 %v10816_v0, %v9640_v49  ;;  %v10812_v0 = vld [vmem:[%s17170_s1 + $0x14] sm:$0xf]  ;;  %v9624_v49 = vld [vmem:[%s17170_s1 + $0x18] sm:$0xf0] }
  0x73   : > { %v9627_v14 = vor.u32 %v10812_v0, %v9624_v49  ;;  %v9514_v0 = vld [vmem:[%s11900_s19 + $0xf8] sm:$0xf]  ;;  %v9598_v49 = vld [vmem:[%s11900_s19 + $0x1a0] sm:$0xf] }
  0x76   : > { %1370 = vmatpush.bf16.msrb.mxu3 %v9659_v18  ;;  %v10814_v18 = vld [vmem:[%s17170_s1 + $0x24] sm:$0xf] }
  0x77   : > { %v9635_v32 = vor.u32 %v10814_v18, %v9632_v29 }
  0x7a   : > { %1371 = vmatpush.bf16.msrb.mxu3 %v9651_v40 }
  0x7d   : > { %1089 = vmatmul.bf16.gmra.mxu0 %v12043_v19  ;;  %1248 = vmatmul.bf16.gmra.mxu3 %v12045_v24 }
  0x7e   : > { %1297 = vmatmul.bf16.gmra.mxu2 %v12047_v27  ;;  %1372 = vmatpush.bf16.msrb.mxu3 %v9643_v1  ;;  %v10852_v1 = vld [vmem:[%s17170_s1 + $0x154] sm:$0xf] }
  0x7f   : > { %1193 = vmatmul.bf16.gmra.mxu1 %v12049_v28  ;;  %v9787_v29 = vor.u32 %v10852_v1, %v9784_v15  ;;  %v10806_v1 = vld [vmem:[%s11900_s19 + $0x1a8] sm:$0xf0]  ;;  %v9619_v15 = vor.u32 %v10810_v37, %v9616_v38  ;;  %v10834_v38 = vld [vmem:[%s17170_s1 + $0xc4] sm:$0xf] }
  0x81   : > { %1578 = vmatpush.bf16.msrb.mxu1 %v9787_v29 }
  0x82   : > { %1373 = vmatpush.bf16.msrb.mxu3 %v9635_v32  ;;  %v9506_v32 = vld [vmem:[%s11900_s19 + $0xf0] sm:$0xf] }
  0x83   : > { %v12253_v24 = vor.u32 %v10784_v35, %v9506_v32  ;;  %v9712_v32 = vld [vmem:[%s17170_s1 + $0xc8] sm:$0xf0] }
  0x85   : > { %17275 = vst [vmem:[#allocation30_spill] sm:$0xff] %v12253_v24 }
  0x86   : > { %1374 = vmatpush.bf16.msrb.mxu3 %v9627_v14  ;;  %v10785_v14 = vld [vmem:[%s11900_s19 + $0x100] sm:$0xf0] }
  0x87   : > { %v12259_v16 = vor.u32 %v10785_v14, %v9514_v0  ;;  %v10787_v14 = vld [vmem:[%s11900_s19 + $0x110] sm:$0xf0] }
  0x89   : > { %17277 = vst [vmem:[#allocation32_spill] sm:$0xff] %v12259_v16 }
  0x8a   : > { %1375 = vmatpush.bf16.msrb.mxu3 %v9619_v15  ;;  %v9518_v15 = vld [vmem:[%s11900_s19 + $0x108] sm:$0xf] }
  0x8d   : > { %1094 = vmatmul.bf16.gmra.mxu0 %v12069_v42  ;;  %1253 = vmatmul.bf16.gmra.mxu3 %v12071_v43  ;;  %v9508_v43 = vld [vmem:[%s11900_s19 + $0xfc] sm:$0xf0] }
  0x8e   : > { %1302 = vmatmul.bf16.gmra.mxu2 %v12073_v48  ;;  %v9532_v48 = vld [vmem:[%s11900_s19 + $0x12c] sm:$0xf0] }
  0x8f   : > { %1198 = vmatmul.bf16.gmra.mxu1 %v12075_v50 }
  0x9d   : > { %1099 = vmatmul.bf16.gmra.mxu0 %v12107_v9  ;;  %1258 = vmatmul.bf16.gmra.mxu3 %v12109_v10  ;;  %v10783_v10 = vld [vmem:[%s11900_s19 + $0xf4] sm:$0xf] }
  0x9e   : > { %1307 = vmatmul.bf16.gmra.mxu2 %v12111_v11  ;;  %v12261_v45 = vor.u32 %v10783_v10, %v9508_v43  ;;  %v9715_v43 = vor.u32 %v10834_v38, %v9712_v32  ;;  %v10873_v10 = vld [vmem:[%s17171_s2 + $0x78] sm:$0xff]  ;;  %v9526_v38 = vld [vmem:[%s11900_s19 + $0x110] sm:$0xf] }
  0x9f   : > { %1203 = vmatmul.bf16.gmra.mxu1 %v12113_v12  ;;  %v9610_v32 = vld [vmem:[%s11900_s19 + $0x1b8] sm:$0xf]  ;;  %v10850_v12 = vld [vmem:[%s17170_s1 + $0x144] sm:$0xf] }
  0xa0   : > { %17278 = vst [vmem:[#allocation33_spill] sm:$0xff] %v12261_v45  ;;  %1475 = vmatpush.bf16.msrb.mxu0 %v9715_v43 }
  0xaa   : > { %v12149_v54 = vpop.f32.mrf.mxu0 }
  0xac   : > { %v12155_v59 = vpop.f32.mrf.mxu1 }
  0xad   : > { %1104 = vmatmul.bf16.gmra.mxu0 %v12145_v52  ;;  %1347 = vmatmul.bf16.vlgmr.msra.gmra.mxu3 %v12147_v53  ;;  %v12255_v53 = vor.u32 %v10806_v1, %v9598_v49 }
  0xae   : > { %1312 = vmatmul.bf16.gmra.mxu2 %v12151_v56  ;;  %2142 = vmatpush.bf16.msra.mxu3 %v10873_v10  ;;  %v12304_v56 = vor.u32 %v10788_v17, %v9526_v38  ;;  %v10832_v38 = vld [vmem:[%s17170_s1 + $0xb4] sm:$0xf] }
  0xaf   : > { %1208 = vmatmul.bf16.gmra.mxu1 %v12153_v34  ;;  %17276 = vst [vmem:[#allocation31_spill] sm:$0xff] %v12255_v53 }
  0xb0   : > { %v12173_v4 = vpop.f32.mrf.mxu3  ;;  %17281 = vst [vmem:[#allocation36_spill] sm:$0xff] %v12304_v56 }
  0xb1   : > { %v12175_v5 = vpop.f32.mrf.mxu2 }
  0xb2   : > { %v12177_v6 = vpop.f32.mrf.mxu0 }
  0xb4   : > { %v12179_v13 = vpop.f32.mrf.mxu1 }
  0xb8   : > { %v12195_v39 = vpop.f32.mrf.mxu3 }
  0xb9   : > { %v12197_v40 = vpop.f32.mrf.mxu2 }
  0xba   : > { %v12203_v51 = vpop.f32.mrf.mxu0 }
  0xbc   : > { %v12209_v63 = vpop.f32.mrf.mxu1 }
  0xbd   : > { %1109 = vmatmul.bf16.gmra.mxu0 %v12199_v41  ;;  %1352 = vmatmul.bf16.gmra.mxu3 %v12201_v7 }
  0xbe   : > { %1317 = vmatmul.bf16.gmra.mxu2 %v12205_v60  ;;  %v12298_v60 = vor.u32 %v10787_v14, %v9518_v15  ;;  %v10863_v14 = vld [vmem:[%s17171_s2 + $0x28] sm:$0xff] }
  0xbf   : > { %1213 = vmatmul.bf16.gmra.mxu1 %v12207_v62 }
  0xc0   : > { %v12227_v18 = vpop.f32.mrf.mxu3  ;;  %17279 = vst [vmem:[#allocation34_spill] sm:$0xff] %v12298_v60 }
  0xc1   : > { %v12229_v30 = vpop.f32.mrf.mxu2 }
  0xc2   : > { %v12231_v31 = vpop.f32.mrf.mxu0 }
  0xc4   : > { %v12233_v8 = vpop.f32.mrf.mxu1 }
  0xc8   : > { %v12249_v29 = vpop.f32.mrf.mxu3 }
  0xc9   : > { %v12251_v7 = vpop.f32.mrf.mxu2 }
  0xca   : > { %v12257_v55 = vpop.f32.mrf.mxu0 }
  0xcc   : > { %v12263_v37 = vpop.f32.mrf.mxu1 }
  0xcd   : > { %1114 = vmatmul.bf16.gmra.mxu0 %v12253_v24  ;;  %1357 = vmatmul.bf16.gmra.mxu3 %v12255_v53  ;;  %v10809_v53 = vld [vmem:[%s11900_s19 + $0x1c0] sm:$0xf0]  ;;  %v9776_v24 = vld [vmem:[%s17170_s1 + $0x148] sm:$0xf0] }
  0xce   : > { %1322 = vmatmul.bf16.gmra.mxu2 %v12259_v16  ;;  %v9520_v16 = vld [vmem:[%s11900_s19 + $0x114] sm:$0xf0]  ;;  %v12300_v10 = vor.u32 %v10809_v53, %v9610_v32  ;;  %v9779_v53 = vor.u32 %v10850_v12, %v9776_v24  ;;  %v10864_v24 = vld [vmem:[%s17171_s2 + $0x30] sm:$0xff]  ;;  %v9704_v32 = vld [vmem:[%s17170_s1 + $0xb8] sm:$0xf0] }
  0xcf   : > { %1218 = vmatmul.bf16.gmra.mxu1 %v12261_v45  ;;  %v12306_v34 = vor.u32 %v10786_v21, %v9520_v16  ;;  %v10865_v21 = vld [vmem:[%s17171_s2 + $0x38] sm:$0xff] }
  0xd0   : > { %v12278_v35 = vpop.f32.mrf.mxu3  ;;  %17280 = vst [vmem:[#allocation35_spill] sm:$0xff] %v12300_v10  ;;  %1579 = vmatpush.bf16.msrb.mxu1 %v9779_v53  ;;  %2038 = vmatpush.bf16.msrb.mxu2 %v10865_v21  ;;  %v9530_v53 = vld [vmem:[%s11900_s19 + $0x120] sm:$0xf]  ;;  %v10790_v21 = vld [vmem:[%s11900_s19 + $0x128] sm:$0xf0] }
  0xd1   : > { %v12280_v0 = vpop.f32.mrf.mxu2  ;;  %17282 = vst [vmem:[#allocation37_spill] sm:$0xff] %v12306_v34  ;;  %v12358_v27 = vor.u32 %v10790_v21, %v9530_v53  ;;  %v10830_v53 = vld [vmem:[%s17170_s1 + $0xa4] sm:$0xf]  ;;  %v9696_v21 = vld [vmem:[%s17170_s1 + $0xa8] sm:$0xf0] }
  0xd2   : > { %v12282_v49 = vpop.f32.mrf.mxu0 }
  0xd3   : > { %17284 = vst [vmem:[#allocation39_spill] sm:$0xff] %v12358_v27 }
  0xd4   : > { %v12284_v1 = vpop.f32.mrf.mxu1  ;;  %2039 = vmatpush.bf16.msrb.mxu2 %v10864_v24  ;;  %v12352_v24 = vld [vmem:[%s17175_s6] ss:$2 sm:$0x3] }
  0xd5   : > { %17283 = vst [vmem:[#allocation38_spill] sm:$0xff] %v12352_v24  ;;  %v12370_v52 = vperm.slane %v12352_v24, 0  ;;  %v10793_v24 = vld [vmem:[%s11900_s19 + $0x140] sm:$0xf0] }
  0xd7   : > { %v1143_v9 = vadd.f32 %v12195_v39, %v12370_v52 }
  0xd8   : > { %v12294_v45 = vpop.f32.mrf.mxu3  ;;  %2040 = vmatpush.bf16.msrb.mxu2 %v10863_v14 }
  0xd9   : > { %v12296_v43 = vpop.f32.mrf.mxu2 }
  0xda   : > { %v12302_v62 = vpop.f32.mrf.mxu0 }
  0xdc   : > { %v12308_v11 = vpop.f32.mrf.mxu1 }
  0xdd   : > { %1119 = vmatmul.bf16.gmra.mxu0 %v12298_v60  ;;  %1362 = vmatmul.bf16.gmra.mxu3 %v12300_v10  ;;  %v9538_v10 = vld [vmem:[%s11900_s19 + $0x128] sm:$0xf]  ;;  %v10789_v60 = vld [vmem:[%s11900_s19 + $0x124] sm:$0xf] }
  0xde   : > { %1327 = vmatmul.bf16.gmra.mxu2 %v12304_v56  ;;  %v9707_v56 = vor.u32 %v10832_v38, %v9704_v32  ;;  %v10862_v38 = vld [vmem:[%s17171_s2 + $0x20] sm:$0xff]  ;;  %v12367_v14 = vor.u32 %v10789_v60, %v9532_v48  ;;  %v10848_v48 = vld [vmem:[%s17170_s1 + $0x134] sm:$0xf]  ;;  %v1141_v60 = vadd.f32 %v12173_v4, %v12370_v52 }
  0xdf   : > { %1223 = vmatmul.bf16.gmra.mxu1 %v12306_v34  ;;  %v10791_v34 = vld [vmem:[%s11900_s19 + $0x130] sm:$0xf0]  ;;  %2041 = vmatpush.bf16.msrb.mxu2 %v10862_v38 }
  0xe0   : > { %v12323_v17 = vpop.f32.mrf.mxu3  ;;  %1476 = vmatpush.bf16.msrb.mxu0 %v9707_v56  ;;  %v12365_v28 = vor.u32 %v10791_v34, %v9538_v10  ;;  %17286 = vst [vmem:[#allocation41_spill] sm:$0xff] %v12367_v14  ;;  %v10861_v56 = vld [vmem:[%s17171_s2 + $0x18] sm:$0xff]  ;;  %v10860_v4 = vld [vmem:[%s17171_s2 + $0x10] sm:$0xff] }
  0xe1   : > { %v12325_v16 = vpop.f32.mrf.mxu2  ;;  %v9768_v34 = vld [vmem:[%s17170_s1 + $0x138] sm:$0xf0] }
  0xe2   : > { %v12330_v12 = vpop.f32.mrf.mxu0  ;;  %17285 = vst [vmem:[#allocation40_spill] sm:$0xff] %v12365_v28 }
  0xe3   : > { %2042 = vmatpush.bf16.msrb.mxu2 %v10861_v56 }
  0xe4   : > { %v12332_v15 = vpop.f32.mrf.mxu1 }
  0xe7   : > { %2043 = vmatpush.bf16.msrb.mxu2 %v10860_v4  ;;  %v10859_v4 = vld [vmem:[%s17171_s2 + $0x8] sm:$0xff] }
  0xe8   : > { %v12354_v50 = vpop.f32.mrf.mxu3 }
  0xe9   : > { %v12356_v41 = vpop.f32.mrf.mxu2 }
  0xea   : > { %v12363_v32 = vpop.f32.mrf.mxu0 }
  0xeb   : > { %2044 = vmatpush.bf16.msrb.mxu2 %v10859_v4 }
  0xec   : > { %v12372_v61 = vpop.f32.mrf.mxu1 }
  0xed   : > { %17287 = vst [vmem:[#allocation42_spill] sm:$0xff] %v12372_v61  ;;  %1124 = vmatmul.bf16.gmra.mxu0 %v12358_v27  ;;  %1376 = vmatmul.bf16.vlgmr.msrb.gmra.mxu3 %v11922_v20  ;;  %v9771_v20 = vor.u32 %v10848_v48, %v9768_v34  ;;  %v10846_v48 = vld [vmem:[%s17170_s1 + $0x124] sm:$0xf]  ;;  %v9760_v34 = vld [vmem:[%s17170_s1 + $0x128] sm:$0xf0] }
  0xee   : > { %1332 = vmatmul.bf16.gmra.mxu2 %v12365_v28  ;;  %v9542_v27 = vld [vmem:[%s11900_s19 + $0x138] sm:$0xf]  ;;  %v9680_v61 = vld [vmem:[%s17170_s1 + $0x88] sm:$0xf0] }
  0xef   : > { %1228 = vmatmul.bf16.gmra.mxu1 %v12367_v14  ;;  %v9699_v14 = vor.u32 %v10830_v53, %v9696_v21  ;;  %v10828_v53 = vld [vmem:[%s17170_s1 + $0x94] sm:$0xf]  ;;  %v9688_v21 = vld [vmem:[%s17170_s1 + $0x98] sm:$0xf0]  ;;  %v12448_v39 = vor.u32 %v10793_v24, %v9542_v27  ;;  %v9744_v27 = vld [vmem:[%s17170_s1 + $0x108] sm:$0xf0] }
  0xf0   : > { %v1244_v10 = vpop.f32.mrf.mxu3  ;;  %1580 = vmatpush.bf16.msrb.mxu1 %v9771_v20  ;;  %v9763_v20 = vor.u32 %v10846_v48, %v9760_v34  ;;  %v9550_v48 = vld [vmem:[%s11900_s19 + $0x140] sm:$0xf]  ;;  %v10844_v34 = vld [vmem:[%s17170_s1 + $0x114] sm:$0xf] }
  0xf1   : > { %v12395_v38 = vadd.f32 %v1244_v10, %v1141_v60  ;;  %v12397_v28 = vpop.f32.mrf.mxu2  ;;  %1477 = vmatpush.bf16.msrb.mxu0 %v9699_v14  ;;  %v10872_v10 = vld [vmem:[%s17171_s2 + $0x70] sm:$0xff]  ;;  %v9691_v14 = vor.u32 %v10828_v53, %v9688_v21  ;;  %v9544_v53 = vld [vmem:[%s11900_s19 + $0x144] sm:$0xf0]  ;;  %v9755_v21 = vor.u32 %v10844_v34, %v9752_v3  ;;  %17290 = vst [vmem:[#allocation45_spill] sm:$0xff] %v12448_v39  ;;  %v10858_v3 = vld [vmem:[%s17171_s2] sm:$0xff] }
  0xf2   : > { %17288 = vst [vmem:[#allocation43_spill] sm:$0xff] %v12397_v28  ;;  %v12402_v56 = vpop.f32.mrf.mxu0  ;;  %2143 = vmatpush.bf16.msra.mxu3 %v10872_v10  ;;  %v10794_v28 = vld [vmem:[%s11900_s19 + $0x148] sm:$0xf0]  ;;  %v10826_v10 = vld [vmem:[%s17170_s1 + $0x84] sm:$0xf]  ;;  %2045 = vmatpush.bf16.msrb.mxu2 %v10858_v3  ;;  %v1148_v3 = vadd.f32 %v12249_v29, %v12370_v52  ;;  %v1066_v29 = vadd.f32 %v12149_v54, %v12370_v52 }
  0xf3   : > { %v9683_v42 = vor.u32 %v10826_v10, %v9680_v61  ;;  %v12455_v4 = vor.u32 %v10794_v28, %v9550_v48  ;;  %v1146_v28 = vadd.f32 %v12227_v18, %v12370_v52  ;;  %v9562_v10 = vld [vmem:[%s11900_s19 + $0x158] sm:$0xf] }
  0xf4   : > { %v12410_v60 = vpop.f32.mrf.mxu1  ;;  %1581 = vmatpush.bf16.msrb.mxu1 %v9763_v20  ;;  %v10792_v20 = vld [vmem:[%s11900_s19 + $0x13c] sm:$0xf] }
  0xf5   : > { %17289 = vst [vmem:[#allocation44_spill] sm:$0xff] %v12410_v60  ;;  %1478 = vmatpush.bf16.msrb.mxu0 %v9691_v14  ;;  %v12457_v34 = vor.u32 %v10792_v20, %v9544_v53 }
  0xf6   : > { %17291 = vst [vmem:[#allocation46_spill] sm:$0xff] %v12455_v4 }
  0xf7   : > { %17292 = vst [vmem:[#allocation47_spill] sm:$0xff] %v12457_v34 }
  0xf8   : > { %v1246_v60 = vpop.f32.mrf.mxu3  ;;  %1582 = vmatpush.bf16.msrb.mxu1 %v9755_v21  ;;  %v9554_v21 = vld [vmem:[%s11900_s19 + $0x150] sm:$0xf] }
  0xf9   : > { %v12444_v25 = vadd.f32 %v1246_v60, %v1143_v9  ;;  %v12446_v58 = vpop.f32.mrf.mxu2  ;;  %v10842_v9 = vld [vmem:[%s17170_s1 + $0x104] sm:$0xf]  ;;  %1479 = vmatpush.bf16.msrb.mxu0 %v9683_v42 }
  0xfa   : > { %v12453_v14 = vpop.f32.mrf.mxu0  ;;  %v9747_v24 = vor.u32 %v10842_v9, %v9744_v27  ;;  %v10797_v9 = vld [vmem:[%s11900_s19 + $0x160] sm:$0xf0]  ;;  %v10795_v27 = vld [vmem:[%s11900_s19 + $0x154] sm:$0xf] }
  0xfc   : > { %v12465_v61 = vpop.f32.mrf.mxu1  ;;  %1583 = vmatpush.bf16.msrb.mxu1 %v9747_v24 }
  0xfd   : > { %17293 = vst [vmem:[#allocation48_spill] sm:$0xff] %v12465_v61  ;;  %1129 = vmatmul.bf16.gmra.mxu0 %v12448_v39  ;;  %1381 = vmatmul.bf16.gmra.mxu3 %v11947_v33  ;;  %v10796_v33 = vld [vmem:[%s11900_s19 + $0x158] sm:$0xf0]  ;;  %v12497_v39 = vor.u32 %v10797_v9, %v9562_v10  ;;  %v1068_v61 = vadd.f32 %v12177_v6, %v12370_v52 }
  0xfe   : > { %1337 = vmatmul.bf16.gmra.mxu2 %v12455_v4  ;;  %v9556_v4 = vld [vmem:[%s11900_s19 + $0x15c] sm:$0xf0]  ;;  %s9383_s19 = sshll.u32 %s17586_s15, 2 }
  0xff   : > { %1233 = vmatmul.bf16.gmra.mxu1 %v12457_v34  ;;  %17296 = vst [vmem:[#allocation51_spill] sm:$0xff] %v12497_v39  ;;  %s13646_s17 = scalar_lea.vmem %s17179_s10, %s9383_s19 }
 0x100   : > { %v1249_v60 = vpop.f32.mrf.mxu3 }
 0x101   : > { %v12473_v42 = vadd.f32 %v1249_v60, %v1146_v28  ;;  %v12475_v48 = vpop.f32.mrf.mxu2  ;;  %v12493_v60 = vor.u32 %v10796_v33, %v9554_v21  ;;  %v1170_v21 = vadd.f32 %v12155_v59, %v1066_v29  ;;  %v1172_v33 = vadd.f32 %v12179_v13, %v1068_v61 }
 0x102   : > { %17294 = vst [vmem:[#allocation49_spill] sm:$0xff] %v12475_v48  ;;  %v12477_v20 = vpop.f32.mrf.mxu0  ;;  %v12499_v48 = vor.u32 %v10795_v27, %v9556_v4  ;;  %v1151_v4 = vadd.f32 %v12278_v35, %v12370_v52  ;;  %v1153_v35 = vadd.f32 %v12294_v45, %v12370_v52  ;;  %v10871_v45 = vld [vmem:[%s17171_s2 + $0x68] sm:$0xff] }
 0x103   : > { %v1276_v27 = vadd.f32 %v12197_v40, %v1172_v33  ;;  %v1073_v40 = vadd.f32 %v12231_v31, %v12370_v52  ;;  %2144 = vmatpush.bf16.msra.mxu3 %v10871_v45 }
 0x104   : > { %v12479_v53 = vpop.f32.mrf.mxu1 }
 0x105   : > { %17295 = vst [vmem:[#allocation50_spill] sm:$0xff] %v12479_v53  ;;  %v1796_v59 = vmax.f32 %v1276_v27, 0.0  ;;  %v1177_v33 = vadd.f32 %v12233_v8, %v1073_v40  ;;  %v1076_v40 = vadd.f32 %v12257_v55, %v12370_v52 }
 0x108   : > { %v1251_v18 = vpop.f32.mrf.mxu3 }
 0x109   : > { %v12489_v24 = vadd.f32 %v1251_v18, %v1148_v3  ;;  %v12491_v28 = vpop.f32.mrf.mxu2 }
 0x10a   : > { %v12495_v34 = vpop.f32.mrf.mxu0 }
 0x10c   : > { %v12501_v53 = vpop.f32.mrf.mxu1 }
 0x10d   : > { %1134 = vmatmul.bf16.gmra.mxu0 %v12493_v60  ;;  %1386 = vmatmul.bf16.gmra.mxu3 %v11969_v44  ;;  %v1274_v44 = vadd.f32 %v12175_v5, %v1170_v21  ;;  %v1071_v5 = vadd.f32 %v12203_v51, %v12370_v52  ;;  %v1156_v21 = vadd.f32 %v12323_v17, %v12370_v52 }
 0x10e   : > { %1342 = vmatmul.bf16.gmra.mxu2 %v12497_v39  ;;  %v1158_v17 = vadd.f32 %v12354_v50, %v12370_v52  ;;  %v1180_v50 = vadd.f32 %v12263_v37, %v1076_v40 }
 0x10f   : > { %1238 = vmatmul.bf16.gmra.mxu1 %v12499_v48  ;;  %v1794_v18 = vmax.f32 %v1274_v44, 0.0  ;;  %v1175_v51 = vadd.f32 %v12209_v63, %v1071_v5 }
 0x110   : > { %v1254_v10 = vpop.f32.mrf.mxu3 }
 0x111   : > { %v12515_v54 = vadd.f32 %v1254_v10, %v1151_v4  ;;  %v12517_v3 = vpop.f32.mrf.mxu2  ;;  %v1870_v39 = vpack.c.bf16 %v1796_v59, %v1794_v18 }
 0x112   : > { %v12519_v6 = vpop.f32.mrf.mxu0 }
 0x114   : > { %v12521_v9 = vpop.f32.mrf.mxu1 }
 0x118   : > { %v1256_v29 = vpop.f32.mrf.mxu3 }
 0x119   : > { %v12527_v13 = vadd.f32 %v1256_v29, %v1153_v35  ;;  %v12529_v61 = vpop.f32.mrf.mxu2 }
 0x11a   : > { %v12531_v4 = vpop.f32.mrf.mxu0 }
 0x11c   : > { %v12533_v10 = vpop.f32.mrf.mxu1 }
 0x11d   : > { %1391 = vmatmul.bf16.gmra.mxu3 %v11993_v57  ;;  %1480 = vmatmul.bf16.vlgmr.msrb.gmra.mxu0 %v11928_v23  ;;  %v1279_v23 = vadd.f32 %v12229_v30, %v1175_v51 }
 0x11e   : > { %2046 = vmatmul.bf16.vlgmr.msrb.gmra.mxu2 %v1870_v39 }
 0x11f   : > { %1584 = vmatmul.bf16.vlgmr.msrb.gmra.mxu1 %v11926_v22  ;;  %v1281_v22 = vadd.f32 %v12251_v7, %v1177_v33  ;;  %v1798_v39 = vmax.f32 %v1279_v23, 0.0  ;;  %v1078_v7 = vadd.f32 %v12282_v49, %v12370_v52 }
 0x120   : > { %v1259_v31 = vpop.f32.mrf.mxu3 }
 0x121   : > { %v12549_v44 = vadd.f32 %v1259_v31, %v1156_v21  ;;  %v12551_v27 = vpop.f32.mrf.mxu2  ;;  %v1800_v63 = vmax.f32 %v1281_v22, 0.0  ;;  %v1182_v45 = vadd.f32 %v12284_v1, %v1078_v7 }
 0x122   : > { %v12553_v35 = vpop.f32.mrf.mxu0 }
 0x123   : > { %v1872_v30 = vpack.c.bf16 %v1800_v63, %v1798_v39  ;;  %v1081_v63 = vadd.f32 %v12302_v62, %v12370_v52 }
 0x124   : > { %v12555_v57 = vpop.f32.mrf.mxu1 }
 0x125   : > { %v1185_v40 = vadd.f32 %v12308_v11, %v1081_v63 }
 0x128   : > { %v1261_v18 = vpop.f32.mrf.mxu3 }
 0x129   : > { %v12561_v8 = vadd.f32 %v1261_v18, %v1158_v17  ;;  %v12563_v59 = vpop.f32.mrf.mxu2  ;;  %v10870_v18 = vld [vmem:[%s17171_s2 + $0x60] sm:$0xff] }
 0x12a   : > { %v12565_v29 = vpop.f32.mrf.mxu0  ;;  %2145 = vmatpush.bf16.msra.mxu3 %v10870_v18 }
 0x12c   : > { %v12567_v5 = vpop.f32.mrf.mxu1 }
 0x12d   : > { %1396 = vmatmul.bf16.gmra.mxu3 %v12017_v2  ;;  %1485 = vmatmul.bf16.gmra.mxu0 %v11953_v36  ;;  %v1284_v2 = vadd.f32 %v12280_v0, %v1180_v50  ;;  %v1286_v36 = vadd.f32 %v12296_v43, %v1182_v45  ;;  %v1083_v0 = vadd.f32 %v12330_v12, %v12370_v52 }
 0x12e   : > { %2051 = vmatmul.bf16.gmra.mxu2 %v1872_v30  ;;  %v1289_v30 = vadd.f32 %v12325_v16, %v1185_v40  ;;  %v1088_v16 = vadd.f32 %v12402_v56, %v12370_v52 }
 0x12f   : > { %1589 = vmatmul.bf16.gmra.mxu1 %v11951_v26  ;;  %v1802_v31 = vmax.f32 %v1284_v2, 0.0  ;;  %v1804_v23 = vmax.f32 %v1286_v36, 0.0  ;;  %v1187_v62 = vadd.f32 %v12332_v15, %v1083_v0  ;;  %v17301_v0 = vld [vmem:[#allocation44_spill] sm:$0xff] }
 0x130   : > { %v1348_v21 = vpop.f32.mrf.mxu3  ;;  %v1806_v45 = vmax.f32 %v1289_v30, 0.0 }
 0x131   : > { %v12578_v51 = vpop.f32.mrf.mxu2  ;;  %v1349_v55 = vadd.f32 %v1348_v21, %v12395_v38  ;;  %v1874_v43 = vpack.c.bf16 %v1804_v23, %v1802_v31  ;;  %v1086_v31 = vadd.f32 %v12363_v32, %v12370_v52  ;;  %v17297_v23 = vld [vmem:[#allocation14_spill] sm:$0xff] }
 0x132   : > { %v12581_v33 = vpop.f32.mrf.mxu0 }
 0x133   : > { %v1854_v17 = vmax.f32 %v1349_v55, 0.0 }
 0x134   : > { %v12583_v49 = vpop.f32.mrf.mxu1 }
 0x138   : > { %v1350_v26 = vpop.f32.mrf.mxu3 }
 0x139   : > { %v1351_v37 = vadd.f32 %v1350_v26, %v12444_v25  ;;  %v12588_v22 = vpop.f32.mrf.mxu2  ;;  %v17298_v26 = vld [vmem:[#allocation7_spill] sm:$0xff] }
 0x13a   : > { %v12590_v1 = vpop.f32.mrf.mxu0 }
 0x13b   : > { %v1856_v39 = vmax.f32 %v1351_v37, 0.0 }
 0x13c   : > { %v12592_v38 = vpop.f32.mrf.mxu1 }
 0x13d   : > { %1401 = vmatmul.bf16.gmra.mxu3 %v12043_v19  ;;  %1490 = vmatmul.bf16.gmra.mxu0 %v11976_v47  ;;  %v12600_v25 = vpack.c.bf16 %v1856_v39, %v1854_v17  ;;  %v17299_v17 = vld [vmem:[#allocation6_spill] sm:$0xff] }
 0x13e   : > { %2056 = vmatmul.bf16.gmra.mxu2 %v1874_v43  ;;  %v17300_v39 = vld [vmem:[#allocation42_spill] sm:$0xff]  ;;  %v1192_v43 = vadd.f32 %v17301_v0, %v1088_v16  ;;  %v1093_v16 = vadd.f32 %v12477_v20, %v12370_v52 }
 0x13f   : > { %1594 = vmatmul.bf16.gmra.mxu1 %v11974_v46  ;;  %v1291_v46 = vadd.f32 %v12356_v41, %v1187_v62  ;;  %v1190_v63 = vadd.f32 %v17300_v39, %v1086_v31  ;;  %v17302_v62 = vld [vmem:[#allocation43_spill] sm:$0xff]  ;;  %v1091_v31 = vadd.f32 %v12453_v14, %v12370_v52  ;;  %v17306_v39 = vld [vmem:[#allocation48_spill] sm:$0xff]  ;;  %v17307_v14 = vld [vmem:[#allocation50_spill] sm:$0xff] }
 0x140   : > { %v1353_v7 = vpop.f32.mrf.mxu3  ;;  %v1197_v0 = vadd.f32 %v17307_v14, %v1093_v16 }
 0x141   : > { %v1354_v12 = vadd.f32 %v1353_v7, %v12473_v42  ;;  %v12615_v50 = vpop.f32.mrf.mxu2  ;;  %v1808_v21 = vmax.f32 %v1291_v46, 0.0  ;;  %v1294_v7 = vadd.f32 %v17302_v62, %v1190_v63  ;;  %v1195_v63 = vadd.f32 %v17306_v39, %v1091_v31  ;;  %v17310_v39 = vld [vmem:[#allocation13_spill] sm:$0xff] }
 0x142   : > { %v12609_v19 = vpop.f32.mrf.mxu0 }
 0x143   : > { %v1858_v2 = vmax.f32 %v1354_v12, 0.0  ;;  %v1876_v41 = vpack.c.bf16 %v1808_v21, %v1806_v45  ;;  %v1296_v12 = vadd.f32 %v12446_v58, %v1192_v43  ;;  %v1810_v30 = vmax.f32 %v1294_v7, 0.0  ;;  %v17308_v7 = vld [vmem:[#allocation49_spill] sm:$0xff] }
 0x144   : > { %v12611_v47 = vpop.f32.mrf.mxu1 }
 0x145   : > { %v1812_v46 = vmax.f32 %v1296_v12, 0.0  ;;  %v1299_v12 = vadd.f32 %v17308_v7, %v1195_v63  ;;  %v17311_v63 = vld [vmem:[#allocation12_spill] sm:$0xff] }
 0x147   : > { %v1878_v58 = vpack.c.bf16 %v1812_v46, %v1810_v30  ;;  %v1301_v30 = vadd.f32 %v12491_v28, %v1197_v0  ;;  %v10869_v46 = vld [vmem:[%s17171_s2 + $0x58] sm:$0xff]  ;;  %v1098_v28 = vadd.f32 %v12519_v6, %v12370_v52 }
 0x148   : > { %v1355_v55 = vpop.f32.mrf.mxu3  ;;  %2146 = vmatpush.bf16.msra.mxu3 %v10869_v46 }
 0x149   : > { %v1356_v11 = vadd.f32 %v1355_v55, %v12489_v24  ;;  %v12630_v24 = vpop.f32.mrf.mxu2  ;;  %v1202_v0 = vadd.f32 %v12521_v9, %v1098_v28  ;;  %v1101_v9 = vadd.f32 %v12531_v4, %v12370_v52 }
 0x14a   : > { %v12618_v15 = vpop.f32.mrf.mxu0 }
 0x14b   : > { %v1860_v36 = vmax.f32 %v1356_v11, 0.0  ;;  %v1306_v7 = vadd.f32 %v12529_v61, %v1202_v0  ;;  %v17313_v61 = vld [vmem:[#allocation17_spill] sm:$0xff] }
 0x14c   : > { %v12620_v42 = vpop.f32.mrf.mxu1 }
 0x14d   : > { %1406 = vmatmul.bf16.gmra.mxu3 %v17297_v23  ;;  %1495 = vmatmul.bf16.gmra.mxu0 %v17298_v26  ;;  %v12628_v37 = vpack.c.bf16 %v1860_v36, %v1858_v2  ;;  %v17304_v23 = vld [vmem:[#allocation10_spill] sm:$0xff]  ;;  %v1820_v46 = vmax.f32 %v1306_v7, 0.0 }
 0x14e   : > { %2061 = vmatmul.bf16.gmra.mxu2 %v1876_v41  ;;  %v17303_v41 = vld [vmem:[#allocation18_spill] sm:$0xff] }
 0x14f   : > { %1599 = vmatmul.bf16.gmra.mxu1 %v17299_v17  ;;  %v10881_v17 = vld [vmem:[%s17172_s3 + $0x38] sm:$0xff] }
 0x150   : > { %v1358_v32 = vpop.f32.mrf.mxu3  ;;  %2445 = vmatpush.bf16.msra.mxu0 %v10881_v17  ;;  %v17309_v17 = vld [vmem:[#allocation22_spill] sm:$0xff] }
 0x151   : > { %v1359_v18 = vadd.f32 %v1358_v32, %v12515_v54  ;;  %v12642_v45 = vpop.f32.mrf.mxu2 }
 0x152   : > { %v12636_v56 = vpop.f32.mrf.mxu0 }
 0x153   : > { %v1862_v2 = vmax.f32 %v1359_v18, 0.0 }
 0x154   : > { %v12638_v40 = vpop.f32.mrf.mxu1 }
 0x158   : > { %v1360_v21 = vpop.f32.mrf.mxu3 }
 0x159   : > { %v1361_v55 = vadd.f32 %v1360_v21, %v12527_v13  ;;  %v17305_v13 = vld [vmem:[#allocation9_spill] sm:$0xff]  ;;  %v12664_v32 = vpop.f32.mrf.mxu2  ;;  %v1814_v21 = vmax.f32 %v1299_v12, 0.0 }
 0x15a   : > { %v12645_v11 = vpop.f32.mrf.mxu0 }
 0x15b   : > { %v1864_v36 = vmax.f32 %v1361_v55, 0.0  ;;  %v1816_v55 = vmax.f32 %v1301_v30, 0.0 }
 0x15c   : > { %v12647_v54 = vpop.f32.mrf.mxu1 }
 0x15d   : > { %1411 = vmatmul.bf16.gmra.mxu3 %v17303_v41  ;;  %1500 = vmatmul.bf16.gmra.mxu0 %v17304_v23  ;;  %v12655_v26 = vpack.c.bf16 %v1864_v36, %v1862_v2  ;;  %v1096_v41 = vadd.f32 %v12495_v34, %v12370_v52 }
 0x15e   : > { %2066 = vmatmul.bf16.gmra.mxu2 %v1878_v58 }
 0x15f   : > { %1604 = vmatmul.bf16.gmra.mxu1 %v17305_v13  ;;  %v1880_v13 = vpack.c.bf16 %v1816_v55, %v1814_v21  ;;  %v1200_v14 = vadd.f32 %v12501_v53, %v1096_v41 }
 0x160   : > { %v1363_v43 = vpop.f32.mrf.mxu3 }
 0x161   : > { %v1364_v20 = vadd.f32 %v1363_v43, %v12549_v44  ;;  %v12684_v23 = vpop.f32.mrf.mxu2 }
 0x162   : > { %v12666_v18 = vpop.f32.mrf.mxu0 }
 0x163   : > { %v1866_v31 = vmax.f32 %v1364_v20, 0.0  ;;  %v1304_v20 = vadd.f32 %v12517_v3, %v1200_v14  ;;  %v17312_v3 = vld [vmem:[#allocation26_spill] sm:$0xff] }
 0x164   : > { %v12668_v62 = vpop.f32.mrf.mxu1 }
 0x165   : > { %v1818_v30 = vmax.f32 %v1304_v20, 0.0 }
 0x168   : > { %v1365_v2 = vpop.f32.mrf.mxu3 }
 0x169   : > { %v1366_v44 = vadd.f32 %v1365_v2, %v12561_v8  ;;  %v12699_v12 = vpop.f32.mrf.mxu2  ;;  %v1103_v2 = vadd.f32 %v12553_v35, %v12370_v52 }
 0x16a   : > { %v12676_v36 = vpop.f32.mrf.mxu0 }
 0x16b   : > { %v1868_v16 = vmax.f32 %v1366_v44, 0.0  ;;  %v1882_v44 = vpack.c.bf16 %v1820_v46, %v1818_v30  ;;  %v1207_v41 = vadd.f32 %v12555_v57, %v1103_v2  ;;  %v1108_v30 = vadd.f32 %v12581_v33, %v12370_v52  ;;  %v17316_v2 = vld [vmem:[#allocation21_spill] sm:$0xff] }
 0x16c   : > { %v12678_v58 = vpop.f32.mrf.mxu1 }
 0x16d   : > { %1416 = vmatmul.bf16.gmra.mxu3 %v17309_v17  ;;  %1505 = vmatmul.bf16.gmra.mxu0 %v17310_v39  ;;  %v12688_v8 = vpack.c.bf16 %v1868_v16, %v1866_v31  ;;  %v17314_v31 = vld [vmem:[#allocation16_spill] sm:$0xff]  ;;  %v1205_v16 = vadd.f32 %v12533_v10, %v1101_v9  ;;  %v1311_v39 = vadd.f32 %v12563_v59, %v1207_v41  ;;  %v17315_v9 = vld [vmem:[#allocation30_spill] sm:$0xff] }
 0x16e   : > { %2071 = vmatmul.bf16.gmra.mxu2 %v1880_v13  ;;  %v10880_v10 = vld [vmem:[%s17172_s3 + $0x30] sm:$0xff]  ;;  %v1106_v59 = vadd.f32 %v12565_v29, %v12370_v52 }
 0x16f   : > { %1609 = vmatmul.bf16.gmra.mxu1 %v17311_v63  ;;  %v1309_v35 = vadd.f32 %v12551_v27, %v1205_v16  ;;  %v1824_v14 = vmax.f32 %v1311_v39, 0.0  ;;  %2446 = vmatpush.bf16.msra.mxu0 %v10880_v10  ;;  %v10868_v27 = vld [vmem:[%s17171_s2 + $0x50] sm:$0xff]  ;;  %v17318_v39 = vld [vmem:[#allocation38_spill] sm:$0xff] }
 0x170   : > { %v1377_v34 = vpop.f32.mrf.mxu3  ;;  %2147 = vmatpush.bf16.msra.mxu3 %v10868_v27 }
 0x171   : > { %v12716_v28 = vpop.f32.mrf.mxu2  ;;  %v1822_v63 = vmax.f32 %v1309_v35, 0.0 }
 0x172   : > { %v12693_v43 = vpop.f32.mrf.mxu0 }
 0x173   : > { %v1884_v46 = vpack.c.bf16 %v1824_v14, %v1822_v63  ;;  %v12760_v63 = vperm.slane %v17318_v39, 1 }
 0x174   : > { %v12695_v6 = vpop.f32.mrf.mxu1 }
 0x178   : > { %v12701_v21 = vpop.f32.mrf.mxu3 }
 0x179   : > { %v12731_v57 = vpop.f32.mrf.mxu2 }
 0x17a   : > { %v12703_v55 = vpop.f32.mrf.mxu0 }
 0x17c   : > { %v12705_v53 = vpop.f32.mrf.mxu1 }
 0x17d   : > { %1421 = vmatmul.bf16.gmra.mxu3 %v17312_v3  ;;  %1510 = vmatmul.bf16.gmra.mxu0 %v17313_v61  ;;  %v1210_v3 = vadd.f32 %v12567_v5, %v1106_v59  ;;  %v1212_v61 = vadd.f32 %v12583_v49, %v1108_v30  ;;  %v1378_v49 = vadd.f32 %v1377_v34, %v12760_v63 }
 0x17e   : > { %2076 = vmatmul.bf16.gmra.mxu2 %v1882_v44  ;;  %v17317_v44 = vld [vmem:[#allocation20_spill] sm:$0xff] }
 0x17f   : > { %1614 = vmatmul.bf16.gmra.mxu1 %v17314_v31  ;;  %v1314_v33 = vadd.f32 %v12578_v51, %v1210_v3  ;;  %v1316_v41 = vadd.f32 %v12588_v22, %v1212_v61  ;;  %v1113_v51 = vadd.f32 %v12609_v19, %v12370_v52  ;;  %v17321_v61 = vld [vmem:[#allocation24_spill] sm:$0xff] }
 0x180   : > { %v12718_v13 = vpop.f32.mrf.mxu3 }
 0x181   : > { %v12757_v35 = vpop.f32.mrf.mxu2  ;;  %v1826_v14 = vmax.f32 %v1314_v33, 0.0  ;;  %v1828_v10 = vmax.f32 %v1316_v41, 0.0  ;;  %v1217_v33 = vadd.f32 %v12611_v47, %v1113_v51 }
 0x182   : > { %v12720_v4 = vpop.f32.mrf.mxu0 }
 0x183   : > { %v1886_v22 = vpack.c.bf16 %v1828_v10, %v1826_v14 }
 0x184   : > { %v12722_v17 = vpop.f32.mrf.mxu1 }
 0x188   : > { %v12726_v0 = vpop.f32.mrf.mxu3 }
 0x189   : > { %v12771_v3 = vpop.f32.mrf.mxu2 }
 0x18a   : > { %v12733_v20 = vpop.f32.mrf.mxu0 }
 0x18c   : > { %v12735_v7 = vpop.f32.mrf.mxu1 }
 0x18d   : > { %1426 = vmatmul.bf16.gmra.mxu3 %v17315_v9  ;;  %1515 = vmatmul.bf16.gmra.mxu0 %v17316_v2  ;;  %v17319_v2 = vld [vmem:[#allocation34_spill] sm:$0xff] }
 0x18e   : > { %2081 = vmatmul.bf16.gmra.mxu2 %v1884_v46  ;;  %v1111_v46 = vadd.f32 %v12590_v1, %v12370_v52  ;;  %v1380_v1 = vadd.f32 %v12701_v21, %v12760_v63 }
 0x18f   : > { %1619 = vmatmul.bf16.gmra.mxu1 %v17317_v44  ;;  %v17320_v44 = vld [vmem:[#allocation25_spill] sm:$0xff] }
 0x190   : > { %v12749_v31 = vpop.f32.mrf.mxu3  ;;  %v1215_v34 = vadd.f32 %v12592_v38, %v1111_v46  ;;  %v1383_v46 = vadd.f32 %v12718_v13, %v12760_v63  ;;  %v17323_v13 = vld [vmem:[#allocation29_spill] sm:$0xff] }
 0x191   : > { %v12782_v38 = vpop.f32.mrf.mxu2 }
 0x192   : > { %v12751_v16 = vpop.f32.mrf.mxu0  ;;  %v1319_v10 = vadd.f32 %v12615_v50, %v1215_v34  ;;  %v10879_v50 = vld [vmem:[%s17172_s3 + $0x28] sm:$0xff] }
 0x193   : > { %2447 = vmatpush.bf16.msra.mxu0 %v10879_v50 }
 0x194   : > { %v12753_v29 = vpop.f32.mrf.mxu1 }
 0x198   : > { %v12762_v5 = vpop.f32.mrf.mxu3 }
 0x19a   : > { %v1481_v27 = vpop.f32.mrf.mxu0 }
 0x19b   : > { %v1482_v59 = vadd.f32 %v1481_v27, %v1378_v49  ;;  %v1321_v49 = vadd.f32 %v12630_v24, %v1217_v33  ;;  %v1116_v24 = vadd.f32 %v12618_v15, %v12370_v52  ;;  %v1385_v15 = vadd.f32 %v12726_v0, %v12760_v63 }
 0x19c   : > { %v1585_v30 = vpop.f32.mrf.mxu1 }
 0x19d   : > { %v1586_v9 = vadd.f32 %v1585_v30, %v1482_v59  ;;  %1431 = vmatmul.bf16.gmra.mxu3 %v17319_v2  ;;  %1520 = vmatmul.bf16.gmra.mxu0 %v17320_v44  ;;  %v1832_v2 = vmax.f32 %v1321_v49, 0.0 }
 0x19e   : > { %2086 = vmatmul.bf16.gmra.mxu2 %v1886_v22  ;;  %v1830_v22 = vmax.f32 %v1319_v10, 0.0 }
 0x19f   : > { %1624 = vmatmul.bf16.gmra.mxu1 %v17321_v61  ;;  %v1795_v59 = vmax.f32 %v1586_v9, 0.0  ;;  %v1118_v9 = vadd.f32 %v12636_v56, %v12370_v52  ;;  %v12806_v56 = vpop.f32.mrf.mxu2 }
 0x1a0   : > { %v12776_v41 = vpop.f32.mrf.mxu3  ;;  %v1888_v34 = vpack.c.bf16 %v1832_v2, %v1830_v22 }
 0x1a2   : > { %v1483_v19 = vpop.f32.mrf.mxu0 }
 0x1a3   : > { %v1484_v39 = vadd.f32 %v1483_v19, %v1380_v1  ;;  %v17322_v1 = vld [vmem:[#allocation39_spill] sm:$0xff]  ;;  %v17324_v19 = vld [vmem:[#allocation28_spill] sm:$0xff] }
 0x1a4   : > { %v1587_v14 = vpop.f32.mrf.mxu1 }
 0x1a5   : > { %v1588_v27 = vadd.f32 %v1587_v14, %v1484_v39  ;;  %v1220_v39 = vadd.f32 %v12620_v42, %v1116_v24  ;;  %v1222_v14 = vadd.f32 %v12638_v40, %v1118_v9 }
 0x1a7   : > { %v1797_v30 = vmax.f32 %v1588_v27, 0.0  ;;  %v10867_v27 = vld [vmem:[%s17171_s2 + $0x48] sm:$0xff]  ;;  %v1324_v22 = vadd.f32 %v12642_v45, %v1220_v39  ;;  %v1326_v42 = vadd.f32 %v12664_v32, %v1222_v14  ;;  %v1121_v45 = vadd.f32 %v12645_v11, %v12370_v52  ;;  %v17326_v39 = vld [vmem:[#allocation33_spill] sm:$0xff] }
 0x1a8   : > { %v12784_v47 = vpop.f32.mrf.mxu3  ;;  %2148 = vmatpush.bf16.msra.mxu3 %v10867_v27  ;;  %v1123_v32 = vadd.f32 %v12666_v18, %v12370_v52  ;;  %v1390_v11 = vadd.f32 %v12762_v5, %v12760_v63 }
 0x1a9   : > { %v12788_v21 = vpack.c.bf16 %v1797_v30, %v1795_v59  ;;  %v1225_v14 = vadd.f32 %v12647_v54, %v1121_v45 }
 0x1aa   : > { %v1486_v51 = vpop.f32.mrf.mxu0 }
 0x1ab   : > { %v1487_v44 = vadd.f32 %v1486_v51, %v1383_v46  ;;  %v1834_v51 = vmax.f32 %v1324_v22, 0.0 }
 0x1ac   : > { %v1590_v61 = vpop.f32.mrf.mxu1 }
 0x1ad   : > { %v1591_v33 = vadd.f32 %v1590_v61, %v1487_v44  ;;  %1436 = vmatmul.bf16.gmra.mxu3 %v17322_v1  ;;  %1525 = vmatmul.bf16.gmra.mxu0 %v17323_v13  ;;  %v1836_v44 = vmax.f32 %v1326_v42, 0.0  ;;  %v1388_v61 = vadd.f32 %v12749_v31, %v12760_v63  ;;  %v17327_v31 = vld [vmem:[#allocation32_spill] sm:$0xff] }
 0x1ae   : > { %2091 = vmatmul.bf16.gmra.mxu2 %v1888_v34 }
 0x1af   : > { %1629 = vmatmul.bf16.gmra.mxu1 %v17324_v19  ;;  %v1799_v2 = vmax.f32 %v1591_v33, 0.0  ;;  %v12823_v33 = vpop.f32.mrf.mxu2  ;;  %v1890_v1 = vpack.c.bf16 %v1836_v44, %v1834_v51  ;;  %v17325_v19 = vld [vmem:[#allocation45_spill] sm:$0xff]  ;;  %v1393_v44 = vadd.f32 %v12776_v41, %v12760_v63 }
 0x1b0   : > { %v12802_v10 = vpop.f32.mrf.mxu3 }
 0x1b2   : > { %v1488_v49 = vpop.f32.mrf.mxu0 }
 0x1b3   : > { %v1489_v59 = vadd.f32 %v1488_v49, %v1385_v15  ;;  %v1227_v15 = vadd.f32 %v12668_v62, %v1123_v32  ;;  %v17328_v32 = vld [vmem:[#allocation37_spill] sm:$0xff] }
 0x1b4   : > { %v1592_v30 = vpop.f32.mrf.mxu1 }
 0x1b5   : > { %v1593_v40 = vadd.f32 %v1592_v30, %v1489_v59  ;;  %v1329_v30 = vadd.f32 %v12684_v23, %v1225_v14  ;;  %v1331_v22 = vadd.f32 %v12699_v12, %v1227_v15  ;;  %v1126_v23 = vadd.f32 %v12676_v36, %v12370_v52 }
 0x1b6   : > { %v1128_v12 = vadd.f32 %v12693_v43, %v12370_v52  ;;  %v1395_v36 = vadd.f32 %v12784_v47, %v12760_v63 }
 0x1b7   : > { %v1801_v46 = vmax.f32 %v1593_v40, 0.0  ;;  %v12836_v40 = vpop.f32.mrf.mxu2  ;;  %v1838_v54 = vmax.f32 %v1329_v30, 0.0  ;;  %v1840_v51 = vmax.f32 %v1331_v22, 0.0  ;;  %v1230_v41 = vadd.f32 %v12678_v58, %v1126_v23 }
 0x1b8   : > { %v12813_v0 = vpop.f32.mrf.mxu3  ;;  %v1398_v22 = vadd.f32 %v12802_v10, %v12760_v63  ;;  %v17332_v10 = vld [vmem:[#allocation40_spill] sm:$0xff] }
 0x1b9   : > { %v12817_v50 = vpack.c.bf16 %v1801_v46, %v1799_v2  ;;  %v1334_v15 = vadd.f32 %v12716_v28, %v1230_v41 }
 0x1ba   : > { %v1491_v24 = vpop.f32.mrf.mxu0 }
 0x1bb   : > { %v1492_v9 = vadd.f32 %v1491_v24, %v1388_v61  ;;  %v1842_v47 = vmax.f32 %v1334_v15, 0.0 }
 0x1bc   : > { %v1595_v34 = vpop.f32.mrf.mxu1 }
 0x1bd   : > { %v1596_v13 = vadd.f32 %v1595_v34, %v1492_v9  ;;  %1441 = vmatmul.bf16.gmra.mxu3 %v17325_v19  ;;  %1530 = vmatmul.bf16.gmra.mxu0 %v17326_v39  ;;  %v1892_v34 = vpack.c.bf16 %v1840_v51, %v1838_v54  ;;  %v1131_v54 = vadd.f32 %v12703_v55, %v12370_v52 }
 0x1be   : > { %2096 = vmatmul.bf16.gmra.mxu2 %v1890_v1  ;;  %v17329_v1 = vld [vmem:[#allocation36_spill] sm:$0xff]  ;;  %v1133_v51 = vadd.f32 %v12720_v4, %v12370_v52  ;;  %v1400_v55 = vadd.f32 %v12813_v0, %v12760_v63 }
 0x1bf   : > { %1634 = vmatmul.bf16.gmra.mxu1 %v17327_v31  ;;  %v1803_v2 = vmax.f32 %v1596_v13, 0.0  ;;  %v1232_v13 = vadd.f32 %v12695_v6, %v1128_v12  ;;  %v12853_v19 = vpop.f32.mrf.mxu2  ;;  %v1235_v23 = vadd.f32 %v12705_v53, %v1131_v54 }
 0x1c0   : > { %v12830_v49 = vpop.f32.mrf.mxu3  ;;  %v1237_v12 = vadd.f32 %v12722_v17, %v1133_v51 }
 0x1c1   : > { %v1336_v58 = vadd.f32 %v12731_v57, %v1232_v13 }
 0x1c2   : > { %v1493_v18 = vpop.f32.mrf.mxu0  ;;  %v1341_v41 = vadd.f32 %v12771_v3, %v1237_v12  ;;  %v1136_v3 = vadd.f32 %v12733_v20, %v12370_v52 }
 0x1c3   : > { %v1494_v27 = vadd.f32 %v1493_v18, %v1390_v11 }
 0x1c4   : > { %v1597_v59 = vpop.f32.mrf.mxu1 }
 0x1c5   : > { %v1598_v42 = vadd.f32 %v1597_v59, %v1494_v27  ;;  %v10866_v27 = vld [vmem:[%s17171_s2 + $0x40] sm:$0xff]  ;;  %v1844_v59 = vmax.f32 %v1336_v58, 0.0 }
 0x1c6   : > { %2149 = vmatpush.bf16.msra.mxu3 %v10866_v27 }
 0x1c7   : > { %v1805_v46 = vmax.f32 %v1598_v42, 0.0  ;;  %v12873_v28 = vpop.f32.mrf.mxu2 }
 0x1c8   : > { %v12838_v62 = vpop.f32.mrf.mxu3 }
 0x1c9   : > { %v12842_v5 = vpack.c.bf16 %v1805_v46, %v1803_v2 }
 0x1ca   : > { %v1496_v61 = vpop.f32.mrf.mxu0 }
 0x1cb   : > { %v1497_v24 = vadd.f32 %v1496_v61, %v1393_v44  ;;  %v1894_v44 = vpack.c.bf16 %v1844_v59, %v1842_v47  ;;  %v17333_v47 = vld [vmem:[#allocation3_spill] sm:$0xff] }
 0x1cc   : > { %v1600_v9 = vpop.f32.mrf.mxu1 }
 0x1cd   : > { %v1601_v45 = vadd.f32 %v1600_v9, %v1497_v24  ;;  %1446 = vmatmul.bf16.gmra.mxu3 %v12493_v60  ;;  %1535 = vmatmul.bf16.gmra.mxu0 %v17328_v32  ;;  %v10878_v60 = vld [vmem:[%s17172_s3 + $0x20] sm:$0xff]  ;;  %v17331_v9 = vld [vmem:[#allocation41_spill] sm:$0xff] }
 0x1ce   : > { %2101 = vmatmul.bf16.gmra.mxu2 %v1892_v34  ;;  %2448 = vmatpush.bf16.msra.mxu0 %v10878_v60  ;;  %v17330_v24 = vld [vmem:[#allocation2_spill] sm:$0xff] }
 0x1cf   : > { %1639 = vmatmul.bf16.gmra.mxu1 %v17329_v1  ;;  %v1807_v11 = vmax.f32 %v1601_v45, 0.0  ;;  %v1339_v1 = vadd.f32 %v12757_v35, %v1235_v23  ;;  %v12890_v13 = vpop.f32.mrf.mxu2  ;;  %v10889_v35 = vld [vmem:[%s17172_s3 + $0x78] sm:$0xff] }
 0x1d0   : > { %v12855_v39 = vpop.f32.mrf.mxu3  ;;  %2749 = vmatpush.bf16.msra.mxu1 %v10889_v35 }
 0x1d1   : > { %v1846_v53 = vmax.f32 %v1339_v1, 0.0  ;;  %v17336_v1 = vld [vmem:[#allocation4_spill] sm:$0xff] }
 0x1d2   : > { %v1498_v43 = vpop.f32.mrf.mxu0 }
 0x1d3   : > { %v1499_v31 = vadd.f32 %v1498_v43, %v1395_v36 }
 0x1d4   : > { %v1602_v14 = vpop.f32.mrf.mxu1 }
 0x1d5   : > { %v1603_v6 = vadd.f32 %v1602_v14, %v1499_v31  ;;  %v1848_v31 = vmax.f32 %v1341_v41, 0.0  ;;  %v1403_v14 = vadd.f32 %v12830_v49, %v12760_v63  ;;  %v17334_v49 = vld [vmem:[#allocation47_spill] sm:$0xff] }
 0x1d6   : > { %v17337_v41 = vld [vmem:[#allocation51_spill] sm:$0xff] }
 0x1d7   : > { %v1809_v18 = vmax.f32 %v1603_v6, 0.0  ;;  %v12907_v59 = vpop.f32.mrf.mxu2 }
 0x1d8   : > { %v12867_v30 = vpop.f32.mrf.mxu3 }
 0x1d9   : > { %v12871_v42 = vpack.c.bf16 %v1809_v18, %v1807_v11  ;;  %v1138_v11 = vadd.f32 %v12751_v16, %v12370_v52  ;;  %v1896_v18 = vpack.c.bf16 %v1848_v31, %v1846_v53  ;;  %v1405_v52 = vadd.f32 %v12838_v62, %v12760_v63 }
 0x1da   : > { %v1501_v57 = vpop.f32.mrf.mxu0  ;;  %v1408_v62 = vadd.f32 %v12855_v39, %v12760_v63 }
 0x1db   : > { %v1502_v2 = vadd.f32 %v1501_v57, %v1398_v22  ;;  %v17335_v22 = vld [vmem:[#allocation46_spill] sm:$0xff]  ;;  %v1240_v57 = vadd.f32 %v12735_v7, %v1136_v3  ;;  %v10877_v7 = vld [vmem:[%s17172_s3 + $0x18] sm:$0xff] }
 0x1dc   : > { %v1605_v46 = vpop.f32.mrf.mxu1  ;;  %2449 = vmatpush.bf16.msra.mxu0 %v10877_v7 }
 0x1dd   : > { %v1606_v61 = vadd.f32 %v1605_v46, %v1502_v2  ;;  %1451 = vmatmul.bf16.gmra.mxu3 %v17330_v24  ;;  %1540 = vmatmul.bf16.gmra.mxu0 %v17331_v9  ;;  %v1242_v2 = vadd.f32 %v12753_v29, %v1138_v11  ;;  %v1344_v51 = vadd.f32 %v12782_v38, %v1240_v57 }
 0x1de   : > { %2106 = vmatmul.bf16.gmra.mxu2 %v1894_v44 }
 0x1df   : > { %1644 = vmatmul.bf16.gmra.mxu1 %v17332_v10  ;;  %v1811_v43 = vmax.f32 %v1606_v61, 0.0  ;;  %v1346_v44 = vadd.f32 %v12806_v56, %v1242_v2  ;;  %v1850_v29 = vmax.f32 %v1344_v51, 0.0  ;;  %v12921_v23 = vpop.f32.mrf.mxu2 }
 0x1e0   : > { %v12884_v34 = vpop.f32.mrf.mxu3 }
 0x1e1   : > { %v1852_v10 = vmax.f32 %v1346_v44, 0.0 }
 0x1e2   : > { %v1503_v45 = vpop.f32.mrf.mxu0 }
 0x1e3   : > { %v1504_v4 = vadd.f32 %v1503_v45, %v1400_v55 }
 0x1e4   : > { %v1607_v32 = vpop.f32.mrf.mxu1 }
 0x1e5   : > { %v1608_v36 = vadd.f32 %v1607_v32, %v1504_v4  ;;  %v1898_v4 = vpack.c.bf16 %v1852_v10, %v1850_v29  ;;  %v17341_v29 = vld [vmem:[#allocation11_spill] sm:$0xff] }
 0x1e6   : > { %v17342_v10 = vld [vmem:[#allocation27_spill] sm:$0xff] }
 0x1e7   : > { %v1813_v60 = vmax.f32 %v1608_v36, 0.0  ;;  %v12932_v39 = vpop.f32.mrf.mxu2 }
 0x1e8   : > { %v12892_v17 = vpop.f32.mrf.mxu3 }
 0x1e9   : > { %v12896_v0 = vpack.c.bf16 %v1813_v60, %v1811_v43  ;;  %v1410_v43 = vadd.f32 %v12867_v30, %v12760_v63  ;;  %v17339_v30 = vld [vmem:[#allocation8_spill] sm:$0xff]  ;;  %v1415_v57 = vadd.f32 %v12892_v17, %v12760_v63 }
 0x1ea   : > { %v1506_v15 = vpop.f32.mrf.mxu0 }
 0x1eb   : > { %v1507_v58 = vadd.f32 %v1506_v15, %v1403_v14 }
 0x1ec   : > { %v1610_v6 = vpop.f32.mrf.mxu1 }
 0x1ed   : > { %v1611_v27 = vadd.f32 %v1610_v6, %v1507_v58  ;;  %1456 = vmatmul.bf16.gmra.mxu3 %v17333_v47  ;;  %1545 = vmatmul.bf16.gmra.mxu0 %v17334_v49  ;;  %v17340_v47 = vld [vmem:[#allocation23_spill] sm:$0xff] }
 0x1ee   : > { %2111 = vmatmul.bf16.gmra.mxu2 %v1896_v18  ;;  %v1413_v18 = vadd.f32 %v12884_v34, %v12760_v63 }
 0x1ef   : > { %1649 = vmatmul.bf16.gmra.mxu1 %v17335_v22  ;;  %v1815_v24 = vmax.f32 %v1611_v27, 0.0  ;;  %v12936_v11 = vpop.f32.mrf.mxu2  ;;  %v17338_v27 = vld [vmem:[#allocation5_spill] sm:$0xff] }
 0x1f0   : > { %v12912_v20 = vpop.f32.mrf.mxu3 }
 0x1f1   : > { %v1418_v17 = vadd.f32 %v12912_v20, %v12760_v63 }
 0x1f2   : > { %v1508_v16 = vpop.f32.mrf.mxu0 }
 0x1f3   : > { %v1509_v46 = vadd.f32 %v1508_v16, %v1405_v52  ;;  %v10888_v52 = vld [vmem:[%s17172_s3 + $0x70] sm:$0xff] }
 0x1f4   : > { %v1612_v54 = vpop.f32.mrf.mxu1  ;;  %2750 = vmatpush.bf16.msra.mxu1 %v10888_v52 }
 0x1f5   : > { %v1613_v61 = vadd.f32 %v1612_v54, %v1509_v46 }
 0x1f7   : > { %v1817_v9 = vmax.f32 %v1613_v61, 0.0  ;;  %v12949_v51 = vpop.f32.mrf.mxu2 }
 0x1f8   : > { %v1419_v12 = vpop.f32.mrf.mxu3 }
 0x1f9   : > { %v12925_v55 = vpack.c.bf16 %v1817_v9, %v1815_v24 }
 0x1fa   : > { %v1511_v38 = vpop.f32.mrf.mxu0 }
 0x1fb   : > { %v1512_v56 = vadd.f32 %v1511_v38, %v1408_v62  ;;  %v10876_v38 = vld [vmem:[%s17172_s3 + $0x10] sm:$0xff] }
 0x1fc   : > { %v1615_v45 = vpop.f32.mrf.mxu1  ;;  %2450 = vmatpush.bf16.msra.mxu0 %v10876_v38 }
 0x1fd   : > { %v1616_v32 = vadd.f32 %v1615_v45, %v1512_v56  ;;  %1461 = vmatmul.bf16.gmra.mxu3 %v17336_v1  ;;  %1550 = vmatmul.bf16.gmra.mxu0 %v12499_v48 }
 0x1fe   : > { %2116 = vmatmul.bf16.gmra.mxu2 %v1898_v4  ;;  %v1420_v4 = vadd.f32 %v1419_v12, %v12760_v63  ;;  %v17344_v12 = vld [vmem:[#allocation31_spill] sm:$0xff] }
 0x1ff   : > { %1654 = vmatmul.bf16.gmra.mxu1 %v17337_v41  ;;  %v1819_v15 = vmax.f32 %v1616_v32, 0.0  ;;  %v12962_v56 = vpop.f32.mrf.mxu2 }
 0x200   : > { %v1422_v36 = vpop.f32.mrf.mxu3 }
 0x202   : > { %v1513_v60 = vpop.f32.mrf.mxu0 }
 0x203   : > { %v1514_v53 = vadd.f32 %v1513_v60, %v1410_v43 }
 0x204   : > { %v1617_v31 = vpop.f32.mrf.mxu1 }
 0x205   : > { %v1618_v14 = vadd.f32 %v1617_v31, %v1514_v53 }
 0x207   : > { %v1821_v58 = vmax.f32 %v1618_v14, 0.0  ;;  %v12967_v31 = vpop.f32.mrf.mxu2 }
 0x208   : > { %v1424_v6 = vpop.f32.mrf.mxu3 }
 0x209   : > { %v12934_v35 = vpack.c.bf16 %v1821_v58, %v1819_v15  ;;  %v1423_v58 = vadd.f32 %v1422_v36, %v12760_v63 }
 0x20a   : > { %v1516_v3 = vpop.f32.mrf.mxu0 }
 0x20b   : > { %v1517_v49 = vadd.f32 %v1516_v3, %v1413_v18  ;;  %v17343_v3 = vld [vmem:[#allocation15_spill] sm:$0xff] }
 0x20c   : > { %v1620_v48 = vpop.f32.mrf.mxu1 }
 0x20d   : > { %1466 = vmatmul.bf16.gmra.mxu3 %v17338_v27  ;;  %1555 = vmatmul.bf16.gmra.mxu0 %v17339_v30  ;;  %v1621_v16 = vadd.f32 %v1620_v48, %v1517_v49  ;;  %v1425_v27 = vadd.f32 %v1424_v6, %v12760_v63 }
 0x20e   : > { %2121 = vmatmul.bf16.gmra.mxu2 %v12600_v25 }
 0x20f   : > { %1659 = vmatmul.bf16.gmra.mxu1 %v17340_v47  ;;  %v1823_v25 = vmax.f32 %v1621_v16, 0.0 }
 0x210   : > { %v1427_v22 = vpop.f32.mrf.mxu3 }
 0x211   : > { %v1428_v6 = vadd.f32 %v1427_v22, %v12760_v63  ;;  %v10875_v22 = vld [vmem:[%s17172_s3 + $0x8] sm:$0xff] }
 0x212   : > { %v1518_v2 = vpop.f32.mrf.mxu0  ;;  %2451 = vmatpush.bf16.msra.mxu0 %v10875_v22 }
 0x213   : > { %v1519_v34 = vadd.f32 %v1518_v2, %v1415_v57  ;;  %v12975_v2 = vpop.f32.mrf.mxu2 }
 0x214   : > { %v1622_v46 = vpop.f32.mrf.mxu1 }
 0x215   : > { %v1623_v54 = vadd.f32 %v1622_v46, %v1519_v34 }
 0x217   : > { %v1825_v44 = vmax.f32 %v1623_v54, 0.0 }
 0x218   : > { %v1429_v61 = vpop.f32.mrf.mxu3 }
 0x219   : > { %v12951_v24 = vpack.c.bf16 %v1825_v44, %v1823_v25  ;;  %v17345_v25 = vld [vmem:[#allocation19_spill] sm:$0xff] }
 0x21a   : > { %v1521_v9 = vpop.f32.mrf.mxu0 }
 0x21b   : > { %v1522_v62 = vadd.f32 %v1521_v9, %v1418_v17  ;;  %v12985_v44 = vpop.f32.mrf.mxu2  ;;  %v17346_v9 = vld [vmem:[#allocation35_spill] sm:$0xff] }
 0x21c   : > { %v1625_v7 = vpop.f32.mrf.mxu1 }
 0x21d   : > { %1560 = vmatmul.bf16.gmra.mxu0 %v17341_v29  ;;  %2150 = vmatmul.bf16.vlgmr.msra.gmra.mxu3 %v12788_v21  ;;  %v1626_v32 = vadd.f32 %v1625_v7, %v1522_v62  ;;  %v1430_v29 = vadd.f32 %v1429_v61, %v12760_v63 }
 0x21e   : > { %2126 = vmatmul.bf16.gmra.mxu2 %v12628_v37 }
 0x21f   : > { %1664 = vmatmul.bf16.gmra.mxu1 %v17342_v10  ;;  %v1827_v43 = vmax.f32 %v1626_v32, 0.0 }
 0x220   : > { %v1432_v45 = vpop.f32.mrf.mxu3 }
 0x222   : > { %v1523_v20 = vpop.f32.mrf.mxu0 }
 0x223   : > { %v1524_v1 = vadd.f32 %v1523_v20, %v1420_v4 }
 0x224   : > { %v1627_v41 = vpop.f32.mrf.mxu1 }
 0x225   : > { %v1628_v21 = vadd.f32 %v1627_v41, %v1524_v1 }
 0x227   : > { %v1829_v37 = vmax.f32 %v1628_v21, 0.0 }
 0x228   : > { %v1434_v60 = vpop.f32.mrf.mxu3 }
 0x229   : > { %v12965_v53 = vpack.c.bf16 %v1829_v37, %v1827_v43  ;;  %v1433_v43 = vadd.f32 %v1432_v45, %v12760_v63 }
 0x22a   : > { %v1526_v14 = vpop.f32.mrf.mxu0 }
 0x22b   : > { %v1527_v48 = vadd.f32 %v1526_v14, %v1423_v58  ;;  %v1435_v14 = vadd.f32 %v1434_v60, %v12760_v63  ;;  %v10886_v60 = vld [vmem:[%s17172_s3 + $0x60] sm:$0xff] }
 0x22c   : > { %v1630_v15 = vpop.f32.mrf.mxu1 }
 0x22d   : > { %1565 = vmatmul.bf16.gmra.mxu0 %v17343_v3  ;;  %2155 = vmatmul.bf16.gmra.mxu3 %v12817_v50  ;;  %v1631_v47 = vadd.f32 %v1630_v15, %v1527_v48  ;;  %v10887_v50 = vld [vmem:[%s17172_s3 + $0x68] sm:$0xff] }
 0x22e   : > { %2131 = vmatmul.bf16.gmra.mxu2 %v12655_v26  ;;  %2751 = vmatpush.bf16.msra.mxu1 %v10887_v50 }
 0x22f   : > { %1669 = vmatmul.bf16.gmra.mxu1 %v17344_v12  ;;  %v1831_v36 = vmax.f32 %v1631_v47, 0.0 }
 0x230   : > { %v1437_v18 = vpop.f32.mrf.mxu3 }
 0x231   : > { %v1438_v45 = vadd.f32 %v1437_v18, %v12760_v63 }
 0x232   : > { %v1528_v30 = vpop.f32.mrf.mxu0  ;;  %2752 = vmatpush.bf16.msra.mxu1 %v10886_v60 }
 0x233   : > { %v1529_v49 = vadd.f32 %v1528_v30, %v1425_v27 }
 0x234   : > { %v1632_v57 = vpop.f32.mrf.mxu1 }
 0x235   : > { %v1633_v52 = vadd.f32 %v1632_v57, %v1529_v49 }
 0x237   : > { %v1833_v16 = vmax.f32 %v1633_v52, 0.0 }
 0x238   : > { %v1439_v26 = vpop.f32.mrf.mxu3 }
 0x239   : > { %v12980_v34 = vpack.c.bf16 %v1833_v16, %v1831_v36  ;;  %v1440_v16 = vadd.f32 %v1439_v26, %v12760_v63 }
 0x23a   : > { %v1531_v46 = vpop.f32.mrf.mxu0 }
 0x23b   : > { %v1532_v7 = vadd.f32 %v1531_v46, %v1428_v6 }
 0x23c   : > { %v1635_v54 = vpop.f32.mrf.mxu1 }
 0x23d   : > { %1570 = vmatmul.bf16.gmra.mxu0 %v17345_v25  ;;  %2160 = vmatmul.bf16.gmra.mxu3 %v12842_v5  ;;  %v1636_v62 = vadd.f32 %v1635_v54, %v1532_v7 }
 0x23e   : > { %2136 = vmatmul.bf16.gmra.mxu2 %v12688_v8 }
 0x23f   : > { %1674 = vmatmul.bf16.gmra.mxu1 %v17346_v9  ;;  %v1835_v5 = vmax.f32 %v1636_v62, 0.0 }
 0x240   : > { %v1442_v17 = vpop.f32.mrf.mxu3 }
 0x241   : > { %v1443_v26 = vadd.f32 %v1442_v17, %v12760_v63 }
 0x242   : > { %v1533_v10 = vpop.f32.mrf.mxu0 }
 0x243   : > { %v1534_v38 = vadd.f32 %v1533_v10, %v1430_v29  ;;  %v10874_v10 = vld [vmem:[%s17172_s3] sm:$0xff] }
 0x244   : > { %v1637_v4 = vpop.f32.mrf.mxu1  ;;  %2452 = vmatpush.bf16.msra.mxu0 %v10874_v10 }
 0x245   : > { %v1638_v20 = vadd.f32 %v1637_v4, %v1534_v38 }
 0x247   : > { %v1837_v32 = vmax.f32 %v1638_v20, 0.0 }
 0x248   : > { %v1444_v1 = vpop.f32.mrf.mxu3 }
 0x249   : > { %v12993_v8 = vpack.c.bf16 %v1837_v32, %v1835_v5  ;;  %v1445_v22 = vadd.f32 %v1444_v1, %v12760_v63 }
 0x24a   : > { %v1536_v41 = vpop.f32.mrf.mxu0 }
 0x24b   : > { %v1537_v61 = vadd.f32 %v1536_v41, %v1433_v43 }
 0x24c   : > { %v1640_v21 = vpop.f32.mrf.mxu1 }
 0x24d   : > { %2165 = vmatmul.bf16.gmra.mxu3 %v12871_v42  ;;  %v1641_v58 = vadd.f32 %v1640_v21, %v1537_v61 }
 0x24f   : > { %v1839_v27 = vmax.f32 %v1641_v58, 0.0 }
 0x250   : > { %v1447_v37 = vpop.f32.mrf.mxu3 }
 0x252   : > { %v1538_v15 = vpop.f32.mrf.mxu0 }
 0x253   : > { %v1539_v3 = vadd.f32 %v1538_v15, %v1435_v14  ;;  %v10897_v14 = vld [vmem:[%s17172_s3 + $0xb8] sm:$0xff] }
 0x254   : > { %v1642_v12 = vpop.f32.mrf.mxu1  ;;  %3053 = vmatpush.bf16.msra.mxu2 %v10897_v14 }
 0x255   : > { %v1643_v48 = vadd.f32 %v1642_v12, %v1539_v3  ;;  %v1448_v3 = vadd.f32 %v1447_v37, %v12760_v63 }
 0x257   : > { %v1841_v30 = vmax.f32 %v1643_v48, 0.0 }
 0x258   : > { %v1449_v47 = vpop.f32.mrf.mxu3 }
 0x259   : > { %v12998_v49 = vpack.c.bf16 %v1841_v30, %v1839_v27  ;;  %v1450_v48 = vadd.f32 %v1449_v47, %v12760_v63 }
 0x25a   : > { %v1541_v57 = vpop.f32.mrf.mxu0 }
 0x25b   : > { %v1542_v42 = vadd.f32 %v1541_v57, %v1438_v45  ;;  %v10885_v45 = vld [vmem:[%s17172_s3 + $0x58] sm:$0xff] }
 0x25c   : > { %v1645_v52 = vpop.f32.mrf.mxu1  ;;  %2753 = vmatpush.bf16.msra.mxu1 %v10885_v45 }
 0x25d   : > { %2170 = vmatmul.bf16.gmra.mxu3 %v12896_v0  ;;  %v1646_v46 = vadd.f32 %v1645_v52, %v1542_v42 }
 0x25f   : > { %v1843_v9 = vmax.f32 %v1646_v46, 0.0 }
 0x260   : > { %v1452_v36 = vpop.f32.mrf.mxu3 }
 0x262   : > { %v1543_v50 = vpop.f32.mrf.mxu0 }
 0x263   : > { %v1544_v54 = vadd.f32 %v1543_v50, %v1440_v16 }
 0x264   : > { %v1647_v6 = vpop.f32.mrf.mxu1 }
 0x265   : > { %v1648_v25 = vadd.f32 %v1647_v6, %v1544_v54  ;;  %v1453_v54 = vadd.f32 %v1452_v36, %v12760_v63 }
 0x267   : > { %v1845_v7 = vmax.f32 %v1648_v25, 0.0 }
 0x268   : > { %v1454_v29 = vpop.f32.mrf.mxu3 }
 0x269   : > { %v13006_v18 = vpack.c.bf16 %v1845_v7, %v1843_v9  ;;  %v1455_v25 = vadd.f32 %v1454_v29, %v12760_v63  ;;  %v10896_v29 = vld [vmem:[%s17172_s3 + $0xb0] sm:$0xff] }
 0x26a   : > { %v1546_v0 = vpop.f32.mrf.mxu0  ;;  %3054 = vmatpush.bf16.msra.mxu2 %v10896_v29 }
 0x26b   : > { %v1547_v38 = vadd.f32 %v1546_v0, %v1443_v26 }
 0x26c   : > { %v1650_v62 = vpop.f32.mrf.mxu1 }
 0x26d   : > { %2175 = vmatmul.bf16.gmra.mxu3 %v12925_v55  ;;  %v1651_v5 = vadd.f32 %v1650_v62, %v1547_v38 }
 0x26f   : > { %v1847_v43 = vmax.f32 %v1651_v5, 0.0 }
 0x270   : > { %v1457_v4 = vpop.f32.mrf.mxu3 }
 0x271   : > { %v1458_v36 = vadd.f32 %v1457_v4, %v12760_v63 }
 0x272   : > { %v1548_v20 = vpop.f32.mrf.mxu0 }
 0x273   : > { %v1549_v32 = vadd.f32 %v1548_v20, %v1445_v22 }
 0x274   : > { %v1652_v41 = vpop.f32.mrf.mxu1 }
 0x275   : > { %v1653_v21 = vadd.f32 %v1652_v41, %v1549_v32 }
 0x277   : > { %v1849_v61 = vmax.f32 %v1653_v21, 0.0  ;;  %v13042_v21 = vld [vmem:[%s17176_s7] ss:$0 sm:$0xff] }
 0x278   : > { %v1459_v15 = vpop.f32.mrf.mxu3 }
 0x279   : > { %v13017_v17 = vpack.c.bf16 %v1849_v61, %v1847_v43  ;;  %v1460_v43 = vadd.f32 %v1459_v15, %v12760_v63 }
 0x27a   : > { %v1551_v55 = vpop.f32.mrf.mxu0 }
 0x27b   : > { %v1552_v1 = vadd.f32 %v1551_v55, %v1448_v3  ;;  %v2050_v3 = vadd.f32 %v13042_v21, %v12836_v40 }
 0x27c   : > { %v1655_v58 = vpop.f32.mrf.mxu1 }
 0x27d   : > { %2180 = vmatmul.bf16.gmra.mxu3 %v12934_v35  ;;  %v1656_v30 = vadd.f32 %v1655_v58, %v1552_v1 }
 0x27f   : > { %v1851_v60 = vmax.f32 %v1656_v30, 0.0 }
 0x280   : > { %v1462_v12 = vpop.f32.mrf.mxu3 }
 0x282   : > { %v1553_v27 = vpop.f32.mrf.mxu0 }
 0x283   : > { %v1554_v57 = vadd.f32 %v1553_v27, %v1450_v48 }
 0x284   : > { %v1657_v52 = vpop.f32.mrf.mxu1 }
 0x285   : > { %v1658_v42 = vadd.f32 %v1657_v52, %v1554_v57 }
 0x287   : > { %v1853_v16 = vmax.f32 %v1658_v42, 0.0 }
 0x288   : > { %v1464_v50 = vpop.f32.mrf.mxu3 }
 0x289   : > { %v13025_v37 = vpack.c.bf16 %v1853_v16, %v1851_v60  ;;  %v10884_v16 = vld [vmem:[%s17172_s3 + $0x50] sm:$0xff] }
 0x28a   : > { %v1556_v35 = vpop.f32.mrf.mxu0  ;;  %2754 = vmatpush.bf16.msra.mxu1 %v10884_v16 }
 0x28b   : > { %v1557_v47 = vadd.f32 %v1556_v35, %v1453_v54  ;;  %v1465_v54 = vadd.f32 %v1464_v50, %v12760_v63 }
 0x28c   : > { %v1660_v46 = vpop.f32.mrf.mxu1 }
 0x28d   : > { %2185 = vmatmul.bf16.gmra.mxu3 %v12951_v24  ;;  %v1661_v7 = vadd.f32 %v1660_v46, %v1557_v47 }
 0x28f   : > { %v1855_v26 = vmax.f32 %v1661_v7, 0.0 }
 0x290   : > { %v13029_v6 = vpop.f32.mrf.mxu3 }
 0x292   : > { %v1558_v9 = vpop.f32.mrf.mxu0 }
 0x293   : > { %v1559_v0 = vadd.f32 %v1558_v9, %v1455_v25 }
 0x294   : > { %v1662_v10 = vpop.f32.mrf.mxu1 }
 0x295   : > { %v1663_v62 = vadd.f32 %v1662_v10, %v1559_v0  ;;  %v2053_v0 = vadd.f32 %v13042_v21, %v12853_v19 }
 0x297   : > { %v1857_v38 = vmax.f32 %v1663_v62, 0.0 }
 0x298   : > { %v1469_v22 = vpop.f32.mrf.mxu3 }
 0x299   : > { %v13032_v20 = vpack.c.bf16 %v1857_v38, %v1855_v26 }
 0x29a   : > { %v1561_v5 = vpop.f32.mrf.mxu0 }
 0x29b   : > { %v1562_v24 = vadd.f32 %v1561_v5, %v1458_v36 }
 0x29c   : > { %v1665_v32 = vpop.f32.mrf.mxu1 }
 0x29d   : > { %2190 = vmatmul.bf16.gmra.mxu3 %v12965_v53  ;;  %v1666_v14 = vadd.f32 %v1665_v32, %v1562_v24  ;;  %v2048_v53 = vadd.f32 %v13042_v21, %v12823_v33  ;;  %v1463_v33 = vadd.f32 %v1462_v12, %v12760_v63  ;;  %v2055_v12 = vadd.f32 %v13042_v21, %v12873_v28 }
 0x29f   : > { %v1859_v1 = vmax.f32 %v1666_v14, 0.0 }
 0x2a0   : > { %v2151_v41 = vpop.f32.mrf.mxu3 }
 0x2a1   : > { %v2152_v48 = vadd.f32 %v2151_v41, %v2048_v53  ;;  %v1468_v41 = vadd.f32 %v13029_v6, %v12760_v63 }
 0x2a2   : > { %v1563_v61 = vpop.f32.mrf.mxu0 }
 0x2a3   : > { %v1564_v55 = vadd.f32 %v1563_v61, %v1460_v43  ;;  %v2322_v45 = vmax.f32 %v2152_v48, 0.0  ;;  %v1470_v61 = vadd.f32 %v1469_v22, %v12760_v63 }
 0x2a4   : > { %v1667_v4 = vpop.f32.mrf.mxu1 }
 0x2a5   : > { %v1668_v58 = vadd.f32 %v1667_v4, %v1564_v55 }
 0x2a7   : > { %v1861_v27 = vmax.f32 %v1668_v58, 0.0  ;;  %v10895_v58 = vld [vmem:[%s17172_s3 + $0xa8] sm:$0xff] }
 0x2a8   : > { %v2153_v30 = vpop.f32.mrf.mxu3  ;;  %3055 = vmatpush.bf16.msra.mxu2 %v10895_v58 }
 0x2a9   : > { %v2154_v57 = vadd.f32 %v2153_v30, %v2050_v3  ;;  %v13049_v52 = vpack.c.bf16 %v1861_v27, %v1859_v1  ;;  %v2058_v3 = vadd.f32 %v13042_v21, %v12890_v13  ;;  %v10883_v13 = vld [vmem:[%s17172_s3 + $0x48] sm:$0xff] }
 0x2aa   : > { %v1566_v15 = vpop.f32.mrf.mxu0  ;;  %2755 = vmatpush.bf16.msra.mxu1 %v10883_v13 }
 0x2ab   : > { %v2323_v42 = vmax.f32 %v2154_v57, 0.0  ;;  %v1567_v40 = vadd.f32 %v1566_v15, %v1463_v33 }
 0x2ac   : > { %v1670_v60 = vpop.f32.mrf.mxu1 }
 0x2ad   : > { %v2360_v35 = vpack.c.bf16 %v2323_v42, %v2322_v45  ;;  %2195 = vmatmul.bf16.gmra.mxu3 %v12980_v34  ;;  %v1671_v25 = vadd.f32 %v1670_v60, %v1567_v40  ;;  %v2065_v60 = vadd.f32 %v13042_v21, %v12932_v39 }
 0x2af   : > { %2453 = vmatmul.bf16.vlgmr.msra.gmra.mxu0 %v2360_v35  ;;  %v1863_v62 = vmax.f32 %v1671_v25, 0.0  ;;  %v2068_v25 = vadd.f32 %v13042_v21, %v12936_v11 }
 0x2b0   : > { %v2156_v46 = vpop.f32.mrf.mxu3 }
 0x2b1   : > { %v2157_v26 = vadd.f32 %v2156_v46, %v2053_v0 }
 0x2b2   : > { %v1568_v47 = vpop.f32.mrf.mxu0 }
 0x2b3   : > { %v1569_v9 = vadd.f32 %v1568_v47, %v1465_v54  ;;  %v2324_v50 = vmax.f32 %v2157_v26, 0.0  ;;  %v2082_v54 = vpop.f32.mrf.mxu2 }
 0x2b4   : > { %v1672_v7 = vpop.f32.mrf.mxu1 }
 0x2b5   : > { %v1673_v10 = vadd.f32 %v1672_v7, %v1569_v9 }
 0x2b7   : > { %v1865_v34 = vmax.f32 %v1673_v10, 0.0 }
 0x2b8   : > { %v2158_v38 = vpop.f32.mrf.mxu3 }
 0x2b9   : > { %v2159_v5 = vadd.f32 %v2158_v38, %v2055_v12  ;;  %v13061_v32 = vpack.c.bf16 %v1865_v34, %v1863_v62  ;;  %v2073_v34 = vadd.f32 %v13042_v21, %v12962_v56  ;;  %v2075_v38 = vadd.f32 %v13042_v21, %v12967_v31 }
 0x2ba   : > { %v1571_v36 = vpop.f32.mrf.mxu0  ;;  %v2080_v56 = vadd.f32 %v13042_v21, %v12985_v44 }
 0x2bb   : > { %v2325_v24 = vmax.f32 %v2159_v5, 0.0  ;;  %v1572_v43 = vadd.f32 %v1571_v36, %v1468_v41  ;;  %v2084_v7 = vpop.f32.mrf.mxu2 }
 0x2bc   : > { %v1675_v29 = vpop.f32.mrf.mxu1 }
 0x2bd   : > { %2200 = vmatmul.bf16.gmra.mxu3 %v12993_v8  ;;  %v2361_v19 = vpack.c.bf16 %v2325_v24, %v2324_v50  ;;  %v1676_v55 = vadd.f32 %v1675_v29, %v1572_v43  ;;  %v2060_v8 = vadd.f32 %v13042_v21, %v12907_v59  ;;  %v2063_v59 = vadd.f32 %v13042_v21, %v12921_v23 }
 0x2be   : > { %v2070_v23 = vadd.f32 %v13042_v21, %v12949_v51  ;;  %v10882_v51 = vld [vmem:[%s17172_s3 + $0x40] sm:$0xff]  ;;  %v2078_v43 = vadd.f32 %v13042_v21, %v12975_v2  ;;  %v10893_v2 = vld [vmem:[%s17172_s3 + $0x98] sm:$0xff] }
 0x2bf   : > { %2458 = vmatmul.bf16.gmra.mxu0 %v2361_v19  ;;  %v1867_v1 = vmax.f32 %v1676_v55, 0.0  ;;  %2756 = vmatpush.bf16.msra.mxu1 %v10882_v51 }
 0x2c0   : > { %v2161_v28 = vpop.f32.mrf.mxu3 }
 0x2c1   : > { %v2162_v48 = vadd.f32 %v2161_v28, %v2058_v3  ;;  %v2083_v3 = vadd.f32 %v13042_v21, %v2082_v54 }
 0x2c2   : > { %v1573_v14 = vpop.f32.mrf.mxu0 }
 0x2c3   : > { %v1574_v4 = vadd.f32 %v1573_v14, %v1470_v61  ;;  %v2326_v57 = vmax.f32 %v2162_v48, 0.0  ;;  %v2087_v11 = vpop.f32.mrf.mxu2 }
 0x2c4   : > { %v1677_v53 = vpop.f32.mrf.mxu1 }
 0x2c5   : > { %v1678_v6 = vadd.f32 %v1677_v53, %v1574_v4  ;;  %v10905_v53 = vld [vmem:[%s17172_s3 + $0xf8] sm:$0xff] }
 0x2c6   : > { %3357 = vmatpush.bf16.msrb.mxu3 %v10905_v53 }
 0x2c7   : > { %v1869_v27 = vmax.f32 %v1678_v6, 0.0  ;;  %v2085_v6 = vadd.f32 %v13042_v21, %v2084_v7 }
 0x2c8   : > { %v2163_v63 = vpop.f32.mrf.mxu3 }
 0x2c9   : > { %v2164_v22 = vadd.f32 %v2163_v63, %v2060_v8  ;;  %v13074_v30 = vpack.c.bf16 %v1869_v27, %v1867_v1 }
 0x2cb   : > { %v2327_v15 = vmax.f32 %v2164_v22, 0.0  ;;  %v2089_v29 = vpop.f32.mrf.mxu2 }
 0x2cc   : > { %v2090_v13 = vadd.f32 %v13042_v21, %v2089_v29 }
 0x2cd   : > { %2205 = vmatmul.bf16.gmra.mxu3 %v12998_v49  ;;  %v2362_v45 = vpack.c.bf16 %v2327_v15, %v2326_v57 }
 0x2cf   : > { %2463 = vmatmul.bf16.gmra.mxu0 %v2362_v45  ;;  %v2088_v45 = vadd.f32 %v13042_v21, %v2087_v11 }
 0x2d0   : > { %v2166_v42 = vpop.f32.mrf.mxu3 }
 0x2d1   : > { %v2167_v16 = vadd.f32 %v2166_v42, %v2063_v59 }
 0x2d3   : > { %v2328_v40 = vmax.f32 %v2167_v16, 0.0  ;;  %v2092_v28 = vpop.f32.mrf.mxu2 }
 0x2d8   : > { %v2168_v33 = vpop.f32.mrf.mxu3 }
 0x2d9   : > { %v2169_v35 = vadd.f32 %v2168_v33, %v2065_v60 }
 0x2db   : > { %v2329_v46 = vmax.f32 %v2169_v35, 0.0  ;;  %v2094_v58 = vpop.f32.mrf.mxu2 }
 0x2dd   : > { %2210 = vmatmul.bf16.gmra.mxu3 %v13006_v18  ;;  %v2363_v49 = vpack.c.bf16 %v2329_v46, %v2328_v40  ;;  %v10894_v18 = vld [vmem:[%s17172_s3 + $0xa0] sm:$0xff] }
 0x2de   : > { %3056 = vmatpush.bf16.msra.mxu2 %v10894_v18 }
 0x2df   : > { %2468 = vmatmul.bf16.gmra.mxu0 %v2363_v49  ;;  %v10904_v49 = vld [vmem:[%s17172_s3 + $0xf0] sm:$0xff] }
 0x2e0   : > { %v2171_v47 = vpop.f32.mrf.mxu3  ;;  %3358 = vmatpush.bf16.msrb.mxu3 %v10904_v49 }
 0x2e1   : > { %v2172_v9 = vadd.f32 %v2171_v47, %v2068_v25 }
 0x2e2   : > { %3057 = vmatpush.bf16.msra.mxu2 %v10893_v2 }
 0x2e3   : > { %v2330_v10 = vmax.f32 %v2172_v9, 0.0  ;;  %v2097_v27 = vpop.f32.mrf.mxu2  ;;  %v2095_v9 = vadd.f32 %v13042_v21, %v2094_v58 }
 0x2e8   : > { %v2173_v39 = vpop.f32.mrf.mxu3 }
 0x2e9   : > { %v2174_v0 = vadd.f32 %v2173_v39, %v2070_v23  ;;  %v2093_v23 = vadd.f32 %v13042_v21, %v2092_v28 }
 0x2eb   : > { %v2331_v12 = vmax.f32 %v2174_v0, 0.0  ;;  %v2099_v15 = vpop.f32.mrf.mxu2 }
 0x2ed   : > { %2215 = vmatmul.bf16.gmra.mxu3 %v13017_v17  ;;  %v2364_v62 = vpack.c.bf16 %v2331_v12, %v2330_v10  ;;  %v10892_v10 = vld [vmem:[%s17172_s3 + $0x90] sm:$0xff] }
 0x2ee   : > { %3058 = vmatpush.bf16.msra.mxu2 %v10892_v10 }
 0x2ef   : > { %2473 = vmatmul.bf16.gmra.mxu0 %v2364_v62 }
 0x2f0   : > { %v2176_v26 = vpop.f32.mrf.mxu3 }
 0x2f1   : > { %v2177_v5 = vadd.f32 %v2176_v26, %v2073_v34 }
 0x2f3   : > { %v2332_v17 = vmax.f32 %v2177_v5, 0.0  ;;  %v2102_v46 = vpop.f32.mrf.mxu2 }
 0x2f8   : > { %v2178_v36 = vpop.f32.mrf.mxu3 }
 0x2f9   : > { %v2179_v50 = vadd.f32 %v2178_v36, %v2075_v38 }
 0x2fb   : > { %v2333_v24 = vmax.f32 %v2179_v50, 0.0  ;;  %v2104_v12 = vpop.f32.mrf.mxu2 }
 0x2fd   : > { %2220 = vmatmul.bf16.gmra.mxu3 %v13025_v37  ;;  %v2365_v41 = vpack.c.bf16 %v2333_v24, %v2332_v17  ;;  %v2098_v24 = vadd.f32 %v13042_v21, %v2097_v27 }
 0x2ff   : > { %2478 = vmatmul.bf16.gmra.mxu0 %v2365_v41  ;;  %v2100_v41 = vadd.f32 %v13042_v21, %v2099_v15 }
 0x300   : > { %v2181_v19 = vpop.f32.mrf.mxu3 }
 0x301   : > { %v2182_v61 = vadd.f32 %v2181_v19, %v2078_v43 }
 0x303   : > { %v2334_v55 = vmax.f32 %v2182_v61, 0.0  ;;  %v2107_v36 = vpop.f32.mrf.mxu2 }
 0x308   : > { %v2183_v31 = vpop.f32.mrf.mxu3 }
 0x309   : > { %v2184_v14 = vadd.f32 %v2183_v31, %v2080_v56 }
 0x30b   : > { %v2335_v4 = vmax.f32 %v2184_v14, 0.0 }
 0x30d   : > { %2225 = vmatmul.bf16.gmra.mxu3 %v13032_v20  ;;  %v2366_v37 = vpack.c.bf16 %v2335_v4, %v2334_v55  ;;  %v2109_v55 = vpop.f32.mrf.mxu2 }
 0x30e   : > { %v2110_v49 = vadd.f32 %v13042_v21, %v2109_v55 }
 0x30f   : > { %2483 = vmatmul.bf16.gmra.mxu0 %v2366_v37 }
 0x310   : > { %v2186_v44 = vpop.f32.mrf.mxu3 }
 0x311   : > { %v2187_v8 = vadd.f32 %v2186_v44, %v2083_v3  ;;  %v2103_v44 = vadd.f32 %v13042_v21, %v2102_v46 }
 0x313   : > { %v2336_v63 = vmax.f32 %v2187_v8, 0.0  ;;  %v2105_v8 = vadd.f32 %v13042_v21, %v2104_v12 }
 0x318   : > { %v2188_v1 = vpop.f32.mrf.mxu3 }
 0x319   : > { %v2189_v48 = vadd.f32 %v2188_v1, %v2085_v6  ;;  %v2112_v6 = vpop.f32.mrf.mxu2 }
 0x31b   : > { %v2337_v20 = vmax.f32 %v2189_v48, 0.0 }
 0x31d   : > { %2230 = vmatmul.bf16.gmra.mxu3 %v13049_v52  ;;  %v2367_v22 = vpack.c.bf16 %v2337_v20, %v2336_v63  ;;  %v13121_v52 = vld [vmem:[%s17176_s7 + $0x1] ss:$0 sm:$0xff]  ;;  %v10903_v63 = vld [vmem:[%s17172_s3 + $0xe8] sm:$0xff] }
 0x31e   : > { %3359 = vmatpush.bf16.msrb.mxu3 %v10903_v63 }
 0x31f   : > { %2488 = vmatmul.bf16.gmra.mxu0 %v2367_v22 }
 0x320   : > { %v2191_v57 = vpop.f32.mrf.mxu3 }
 0x321   : > { %v2192_v42 = vadd.f32 %v2191_v57, %v2088_v45 }
 0x323   : > { %v2338_v16 = vmax.f32 %v2192_v42, 0.0 }
 0x328   : > { %v2193_v59 = vpop.f32.mrf.mxu3 }
 0x329   : > { %v2194_v60 = vadd.f32 %v2193_v59, %v2090_v13  ;;  %v10891_v13 = vld [vmem:[%s17172_s3 + $0x88] sm:$0xff] }
 0x32a   : > { %3059 = vmatpush.bf16.msra.mxu2 %v10891_v13 }
 0x32b   : > { %v2339_v33 = vmax.f32 %v2194_v60, 0.0  ;;  %v2114_v60 = vpop.f32.mrf.mxu2 }
 0x32c   : > { %v2454_v35 = vpop.f32.mrf.mxu0 }
 0x32d   : > { %2235 = vmatmul.bf16.gmra.mxu3 %v13061_v32  ;;  %v2368_v40 = vpack.c.bf16 %v2339_v33, %v2338_v16  ;;  %v2455_v47 = vadd.f32 %v13121_v52, %v2454_v35 }
 0x32f   : > { %2493 = vmatmul.bf16.gmra.mxu0 %v2368_v40  ;;  %v2625_v7 = vmax.f32 %v2455_v47, 0.0  ;;  %v2108_v40 = vadd.f32 %v13042_v21, %v2107_v36 }
 0x330   : > { %v2196_v54 = vpop.f32.mrf.mxu3 }
 0x331   : > { %v2197_v39 = vadd.f32 %v2196_v54, %v2093_v23 }
 0x333   : > { %v2340_v11 = vmax.f32 %v2197_v39, 0.0 }
 0x334   : > { %v2456_v25 = vpop.f32.mrf.mxu0 }
 0x335   : > { %v2457_v32 = vadd.f32 %v13121_v52, %v2456_v25 }
 0x337   : > { %v2626_v0 = vmax.f32 %v2457_v32, 0.0 }
 0x338   : > { %v2198_v18 = vpop.f32.mrf.mxu3 }
 0x339   : > { %v2663_v62 = vpack.c.bf16 %v2626_v0, %v2625_v7  ;;  %v2199_v26 = vadd.f32 %v2198_v18, %v2095_v9  ;;  %v2117_v7 = vpop.f32.mrf.mxu2 }
 0x33b   : > { %v2341_v51 = vmax.f32 %v2199_v26, 0.0  ;;  %2757 = vmatmul.bf16.vlgmr.msra.gmra.mxu1 %v2663_v62 }
 0x33c   : > { %v2459_v34 = vpop.f32.mrf.mxu0 }
 0x33d   : > { %2240 = vmatmul.bf16.gmra.mxu3 %v13074_v30  ;;  %v2369_v38 = vpack.c.bf16 %v2341_v51, %v2340_v11  ;;  %v2460_v50 = vadd.f32 %v13121_v52, %v2459_v34  ;;  %v2113_v51 = vadd.f32 %v13042_v21, %v2112_v6 }
 0x33f   : > { %2498 = vmatmul.bf16.gmra.mxu0 %v2369_v38  ;;  %v2627_v19 = vmax.f32 %v2460_v50, 0.0  ;;  %v2115_v38 = vadd.f32 %v13042_v21, %v2114_v60 }
 0x340   : > { %v2201_v5 = vpop.f32.mrf.mxu3 }
 0x341   : > { %v2202_v43 = vadd.f32 %v2201_v5, %v2098_v24  ;;  %v2119_v26 = vpop.f32.mrf.mxu2 }
 0x343   : > { %v2342_v30 = vmax.f32 %v2202_v43, 0.0  ;;  %v10902_v43 = vld [vmem:[%s17172_s3 + $0xe0] sm:$0xff] }
 0x344   : > { %v2461_v17 = vpop.f32.mrf.mxu0  ;;  %3360 = vmatpush.bf16.msrb.mxu3 %v10902_v43 }
 0x345   : > { %v2462_v29 = vadd.f32 %v13121_v52, %v2461_v17 }
 0x347   : > { %v2628_v28 = vmax.f32 %v2462_v29, 0.0 }
 0x348   : > { %v2203_v56 = vpop.f32.mrf.mxu3 }
 0x349   : > { %v2204_v61 = vadd.f32 %v2203_v56, %v2100_v41  ;;  %v2664_v31 = vpack.c.bf16 %v2628_v28, %v2627_v19 }
 0x34b   : > { %v2343_v14 = vmax.f32 %v2204_v61, 0.0  ;;  %2762 = vmatmul.bf16.gmra.mxu1 %v2664_v31  ;;  %v2122_v61 = vpop.f32.mrf.mxu2 }
 0x34c   : > { %v2464_v4 = vpop.f32.mrf.mxu0  ;;  %v2123_v13 = vadd.f32 %v13042_v21, %v2122_v61 }
 0x34d   : > { %v2370_v53 = vpack.c.bf16 %v2343_v14, %v2342_v30  ;;  %v2465_v2 = vadd.f32 %v13121_v52, %v2464_v4  ;;  %v10890_v14 = vld [vmem:[%s17172_s3 + $0x80] sm:$0xff]  ;;  %v2118_v4 = vadd.f32 %v13042_v21, %v2117_v7 }
 0x34e   : > { %3060 = vmatpush.bf16.msra.mxu2 %v10890_v14  ;;  %v10913_v14 = vld [vmem:[%s17172_s3 + $0x138] sm:$0xff] }
 0x34f   : > { %2503 = vmatmul.bf16.gmra.mxu0 %v2370_v53  ;;  %v2629_v1 = vmax.f32 %v2465_v2, 0.0 }
 0x350   : > { %v2206_v37 = vpop.f32.mrf.mxu3  ;;  %4269 = vmatpush.bf16.msrb.mxu0 %v10913_v14 }
 0x351   : > { %v2207_v48 = vadd.f32 %v2206_v37, %v2103_v44  ;;  %v2120_v37 = vadd.f32 %v13042_v21, %v2119_v26 }
 0x353   : > { %v2344_v15 = vmax.f32 %v2207_v48, 0.0 }
 0x354   : > { %v2466_v58 = vpop.f32.mrf.mxu0 }
 0x355   : > { %v2467_v3 = vadd.f32 %v13121_v52, %v2466_v58 }
 0x357   : > { %v2630_v27 = vmax.f32 %v2467_v3, 0.0  ;;  %v2124_v3 = vpop.f32.mrf.mxu2 }
 0x358   : > { %v2208_v20 = vpop.f32.mrf.mxu3 }
 0x359   : > { %v2209_v22 = vadd.f32 %v2208_v20, %v2105_v8  ;;  %v2665_v57 = vpack.c.bf16 %v2630_v27, %v2629_v1 }
 0x35b   : > { %v2345_v45 = vmax.f32 %v2209_v22, 0.0  ;;  %2767 = vmatmul.bf16.gmra.mxu1 %v2665_v57 }
 0x35c   : > { %v2469_v42 = vpop.f32.mrf.mxu0 }
 0x35d   : > { %v2371_v59 = vpack.c.bf16 %v2345_v45, %v2344_v15  ;;  %v2470_v33 = vadd.f32 %v13121_v52, %v2469_v42 }
 0x35f   : > { %2508 = vmatmul.bf16.gmra.mxu0 %v2371_v59  ;;  %v2631_v54 = vmax.f32 %v2470_v33, 0.0  ;;  %v2127_v57 = vpop.f32.mrf.mxu2  ;;  %v2125_v59 = vadd.f32 %v13042_v21, %v2124_v3  ;;  %v13187_v3 = vld [vmem:[%s17176_s7 + $0x2] ss:$0 sm:$0xff] }
 0x360   : > { %v2211_v16 = vpop.f32.mrf.mxu3 }
 0x361   : > { %v2212_v47 = vadd.f32 %v2211_v16, %v2108_v40 }
 0x363   : > { %v2346_v39 = vmax.f32 %v2212_v47, 0.0 }
 0x364   : > { %v2471_v35 = vpop.f32.mrf.mxu0 }
 0x365   : > { %v2472_v46 = vadd.f32 %v13121_v52, %v2471_v35 }
 0x367   : > { %v2632_v25 = vmax.f32 %v2472_v46, 0.0  ;;  %v2129_v47 = vpop.f32.mrf.mxu2 }
 0x368   : > { %v2213_v23 = vpop.f32.mrf.mxu3 }
 0x369   : > { %v2214_v32 = vadd.f32 %v2213_v23, %v2110_v49  ;;  %v2666_v9 = vpack.c.bf16 %v2632_v25, %v2631_v54 }
 0x36b   : > { %v2347_v0 = vmax.f32 %v2214_v32, 0.0  ;;  %2772 = vmatmul.bf16.gmra.mxu1 %v2666_v9 }
 0x36c   : > { %v2474_v10 = vpop.f32.mrf.mxu0 }
 0x36d   : > { %v2372_v12 = vpack.c.bf16 %v2347_v0, %v2346_v39  ;;  %v2475_v62 = vadd.f32 %v13121_v52, %v2474_v10  ;;  %v2128_v39 = vadd.f32 %v13042_v21, %v2127_v57  ;;  %v10901_v10 = vld [vmem:[%s17172_s3 + $0xd8] sm:$0xff] }
 0x36e   : > { %3361 = vmatpush.bf16.msrb.mxu3 %v10901_v10 }
 0x36f   : > { %2513 = vmatmul.bf16.gmra.mxu0 %v2372_v12  ;;  %v2633_v5 = vmax.f32 %v2475_v62, 0.0  ;;  %v2132_v12 = vpop.f32.mrf.mxu2 }
 0x370   : > { %v2216_v18 = vpop.f32.mrf.mxu3  ;;  %v2133_v43 = vadd.f32 %v13042_v21, %v2132_v12 }
 0x371   : > { %v2217_v36 = vadd.f32 %v2216_v18, %v2113_v51  ;;  %v2130_v18 = vadd.f32 %v13042_v21, %v2129_v47 }
 0x373   : > { %v2348_v41 = vmax.f32 %v2217_v36, 0.0 }
 0x374   : > { %v2476_v11 = vpop.f32.mrf.mxu0 }
 0x375   : > { %v2477_v34 = vadd.f32 %v13121_v52, %v2476_v11 }
 0x377   : > { %v2634_v50 = vmax.f32 %v2477_v34, 0.0 }
 0x378   : > { %v2218_v17 = vpop.f32.mrf.mxu3 }
 0x379   : > { %v2219_v24 = vadd.f32 %v2218_v17, %v2115_v38  ;;  %v2667_v29 = vpack.c.bf16 %v2634_v50, %v2633_v5 }
 0x37b   : > { %v2349_v19 = vmax.f32 %v2219_v24, 0.0  ;;  %2777 = vmatmul.bf16.gmra.mxu1 %v2667_v29  ;;  %v2134_v24 = vpop.f32.mrf.mxu2 }
 0x37c   : > { %v2479_v28 = vpop.f32.mrf.mxu0 }
 0x37d   : > { %v2373_v56 = vpack.c.bf16 %v2349_v19, %v2348_v41  ;;  %v2480_v30 = vadd.f32 %v13121_v52, %v2479_v28 }
 0x37f   : > { %2518 = vmatmul.bf16.gmra.mxu0 %v2373_v56  ;;  %v2635_v2 = vmax.f32 %v2480_v30, 0.0  ;;  %v2135_v56 = vadd.f32 %v13042_v21, %v2134_v24 }
 0x380   : > { %v2221_v31 = vpop.f32.mrf.mxu3 }
 0x381   : > { %v2222_v58 = vadd.f32 %v2221_v31, %v2118_v4 }
 0x383   : > { %v2350_v48 = vmax.f32 %v2222_v58, 0.0 }
 0x384   : > { %v2481_v55 = vpop.f32.mrf.mxu0 }
 0x385   : > { %v2482_v53 = vadd.f32 %v13121_v52, %v2481_v55 }
 0x387   : > { %v2636_v44 = vmax.f32 %v2482_v53, 0.0 }
 0x388   : > { %v2223_v6 = vpop.f32.mrf.mxu3 }
 0x389   : > { %v2224_v8 = vadd.f32 %v2223_v6, %v2120_v37  ;;  %v2668_v1 = vpack.c.bf16 %v2636_v44, %v2635_v2  ;;  %v2137_v2 = vpop.f32.mrf.mxu2 }
 0x38b   : > { %v2351_v27 = vmax.f32 %v2224_v8, 0.0  ;;  %2782 = vmatmul.bf16.gmra.mxu1 %v2668_v1 }
 0x38c   : > { %v2484_v63 = vpop.f32.mrf.mxu0 }
 0x38d   : > { %v2374_v20 = vpack.c.bf16 %v2351_v27, %v2350_v48  ;;  %v2485_v15 = vadd.f32 %v13121_v52, %v2484_v63 }
 0x38f   : > { %2523 = vmatmul.bf16.gmra.mxu0 %v2374_v20  ;;  %v2637_v60 = vmax.f32 %v2485_v15, 0.0 }
 0x390   : > { %v2226_v22 = vpop.f32.mrf.mxu3 }
 0x391   : > { %v2227_v16 = vadd.f32 %v2226_v22, %v2123_v13  ;;  %v2139_v15 = vpop.f32.mrf.mxu2  ;;  %v2138_v13 = vadd.f32 %v13042_v21, %v2137_v2 }
 0x393   : > { %v2352_v49 = vmax.f32 %v2227_v16, 0.0 }
 0x394   : > { %v2486_v45 = vpop.f32.mrf.mxu0 }
 0x395   : > { %v2487_v42 = vadd.f32 %v13121_v52, %v2486_v45 }
 0x397   : > { %v2638_v33 = vmax.f32 %v2487_v42, 0.0 }
 0x398   : > { %v2228_v35 = vpop.f32.mrf.mxu3 }
 0x399   : > { %v2229_v40 = vadd.f32 %v2228_v35, %v2125_v59  ;;  %v2669_v46 = vpack.c.bf16 %v2638_v33, %v2637_v60  ;;  %v2140_v60 = vadd.f32 %v13042_v21, %v2139_v15 }
 0x39b   : > { %v2353_v54 = vmax.f32 %v2229_v40, 0.0  ;;  %2787 = vmatmul.bf16.gmra.mxu1 %v2669_v46  ;;  %v10900_v40 = vld [vmem:[%s17172_s3 + $0xd0] sm:$0xff] }
 0x39c   : > { %v2489_v25 = vpop.f32.mrf.mxu0  ;;  %3362 = vmatpush.bf16.msrb.mxu3 %v10900_v40 }
 0x39d   : > { %v2375_v23 = vpack.c.bf16 %v2353_v54, %v2352_v49  ;;  %v2490_v9 = vadd.f32 %v13121_v52, %v2489_v25 }
 0x39f   : > { %2528 = vmatmul.bf16.gmra.mxu0 %v2375_v23  ;;  %v2639_v62 = vmax.f32 %v2490_v9, 0.0 }
 0x3a0   : > { %v2231_v32 = vpop.f32.mrf.mxu3 }
 0x3a1   : > { %v2232_v26 = vadd.f32 %v2231_v32, %v2128_v39 }
 0x3a3   : > { %v2354_v5 = vmax.f32 %v2232_v26, 0.0 }
 0x3a4   : > { %v2491_v7 = vpop.f32.mrf.mxu0 }
 0x3a5   : > { %v2492_v0 = vadd.f32 %v13121_v52, %v2491_v7 }
 0x3a7   : > { %v2640_v11 = vmax.f32 %v2492_v0, 0.0 }
 0x3a8   : > { %v2233_v51 = vpop.f32.mrf.mxu3 }
 0x3a9   : > { %v2234_v34 = vadd.f32 %v2233_v51, %v2130_v18  ;;  %v2670_v38 = vpack.c.bf16 %v2640_v11, %v2639_v62 }
 0x3ab   : > { %v2355_v36 = vmax.f32 %v2234_v34, 0.0  ;;  %2792 = vmatmul.bf16.gmra.mxu1 %v2670_v38 }
 0x3ac   : > { %v2494_v50 = vpop.f32.mrf.mxu0 }
 0x3ad   : > { %v2376_v17 = vpack.c.bf16 %v2355_v36, %v2354_v5  ;;  %v2495_v41 = vadd.f32 %v13121_v52, %v2494_v50  ;;  %v10912_v5 = vld [vmem:[%s17172_s3 + $0x130] sm:$0xff] }
 0x3ae   : > { %4270 = vmatpush.bf16.msrb.mxu0 %v10912_v5 }
 0x3af   : > { %2533 = vmatmul.bf16.gmra.mxu0 %v2376_v17  ;;  %v2641_v61 = vmax.f32 %v2495_v41, 0.0 }
 0x3b0   : > { %v2236_v29 = vpop.f32.mrf.mxu3 }
 0x3b1   : > { %v2237_v31 = vadd.f32 %v2236_v29, %v2133_v43 }
 0x3b3   : > { %v2356_v58 = vmax.f32 %v2237_v31, 0.0 }
 0x3b4   : > { %v2496_v19 = vpop.f32.mrf.mxu0 }
 0x3b5   : > { %v2497_v28 = vadd.f32 %v13121_v52, %v2496_v19 }
 0x3b7   : > { %v2642_v30 = vmax.f32 %v2497_v28, 0.0 }
 0x3b8   : > { %v2238_v55 = vpop.f32.mrf.mxu3  ;;  %v2758_v4 = vpop.f32.mrf.mxu1 }
 0x3b9   : > { %v2239_v53 = vadd.f32 %v2238_v55, %v2135_v56  ;;  %v2671_v37 = vpack.c.bf16 %v2642_v30, %v2641_v61  ;;  %v2759_v1 = vadd.f32 %v13187_v3, %v2758_v4 }
 0x3bb   : > { %v2357_v44 = vmax.f32 %v2239_v53, 0.0  ;;  %2797 = vmatmul.bf16.gmra.mxu1 %v2671_v37  ;;  %v2929_v20 = vmax.f32 %v2759_v1, 0.0  ;;  %v10899_v53 = vld [vmem:[%s17172_s3 + $0xc8] sm:$0xff] }
 0x3bc   : > { %v2499_v6 = vpop.f32.mrf.mxu0  ;;  %3363 = vmatpush.bf16.msrb.mxu3 %v10899_v53 }
 0x3bd   : > { %v2377_v8 = vpack.c.bf16 %v2357_v44, %v2356_v58  ;;  %v2500_v22 = vadd.f32 %v13121_v52, %v2499_v6 }
 0x3bf   : > { %2538 = vmatmul.bf16.gmra.mxu0 %v2377_v8  ;;  %v2643_v16 = vmax.f32 %v2500_v22, 0.0 }
 0x3c0   : > { %v2241_v48 = vpop.f32.mrf.mxu3  ;;  %v2760_v27 = vpop.f32.mrf.mxu1 }
 0x3c1   : > { %v2761_v63 = vadd.f32 %v13187_v3, %v2760_v27  ;;  %v2242_v33 = vadd.f32 %v2241_v48, %v2138_v13 }
 0x3c3   : > { %v2930_v57 = vmax.f32 %v2761_v63, 0.0  ;;  %v2358_v25 = vmax.f32 %v2242_v33, 0.0 }
 0x3c4   : > { %v2501_v45 = vpop.f32.mrf.mxu0 }
 0x3c5   : > { %v2967_v42 = vpack.c.bf16 %v2930_v57, %v2929_v20  ;;  %v2502_v59 = vadd.f32 %v13121_v52, %v2501_v45 }
 0x3c7   : > { %v2644_v35 = vmax.f32 %v2502_v59, 0.0  ;;  %3061 = vmatmul.bf16.vlgmr.msra.gmra.mxu2 %v2967_v42 }
 0x3c8   : > { %v2243_v46 = vpop.f32.mrf.mxu3  ;;  %v2763_v49 = vpop.f32.mrf.mxu1 }
 0x3c9   : > { %v2244_v54 = vadd.f32 %v2243_v46, %v2140_v60  ;;  %v2672_v47 = vpack.c.bf16 %v2644_v35, %v2643_v16  ;;  %v2764_v21 = vadd.f32 %v13187_v3, %v2763_v49  ;;  %v10911_v16 = vld [vmem:[%s17172_s3 + $0x128] sm:$0xff] }
 0x3ca   : > { %4271 = vmatpush.bf16.msrb.mxu0 %v10911_v16  ;;  %v10921_v16 = vld [vmem:[%s17172_s3 + $0x178] sm:$0xff] }
 0x3cb   : > { %v2359_v23 = vmax.f32 %v2244_v54, 0.0  ;;  %2802 = vmatmul.bf16.gmra.mxu1 %v2672_v47  ;;  %v2931_v0 = vmax.f32 %v2764_v21, 0.0 }
 0x3cc   : > { %v2504_v32 = vpop.f32.mrf.mxu0  ;;  %4630 = vmatpush.bf16.msrb.mxu1 %v10921_v16 }
 0x3cd   : > { %v2378_v9 = vpack.c.bf16 %v2359_v23, %v2358_v25  ;;  %v2505_v10 = vadd.f32 %v13121_v52, %v2504_v32 }
 0x3cf   : > { %2543 = vmatmul.bf16.gmra.mxu0 %v2378_v9  ;;  %v2645_v11 = vmax.f32 %v2505_v10, 0.0 }
 0x3d0   : > { %v2765_v7 = vpop.f32.mrf.mxu1 }
 0x3d1   : > { %v2766_v39 = vadd.f32 %v13187_v3, %v2765_v7 }
 0x3d3   : > { %v2932_v12 = vmax.f32 %v2766_v39, 0.0 }
 0x3d4   : > { %v2506_v18 = vpop.f32.mrf.mxu0 }
 0x3d5   : > { %v2507_v62 = vadd.f32 %v13121_v52, %v2506_v18  ;;  %v2968_v26 = vpack.c.bf16 %v2932_v12, %v2931_v0  ;;  %v10898_v0 = vld [vmem:[%s17172_s3 + $0xc0] sm:$0xff] }
 0x3d6   : > { %3364 = vmatpush.bf16.msrb.mxu3 %v10898_v0 }
 0x3d7   : > { %v2646_v51 = vmax.f32 %v2507_v62, 0.0  ;;  %3066 = vmatmul.bf16.gmra.mxu2 %v2968_v26 }
 0x3d8   : > { %v2768_v34 = vpop.f32.mrf.mxu1 }
 0x3d9   : > { %v2673_v38 = vpack.c.bf16 %v2646_v51, %v2645_v11  ;;  %v2769_v50 = vadd.f32 %v13187_v3, %v2768_v34 }
 0x3db   : > { %2807 = vmatmul.bf16.gmra.mxu1 %v2673_v38  ;;  %v2933_v29 = vmax.f32 %v2769_v50, 0.0 }
 0x3dc   : > { %v2509_v36 = vpop.f32.mrf.mxu0 }
 0x3dd   : > { %v2510_v41 = vadd.f32 %v13121_v52, %v2509_v36 }
 0x3df   : > { %v2647_v61 = vmax.f32 %v2510_v41, 0.0 }
 0x3e0   : > { %v2770_v17 = vpop.f32.mrf.mxu1 }
 0x3e1   : > { %v2771_v24 = vadd.f32 %v13187_v3, %v2770_v17 }
 0x3e3   : > { %v2934_v19 = vmax.f32 %v2771_v24, 0.0 }
 0x3e4   : > { %v2511_v43 = vpop.f32.mrf.mxu0 }
 0x3e5   : > { %v2512_v28 = vadd.f32 %v13121_v52, %v2511_v43  ;;  %v2969_v56 = vpack.c.bf16 %v2934_v19, %v2933_v29 }
 0x3e7   : > { %v2648_v31 = vmax.f32 %v2512_v28, 0.0  ;;  %3071 = vmatmul.bf16.gmra.mxu2 %v2969_v56  ;;  %v10910_v56 = vld [vmem:[%s17172_s3 + $0x120] sm:$0xff] }
 0x3e8   : > { %v2773_v30 = vpop.f32.mrf.mxu1  ;;  %4272 = vmatpush.bf16.msrb.mxu0 %v10910_v56 }
 0x3e9   : > { %v2674_v14 = vpack.c.bf16 %v2648_v31, %v2647_v61  ;;  %v2774_v4 = vadd.f32 %v13187_v3, %v2773_v30 }
 0x3eb   : > { %2812 = vmatmul.bf16.gmra.mxu1 %v2674_v14  ;;  %v2935_v58 = vmax.f32 %v2774_v4, 0.0 }
 0x3ec   : > { %v2514_v55 = vpop.f32.mrf.mxu0 }
 0x3ed   : > { %v2515_v44 = vadd.f32 %v13121_v52, %v2514_v55 }
 0x3ef   : > { %v2649_v27 = vmax.f32 %v2515_v44, 0.0 }
 0x3f0   : > { %v2775_v37 = vpop.f32.mrf.mxu1 }
 0x3f1   : > { %v2776_v2 = vadd.f32 %v13187_v3, %v2775_v37 }
 0x3f3   : > { %v2936_v6 = vmax.f32 %v2776_v2, 0.0 }
 0x3f4   : > { %v2516_v8 = vpop.f32.mrf.mxu0 }
 0x3f5   : > { %v2517_v1 = vadd.f32 %v13121_v52, %v2516_v8  ;;  %v2970_v48 = vpack.c.bf16 %v2936_v6, %v2935_v58 }
 0x3f7   : > { %v2650_v63 = vmax.f32 %v2517_v1, 0.0  ;;  %3076 = vmatmul.bf16.gmra.mxu2 %v2970_v48 }
 0x3f8   : > { %v2778_v20 = vpop.f32.mrf.mxu1 }
 0x3f9   : > { %v2675_v22 = vpack.c.bf16 %v2650_v63, %v2649_v27  ;;  %v2779_v15 = vadd.f32 %v13187_v3, %v2778_v20 }
 0x3fb   : > { %2817 = vmatmul.bf16.gmra.mxu1 %v2675_v22  ;;  %v2937_v42 = vmax.f32 %v2779_v15, 0.0 }
 0x3fc   : > { %v2519_v57 = vpop.f32.mrf.mxu0 }
 0x3fd   : > { %v2520_v59 = vadd.f32 %v13121_v52, %v2519_v57 }
 0x3ff   : > { %v2651_v46 = vmax.f32 %v2520_v59, 0.0 }
 0x400   : > { %v2780_v45 = vpop.f32.mrf.mxu1 }
 0x401   : > { %v2781_v13 = vadd.f32 %v13187_v3, %v2780_v45 }
 0x403   : > { %v2938_v60 = vmax.f32 %v2781_v13, 0.0 }
 0x404   : > { %v2521_v33 = vpop.f32.mrf.mxu0 }
 0x405   : > { %v2522_v35 = vadd.f32 %v13121_v52, %v2521_v33  ;;  %v2971_v40 = vpack.c.bf16 %v2938_v60, %v2937_v42 }
 0x407   : > { %v2652_v49 = vmax.f32 %v2522_v35, 0.0  ;;  %3081 = vmatmul.bf16.gmra.mxu2 %v2971_v40 }
 0x408   : > { %v2783_v54 = vpop.f32.mrf.mxu1 }
 0x409   : > { %v2676_v47 = vpack.c.bf16 %v2652_v49, %v2651_v46  ;;  %v2784_v23 = vadd.f32 %v13187_v3, %v2783_v54 }
 0x40b   : > { %2822 = vmatmul.bf16.gmra.mxu1 %v2676_v47  ;;  %v2939_v21 = vmax.f32 %v2784_v23, 0.0  ;;  %v13251_v47 = vld [vmem:[%s17176_s7 + $0x3] ss:$0 sm:$0xff] }
 0x40c   : > { %v2524_v25 = vpop.f32.mrf.mxu0 }
 0x40d   : > { %v2525_v7 = vadd.f32 %v13121_v52, %v2524_v25  ;;  %v10909_v25 = vld [vmem:[%s17172_s3 + $0x118] sm:$0xff] }
 0x40e   : > { %4273 = vmatpush.bf16.msrb.mxu0 %v10909_v25 }
 0x40f   : > { %v2653_v62 = vmax.f32 %v2525_v7, 0.0 }
 0x410   : > { %v2785_v32 = vpop.f32.mrf.mxu1 }
 0x411   : > { %v2786_v9 = vadd.f32 %v13187_v3, %v2785_v32 }
 0x413   : > { %v2940_v39 = vmax.f32 %v2786_v9, 0.0 }
 0x414   : > { %v2526_v10 = vpop.f32.mrf.mxu0 }
 0x415   : > { %v2527_v12 = vadd.f32 %v13121_v52, %v2526_v10  ;;  %v2972_v18 = vpack.c.bf16 %v2940_v39, %v2939_v21 }
 0x417   : > { %v2654_v26 = vmax.f32 %v2527_v12, 0.0  ;;  %3086 = vmatmul.bf16.gmra.mxu2 %v2972_v18 }
 0x418   : > { %v2788_v11 = vpop.f32.mrf.mxu1 }
 0x419   : > { %v2677_v51 = vpack.c.bf16 %v2654_v26, %v2653_v62  ;;  %v2789_v38 = vadd.f32 %v13187_v3, %v2788_v11 }
 0x41b   : > { %2827 = vmatmul.bf16.gmra.mxu1 %v2677_v51  ;;  %v2941_v50 = vmax.f32 %v2789_v38, 0.0 }
 0x41c   : > { %v2529_v34 = vpop.f32.mrf.mxu0 }
 0x41d   : > { %v2530_v17 = vadd.f32 %v13121_v52, %v2529_v34 }
 0x41f   : > { %v2655_v43 = vmax.f32 %v2530_v17, 0.0 }
 0x420   : > { %v2790_v5 = vpop.f32.mrf.mxu1 }
 0x421   : > { %v2791_v36 = vadd.f32 %v13187_v3, %v2790_v5 }
 0x423   : > { %v2942_v24 = vmax.f32 %v2791_v36, 0.0 }
 0x424   : > { %v2531_v29 = vpop.f32.mrf.mxu0 }
 0x425   : > { %v2532_v41 = vadd.f32 %v13121_v52, %v2531_v29  ;;  %v2973_v19 = vpack.c.bf16 %v2942_v24, %v2941_v50 }
 0x427   : > { %v2656_v28 = vmax.f32 %v2532_v41, 0.0  ;;  %3091 = vmatmul.bf16.gmra.mxu2 %v2973_v19 }
 0x428   : > { %v2793_v61 = vpop.f32.mrf.mxu1 }
 0x429   : > { %v2678_v31 = vpack.c.bf16 %v2656_v28, %v2655_v43  ;;  %v2794_v14 = vadd.f32 %v13187_v3, %v2793_v61 }
 0x42b   : > { %2832 = vmatmul.bf16.gmra.mxu1 %v2678_v31  ;;  %v2943_v53 = vmax.f32 %v2794_v14, 0.0 }
 0x42c   : > { %v2534_v30 = vpop.f32.mrf.mxu0 }
 0x42d   : > { %v2535_v37 = vadd.f32 %v13121_v52, %v2534_v30 }
 0x42f   : > { %v2657_v8 = vmax.f32 %v2535_v37, 0.0 }
 0x430   : > { %v2795_v55 = vpop.f32.mrf.mxu1 }
 0x431   : > { %v2796_v4 = vadd.f32 %v13187_v3, %v2795_v55 }
 0x433   : > { %v2944_v2 = vmax.f32 %v2796_v4, 0.0 }
 0x434   : > { %v2536_v58 = vpop.f32.mrf.mxu0 }
 0x435   : > { %v2537_v44 = vadd.f32 %v13121_v52, %v2536_v58  ;;  %v2974_v6 = vpack.c.bf16 %v2944_v2, %v2943_v53  ;;  %v10920_v53 = vld [vmem:[%s17172_s3 + $0x170] sm:$0xff] }
 0x436   : > { %4631 = vmatpush.bf16.msrb.mxu1 %v10920_v53 }
 0x437   : > { %v2658_v1 = vmax.f32 %v2537_v44, 0.0  ;;  %3096 = vmatmul.bf16.gmra.mxu2 %v2974_v6 }
 0x438   : > { %v2798_v48 = vpop.f32.mrf.mxu1 }
 0x439   : > { %v2679_v27 = vpack.c.bf16 %v2658_v1, %v2657_v8  ;;  %v2799_v20 = vadd.f32 %v13187_v3, %v2798_v48 }
 0x43b   : > { %2837 = vmatmul.bf16.gmra.mxu1 %v2679_v27  ;;  %v2945_v15 = vmax.f32 %v2799_v20, 0.0 }
 0x43c   : > { %v2539_v63 = vpop.f32.mrf.mxu0 }
 0x43d   : > { %v2540_v45 = vadd.f32 %v13121_v52, %v2539_v63 }
 0x43f   : > { %v2659_v33 = vmax.f32 %v2540_v45, 0.0 }
 0x440   : > { %v2800_v22 = vpop.f32.mrf.mxu1 }
 0x441   : > { %v2801_v57 = vadd.f32 %v13187_v3, %v2800_v22  ;;  %v10908_v22 = vld [vmem:[%s17172_s3 + $0x110] sm:$0xff] }
 0x442   : > { %4274 = vmatpush.bf16.msrb.mxu0 %v10908_v22 }
 0x443   : > { %v2946_v13 = vmax.f32 %v2801_v57, 0.0 }
 0x444   : > { %v2541_v42 = vpop.f32.mrf.mxu0 }
 0x445   : > { %v2542_v59 = vadd.f32 %v13121_v52, %v2541_v42  ;;  %v2975_v60 = vpack.c.bf16 %v2946_v13, %v2945_v15 }
 0x447   : > { %v2660_v35 = vmax.f32 %v2542_v59, 0.0  ;;  %3101 = vmatmul.bf16.gmra.mxu2 %v2975_v60 }
 0x448   : > { %v2803_v40 = vpop.f32.mrf.mxu1 }
 0x449   : > { %v2680_v46 = vpack.c.bf16 %v2660_v35, %v2659_v33  ;;  %v2804_v23 = vadd.f32 %v13187_v3, %v2803_v40 }
 0x44a   : > { %v3062_v49 = vpop.f32.mrf.mxu2 }
 0x44b   : > { %2842 = vmatmul.bf16.gmra.mxu1 %v2680_v46  ;;  %v3063_v9 = vadd.f32 %v13251_v47, %v3062_v49  ;;  %v2947_v39 = vmax.f32 %v2804_v23, 0.0 }
 0x44c   : > { %v2544_v54 = vpop.f32.mrf.mxu0 }
 0x44d   : > { %v2545_v0 = vadd.f32 %v13121_v52, %v2544_v54  ;;  %v3233_v62 = vmax.f32 %v3063_v9, 0.0  ;;  %v10919_v9 = vld [vmem:[%s17172_s3 + $0x168] sm:$0xff] }
 0x44e   : > { %4632 = vmatpush.bf16.msrb.mxu1 %v10919_v9 }
 0x44f   : > { %v2661_v34 = vmax.f32 %v2545_v0, 0.0 }
 0x450   : > { %v2805_v32 = vpop.f32.mrf.mxu1 }
 0x451   : > { %v2806_v21 = vadd.f32 %v13187_v3, %v2805_v32 }
 0x452   : > { %v3064_v7 = vpop.f32.mrf.mxu2 }
 0x453   : > { %v2948_v10 = vmax.f32 %v2806_v21, 0.0  ;;  %v3065_v12 = vadd.f32 %v13251_v47, %v3064_v7 }
 0x454   : > { %v2546_v18 = vpop.f32.mrf.mxu0 }
 0x455   : > { %v3234_v26 = vmax.f32 %v3065_v12, 0.0  ;;  %v2547_v11 = vadd.f32 %v13121_v52, %v2546_v18  ;;  %v2976_v51 = vpack.c.bf16 %v2948_v10, %v2947_v39 }
 0x457   : > { %v3271_v38 = vpack.c.bf16 %v3234_v26, %v3233_v62  ;;  %v2662_v5 = vmax.f32 %v2547_v11, 0.0  ;;  %3106 = vmatmul.bf16.gmra.mxu2 %v2976_v51 }
 0x458   : > { %v2808_v36 = vpop.f32.mrf.mxu1 }
 0x459   : > { %3365 = vmatmul.bf16.vlgmr.msrb.gmra.mxu3 %v3271_v38  ;;  %v2681_v50 = vpack.c.bf16 %v2662_v5, %v2661_v34  ;;  %v2809_v24 = vadd.f32 %v13187_v3, %v2808_v36  ;;  %v10907_v36 = vld [vmem:[%s17172_s3 + $0x108] sm:$0xff] }
 0x45a   : > { %v3067_v17 = vpop.f32.mrf.mxu2  ;;  %4275 = vmatpush.bf16.msrb.mxu0 %v10907_v36 }
 0x45b   : > { %2847 = vmatmul.bf16.gmra.mxu1 %v2681_v50  ;;  %v3068_v41 = vadd.f32 %v13251_v47, %v3067_v17  ;;  %v2949_v28 = vmax.f32 %v2809_v24, 0.0 }
 0x45d   : > { %v3235_v61 = vmax.f32 %v3068_v41, 0.0 }
 0x460   : > { %v2810_v29 = vpop.f32.mrf.mxu1 }
 0x461   : > { %v2811_v19 = vadd.f32 %v13187_v3, %v2810_v29 }
 0x462   : > { %v3069_v43 = vpop.f32.mrf.mxu2 }
 0x463   : > { %v2950_v52 = vmax.f32 %v2811_v19, 0.0  ;;  %v3070_v56 = vadd.f32 %v13251_v47, %v3069_v43 }
 0x465   : > { %v3236_v31 = vmax.f32 %v3070_v56, 0.0  ;;  %v2977_v30 = vpack.c.bf16 %v2950_v52, %v2949_v28 }
 0x467   : > { %3111 = vmatmul.bf16.gmra.mxu2 %v2977_v30  ;;  %v3272_v14 = vpack.c.bf16 %v3236_v31, %v3235_v61 }
 0x468   : > { %v2813_v55 = vpop.f32.mrf.mxu1 }
 0x469   : > { %3370 = vmatmul.bf16.gmra.mxu3 %v3272_v14  ;;  %v2814_v37 = vadd.f32 %v13187_v3, %v2813_v55 }
 0x46a   : > { %v3072_v4 = vpop.f32.mrf.mxu2 }
 0x46b   : > { %v3073_v58 = vadd.f32 %v13251_v47, %v3072_v4  ;;  %v2951_v8 = vmax.f32 %v2814_v37, 0.0 }
 0x46d   : > { %v3237_v27 = vmax.f32 %v3073_v58, 0.0 }
 0x470   : > { %v2815_v2 = vpop.f32.mrf.mxu1 }
 0x471   : > { %v2816_v44 = vadd.f32 %v13187_v3, %v2815_v2 }
 0x472   : > { %v3074_v6 = vpop.f32.mrf.mxu2 }
 0x473   : > { %v2952_v1 = vmax.f32 %v2816_v44, 0.0  ;;  %v3075_v48 = vadd.f32 %v13251_v47, %v3074_v6 }
 0x475   : > { %v3238_v63 = vmax.f32 %v3075_v48, 0.0  ;;  %v2978_v20 = vpack.c.bf16 %v2952_v1, %v2951_v8 }
 0x477   : > { %3116 = vmatmul.bf16.gmra.mxu2 %v2978_v20  ;;  %v3273_v57 = vpack.c.bf16 %v3238_v63, %v3237_v27  ;;  %v10918_v27 = vld [vmem:[%s17172_s3 + $0x160] sm:$0xff] }
 0x478   : > { %v2818_v15 = vpop.f32.mrf.mxu1  ;;  %4633 = vmatpush.bf16.msrb.mxu1 %v10918_v27 }
 0x479   : > { %3375 = vmatmul.bf16.gmra.mxu3 %v3273_v57  ;;  %v2819_v13 = vadd.f32 %v13187_v3, %v2818_v15 }
 0x47a   : > { %v3077_v45 = vpop.f32.mrf.mxu2 }
 0x47b   : > { %v3078_v59 = vadd.f32 %v13251_v47, %v3077_v45  ;;  %v2953_v33 = vmax.f32 %v2819_v13, 0.0 }
 0x47d   : > { %v3239_v46 = vmax.f32 %v3078_v59, 0.0 }
 0x480   : > { %v2820_v42 = vpop.f32.mrf.mxu1 }
 0x481   : > { %v2821_v60 = vadd.f32 %v13187_v3, %v2820_v42 }
 0x482   : > { %v3079_v16 = vpop.f32.mrf.mxu2 }
 0x483   : > { %v2954_v35 = vmax.f32 %v2821_v60, 0.0  ;;  %v3080_v40 = vadd.f32 %v13251_v47, %v3079_v16 }
 0x485   : > { %v3240_v49 = vmax.f32 %v3080_v40, 0.0  ;;  %v2979_v54 = vpack.c.bf16 %v2954_v35, %v2953_v33 }
 0x487   : > { %3121 = vmatmul.bf16.gmra.mxu2 %v2979_v54  ;;  %v3274_v25 = vpack.c.bf16 %v3240_v49, %v3239_v46 }
 0x488   : > { %v2823_v23 = vpop.f32.mrf.mxu1 }
 0x489   : > { %3380 = vmatmul.bf16.gmra.mxu3 %v3274_v25  ;;  %v2824_v21 = vadd.f32 %v13187_v3, %v2823_v23 }
 0x48a   : > { %v3082_v32 = vpop.f32.mrf.mxu2 }
 0x48b   : > { %v3083_v39 = vadd.f32 %v13251_v47, %v3082_v32  ;;  %v2955_v12 = vmax.f32 %v2824_v21, 0.0 }
 0x48d   : > { %v3241_v26 = vmax.f32 %v3083_v39, 0.0 }
 0x490   : > { %v2825_v7 = vpop.f32.mrf.mxu1 }
 0x491   : > { %v2826_v0 = vadd.f32 %v13187_v3, %v2825_v7 }
 0x492   : > { %v3084_v10 = vpop.f32.mrf.mxu2 }
 0x493   : > { %v2956_v18 = vmax.f32 %v2826_v0, 0.0  ;;  %v3085_v62 = vadd.f32 %v13251_v47, %v3084_v10 }
 0x495   : > { %v3242_v11 = vmax.f32 %v3085_v62, 0.0  ;;  %v2980_v51 = vpack.c.bf16 %v2956_v18, %v2955_v12  ;;  %v10906_v62 = vld [vmem:[%s17172_s3 + $0x100] sm:$0xff] }
 0x496   : > { %4276 = vmatpush.bf16.msrb.mxu0 %v10906_v62 }
 0x497   : > { %3126 = vmatmul.bf16.gmra.mxu2 %v2980_v51  ;;  %v3275_v34 = vpack.c.bf16 %v3242_v11, %v3241_v26  ;;  %v13315_v51 = vld [vmem:[%s17176_s7 + $0x4] ss:$0 sm:$0xff] }
 0x498   : > { %v2828_v38 = vpop.f32.mrf.mxu1 }
 0x499   : > { %3385 = vmatmul.bf16.gmra.mxu3 %v3275_v34  ;;  %v2829_v50 = vadd.f32 %v13187_v3, %v2828_v38 }
 0x49a   : > { %v3087_v5 = vpop.f32.mrf.mxu2 }
 0x49b   : > { %v3088_v24 = vadd.f32 %v13251_v47, %v3087_v5  ;;  %v2957_v19 = vmax.f32 %v2829_v50, 0.0 }
 0x49d   : > { %v3243_v52 = vmax.f32 %v3088_v24, 0.0 }
 0x4a0   : > { %v2830_v17 = vpop.f32.mrf.mxu1 }
 0x4a1   : > { %v2831_v29 = vadd.f32 %v13187_v3, %v2830_v17 }
 0x4a2   : > { %v3089_v41 = vpop.f32.mrf.mxu2 }
 0x4a3   : > { %v2958_v43 = vmax.f32 %v2831_v29, 0.0  ;;  %v3090_v28 = vadd.f32 %v13251_v47, %v3089_v41  ;;  %v10929_v41 = vld [vmem:[%s17172_s3 + $0x1b8] sm:$0xff] }
 0x4a4   : > { %4934 = vmatpush.bf16.msrb.mxu2 %v10929_v41 }
 0x4a5   : > { %v3244_v56 = vmax.f32 %v3090_v28, 0.0  ;;  %v2981_v61 = vpack.c.bf16 %v2958_v43, %v2957_v19  ;;  %v10917_v43 = vld [vmem:[%s17172_s3 + $0x158] sm:$0xff] }
 0x4a6   : > { %4634 = vmatpush.bf16.msrb.mxu1 %v10917_v43 }
 0x4a7   : > { %3131 = vmatmul.bf16.gmra.mxu2 %v2981_v61  ;;  %v3276_v31 = vpack.c.bf16 %v3244_v56, %v3243_v52 }
 0x4a8   : > { %v2833_v30 = vpop.f32.mrf.mxu1 }
 0x4a9   : > { %3390 = vmatmul.bf16.gmra.mxu3 %v3276_v31  ;;  %v2834_v55 = vadd.f32 %v13187_v3, %v2833_v30 }
 0x4aa   : > { %v3092_v14 = vpop.f32.mrf.mxu2 }
 0x4ab   : > { %v3093_v53 = vadd.f32 %v13251_v47, %v3092_v14  ;;  %v2959_v58 = vmax.f32 %v2834_v55, 0.0 }
 0x4ad   : > { %v3245_v8 = vmax.f32 %v3093_v53, 0.0 }
 0x4b0   : > { %v2835_v4 = vpop.f32.mrf.mxu1 }
 0x4b1   : > { %v2836_v37 = vadd.f32 %v13187_v3, %v2835_v4 }
 0x4b2   : > { %v3094_v2 = vpop.f32.mrf.mxu2 }
 0x4b3   : > { %v2960_v44 = vmax.f32 %v2836_v37, 0.0  ;;  %v3095_v6 = vadd.f32 %v13251_v47, %v3094_v2 }
 0x4b5   : > { %v3246_v1 = vmax.f32 %v3095_v6, 0.0  ;;  %v2982_v48 = vpack.c.bf16 %v2960_v44, %v2959_v58 }
 0x4b7   : > { %3136 = vmatmul.bf16.gmra.mxu2 %v2982_v48  ;;  %v3277_v63 = vpack.c.bf16 %v3246_v1, %v3245_v8 }
 0x4b8   : > { %v2838_v20 = vpop.f32.mrf.mxu1 }
 0x4b9   : > { %3395 = vmatmul.bf16.gmra.mxu3 %v3277_v63  ;;  %v2839_v57 = vadd.f32 %v13187_v3, %v2838_v20 }
 0x4ba   : > { %v3097_v22 = vpop.f32.mrf.mxu2 }
 0x4bb   : > { %v3098_v45 = vadd.f32 %v13251_v47, %v3097_v22  ;;  %v2961_v59 = vmax.f32 %v2839_v57, 0.0 }
 0x4bd   : > { %v3247_v33 = vmax.f32 %v3098_v45, 0.0 }
 0x4c0   : > { %v2840_v15 = vpop.f32.mrf.mxu1 }
 0x4c1   : > { %v2841_v13 = vadd.f32 %v13187_v3, %v2840_v15 }
 0x4c2   : > { %v3099_v42 = vpop.f32.mrf.mxu2 }
 0x4c3   : > { %v2962_v60 = vmax.f32 %v2841_v13, 0.0  ;;  %v3100_v16 = vadd.f32 %v13251_v47, %v3099_v42 }
 0x4c5   : > { %v3248_v35 = vmax.f32 %v3100_v16, 0.0  ;;  %v2983_v40 = vpack.c.bf16 %v2962_v60, %v2961_v59 }
 0x4c7   : > { %3141 = vmatmul.bf16.gmra.mxu2 %v2983_v40  ;;  %v3278_v46 = vpack.c.bf16 %v3248_v35, %v3247_v33 }
 0x4c8   : > { %v2843_v49 = vpop.f32.mrf.mxu1 }
 0x4c9   : > { %3400 = vmatmul.bf16.gmra.mxu3 %v3278_v46  ;;  %v2844_v25 = vadd.f32 %v13187_v3, %v2843_v49 }
 0x4ca   : > { %v3102_v54 = vpop.f32.mrf.mxu2 }
 0x4cb   : > { %v3103_v32 = vadd.f32 %v13251_v47, %v3102_v54  ;;  %v2963_v7 = vmax.f32 %v2844_v25, 0.0 }
 0x4cd   : > { %v3249_v10 = vmax.f32 %v3103_v32, 0.0 }
 0x4d0   : > { %v2845_v23 = vpop.f32.mrf.mxu1 }
 0x4d1   : > { %v2846_v9 = vadd.f32 %v13187_v3, %v2845_v23 }
 0x4d2   : > { %v3104_v21 = vpop.f32.mrf.mxu2 }
 0x4d3   : > { %v2964_v39 = vmax.f32 %v2846_v9, 0.0  ;;  %v3105_v0 = vadd.f32 %v13251_v47, %v3104_v21 }
 0x4d5   : > { %v3250_v12 = vmax.f32 %v3105_v0, 0.0  ;;  %v2984_v18 = vpack.c.bf16 %v2964_v39, %v2963_v7 }
 0x4d7   : > { %3146 = vmatmul.bf16.gmra.mxu2 %v2984_v18  ;;  %v3279_v26 = vpack.c.bf16 %v3250_v12, %v3249_v10 }
 0x4d8   : > { %v2848_v11 = vpop.f32.mrf.mxu1 }
 0x4d9   : > { %3405 = vmatmul.bf16.gmra.mxu3 %v3279_v26  ;;  %v2849_v36 = vadd.f32 %v13187_v3, %v2848_v11 }
 0x4da   : > { %v3107_v34 = vpop.f32.mrf.mxu2 }
 0x4db   : > { %v3108_v24 = vadd.f32 %v13251_v47, %v3107_v34  ;;  %v2965_v28 = vmax.f32 %v2849_v36, 0.0 }
 0x4dc   : > { %v3366_v38 = vpop.f32.mrf.mxu3 }
 0x4dd   : > { %v3367_v5 = vadd.f32 %v13315_v51, %v3366_v38  ;;  %v3251_v31 = vmax.f32 %v3108_v24, 0.0 }
 0x4df   : > { %v10044_v50 = vmul.f32 -1.442695, %v3367_v5 }
 0x4e0   : > { %v2850_v17 = vpop.f32.mrf.mxu1 }
 0x4e1   : > { %11184 = vpow2.f32 %v10044_v50  ;;  %v2851_v29 = vadd.f32 %v13187_v3, %v2850_v17 }
 0x4e2   : > { %v3109_v19 = vpop.f32.mrf.mxu2 }
 0x4e3   : > { %v2966_v52 = vmax.f32 %v2851_v29, 0.0  ;;  %v3110_v56 = vadd.f32 %v13251_v47, %v3109_v19  ;;  %v10928_v19 = vld [vmem:[%s17172_s3 + $0x1b0] sm:$0xff] }
 0x4e4   : > { %v3368_v61 = vpop.f32.mrf.mxu3  ;;  %4935 = vmatpush.bf16.msrb.mxu2 %v10928_v19 }
 0x4e5   : > { %v3252_v30 = vmax.f32 %v3110_v56, 0.0  ;;  %v3369_v3 = vadd.f32 %v13315_v51, %v3368_v61  ;;  %v2985_v14 = vpack.c.bf16 %v2966_v52, %v2965_v28 }
 0x4e7   : > { %v11185_v55 = vpop.eup %11184  ;;  %v10045_v4 = vmul.f32 -1.442695, %v3369_v3  ;;  %3151 = vmatmul.bf16.gmra.mxu2 %v2985_v14  ;;  %v3280_v53 = vpack.c.bf16 %v3252_v30, %v3251_v31 }
 0x4e8   : > { %v3575_v37 = vadd.f32 1.0, %v11185_v55 }
 0x4e9   : > { %11186 = vpow2.f32 %v10045_v4  ;;  %3410 = vmatmul.bf16.gmra.mxu3 %v3280_v53 }
 0x4ea   : > { %11188 = vrcp.f32 %v3575_v37  ;;  %v3112_v2 = vpop.f32.mrf.mxu2  ;;  %v3624_v49 = vand.u32 2147483648, %v3575_v37  ;;  %v3622_v21 = vand.u32 2147483647, %v3575_v37  ;;  %vm3618_vm1 = vweird.f32 %v3575_v37 }
 0x4eb   : > { %v3113_v63 = vadd.f32 %v13251_v47, %v3112_v2 }
 0x4ec   : > { %v3371_v58 = vpop.f32.mrf.mxu3  ;;  %v3625_v12 = vor.u32 1.1754944e-38, %v3624_v49  ;;  %vm3623_vm5 = vcmp.eq.f32.partialorder %v3622_v21, 8.507059e+37 }
 0x4ed   : > { %v3372_v44 = vadd.f32 %v13315_v51, %v3371_v58  ;;  %v3253_v45 = vmax.f32 %v3113_v63, 0.0 }
 0x4ef   : > { %v11187_v6 = vpop.eup %11186  ;;  %v10046_v8 = vmul.f32 -1.442695, %v3372_v44 }
 0x4f0   : > { %v11189_v1 = vpop.eup %11188  ;;  %v3576_v48 = vadd.f32 1.0, %v11187_v6 }
 0x4f1   : > { %v3614_v27 = vmul.f32 %v11189_v1, %v3575_v37  ;;  %11190 = vpow2.f32 %v10046_v8  ;;  %vm3619_vm0 = vweird.f32 %v11189_v1 }
 0x4f2   : > { %11192 = vrcp.f32 %v3576_v48  ;;  %v3114_v20 = vpop.f32.mrf.mxu2  ;;  %v3639_v32 = vand.u32 2147483648, %v3576_v48  ;;  %v3637_v7 = vand.u32 2147483647, %v3576_v48  ;;  %vm13337_vm3 = vmor %vm3618_vm1, %vm3619_vm0  ;;  %vm3633_vm4 = vweird.f32 %v3576_v48 }
 0x4f3   : > { %v3615_v22 = vsub.f32 1.0, %v3614_v27  ;;  %v3115_v57 = vadd.f32 %v13251_v47, %v3114_v20 }
 0x4f4   : > { %v3373_v15 = vpop.f32.mrf.mxu3  ;;  %vm3638_vm7 = vcmp.eq.f32.partialorder %v3637_v7, 8.507059e+37  ;;  %v3640_v5 = vor.u32 1.1754944e-38, %v3639_v32 }
 0x4f5   : > { %v3254_v13 = vmax.f32 %v3115_v57, 0.0  ;;  %v3374_v42 = vadd.f32 %v13315_v51, %v3373_v15  ;;  %v3616_v60 = vmul.f32 %v11189_v1, %v3615_v22 }
 0x4f7   : > { %v11191_v59 = vpop.eup %11190  ;;  %v10047_v16 = vmul.f32 -1.442695, %v3374_v42  ;;  %v3281_v33 = vpack.c.bf16 %v3254_v13, %v3253_v45  ;;  %v3617_v23 = vadd.f32 %v11189_v1, %v3616_v60 }
 0x4f8   : > { %v11193_v35 = vpop.eup %11192  ;;  %v13333_v40 = vadd.f32 1.0, %v11191_v59 }
 0x4f9   : > { %v3629_v46 = vmul.f32 %v11193_v35, %v3576_v48  ;;  %11194 = vpow2.f32 %v10047_v16  ;;  %3415 = vmatmul.bf16.gmra.mxu3 %v3281_v33  ;;  %vm3634_vm2 = vweird.f32 %v11193_v35  ;;  %v3621_v26 = vsel %vm13337_vm3, %v11189_v1, %v3617_v23 }
 0x4fa   : > { %11196 = vrcp.f32 %v13333_v40  ;;  %v3117_v54 = vpop.f32.mrf.mxu2  ;;  %vm3635_vm6 = vmor %vm3633_vm4, %vm3634_vm2  ;;  %v3626_v29 = vsel %vm3623_vm5, %v3625_v12, %v3621_v26  ;;  %v3652_v44 = vand.u32 2147483647, %v13333_v40  ;;  %v3654_v48 = vand.u32 2147483648, %v13333_v40 }
 0x4fb   : > { %v3630_v25 = vsub.f32 1.0, %v3629_v46  ;;  %v3118_v50 = vadd.f32 %v13251_v47, %v3117_v54  ;;  %vm3648_vm9 = vweird.f32 %v13333_v40  ;;  %v10916_v54 = vld [vmem:[%s17172_s3 + $0x150] sm:$0xff] }
 0x4fc   : > { %v3376_v9 = vpop.f32.mrf.mxu3  ;;  %vm13367_vm12 = vcmp.eq.f32.partialorder %v3652_v44, 8.507059e+37  ;;  %v3655_v33 = vor.u32 1.1754944e-38, %v3654_v48  ;;  %4635 = vmatpush.bf16.msrb.mxu1 %v10916_v54  ;;  %v10927_v48 = vld [vmem:[%s17172_s3 + $0x1a8] sm:$0xff] }
 0x4fd   : > { %v3631_v39 = vmul.f32 %v11193_v35, %v3630_v25  ;;  %v3377_v0 = vadd.f32 %v13315_v51, %v3376_v9  ;;  %v3255_v61 = vmax.f32 %v3118_v50, 0.0  ;;  %4936 = vmatpush.bf16.msrb.mxu2 %v10927_v48 }
 0x4ff   : > { %v11195_v18 = vpop.eup %11194  ;;  %v10048_v62 = vmul.f32 -1.442695, %v3377_v0  ;;  %v3632_v11 = vadd.f32 %v11193_v35, %v3631_v39 }
 0x500   : > { %v13343_v34 = vpop.eup %11196  ;;  %v3578_v38 = vadd.f32 1.0, %v11195_v18 }
 0x501   : > { %v3644_v36 = vmul.f32 %v13343_v34, %v13333_v40  ;;  %11198 = vpow2.f32 %v10048_v62  ;;  %v3636_v17 = vsel %vm3635_vm6, %v11193_v35, %v3632_v11  ;;  %vm3649_vm8 = vweird.f32 %v13343_v34 }
 0x502   : > { %11200 = vrcp.f32 %v3578_v38  ;;  %v3119_v24 = vpop.f32.mrf.mxu2  ;;  %v3641_v41 = vsel %vm3638_vm7, %v3640_v5, %v3636_v17  ;;  %v3667_v27 = vand.u32 2147483647, %v3578_v38  ;;  %v3669_v63 = vand.u32 2147483648, %v3578_v38  ;;  %vm13363_vm11 = vmor %vm3648_vm9, %vm3649_vm8 }
 0x503   : > { %v3120_v43 = vadd.f32 %v13251_v47, %v3119_v24  ;;  %v4183_v28 = vpack.c.bf16 %v3641_v41, %v3626_v29  ;;  %v3645_v52 = vsub.f32 1.0, %v3644_v36  ;;  %vm3663_vm13 = vweird.f32 %v3578_v38 }
 0x504   : > { %v3378_v56 = vpop.f32.mrf.mxu3  ;;  %vm3668_vm15 = vcmp.eq.f32.partialorder %v3667_v27, 8.507059e+37  ;;  %v3670_v35 = vor.u32 1.1754944e-38, %v3669_v63 }
 0x505   : > { %v3256_v31 = vmax.f32 %v3120_v43, 0.0  ;;  %v3379_v30 = vadd.f32 %v13315_v51, %v3378_v56  ;;  %4277 = vmatmul.bf16.vlgmr.msrb.gmra.mxu0 %v4183_v28  ;;  %v3646_v4 = vmul.f32 %v13343_v34, %v3645_v52 }
 0x507   : > { %v11199_v3 = vpop.eup %11198  ;;  %v10049_v14 = vmul.f32 -1.442695, %v3379_v30  ;;  %v3282_v55 = vpack.c.bf16 %v3256_v31, %v3255_v61  ;;  %v3647_v6 = vadd.f32 %v13343_v34, %v3646_v4 }
 0x508   : > { %v11201_v53 = vpop.eup %11200  ;;  %v13354_v37 = vadd.f32 1.0, %v11199_v3 }
 0x509   : > { %11202 = vpow2.f32 %v10049_v14  ;;  %3420 = vmatmul.bf16.gmra.mxu3 %v3282_v55  ;;  %v3659_v2 = vmul.f32 %v11201_v53, %v3578_v38  ;;  %vm3664_vm10 = vweird.f32 %v11201_v53  ;;  %v3651_v42 = vsel %vm13363_vm11, %v13343_v34, %v3647_v6 }
 0x50a   : > { %11204 = vrcp.f32 %v13354_v37  ;;  %v3122_v58 = vpop.f32.mrf.mxu2  ;;  %vm3665_vm14 = vmor %vm3663_vm13, %vm3664_vm10  ;;  %v3656_v23 = vsel %vm13367_vm12, %v3655_v33, %v3651_v42  ;;  %v3682_v50 = vand.u32 2147483647, %v13354_v37  ;;  %v3684_v41 = vand.u32 2147483648, %v13354_v37 }
 0x50b   : > { %v3660_v8 = vsub.f32 1.0, %v3659_v2  ;;  %v3123_v46 = vadd.f32 %v13251_v47, %v3122_v58  ;;  %vm3678_vm1 = vweird.f32 %v13354_v37 }
 0x50c   : > { %v3381_v1 = vpop.f32.mrf.mxu3  ;;  %vm13400_vm4 = vcmp.eq.f32.partialorder %v3682_v50, 8.507059e+37 }
 0x50d   : > { %v3382_v20 = vadd.f32 %v13315_v51, %v3381_v1  ;;  %v3661_v22 = vmul.f32 %v11201_v53, %v3660_v8  ;;  %v3257_v0 = vmax.f32 %v3123_v46, 0.0 }
 0x50f   : > { %v11203_v45 = vpop.eup %11202  ;;  %v10050_v13 = vmul.f32 -1.442695, %v3382_v20  ;;  %v3662_v59 = vadd.f32 %v11201_v53, %v3661_v22 }
 0x510   : > { %v13374_v60 = vpop.eup %11204  ;;  %v3580_v16 = vadd.f32 1.0, %v11203_v45 }
 0x511   : > { %v3674_v40 = vmul.f32 %v13374_v60, %v13354_v37  ;;  %11206 = vpow2.f32 %v10050_v13  ;;  %v3666_v49 = vsel %vm3665_vm14, %v11201_v53, %v3662_v59  ;;  %vm3679_vm0 = vweird.f32 %v13374_v60 }
 0x512   : > { %11208 = vrcp.f32 %v3580_v16  ;;  %v3124_v25 = vpop.f32.mrf.mxu2  ;;  %v3671_v32 = vsel %vm3668_vm15, %v3670_v35, %v3666_v49  ;;  %v3697_v19 = vand.u32 2147483647, %v3580_v16  ;;  %v3699_v43 = vand.u32 2147483648, %v3580_v16  ;;  %vm13396_vm3 = vmor %vm3678_vm1, %vm3679_vm0 }
 0x513   : > { %v3125_v9 = vadd.f32 %v13251_v47, %v3124_v25  ;;  %v4184_v21 = vpack.c.bf16 %v3671_v32, %v3656_v23  ;;  %v3675_v7 = vsub.f32 1.0, %v3674_v40  ;;  %vm3693_vm5 = vweird.f32 %v3580_v16 }
 0x514   : > { %v3383_v39 = vpop.f32.mrf.mxu3  ;;  %v3685_v53 = vor.u32 1.1754944e-38, %v3684_v41  ;;  %vm3698_vm7 = vcmp.eq.f32.partialorder %v3697_v19, 8.507059e+37  ;;  %v3700_v37 = vor.u32 1.1754944e-38, %v3699_v43  ;;  %v10915_v41 = vld [vmem:[%s17172_s3 + $0x148] sm:$0xff] }
 0x515   : > { %v3258_v10 = vmax.f32 %v3125_v9, 0.0  ;;  %v3384_v12 = vadd.f32 %v13315_v51, %v3383_v39  ;;  %4282 = vmatmul.bf16.gmra.mxu0 %v4184_v21  ;;  %v3676_v11 = vmul.f32 %v13374_v60, %v3675_v7  ;;  %4636 = vmatpush.bf16.msrb.mxu1 %v10915_v41 }
 0x517   : > { %v11207_v18 = vpop.eup %11206  ;;  %v10051_v62 = vmul.f32 -1.442695, %v3384_v12  ;;  %v3283_v26 = vpack.c.bf16 %v3258_v10, %v3257_v0  ;;  %v3677_v17 = vadd.f32 %v13374_v60, %v3676_v11 }
 0x518   : > { %v11209_v34 = vpop.eup %11208  ;;  %v13387_v38 = vadd.f32 1.0, %v11207_v18 }
 0x519   : > { %11210 = vpow2.f32 %v10051_v62  ;;  %3425 = vmatmul.bf16.gmra.mxu3 %v3283_v26  ;;  %v3689_v5 = vmul.f32 %v11209_v34, %v3580_v16  ;;  %vm3694_vm2 = vweird.f32 %v11209_v34  ;;  %v3681_v3 = vsel %vm13396_vm3, %v13374_v60, %v3677_v17 }
 0x51a   : > { %11212 = vrcp.f32 %v13387_v38  ;;  %v3127_v36 = vpop.f32.mrf.mxu2  ;;  %vm3695_vm6 = vmor %vm3693_vm5, %vm3694_vm2  ;;  %v3686_v8 = vsel %vm13400_vm4, %v3685_v53, %v3681_v3  ;;  %v3712_v46 = vand.u32 2147483647, %v13387_v38  ;;  %v3714_v23 = vand.u32 2147483648, %v13387_v38 }
 0x51b   : > { %v3690_v24 = vsub.f32 1.0, %v3689_v5  ;;  %v3128_v58 = vadd.f32 %v13251_v47, %v3127_v36  ;;  %vm3708_vm9 = vweird.f32 %v13387_v38 }
 0x51c   : > { %v3386_v29 = vpop.f32.mrf.mxu3  ;;  %vm13433_vm12 = vcmp.eq.f32.partialorder %v3712_v46, 8.507059e+37 }
 0x51d   : > { %v3387_v28 = vadd.f32 %v13315_v51, %v3386_v29  ;;  %v3691_v52 = vmul.f32 %v11209_v34, %v3690_v24  ;;  %v3259_v57 = vmax.f32 %v3128_v58, 0.0 }
 0x51f   : > { %v11211_v31 = vpop.eup %11210  ;;  %v10052_v30 = vmul.f32 -1.442695, %v3387_v28  ;;  %v3692_v14 = vadd.f32 %v11209_v34, %v3691_v52 }
 0x520   : > { %v13407_v55 = vpop.eup %11212  ;;  %v3582_v4 = vadd.f32 1.0, %v11211_v31 }
 0x521   : > { %v3704_v2 = vmul.f32 %v13407_v55, %v13387_v38  ;;  %11214 = vpow2.f32 %v10052_v30  ;;  %v3696_v44 = vsel %vm3695_vm6, %v11209_v34, %v3692_v14  ;;  %vm3709_vm8 = vweird.f32 %v13407_v55 }
 0x522   : > { %11216 = vrcp.f32 %v3582_v4  ;;  %v3129_v6 = vpop.f32.mrf.mxu2  ;;  %v3701_v1 = vsel %vm3698_vm7, %v3700_v37, %v3696_v44  ;;  %v3727_v32 = vand.u32 2147483647, %v3582_v4  ;;  %v3729_v9 = vand.u32 2147483648, %v3582_v4  ;;  %vm13429_vm11 = vmor %vm3708_vm9, %vm3709_vm8 }
 0x523   : > { %v3130_v27 = vadd.f32 %v13251_v47, %v3129_v6  ;;  %v4185_v63 = vpack.c.bf16 %v3701_v1, %v3686_v8  ;;  %v3705_v20 = vsub.f32 1.0, %v3704_v2  ;;  %vm3723_vm13 = vweird.f32 %v3582_v4 }
 0x524   : > { %v3388_v22 = vpop.f32.mrf.mxu3  ;;  %v3715_v34 = vor.u32 1.1754944e-38, %v3714_v23  ;;  %vm3728_vm15 = vcmp.eq.f32.partialorder %v3727_v32, 8.507059e+37  ;;  %v3730_v38 = vor.u32 1.1754944e-38, %v3729_v9 }
 0x525   : > { %v3260_v15 = vmax.f32 %v3130_v27, 0.0  ;;  %v3389_v45 = vadd.f32 %v13315_v51, %v3388_v22  ;;  %4287 = vmatmul.bf16.gmra.mxu0 %v4185_v63  ;;  %v3706_v60 = vmul.f32 %v13407_v55, %v3705_v20 }
 0x527   : > { %v11215_v13 = vpop.eup %11214  ;;  %v10053_v42 = vmul.f32 -1.442695, %v3389_v45  ;;  %v3284_v59 = vpack.c.bf16 %v3260_v15, %v3259_v57  ;;  %v3707_v49 = vadd.f32 %v13407_v55, %v3706_v60 }
 0x528   : > { %v11217_v16 = vpop.eup %11216  ;;  %v13420_v33 = vadd.f32 1.0, %v11215_v13 }
 0x529   : > { %11218 = vpow2.f32 %v10053_v42  ;;  %3430 = vmatmul.bf16.gmra.mxu3 %v3284_v59  ;;  %v3719_v35 = vmul.f32 %v11217_v16, %v3582_v4  ;;  %vm3724_vm10 = vweird.f32 %v11217_v16  ;;  %v3711_v18 = vsel %vm13429_vm11, %v13407_v55, %v3707_v49 }
 0x52a   : > { %11220 = vrcp.f32 %v13420_v33  ;;  %v3132_v40 = vpop.f32.mrf.mxu2  ;;  %vm3725_vm14 = vmor %vm3723_vm13, %vm3724_vm10  ;;  %v3716_v24 = vsel %vm13433_vm12, %v3715_v34, %v3711_v18  ;;  %v3742_v58 = vand.u32 2147483647, %v13420_v33  ;;  %v3744_v1 = vand.u32 2147483648, %v13420_v33 }
 0x52b   : > { %v3720_v54 = vsub.f32 1.0, %v3719_v35  ;;  %v3133_v36 = vadd.f32 %v13251_v47, %v3132_v40  ;;  %vm3738_vm1 = vweird.f32 %v13420_v33 }
 0x52c   : > { %v3391_v25 = vpop.f32.mrf.mxu3  ;;  %vm13466_vm4 = vcmp.eq.f32.partialorder %v3742_v58, 8.507059e+37  ;;  %v10926_v58 = vld [vmem:[%s17172_s3 + $0x1a0] sm:$0xff] }
 0x52d   : > { %v3392_v21 = vadd.f32 %v13315_v51, %v3391_v25  ;;  %v3721_v7 = vmul.f32 %v11217_v16, %v3720_v54  ;;  %v3261_v56 = vmax.f32 %v3133_v36, 0.0  ;;  %4937 = vmatpush.bf16.msrb.mxu2 %v10926_v58 }
 0x52f   : > { %v11219_v10 = vpop.eup %11218  ;;  %v10054_v12 = vmul.f32 -1.442695, %v3392_v21  ;;  %v3722_v62 = vadd.f32 %v11217_v16, %v3721_v7 }
 0x530   : > { %v13440_v26 = vpop.eup %11220  ;;  %v3584_v11 = vadd.f32 1.0, %v11219_v10 }
 0x531   : > { %v3734_v5 = vmul.f32 %v13440_v26, %v13420_v33  ;;  %11222 = vpow2.f32 %v10054_v12  ;;  %v3726_v50 = vsel %vm3725_vm14, %v11217_v16, %v3722_v62  ;;  %vm3739_vm0 = vweird.f32 %v13440_v26 }
 0x532   : > { %11224 = vrcp.f32 %v3584_v11  ;;  %v3134_v17 = vpop.f32.mrf.mxu2  ;;  %v3731_v29 = vsel %vm3728_vm15, %v3730_v38, %v3726_v50  ;;  %v3757_v48 = vand.u32 2147483647, %v3584_v11  ;;  %v3759_v27 = vand.u32 2147483648, %v3584_v11  ;;  %vm13462_vm3 = vmor %vm3738_vm1, %vm3739_vm0 }
 0x533   : > { %v3135_v19 = vadd.f32 %v13251_v47, %v3134_v17  ;;  %v4186_v43 = vpack.c.bf16 %v3731_v29, %v3716_v24  ;;  %v3735_v28 = vsub.f32 1.0, %v3734_v5  ;;  %vm3753_vm5 = vweird.f32 %v3584_v11 }
 0x534   : > { %v3393_v52 = vpop.f32.mrf.mxu3  ;;  %v3745_v16 = vor.u32 1.1754944e-38, %v3744_v1  ;;  %vm3758_vm7 = vcmp.eq.f32.partialorder %v3757_v48, 8.507059e+37  ;;  %v3760_v33 = vor.u32 1.1754944e-38, %v3759_v27 }
 0x535   : > { %v3262_v61 = vmax.f32 %v3135_v19, 0.0  ;;  %v3394_v31 = vadd.f32 %v13315_v51, %v3393_v52  ;;  %4292 = vmatmul.bf16.gmra.mxu0 %v4186_v43  ;;  %v3736_v55 = vmul.f32 %v13440_v26, %v3735_v28 }
 0x537   : > { %v11223_v30 = vpop.eup %11222  ;;  %v10055_v3 = vmul.f32 -1.442695, %v3394_v31  ;;  %v3285_v14 = vpack.c.bf16 %v3262_v61, %v3261_v56  ;;  %v3737_v44 = vadd.f32 %v13440_v26, %v3736_v55 }
 0x538   : > { %v11225_v4 = vpop.eup %11224  ;;  %v13453_v53 = vadd.f32 1.0, %v11223_v30 }
 0x539   : > { %11226 = vpow2.f32 %v10055_v3  ;;  %3435 = vmatmul.bf16.gmra.mxu3 %v3285_v14  ;;  %v3749_v37 = vmul.f32 %v11225_v4, %v3584_v11  ;;  %vm3754_vm2 = vweird.f32 %v11225_v4  ;;  %v3741_v13 = vsel %vm13462_vm3, %v13440_v26, %v3737_v44 }
 0x53a   : > { %11228 = vrcp.f32 %v13453_v53  ;;  %v3137_v2 = vpop.f32.mrf.mxu2  ;;  %vm3755_vm6 = vmor %vm3753_vm5, %vm3754_vm2  ;;  %v3746_v54 = vsel %vm13466_vm4, %v3745_v16, %v3741_v13  ;;  %v3772_v38 = vand.u32 2147483647, %v13453_v53  ;;  %v3774_v17 = vand.u32 2147483648, %v13453_v53 }
 0x53b   : > { %v3750_v6 = vsub.f32 1.0, %v3749_v37  ;;  %v3138_v40 = vadd.f32 %v13251_v47, %v3137_v2  ;;  %vm3768_vm9 = vweird.f32 %v13453_v53 }
 0x53c   : > { %v3396_v8 = vpop.f32.mrf.mxu3  ;;  %vm13496_vm12 = vcmp.eq.f32.partialorder %v3772_v38, 8.507059e+37  ;;  %v3775_v14 = vor.u32 1.1754944e-38, %v3774_v17 }
 0x53d   : > { %v3397_v63 = vadd.f32 %v13315_v51, %v3396_v8  ;;  %v3751_v20 = vmul.f32 %v11225_v4, %v3750_v6  ;;  %v3263_v7 = vmax.f32 %v3138_v40, 0.0 }
 0x53f   : > { %v11227_v15 = vpop.eup %11226  ;;  %v10056_v45 = vmul.f32 -1.442695, %v3397_v63  ;;  %v3752_v42 = vadd.f32 %v11225_v4, %v3751_v20 }
 0x540   : > { %v13473_v59 = vpop.eup %11228  ;;  %v3586_v60 = vadd.f32 1.0, %v11227_v15 }
 0x541   : > { %v3764_v35 = vmul.f32 %v13473_v59, %v13453_v53  ;;  %11230 = vpow2.f32 %v10056_v45  ;;  %v3756_v46 = vsel %vm3755_vm6, %v11225_v4, %v3752_v42  ;;  %vm3769_vm8 = vweird.f32 %v13473_v59  ;;  %v13510_v53 = vld [vmem:[%s17176_s7 + $0x3] ss:$0 sm:$0xff] }
 0x542   : > { %11232 = vrcp.f32 %v3586_v60  ;;  %v3139_v49 = vpop.f32.mrf.mxu2  ;;  %v3761_v25 = vsel %vm3758_vm7, %v3760_v33, %v3756_v46  ;;  %v3787_v24 = vand.u32 2147483647, %v3586_v60  ;;  %v3789_v29 = vand.u32 2147483648, %v3586_v60  ;;  %vm13492_vm11 = vmor %vm3768_vm9, %vm3769_vm8 }
 0x543   : > { %v3140_v23 = vadd.f32 %v13251_v47, %v3139_v49  ;;  %v4187_v32 = vpack.c.bf16 %v3761_v25, %v3746_v54  ;;  %v3765_v9 = vsub.f32 1.0, %v3764_v35  ;;  %vm3783_vm13 = vweird.f32 %v3586_v60 }
 0x544   : > { %v3398_v21 = vpop.f32.mrf.mxu3  ;;  %vm3788_vm15 = vcmp.eq.f32.partialorder %v3787_v24, 8.507059e+37  ;;  %v3790_v55 = vor.u32 1.1754944e-38, %v3789_v29 }
 0x545   : > { %v3264_v39 = vmax.f32 %v3140_v23, 0.0  ;;  %v3399_v0 = vadd.f32 %v13315_v51, %v3398_v21  ;;  %4297 = vmatmul.bf16.gmra.mxu0 %v4187_v32  ;;  %v3766_v62 = vmul.f32 %v13473_v59, %v3765_v9 }
 0x547   : > { %v11231_v10 = vpop.eup %11230  ;;  %v10057_v12 = vmul.f32 -1.442695, %v3399_v0  ;;  %v3286_v18 = vpack.c.bf16 %v3264_v39, %v3263_v7  ;;  %v3767_v5 = vadd.f32 %v13473_v59, %v3766_v62 }
 0x548   : > { %v11233_v26 = vpop.eup %11232  ;;  %v13483_v11 = vadd.f32 1.0, %v11231_v10 }
 0x549   : > { %11234 = vpow2.f32 %v10057_v12  ;;  %3440 = vmatmul.bf16.gmra.mxu3 %v3286_v18  ;;  %v3779_v34 = vmul.f32 %v11233_v26, %v3586_v60  ;;  %vm3784_vm10 = vweird.f32 %v11233_v26  ;;  %v3771_v61 = vsel %vm13492_vm11, %v13473_v59, %v3767_v5  ;;  %v10914_v5 = vld [vmem:[%s17172_s3 + $0x140] sm:$0xff] }
 0x54a   : > { %11236 = vrcp.f32 %v13483_v11  ;;  %v3142_v47 = vpop.f32.mrf.mxu2  ;;  %vm3785_vm14 = vmor %vm3783_vm13, %vm3784_vm10  ;;  %v3776_v6 = vsel %vm13496_vm12, %v3775_v14, %v3771_v61  ;;  %v3802_v35 = vand.u32 2147483647, %v13483_v11  ;;  %v3804_v54 = vand.u32 2147483648, %v13483_v11  ;;  %4637 = vmatpush.bf16.msrb.mxu1 %v10914_v5 }
 0x54b   : > { %v3780_v36 = vsub.f32 1.0, %v3779_v34  ;;  %v3143_v37 = vadd.f32 %v13510_v53, %v3142_v47  ;;  %vm3798_vm1 = vweird.f32 %v13483_v11 }
 0x54c   : > { %v3401_v50 = vpop.f32.mrf.mxu3  ;;  %vm13534_vm4 = vcmp.eq.f32.partialorder %v3802_v35, 8.507059e+37 }
 0x54d   : > { %v3402_v41 = vadd.f32 %v13315_v51, %v3401_v50  ;;  %v3781_v19 = vmul.f32 %v11233_v26, %v3780_v36  ;;  %v3265_v20 = vmax.f32 %v3143_v37, 0.0 }
 0x54f   : > { %v11235_v52 = vpop.eup %11234  ;;  %v10058_v56 = vmul.f32 -1.442695, %v3402_v41  ;;  %v3782_v31 = vadd.f32 %v11233_v26, %v3781_v19 }
 0x550   : > { %v13503_v30 = vpop.eup %11236  ;;  %v3588_v3 = vadd.f32 1.0, %v11235_v52 }
 0x551   : > { %v3794_v4 = vmul.f32 %v13503_v30, %v13483_v11  ;;  %11238 = vpow2.f32 %v10058_v56  ;;  %v3786_v2 = vsel %vm3785_vm14, %v11233_v26, %v3782_v31  ;;  %vm3799_vm0 = vweird.f32 %v13503_v30 }
 0x552   : > { %11240 = vrcp.f32 %v3588_v3  ;;  %v3144_v44 = vpop.f32.mrf.mxu2  ;;  %v3791_v8 = vsel %vm3788_vm15, %v3790_v55, %v3786_v2  ;;  %v3817_v25 = vand.u32 2147483647, %v3588_v3  ;;  %v3819_v23 = vand.u32 2147483648, %v3588_v3  ;;  %vm13530_vm3 = vmor %vm3798_vm1, %vm3799_vm0 }
 0x553   : > { %v3145_v1 = vadd.f32 %v13510_v53, %v3144_v44  ;;  %v4188_v48 = vpack.c.bf16 %v3791_v8, %v3776_v6  ;;  %v3795_v27 = vsub.f32 1.0, %v3794_v4  ;;  %vm3813_vm5 = vweird.f32 %v3588_v3 }
 0x554   : > { %v3403_v63 = vpop.f32.mrf.mxu3  ;;  %v3805_v26 = vor.u32 1.1754944e-38, %v3804_v54  ;;  %vm3818_vm7 = vcmp.eq.f32.partialorder %v3817_v25, 8.507059e+37  ;;  %v3820_v11 = vor.u32 1.1754944e-38, %v3819_v23  ;;  %v10925_v25 = vld [vmem:[%s17172_s3 + $0x198] sm:$0xff] }
 0x555   : > { %v3266_v22 = vmax.f32 %v3145_v1, 0.0  ;;  %v3404_v57 = vadd.f32 %v13315_v51, %v3403_v63  ;;  %4302 = vmatmul.bf16.gmra.mxu0 %v4188_v48  ;;  %v3796_v42 = vmul.f32 %v13503_v30, %v3795_v27  ;;  %4938 = vmatpush.bf16.msrb.mxu2 %v10925_v25 }
 0x557   : > { %v11239_v15 = vpop.eup %11238  ;;  %v10059_v45 = vmul.f32 -1.442695, %v3404_v57  ;;  %v3287_v13 = vpack.c.bf16 %v3266_v22, %v3265_v20  ;;  %v3797_v40 = vadd.f32 %v13503_v30, %v3796_v42 }
 0x558   : > { %v11241_v59 = vpop.eup %11240  ;;  %v13521_v60 = vadd.f32 1.0, %v11239_v15 }
 0x559   : > { %11242 = vpow2.f32 %v10059_v45  ;;  %3445 = vmatmul.bf16.gmra.mxu3 %v3287_v13  ;;  %v3809_v16 = vmul.f32 %v11241_v59, %v3588_v3  ;;  %vm3814_vm2 = vweird.f32 %v11241_v59  ;;  %v3801_v10 = vsel %vm13530_vm3, %v13503_v30, %v3797_v40  ;;  %v10937_v40 = vld [vmem:[%s17172_s3 + $0x1f8] sm:$0xff] }
 0x55a   : > { %11244 = vrcp.f32 %v13521_v60  ;;  %v3147_v33 = vpop.f32.mrf.mxu2  ;;  %vm3815_vm6 = vmor %vm3813_vm5, %vm3814_vm2  ;;  %v3806_v50 = vsel %vm13534_vm4, %v3805_v26, %v3801_v10  ;;  %v3832_v37 = vand.u32 2147483647, %v13521_v60  ;;  %v3834_v6 = vand.u32 2147483648, %v13521_v60  ;;  %5238 = vmatpush.bf16.msra.mxu3 %v10937_v40 }
 0x55b   : > { %v3810_v46 = vsub.f32 1.0, %v3809_v16  ;;  %v3148_v47 = vadd.f32 %v13510_v53, %v3147_v33  ;;  %vm3828_vm9 = vweird.f32 %v13521_v60 }
 0x55c   : > { %v3406_v49 = vpop.f32.mrf.mxu3  ;;  %vm13567_vm12 = vcmp.eq.f32.partialorder %v3832_v37, 8.507059e+37 }
 0x55d   : > { %v3407_v32 = vadd.f32 %v13315_v51, %v3406_v49  ;;  %v3811_v9 = vmul.f32 %v11241_v59, %v3810_v46  ;;  %v3267_v43 = vmax.f32 %v3148_v47, 0.0 }
 0x55f   : > { %v11243_v39 = vpop.eup %11242  ;;  %v10060_v0 = vmul.f32 -1.442695, %v3407_v32  ;;  %v3812_v12 = vadd.f32 %v11241_v59, %v3811_v9 }
 0x560   : > { %v13541_v18 = vpop.eup %11244  ;;  %v3590_v62 = vadd.f32 1.0, %v11243_v39 }
 0x561   : > { %v3824_v34 = vmul.f32 %v13541_v18, %v13521_v60  ;;  %11246 = vpow2.f32 %v10060_v0  ;;  %v3816_v38 = vsel %vm3815_vm6, %v11241_v59, %v3812_v12  ;;  %vm3829_vm8 = vweird.f32 %v13541_v18 }
 0x562   : > { %11248 = vrcp.f32 %v3590_v62  ;;  %v3149_v36 = vpop.f32.mrf.mxu2  ;;  %v3821_v17 = vsel %vm3818_vm7, %v3820_v11, %v3816_v38  ;;  %v3847_v8 = vand.u32 2147483647, %v3590_v62  ;;  %v3849_v1 = vand.u32 2147483648, %v3590_v62  ;;  %vm13563_vm11 = vmor %vm3828_vm9, %vm3829_vm8 }
 0x563   : > { %v3150_v24 = vadd.f32 %v13510_v53, %v3149_v36  ;;  %v4189_v29 = vpack.c.bf16 %v3821_v17, %v3806_v50  ;;  %v3825_v41 = vsub.f32 1.0, %v3824_v34  ;;  %vm3843_vm13 = vweird.f32 %v3590_v62 }
 0x564   : > { %v3408_v19 = vpop.f32.mrf.mxu3  ;;  %v3835_v59 = vor.u32 1.1754944e-38, %v3834_v6  ;;  %vm3848_vm15 = vcmp.eq.f32.partialorder %v3847_v8, 8.507059e+37  ;;  %v3850_v60 = vor.u32 1.1754944e-38, %v3849_v1  ;;  %v13628_v6 = vld [vmem:[%s17176_s7 + $0x4] ss:$0 sm:$0xff] }
 0x565   : > { %v3268_v28 = vmax.f32 %v3150_v24, 0.0  ;;  %v3409_v52 = vadd.f32 %v13315_v51, %v3408_v19  ;;  %4307 = vmatmul.bf16.gmra.mxu0 %v4189_v29  ;;  %v3826_v30 = vmul.f32 %v13541_v18, %v3825_v41 }
 0x567   : > { %v11247_v56 = vpop.eup %11246  ;;  %v10061_v61 = vmul.f32 -1.442695, %v3409_v52  ;;  %v3288_v31 = vpack.c.bf16 %v3268_v28, %v3267_v43  ;;  %v3827_v2 = vadd.f32 %v13541_v18, %v3826_v30 }
 0x568   : > { %v11249_v3 = vpop.eup %11248  ;;  %v13554_v14 = vadd.f32 1.0, %v11247_v56 }
 0x569   : > { %11250 = vpow2.f32 %v10061_v61  ;;  %3450 = vmatmul.bf16.gmra.mxu3 %v3288_v31  ;;  %v3839_v55 = vmul.f32 %v11249_v3, %v3590_v62  ;;  %vm3844_vm10 = vweird.f32 %v11249_v3  ;;  %v3831_v15 = vsel %vm13563_vm11, %v13541_v18, %v3827_v2 }
 0x56a   : > { %11252 = vrcp.f32 %v13554_v14  ;;  %v3152_v4 = vpop.f32.mrf.mxu2  ;;  %vm3845_vm14 = vmor %vm3843_vm13, %vm3844_vm10  ;;  %v3836_v49 = vsel %vm13567_vm12, %v3835_v59, %v3831_v15  ;;  %vm3858_vm1 = vweird.f32 %v13554_v14  ;;  %v3862_v5 = vand.u32 2147483647, %v13554_v14 }
 0x56b   : > { %v3840_v58 = vsub.f32 1.0, %v3839_v55  ;;  %v3153_v33 = vadd.f32 %v13510_v53, %v3152_v4  ;;  %v3864_v36 = vand.u32 2147483648, %v13554_v14 }
 0x56c   : > { %v3411_v44 = vpop.f32.mrf.mxu3  ;;  %vm3863_vm5 = vcmp.eq.f32.partialorder %v3862_v5, 8.507059e+37 }
 0x56d   : > { %v3412_v48 = vadd.f32 %v13315_v51, %v3411_v44  ;;  %v3841_v27 = vmul.f32 %v11249_v3, %v3840_v58  ;;  %v3269_v7 = vmax.f32 %v3153_v33, 0.0  ;;  %v3865_v61 = vor.u32 1.1754944e-38, %v3864_v36  ;;  %v10936_v36 = vld [vmem:[%s17172_s3 + $0x1f0] sm:$0xff] }
 0x56e   : > { %5239 = vmatpush.bf16.msra.mxu3 %v10936_v36 }
 0x56f   : > { %v11251_v22 = vpop.eup %11250  ;;  %v10062_v57 = vmul.f32 -1.442695, %v3412_v48  ;;  %v3842_v45 = vadd.f32 %v11249_v3, %v3841_v27 }
 0x570   : > { %v13574_v13 = vpop.eup %11252  ;;  %v13576_v42 = vadd.f32 1.0, %v11251_v22 }
 0x571   : > { %v3854_v16 = vmul.f32 %v13574_v13, %v13554_v14  ;;  %11254 = vpow2.f32 %v10062_v57  ;;  %v3846_v35 = vsel %vm3845_vm14, %v11249_v3, %v3842_v45  ;;  %vm3859_vm0 = vweird.f32 %v13574_v13  ;;  %v13623_v14 = vld [vmem:[%s17176_s7 + $0x5] ss:$0 sm:$0xff] }
 0x572   : > { %11256 = vrcp.f32 %v13576_v42  ;;  %v3154_v46 = vpop.f32.mrf.mxu2  ;;  %v3851_v54 = vsel %vm3848_vm15, %v3850_v60, %v3846_v35  ;;  %v3879_v50 = vand.u32 2147483648, %v13576_v42  ;;  %v3877_v29 = vand.u32 2147483647, %v13576_v42  ;;  %vm13605_vm3 = vmor %vm3858_vm1, %vm3859_vm0 }
 0x573   : > { %v3155_v23 = vadd.f32 %v13510_v53, %v3154_v46  ;;  %v4190_v32 = vpack.c.bf16 %v3851_v54, %v3836_v49  ;;  %v3855_v9 = vsub.f32 1.0, %v3854_v16  ;;  %vm3873_vm4 = vweird.f32 %v13576_v42 }
 0x574   : > { %v3413_v21 = vpop.f32.mrf.mxu3  ;;  %v3880_v31 = vor.u32 1.1754944e-38, %v3879_v50  ;;  %vm3878_vm7 = vcmp.eq.f32.partialorder %v3877_v29, 8.507059e+37 }
 0x575   : > { %v3270_v39 = vmax.f32 %v3155_v23, 0.0  ;;  %v3414_v0 = vadd.f32 %v13315_v51, %v3413_v21  ;;  %4312 = vmatmul.bf16.gmra.mxu0 %v4190_v32  ;;  %v3856_v62 = vmul.f32 %v13574_v13, %v3855_v9 }
 0x577   : > { %v11255_v10 = vpop.eup %11254  ;;  %v10063_v12 = vmul.f32 -1.442695, %v3414_v0  ;;  %v3289_v18 = vpack.c.bf16 %v3270_v39, %v3269_v7  ;;  %v3857_v34 = vadd.f32 %v13574_v13, %v3856_v62 }
 0x578   : > { %v11257_v26 = vpop.eup %11256  ;;  %v13593_v11 = vadd.f32 1.0, %v11255_v10 }
 0x579   : > { %11258 = vpow2.f32 %v10063_v12  ;;  %3455 = vmatmul.bf16.gmra.mxu3 %v3289_v18  ;;  %v3869_v53 = vmul.f32 %v11257_v26, %v13576_v42  ;;  %vm3874_vm2 = vweird.f32 %v11257_v26  ;;  %v3861_v28 = vsel %vm13605_vm3, %v13574_v13, %v3857_v34 }
 0x57a   : > { %11260 = vrcp.f32 %v13593_v11  ;;  %vm3875_vm6 = vmor %vm3873_vm4, %vm3874_vm2  ;;  %v3866_v4 = vsel %vm3863_vm5, %v3865_v61, %v3861_v28  ;;  %vm3888_vm8 = vweird.f32 %v13593_v11  ;;  %v3892_v13 = vand.u32 2147483647, %v13593_v11 }
 0x57b   : > { %v3870_v47 = vsub.f32 1.0, %v3869_v53  ;;  %v3894_v33 = vand.u32 2147483648, %v13593_v11 }
 0x57c   : > { %v3416_v38 = vpop.f32.mrf.mxu3  ;;  %vm13658_vm12 = vcmp.eq.f32.partialorder %v3892_v13, 8.507059e+37 }
 0x57d   : > { %v3417_v17 = vadd.f32 %v13315_v51, %v3416_v38  ;;  %v3871_v24 = vmul.f32 %v11257_v26, %v3870_v47  ;;  %v3895_v62 = vor.u32 1.1754944e-38, %v3894_v33 }
 0x57f   : > { %v11259_v19 = vpop.eup %11258  ;;  %v10064_v43 = vmul.f32 -1.442695, %v3417_v17  ;;  %v3872_v52 = vadd.f32 %v11257_v26, %v3871_v24 }
 0x580   : > { %v13613_v56 = vpop.eup %11260  ;;  %v13615_v51 = vadd.f32 1.0, %v11259_v19 }
 0x581   : > { %v3884_v30 = vmul.f32 %v13613_v56, %v13593_v11  ;;  %11262 = vpow2.f32 %v10064_v43  ;;  %v3876_v3 = vsel %vm3875_vm6, %v11257_v26, %v3872_v52  ;;  %vm3889_vm9 = vweird.f32 %v13613_v56 }
 0x582   : > { %11264 = vrcp.f32 %v13615_v51  ;;  %v4278_v55 = vpop.f32.mrf.mxu0  ;;  %v3881_v37 = vsel %vm3878_vm7, %v3880_v31, %v3876_v3  ;;  %v3907_v35 = vand.u32 2147483647, %v13615_v51  ;;  %v3909_v40 = vand.u32 2147483648, %v13615_v51  ;;  %vm13654_vm11 = vmor %vm3888_vm8, %vm3889_vm9 }
 0x583   : > { %v4191_v2 = vpack.c.bf16 %v3881_v37, %v3866_v4  ;;  %v3885_v58 = vsub.f32 1.0, %v3884_v30  ;;  %v4279_v1 = vadd.f32 %v13623_v14, %v4278_v55  ;;  %vm3903_vm13 = vweird.f32 %v13615_v51 }
 0x584   : > { %v3418_v44 = vpop.f32.mrf.mxu3  ;;  %vm3908_vm15 = vcmp.eq.f32.partialorder %v3907_v35, 8.507059e+37  ;;  %v3910_v26 = vor.u32 1.1754944e-38, %v3909_v40 }
 0x585   : > { %v3419_v8 = vadd.f32 %v13628_v6, %v3418_v44  ;;  %4317 = vmatmul.bf16.gmra.mxu0 %v4191_v2  ;;  %v3886_v63 = vmul.f32 %v13613_v56, %v3885_v58  ;;  %v4373_v15 = vpack.c.bf16 %v4279_v1, %v4279_v1 }
 0x587   : > { %v11263_v48 = vpop.eup %11262  ;;  %v10065_v27 = vmul.f32 -1.442695, %v3419_v8  ;;  %v3887_v59 = vadd.f32 %v13613_v56, %v3886_v63  ;;  %v4506_v23 = vunpack.c.l.b16 %v4373_v15 }
 0x588   : > { %v11265_v20 = vpop.eup %11264  ;;  %v13633_v22 = vadd.f32 1.0, %v11263_v48 }
 0x589   : > { %11266 = vpow2.f32 %v10065_v27  ;;  %v3899_v57 = vmul.f32 %v11265_v20, %v13615_v51  ;;  %vm3904_vm10 = vweird.f32 %v11265_v20  ;;  %v3891_v0 = vsel %vm13654_vm11, %v13613_v56, %v3887_v59 }
 0x58a   : > { %11268 = vrcp.f32 %v13633_v22  ;;  %v4280_v45 = vpop.f32.mrf.mxu0  ;;  %vm3905_vm14 = vmor %vm3903_vm13, %vm3904_vm10  ;;  %v3896_v38 = vsel %vm13658_vm12, %v3895_v62, %v3891_v0  ;;  %vm3918_vm0 = vweird.f32 %v13633_v22  ;;  %v3922_v30 = vand.u32 2147483647, %v13633_v22 }
 0x58b   : > { %v4281_v42 = vadd.f32 %v13623_v14, %v4280_v45  ;;  %v3900_v60 = vsub.f32 1.0, %v3899_v57  ;;  %v3924_v2 = vand.u32 2147483648, %v13633_v22 }
 0x58c   : > { %v3421_v16 = vpop.f32.mrf.mxu3  ;;  %vm13696_vm4 = vcmp.eq.f32.partialorder %v3922_v30, 8.507059e+37 }
 0x58d   : > { %v4374_v46 = vpack.c.bf16 %v4281_v42, %v4281_v42  ;;  %v11029_v49 = vpack.c.bf16 %v4281_v42, %v4279_v1  ;;  %v3422_v54 = vadd.f32 %v13628_v6, %v3421_v16  ;;  %v3901_v25 = vmul.f32 %v11265_v20, %v3900_v60 }
 0x58e   : > { %v3925_v16 = vor.u32 1.1754944e-38, %v3924_v2 }
 0x58f   : > { %v11267_v21 = vpop.eup %11266  ;;  %11030 = vst [vmem:[%s13646_s17] sm:$0xff] %v11029_v49   ;;  %v4507_v7 = vunpack.c.l.b16 %v4374_v46  ;;  %v10066_v39 = vmul.f32 -1.442695, %v3422_v54  ;;  %v3902_v10 = vadd.f32 %v11265_v20, %v3901_v25  ;;  %v10924_v49 = vld [vmem:[%s17172_s3 + $0x190] sm:$0xff] }
 0x590   : > { %v13667_v12 = vpop.eup %11268  ;;  %v3596_v18 = vadd.f32 1.0, %v11267_v21  ;;  %4939 = vmatpush.bf16.msrb.mxu2 %v10924_v49 }
 0x591   : > { %v3914_v11 = vmul.f32 %v13667_v12, %v13633_v22  ;;  %v4544_v53 = vpack.c.b16 %v4507_v7, %v4506_v23  ;;  %11270 = vpow2.f32 %v10066_v39  ;;  %v3906_v34 = vsel %vm3905_vm14, %v11265_v20, %v3902_v10 }
 0x592   : > { %11272 = vrcp.f32 %v3596_v18  ;;  %v4283_v47 = vpop.f32.mrf.mxu0  ;;  %v3911_v5 = vsel %vm3908_vm15, %v3910_v26, %v3906_v34  ;;  %vm3919_vm1 = vweird.f32 %v13667_v12  ;;  %v3937_v58 = vand.u32 2147483647, %v3596_v18 }
 0x593   : > { %4638 = vmatmul.bf16.vlgmr.msrb.gmra.mxu1 %v4544_v53  ;;  %v4192_v50 = vpack.c.bf16 %v3911_v5, %v3896_v38  ;;  %v3915_v17 = vsub.f32 1.0, %v3914_v11  ;;  %v4284_v41 = vadd.f32 %v13623_v14, %v4283_v47  ;;  %v3939_v44 = vand.u32 2147483648, %v3596_v18  ;;  %vm13692_vm3 = vmor %vm3918_vm0, %vm3919_vm1 }
 0x594   : > { %v3423_v24 = vpop.f32.mrf.mxu3  ;;  %vm3933_vm5 = vweird.f32 %v3596_v18  ;;  %vm3938_vm7 = vcmp.eq.f32.partialorder %v3937_v58, 8.507059e+37 }
 0x595   : > { %v3424_v29 = vadd.f32 %v13628_v6, %v3423_v24  ;;  %4322 = vmatmul.bf16.gmra.mxu0 %v4192_v50  ;;  %v3916_v28 = vmul.f32 %v13667_v12, %v3915_v17  ;;  %v4375_v61 = vpack.c.bf16 %v4284_v41, %v4284_v41  ;;  %v3940_v33 = vor.u32 1.1754944e-38, %v3939_v44 }
 0x597   : > { %v11271_v19 = vpop.eup %11270  ;;  %v10067_v43 = vmul.f32 -1.442695, %v3424_v29  ;;  %v3917_v55 = vadd.f32 %v13667_v12, %v3916_v28  ;;  %v4508_v63 = vunpack.c.l.b16 %v4375_v61 }
 0x598   : > { %v11273_v52 = vpop.eup %11272  ;;  %v13680_v56 = vadd.f32 1.0, %v11271_v19 }
 0x599   : > { %11274 = vpow2.f32 %v10067_v43  ;;  %v3929_v51 = vmul.f32 %v11273_v52, %v3596_v18  ;;  %vm3934_vm2 = vweird.f32 %v11273_v52  ;;  %v3921_v42 = vsel %vm13692_vm3, %v13667_v12, %v3917_v55 }
 0x59a   : > { %11276 = vrcp.f32 %v13680_v56  ;;  %v4285_v31 = vpop.f32.mrf.mxu0  ;;  %vm3935_vm6 = vmor %vm3933_vm5, %vm3934_vm2  ;;  %v3926_v25 = vsel %vm13696_vm4, %v3925_v16, %v3921_v42  ;;  %vm3948_vm8 = vweird.f32 %v13680_v56  ;;  %v3952_v34 = vand.u32 2147483647, %v13680_v56 }
 0x59b   : > { %v4286_v3 = vadd.f32 %v13623_v14, %v4285_v31  ;;  %v3930_v4 = vsub.f32 1.0, %v3929_v51  ;;  %v3954_v50 = vand.u32 2147483648, %v13680_v56 }
 0x59c   : > { %v3426_v37 = vpop.f32.mrf.mxu3  ;;  %vm13733_vm12 = vcmp.eq.f32.partialorder %v3952_v34, 8.507059e+37 }
 0x59d   : > { %v4376_v8 = vpack.c.bf16 %v4286_v3, %v4286_v3  ;;  %v11034_v1 = vpack.c.bf16 %v4286_v3, %v4284_v41  ;;  %v3427_v48 = vadd.f32 %v13628_v6, %v3426_v37  ;;  %v3931_v27 = vmul.f32 %v11273_v52, %v3930_v4 }
 0x59e   : > { %v3955_v37 = vor.u32 1.1754944e-38, %v3954_v50 }
 0x59f   : > { %v11275_v15 = vpop.eup %11274  ;;  %11121 = vst [vmem:[%s13646_s17 + $0x8] sm:$0xff] %v11034_v1   ;;  %v4509_v45 = vunpack.c.l.b16 %v4376_v8  ;;  %v10068_v13 = vmul.f32 -1.442695, %v3427_v48  ;;  %v3932_v59 = vadd.f32 %v11273_v52, %v3931_v27 }
 0x5a0   : > { %v13704_v60 = vpop.eup %11276  ;;  %v3598_v22 = vadd.f32 1.0, %v11275_v15 }
 0x5a1   : > { %v3944_v35 = vmul.f32 %v13704_v60, %v13680_v56  ;;  %11278 = vpow2.f32 %v10068_v13  ;;  %v4545_v40 = vpack.c.b16 %v4509_v45, %v4508_v63  ;;  %v3936_v46 = vsel %vm3935_vm6, %v11273_v52, %v3932_v59 }
 0x5a2   : > { %11280 = vrcp.f32 %v3598_v22  ;;  %v4288_v54 = vpop.f32.mrf.mxu0  ;;  %v3941_v23 = vsel %vm3938_vm7, %v3940_v33, %v3936_v46  ;;  %vm3949_vm9 = vweird.f32 %v13704_v60  ;;  %v3967_v17 = vand.u32 2147483647, %v3598_v22 }
 0x5a3   : > { %4643 = vmatmul.bf16.gmra.mxu1 %v4545_v40  ;;  %v4193_v32 = vpack.c.bf16 %v3941_v23, %v3926_v25  ;;  %v3945_v9 = vsub.f32 1.0, %v3944_v35  ;;  %v4289_v39 = vadd.f32 %v13623_v14, %v4288_v54  ;;  %v3969_v24 = vand.u32 2147483648, %v3598_v22  ;;  %vm13729_vm11 = vmor %vm3948_vm8, %vm3949_vm9 }
 0x5a4   : > { %v3428_v21 = vpop.f32.mrf.mxu3  ;;  %vm3963_vm13 = vweird.f32 %v3598_v22  ;;  %vm3968_vm15 = vcmp.eq.f32.partialorder %v3967_v17, 8.507059e+37 }
 0x5a5   : > { %v3429_v7 = vadd.f32 %v13628_v6, %v3428_v21  ;;  %4327 = vmatmul.bf16.gmra.mxu0 %v4193_v32  ;;  %v3946_v12 = vmul.f32 %v13704_v60, %v3945_v9  ;;  %v4377_v11 = vpack.c.bf16 %v4289_v39, %v4289_v39  ;;  %v3970_v2 = vor.u32 1.1754944e-38, %v3969_v24 }
 0x5a7   : > { %v11279_v0 = vpop.eup %11278  ;;  %v10069_v10 = vmul.f32 -1.442695, %v3429_v7  ;;  %v3947_v38 = vadd.f32 %v13704_v60, %v3946_v12  ;;  %v4510_v28 = vunpack.c.l.b16 %v4377_v11 }
 0x5a8   : > { %v11281_v18 = vpop.eup %11280  ;;  %v13717_v62 = vadd.f32 1.0, %v11279_v0 }
 0x5a9   : > { %11282 = vpow2.f32 %v10069_v10  ;;  %v3959_v26 = vmul.f32 %v11281_v18, %v3598_v22  ;;  %vm3964_vm10 = vweird.f32 %v11281_v18  ;;  %v3951_v3 = vsel %vm13729_vm11, %v13704_v60, %v3947_v38 }
 0x5aa   : > { %11284 = vrcp.f32 %v13717_v62  ;;  %v4290_v53 = vpop.f32.mrf.mxu0  ;;  %vm3965_vm14 = vmor %vm3963_vm13, %vm3964_vm10  ;;  %v3956_v48 = vsel %vm13733_vm12, %v3955_v37, %v3951_v3  ;;  %vm3978_vm0 = vweird.f32 %v13717_v62  ;;  %v3982_v40 = vand.u32 2147483647, %v13717_v62 }
 0x5ab   : > { %v4291_v47 = vadd.f32 %v13623_v14, %v4290_v53  ;;  %v3960_v5 = vsub.f32 1.0, %v3959_v26  ;;  %v3984_v23 = vand.u32 2147483648, %v13717_v62 }
 0x5ac   : > { %v3431_v36 = vpop.f32.mrf.mxu3  ;;  %vm13767_vm4 = vcmp.eq.f32.partialorder %v3982_v40, 8.507059e+37 }
 0x5ad   : > { %v4378_v29 = vpack.c.bf16 %v4291_v47, %v4291_v47  ;;  %v11039_v41 = vpack.c.bf16 %v4291_v47, %v4289_v39  ;;  %v3432_v19 = vadd.f32 %v13628_v6, %v3431_v36  ;;  %v3961_v43 = vmul.f32 %v11281_v18, %v3960_v5 }
 0x5ae   : > { %v3985_v5 = vor.u32 1.1754944e-38, %v3984_v23 }
 0x5af   : > { %v11283_v61 = vpop.eup %11282  ;;  %11122 = vst [vmem:[%s13646_s17 + $0x10] sm:$0xff] %v11039_v41   ;;  %v4511_v31 = vunpack.c.l.b16 %v4378_v29  ;;  %v10070_v30 = vmul.f32 -1.442695, %v3432_v19  ;;  %v3962_v55 = vadd.f32 %v11281_v18, %v3961_v43  ;;  %v10935_v29 = vld [vmem:[%s17172_s3 + $0x1e8] sm:$0xff] }
 0x5b0   : > { %v13741_v4 = vpop.eup %11284  ;;  %v3600_v56 = vadd.f32 1.0, %v11283_v61  ;;  %v10923_v41 = vld [vmem:[%s17172_s3 + $0x188] sm:$0xff]  ;;  %5240 = vmatpush.bf16.msra.mxu3 %v10935_v29 }
 0x5b1   : > { %v3974_v58 = vmul.f32 %v13741_v4, %v13717_v62  ;;  %11286 = vpow2.f32 %v10070_v30  ;;  %v4546_v44 = vpack.c.b16 %v4511_v31, %v4510_v28  ;;  %v3966_v8 = vsel %vm3965_vm14, %v11281_v18, %v3962_v55  ;;  %4940 = vmatpush.bf16.msrb.mxu2 %v10923_v41 }
 0x5b2   : > { %11288 = vrcp.f32 %v3600_v56  ;;  %v4293_v1 = vpop.f32.mrf.mxu0  ;;  %v3971_v27 = vsel %vm3968_vm15, %v3970_v2, %v3966_v8  ;;  %vm3979_vm1 = vweird.f32 %v13741_v4  ;;  %v3997_v32 = vand.u32 2147483647, %v3600_v56 }
 0x5b3   : > { %4648 = vmatmul.bf16.gmra.mxu1 %v4546_v44  ;;  %v4194_v63 = vpack.c.bf16 %v3971_v27, %v3956_v48  ;;  %v3975_v20 = vsub.f32 1.0, %v3974_v58  ;;  %v4294_v45 = vadd.f32 %v13623_v14, %v4293_v1  ;;  %v3999_v9 = vand.u32 2147483648, %v3600_v56  ;;  %vm13763_vm3 = vmor %vm3978_vm0, %vm3979_vm1 }
 0x5b4   : > { %v3433_v57 = vpop.f32.mrf.mxu3  ;;  %vm3993_vm5 = vweird.f32 %v3600_v56  ;;  %vm3998_vm7 = vcmp.eq.f32.partialorder %v3997_v32, 8.507059e+37 }
 0x5b5   : > { %v3434_v15 = vadd.f32 %v13628_v6, %v3433_v57  ;;  %4332 = vmatmul.bf16.gmra.mxu0 %v4194_v63  ;;  %v3976_v59 = vmul.f32 %v13741_v4, %v3975_v20  ;;  %v4379_v33 = vpack.c.bf16 %v4294_v45, %v4294_v45  ;;  %v4000_v36 = vor.u32 1.1754944e-38, %v3999_v9 }
 0x5b7   : > { %v11287_v13 = vpop.eup %11286  ;;  %v10071_v42 = vmul.f32 -1.442695, %v3434_v15  ;;  %v3977_v49 = vadd.f32 %v13741_v4, %v3976_v59  ;;  %v4512_v10 = vunpack.c.l.b16 %v4379_v33 }
 0x5b8   : > { %v11289_v60 = vpop.eup %11288  ;;  %v13751_v22 = vadd.f32 1.0, %v11287_v13 }
 0x5b9   : > { %11290 = vpow2.f32 %v10071_v42  ;;  %v3989_v16 = vmul.f32 %v11289_v60, %v3600_v56  ;;  %vm3994_vm2 = vweird.f32 %v11289_v60  ;;  %v3981_v34 = vsel %vm13763_vm3, %v13741_v4, %v3977_v49 }
 0x5ba   : > { %11292 = vrcp.f32 %v13751_v22  ;;  %v4295_v35 = vpop.f32.mrf.mxu0  ;;  %vm3995_vm6 = vmor %vm3993_vm5, %vm3994_vm2  ;;  %v3986_v43 = vsel %vm13767_vm4, %v3985_v5, %v3981_v34  ;;  %vm4008_vm8 = vweird.f32 %v13751_v22  ;;  %v4012_v8 = vand.u32 2147483647, %v13751_v22 }
 0x5bb   : > { %v4296_v46 = vadd.f32 %v13623_v14, %v4295_v35  ;;  %v3990_v54 = vsub.f32 1.0, %v3989_v16  ;;  %v4014_v20 = vand.u32 2147483648, %v13751_v22 }
 0x5bc   : > { %v3436_v25 = vpop.f32.mrf.mxu3  ;;  %vm13813_vm12 = vcmp.eq.f32.partialorder %v4012_v8, 8.507059e+37 }
 0x5bd   : > { %v4380_v21 = vpack.c.bf16 %v4296_v46, %v4296_v46  ;;  %v11044_v7 = vpack.c.bf16 %v4296_v46, %v4294_v45  ;;  %v3437_v39 = vadd.f32 %v13628_v6, %v3436_v25  ;;  %v3991_v0 = vmul.f32 %v11289_v60, %v3990_v54 }
 0x5be   : > { %v4015_v23 = vor.u32 1.1754944e-38, %v4014_v20 }
 0x5bf   : > { %v11291_v26 = vpop.eup %11290  ;;  %11123 = vst [vmem:[%s13646_s17 + $0x18] sm:$0xff] %v11044_v7   ;;  %v4513_v11 = vunpack.c.l.b16 %v4380_v21  ;;  %v10072_v53 = vmul.f32 -1.442695, %v3437_v39  ;;  %v3992_v47 = vadd.f32 %v11289_v60, %v3991_v0 }
 0x5c0   : > { %v13775_v38 = vpop.eup %11292  ;;  %v13777_v62 = vadd.f32 1.0, %v11291_v26 }
 0x5c1   : > { %v4004_v50 = vmul.f32 %v13775_v38, %v13751_v22  ;;  %11294 = vpow2.f32 %v10072_v53  ;;  %v4547_v17 = vpack.c.b16 %v4513_v11, %v4512_v10  ;;  %v3996_v24 = vsel %vm3995_vm6, %v11289_v60, %v3992_v47 }
 0x5c2   : > { %11296 = vrcp.f32 %v13777_v62  ;;  %v4298_v19 = vpop.f32.mrf.mxu0  ;;  %v4001_v28 = vsel %vm3998_vm7, %v4000_v36, %v3996_v24  ;;  %vm4009_vm9 = vweird.f32 %v13775_v38  ;;  %v4027_v57 = vand.u32 2147483647, %v13777_v62 }
 0x5c3   : > { %4653 = vmatmul.bf16.gmra.mxu1 %v4547_v17  ;;  %v4195_v52 = vpack.c.bf16 %v4001_v28, %v3986_v43  ;;  %v4005_v51 = vsub.f32 1.0, %v4004_v50  ;;  %v4299_v30 = vadd.f32 %v13623_v14, %v4298_v19  ;;  %v4029_v15 = vand.u32 2147483648, %v13777_v62  ;;  %vm13809_vm11 = vmor %vm4008_vm8, %vm4009_vm9 }
 0x5c4   : > { %v3438_v61 = vpop.f32.mrf.mxu3  ;;  %vm4023_vm13 = vweird.f32 %v13777_v62  ;;  %vm4028_vm15 = vcmp.eq.f32.partialorder %v4027_v57, 8.507059e+37 }
 0x5c5   : > { %v3439_v31 = vadd.f32 %v13628_v6, %v3438_v61  ;;  %4337 = vmatmul.bf16.gmra.mxu0 %v4195_v52  ;;  %v4006_v4 = vmul.f32 %v13775_v38, %v4005_v51  ;;  %v4381_v58 = vpack.c.bf16 %v4299_v30, %v4299_v30  ;;  %v4030_v32 = vor.u32 1.1754944e-38, %v4029_v15 }
 0x5c7   : > { %v11295_v3 = vpop.eup %11294  ;;  %v10073_v55 = vmul.f32 -1.442695, %v3439_v31  ;;  %v4007_v48 = vadd.f32 %v13775_v38, %v4006_v4  ;;  %v4514_v60 = vunpack.c.l.b16 %v4381_v58 }
 0x5c8   : > { %v11297_v56 = vpop.eup %11296  ;;  %v13794_v37 = vadd.f32 1.0, %v11295_v3 }
 0x5c9   : > { %11298 = vpow2.f32 %v10073_v55  ;;  %v4019_v2 = vmul.f32 %v11297_v56, %v13777_v62  ;;  %vm4024_vm10 = vweird.f32 %v11297_v56  ;;  %v4011_v49 = vsel %vm13809_vm11, %v13775_v38, %v4007_v48 }
 0x5ca   : > { %11300 = vrcp.f32 %v13794_v37  ;;  %v4300_v44 = vpop.f32.mrf.mxu0  ;;  %vm4025_vm14 = vmor %vm4023_vm13, %vm4024_vm10  ;;  %v4016_v0 = vsel %vm13813_vm12, %v4015_v23, %v4011_v49  ;;  %vm4038_vm0 = vweird.f32 %v13794_v37  ;;  %v4042_v24 = vand.u32 2147483647, %v13794_v37 }
 0x5cb   : > { %v4301_v1 = vadd.f32 %v13623_v14, %v4300_v44  ;;  %v4020_v27 = vsub.f32 1.0, %v4019_v2  ;;  %v4044_v28 = vand.u32 2147483648, %v13794_v37 }
 0x5cc   : > { %v3441_v63 = vpop.f32.mrf.mxu3  ;;  %vm13848_vm4 = vcmp.eq.f32.partialorder %v4042_v24, 8.507059e+37 }
 0x5cd   : > { %v4382_v45 = vpack.c.bf16 %v4301_v1, %v4301_v1  ;;  %v11049_v13 = vpack.c.bf16 %v4301_v1, %v4299_v30  ;;  %v3442_v42 = vadd.f32 %v13628_v6, %v3441_v63  ;;  %v4021_v59 = vmul.f32 %v11297_v56, %v4020_v27 }
 0x5ce   : > { %v4045_v27 = vor.u32 1.1754944e-38, %v4044_v28 }
 0x5cf   : > { %v11299_v35 = vpop.eup %11298  ;;  %11124 = vst [vmem:[%s13646_s17 + $0x20] sm:$0xff] %v11049_v13   ;;  %v4515_v40 = vunpack.c.l.b16 %v4382_v45  ;;  %v10074_v46 = vmul.f32 -1.442695, %v3442_v42  ;;  %v4022_v54 = vadd.f32 %v11297_v56, %v4021_v59  ;;  %v10934_v45 = vld [vmem:[%s17172_s3 + $0x1e0] sm:$0xff] }
 0x5d0   : > { %v13822_v22 = vpop.eup %11300  ;;  %v3604_v25 = vadd.f32 1.0, %v11299_v35  ;;  %5241 = vmatpush.bf16.msra.mxu3 %v10934_v45 }
 0x5d1   : > { %v4034_v9 = vmul.f32 %v13822_v22, %v13794_v37  ;;  %11302 = vpow2.f32 %v10074_v46  ;;  %v4548_v21 = vpack.c.b16 %v4515_v40, %v4514_v60  ;;  %v4026_v7 = vsel %vm4025_vm14, %v11297_v56, %v4022_v54  ;;  %v10922_v60 = vld [vmem:[%s17172_s3 + $0x180] sm:$0xff] }
 0x5d2   : > { %11304 = vrcp.f32 %v3604_v25  ;;  %v4303_v39 = vpop.f32.mrf.mxu0  ;;  %v4031_v10 = vsel %vm4028_vm15, %v4030_v32, %v4026_v7  ;;  %vm4039_vm1 = vweird.f32 %v13822_v22  ;;  %v4057_v52 = vand.u32 2147483647, %v3604_v25  ;;  %4941 = vmatpush.bf16.msrb.mxu2 %v10922_v60 }
 0x5d3   : > { %4658 = vmatmul.bf16.gmra.mxu1 %v4548_v21  ;;  %v4196_v12 = vpack.c.bf16 %v4031_v10, %v4016_v0  ;;  %v4035_v18 = vsub.f32 1.0, %v4034_v9  ;;  %v4304_v53 = vadd.f32 %v13623_v14, %v4303_v39  ;;  %v4059_v51 = vand.u32 2147483648, %v3604_v25  ;;  %vm13844_vm3 = vmor %vm4038_vm0, %vm4039_vm1 }
 0x5d4   : > { %v3443_v26 = vpop.f32.mrf.mxu3  ;;  %vm4053_vm5 = vweird.f32 %v3604_v25  ;;  %vm4058_vm7 = vcmp.eq.f32.partialorder %v4057_v52, 8.507059e+37 }
 0x5d5   : > { %v3444_v11 = vadd.f32 %v13628_v6, %v3443_v26  ;;  %4342 = vmatmul.bf16.gmra.mxu0 %v4196_v12  ;;  %v4036_v38 = vmul.f32 %v13822_v22, %v4035_v18  ;;  %v4383_v50 = vpack.c.bf16 %v4304_v53, %v4304_v53  ;;  %v4060_v63 = vor.u32 1.1754944e-38, %v4059_v51 }
 0x5d7   : > { %v11303_v34 = vpop.eup %11302  ;;  %v10075_v47 = vmul.f32 -1.442695, %v3444_v11  ;;  %v4037_v41 = vadd.f32 %v13822_v22, %v4036_v38  ;;  %v4516_v55 = vunpack.c.l.b16 %v4383_v50 }
 0x5d8   : > { %v11305_v62 = vpop.eup %11304  ;;  %v13832_v5 = vadd.f32 1.0, %v11303_v34 }
 0x5d9   : > { %11306 = vpow2.f32 %v10075_v47  ;;  %v4049_v36 = vmul.f32 %v11305_v62, %v3604_v25  ;;  %vm4054_vm2 = vweird.f32 %v11305_v62  ;;  %v4041_v8 = vsel %vm13844_vm3, %v13822_v22, %v4037_v41 }
 0x5da   : > { %11308 = vrcp.f32 %v13832_v5  ;;  %v4305_v17 = vpop.f32.mrf.mxu0  ;;  %vm4055_vm6 = vmor %vm4053_vm5, %vm4054_vm2  ;;  %v4046_v42 = vsel %vm13848_vm4, %v4045_v27, %v4041_v8  ;;  %vm4068_vm8 = vweird.f32 %v13832_v5  ;;  %v4072_v7 = vand.u32 2147483647, %v13832_v5 }
 0x5db   : > { %v4306_v29 = vadd.f32 %v13623_v14, %v4305_v17  ;;  %v4050_v19 = vsub.f32 1.0, %v4049_v36  ;;  %v4074_v18 = vand.u32 2147483648, %v13832_v5 }
 0x5dc   : > { %v3446_v43 = vpop.f32.mrf.mxu3  ;;  %vm13894_vm12 = vcmp.eq.f32.partialorder %v4072_v7, 8.507059e+37 }
 0x5dd   : > { %v4384_v61 = vpack.c.bf16 %v4306_v29, %v4306_v29  ;;  %v11054_v31 = vpack.c.bf16 %v4306_v29, %v4304_v53  ;;  %v3447_v30 = vadd.f32 %v13628_v6, %v3446_v43  ;;  %v4051_v3 = vmul.f32 %v11305_v62, %v4050_v19 }
 0x5de   : > { %v4075_v28 = vor.u32 1.1754944e-38, %v4074_v18 }
 0x5df   : > { %v11307_v2 = vpop.eup %11306  ;;  %11125 = vst [vmem:[%s13646_s17 + $0x28] sm:$0xff] %v11054_v31   ;;  %v4517_v58 = vunpack.c.l.b16 %v4384_v61  ;;  %v10076_v44 = vmul.f32 -1.442695, %v3447_v30  ;;  %v4052_v1 = vadd.f32 %v11305_v62, %v4051_v3 }
 0x5e0   : > { %v13856_v48 = vpop.eup %11308  ;;  %v13858_v37 = vadd.f32 1.0, %v11307_v2 }
 0x5e1   : > { %v4064_v20 = vmul.f32 %v13856_v48, %v13832_v5  ;;  %11310 = vpow2.f32 %v10076_v44  ;;  %v4549_v57 = vpack.c.b16 %v4517_v58, %v4516_v55  ;;  %v4056_v15 = vsel %vm4055_vm6, %v11305_v62, %v4052_v1 }
 0x5e2   : > { %11312 = vrcp.f32 %v13858_v37  ;;  %v4308_v13 = vpop.f32.mrf.mxu0  ;;  %v4061_v59 = vsel %vm4058_vm7, %v4060_v63, %v4056_v15  ;;  %vm4069_vm9 = vweird.f32 %v13856_v48  ;;  %v4087_v26 = vand.u32 2147483647, %v13858_v37 }
 0x5e3   : > { %4663 = vmatmul.bf16.gmra.mxu1 %v4549_v57  ;;  %v4197_v16 = vpack.c.bf16 %v4061_v59, %v4046_v42  ;;  %v4065_v33 = vsub.f32 1.0, %v4064_v20  ;;  %v4309_v46 = vadd.f32 %v13623_v14, %v4308_v13  ;;  %v4089_v11 = vand.u32 2147483648, %v13858_v37  ;;  %vm13890_vm11 = vmor %vm4068_vm8, %vm4069_vm9 }
 0x5e4   : > { %v3448_v35 = vpop.f32.mrf.mxu3  ;;  %vm4083_vm13 = vweird.f32 %v13858_v37  ;;  %vm4088_vm15 = vcmp.eq.f32.partialorder %v4087_v26, 8.507059e+37 }
 0x5e5   : > { %v3449_v40 = vadd.f32 %v13628_v6, %v3448_v35  ;;  %4347 = vmatmul.bf16.gmra.mxu0 %v4197_v16  ;;  %v4066_v22 = vmul.f32 %v13856_v48, %v4065_v33  ;;  %v4385_v9 = vpack.c.bf16 %v4309_v46, %v4309_v46  ;;  %v4090_v52 = vor.u32 1.1754944e-38, %v4089_v11 }
 0x5e7   : > { %v11311_v49 = vpop.eup %11310  ;;  %v10077_v54 = vmul.f32 -1.442695, %v3449_v40  ;;  %v4067_v0 = vadd.f32 %v13856_v48, %v4066_v22  ;;  %v4518_v62 = vunpack.c.l.b16 %v4385_v9  ;;  %v10933_v22 = vld [vmem:[%s17172_s3 + $0x1d8] sm:$0xff] }
 0x5e8   : > { %v11313_v25 = vpop.eup %11312  ;;  %v13875_v23 = vadd.f32 1.0, %v11311_v49  ;;  %5242 = vmatpush.bf16.msra.mxu3 %v10933_v22 }
 0x5e9   : > { %11314 = vpow2.f32 %v10077_v54  ;;  %v4079_v32 = vmul.f32 %v11313_v25, %v13858_v37  ;;  %vm4084_vm10 = vweird.f32 %v11313_v25  ;;  %v4071_v41 = vsel %vm13890_vm11, %v13856_v48, %v4067_v0  ;;  %v10945_v37 = vld [vmem:[%s17172_s3 + $0x238] sm:$0xff] }
 0x5ea   : > { %11316 = vrcp.f32 %v13875_v23  ;;  %v4310_v21 = vpop.f32.mrf.mxu0  ;;  %vm4085_vm14 = vmor %vm4083_vm13, %vm4084_vm10  ;;  %v4076_v3 = vsel %vm13894_vm12, %v4075_v28, %v4071_v41  ;;  %5542 = vmatpush.bf16.msra.mxu0 %v10945_v37  ;;  %vm4098_vm0 = vweird.f32 %v13875_v23  ;;  %v4102_v45 = vand.u32 2147483647, %v13875_v23 }
 0x5eb   : > { %v4311_v39 = vadd.f32 %v13623_v14, %v4310_v21  ;;  %v4080_v10 = vsub.f32 1.0, %v4079_v32  ;;  %v4104_v16 = vand.u32 2147483648, %v13875_v23 }
 0x5ec   : > { %v3451_v12 = vpop.f32.mrf.mxu3  ;;  %vm13941_vm4 = vcmp.eq.f32.partialorder %v4102_v45, 8.507059e+37 }
 0x5ed   : > { %v4386_v53 = vpack.c.bf16 %v4311_v39, %v4311_v39  ;;  %v11059_v34 = vpack.c.bf16 %v4311_v39, %v4309_v46  ;;  %v3452_v47 = vadd.f32 %v13628_v6, %v3451_v12  ;;  %v4081_v38 = vmul.f32 %v11313_v25, %v4080_v10 }
 0x5ee   : > { %v4105_v18 = vor.u32 1.1754944e-38, %v4104_v16 }
 0x5ef   : > { %v11315_v17 = vpop.eup %11314  ;;  %11126 = vst [vmem:[%s13646_s17 + $0x30] sm:$0xff] %v11059_v34   ;;  %v4519_v24 = vunpack.c.l.b16 %v4386_v53  ;;  %v10078_v29 = vmul.f32 -1.442695, %v3452_v47  ;;  %v4082_v19 = vadd.f32 %v11313_v25, %v4081_v38 }
 0x5f0   : > { %v13903_v5 = vpop.eup %11316  ;;  %v13905_v43 = vadd.f32 1.0, %v11315_v17 }
 0x5f1   : > { %v4094_v51 = vmul.f32 %v13903_v5, %v13875_v23  ;;  %11318 = vpow2.f32 %v10078_v29  ;;  %v4550_v61 = vpack.c.b16 %v4519_v24, %v4518_v62  ;;  %v4086_v31 = vsel %vm4085_vm14, %v11313_v25, %v4082_v19 }
 0x5f2   : > { %11320 = vrcp.f32 %v13905_v43  ;;  %v4313_v30 = vpop.f32.mrf.mxu0  ;;  %v4091_v55 = vsel %vm4088_vm15, %v4090_v52, %v4086_v31  ;;  %vm4099_vm1 = vweird.f32 %v13903_v5  ;;  %v4117_v33 = vand.u32 2147483647, %v13905_v43 }
 0x5f3   : > { %4668 = vmatmul.bf16.gmra.mxu1 %v4550_v61  ;;  %v4198_v4 = vpack.c.bf16 %v4091_v55, %v4076_v3  ;;  %v4095_v56 = vsub.f32 1.0, %v4094_v51  ;;  %v4314_v44 = vadd.f32 %v13623_v14, %v4313_v30  ;;  %v4119_v35 = vand.u32 2147483648, %v13905_v43  ;;  %vm13937_vm3 = vmor %vm4098_vm0, %vm4099_vm1 }
 0x5f4   : > { %v3453_v2 = vpop.f32.mrf.mxu3  ;;  %vm4113_vm5 = vweird.f32 %v13905_v43  ;;  %vm4118_vm7 = vcmp.eq.f32.partialorder %v4117_v33, 8.507059e+37 }
 0x5f5   : > { %v3454_v58 = vadd.f32 %v13628_v6, %v3453_v2  ;;  %4352 = vmatmul.bf16.gmra.mxu0 %v4198_v4  ;;  %v4096_v48 = vmul.f32 %v13903_v5, %v4095_v56  ;;  %v4387_v57 = vpack.c.bf16 %v4314_v44, %v4314_v44  ;;  %v4120_v26 = vor.u32 1.1754944e-38, %v4119_v35 }
 0x5f7   : > { %v11319_v8 = vpop.eup %11318  ;;  %v10079_v1 = vmul.f32 -1.442695, %v3454_v58  ;;  %v4097_v42 = vadd.f32 %v13903_v5, %v4096_v48  ;;  %v4520_v25 = vunpack.c.l.b16 %v4387_v57 }
 0x5f8   : > { %v11321_v27 = vpop.eup %11320  ;;  %v13919_v63 = vadd.f32 1.0, %v11319_v8 }
 0x5f9   : > { %11322 = vpow2.f32 %v10079_v1  ;;  %v4109_v20 = vmul.f32 %v11321_v27, %v13905_v43  ;;  %vm4114_vm2 = vweird.f32 %v11321_v27  ;;  %v4101_v0 = vsel %vm13937_vm3, %v13903_v5, %v4097_v42 }
 0x5fa   : > { %11324 = vrcp.f32 %v13919_v63  ;;  %v4315_v15 = vpop.f32.mrf.mxu0  ;;  %vm4115_vm6 = vmor %vm4113_vm5, %vm4114_vm2  ;;  %v4106_v38 = vsel %vm13941_vm4, %v4105_v18, %v4101_v0  ;;  %vm4128_vm8 = vweird.f32 %v13919_v63  ;;  %v4132_v3 = vand.u32 2147483647, %v13919_v63 }
 0x5fb   : > { %v4316_v13 = vadd.f32 %v13623_v14, %v4315_v15  ;;  %v4110_v59 = vsub.f32 1.0, %v4109_v20  ;;  %v4134_v55 = vand.u32 2147483648, %v13919_v63 }
 0x5fc   : > { %v3456_v60 = vpop.f32.mrf.mxu3  ;;  %vm4133_vm13 = vcmp.eq.f32.partialorder %v4132_v3, 8.507059e+37 }
 0x5fd   : > { %v4388_v40 = vpack.c.bf16 %v4316_v13, %v4316_v13  ;;  %v11064_v46 = vpack.c.bf16 %v4316_v13, %v4314_v44  ;;  %v3457_v49 = vadd.f32 %v13628_v6, %v3456_v60  ;;  %v4111_v54 = vmul.f32 %v11321_v27, %v4110_v59  ;;  %v13987_v60 = vld [vmem:[%s17176_s7 + $0x6] ss:$0 sm:$0xff] }
 0x5fe   : > { %v4135_v15 = vor.u32 1.1754944e-38, %v4134_v55 }
 0x5ff   : > { %v11323_v21 = vpop.eup %11322  ;;  %11127 = vst [vmem:[%s13646_s17 + $0x38] sm:$0xff] %v11064_v46   ;;  %v4521_v7 = vunpack.c.l.b16 %v4388_v40  ;;  %v10080_v39 = vmul.f32 -1.442695, %v3457_v49  ;;  %v4112_v10 = vadd.f32 %v11321_v27, %v4111_v54  ;;  %v13993_v54 = vld [vmem:[%s17176_s7 + $0x5] ss:$0 sm:$0xff] }
 0x600   : > { %v13950_v23 = vpop.eup %11324  ;;  %v3610_v12 = vadd.f32 1.0, %v11323_v21 }
 0x601   : > { %v4124_v11 = vmul.f32 %v13950_v23, %v13919_v63  ;;  %11326 = vpow2.f32 %v10080_v39  ;;  %v4551_v53 = vpack.c.b16 %v4521_v7, %v4520_v25  ;;  %v4116_v34 = vsel %vm4115_vm6, %v11321_v27, %v4112_v10 }
 0x602   : > { %11328 = vrcp.f32 %v3610_v12  ;;  %v4318_v47 = vpop.f32.mrf.mxu0  ;;  %v4121_v62 = vsel %vm4118_vm7, %v4120_v26, %v4116_v34  ;;  %vm4129_vm9 = vweird.f32 %v13950_v23  ;;  %v4147_v4 = vand.u32 2147483647, %v3610_v12 }
 0x603   : > { %4673 = vmatmul.bf16.gmra.mxu1 %v4551_v53  ;;  %v4199_v36 = vpack.c.bf16 %v4121_v62, %v4106_v38  ;;  %v4125_v50 = vsub.f32 1.0, %v4124_v11  ;;  %v4319_v41 = vadd.f32 %v13623_v14, %v4318_v47  ;;  %v4149_v56 = vand.u32 2147483648, %v3610_v12  ;;  %vm13969_vm11 = vmor %vm4128_vm8, %vm4129_vm9  ;;  %v10944_v53 = vld [vmem:[%s17172_s3 + $0x230] sm:$0xff] }
 0x604   : > { %v3458_v17 = vpop.f32.mrf.mxu3  ;;  %vm4143_vm12 = vweird.f32 %v3610_v12  ;;  %vm4148_vm15 = vcmp.eq.f32.partialorder %v4147_v4, 8.507059e+37  ;;  %5543 = vmatpush.bf16.msra.mxu0 %v10944_v53 }
 0x605   : > { %v3459_v24 = vadd.f32 %v13628_v6, %v3458_v17  ;;  %4357 = vmatmul.bf16.gmra.mxu0 %v4199_v36  ;;  %v4126_v5 = vmul.f32 %v13950_v23, %v4125_v50  ;;  %v4389_v6 = vpack.c.bf16 %v4319_v41, %v4319_v41  ;;  %v4150_v45 = vor.u32 1.1754944e-38, %v4149_v56 }
 0x607   : > { %v11327_v29 = vpop.eup %11326  ;;  %v10081_v19 = vmul.f32 -1.442695, %v3459_v24  ;;  %v4127_v31 = vadd.f32 %v13950_v23, %v4126_v5 }
 0x608   : > { %v11329_v43 = vpop.eup %11328  ;;  %v13960_v28 = vadd.f32 1.0, %v11327_v29 }
 0x609   : > { %11330 = vpow2.f32 %v10081_v19  ;;  %v4139_v52 = vmul.f32 %v11329_v43, %v3610_v12  ;;  %vm4144_vm10 = vweird.f32 %v11329_v43  ;;  %v4131_v37 = vsel %vm13969_vm11, %v13950_v23, %v4127_v31 }
 0x60a   : > { %11332 = vrcp.f32 %v13960_v28  ;;  %v4320_v51 = vpop.f32.mrf.mxu0  ;;  %vm4145_vm14 = vmor %vm4143_vm12, %vm4144_vm10  ;;  %v4136_v33 = vsel %vm4133_vm13, %v4135_v15, %v4131_v37  ;;  %vm4158_vm0 = vweird.f32 %v13960_v28  ;;  %v4162_v23 = vand.u32 2147483647, %v13960_v28 }
 0x60b   : > { %v4321_v61 = vadd.f32 %v13623_v14, %v4320_v51  ;;  %v4140_v30 = vsub.f32 1.0, %v4139_v52  ;;  %v4522_v14 = vunpack.c.l.b16 %v4389_v6  ;;  %v4164_v34 = vand.u32 2147483648, %v13960_v28 }
 0x60c   : > { %vm4163_vm6 = vcmp.eq.f32.partialorder %v4162_v23, 8.507059e+37 }
 0x60d   : > { %v4390_v2 = vpack.c.bf16 %v4321_v61, %v4321_v61  ;;  %v11069_v58 = vpack.c.bf16 %v4321_v61, %v4319_v41  ;;  %v4141_v44 = vmul.f32 %v11329_v43, %v4140_v30  ;;  %v4165_v52 = vor.u32 1.1754944e-38, %v4164_v34 }
 0x60f   : > { %v11331_v1 = vpop.eup %11330  ;;  %11128 = vst [vmem:[%s13646_s17 + $0x40] sm:$0xff] %v11069_v58   ;;  %v4523_v48 = vunpack.c.l.b16 %v4390_v2  ;;  %v4142_v27 = vadd.f32 %v11329_v43, %v4141_v44 }
 0x610   : > { %v13977_v63 = vpop.eup %11332  ;;  %v13979_v20 = vadd.f32 1.0, %v11331_v1  ;;  %v4639_v57 = vpop.f32.mrf.mxu1 }
 0x611   : > { %v4154_v13 = vmul.f32 %v13977_v63, %v13960_v28  ;;  %v4552_v42 = vpack.c.b16 %v4523_v48, %v4522_v14  ;;  %v4146_v59 = vsel %vm4145_vm14, %v11329_v43, %v4142_v27  ;;  %v4640_v49 = vadd.f32 %v13987_v60, %v4639_v57  ;;  %v10932_v43 = vld [vmem:[%s17172_s3 + $0x1d0] sm:$0xff] }
 0x612   : > { %11334 = vrcp.f32 %v13979_v20  ;;  %v4323_v16 = vpop.f32.mrf.mxu0  ;;  %v4151_v35 = vsel %vm4148_vm15, %v4150_v45, %v4146_v59  ;;  %vm4159_vm1 = vweird.f32 %v13977_v63  ;;  %v4177_v47 = vand.u32 2147483647, %v13979_v20  ;;  %5243 = vmatpush.bf16.msra.mxu3 %v10932_v43 }
 0x613   : > { %4678 = vmatmul.bf16.gmra.mxu1 %v4552_v42  ;;  %v4200_v40 = vpack.c.bf16 %v4151_v35, %v4136_v33  ;;  %v4155_v46 = vsub.f32 1.0, %v4154_v13  ;;  %v4324_v22 = vadd.f32 %v13993_v54, %v4323_v16  ;;  %v4810_v39 = vmax.f32 %v4640_v49, 0.0  ;;  %vm14014_vm3 = vmor %vm4158_vm0, %vm4159_vm1 }
 0x614   : > { %v4179_v38 = vand.u32 2147483648, %v13979_v20  ;;  %vm4173_vm4 = vweird.f32 %v13979_v20  ;;  %vm4178_vm7 = vcmp.eq.f32.partialorder %v4177_v47, 8.507059e+37 }
 0x615   : > { %4362 = vmatmul.bf16.gmra.mxu0 %v4200_v40  ;;  %v4156_v25 = vmul.f32 %v13977_v63, %v4155_v46  ;;  %v4391_v0 = vpack.c.bf16 %v4324_v22, %v4324_v22 }
 0x616   : > { %v4180_v51 = vor.u32 1.1754944e-38, %v4179_v38 }
 0x617   : > { %v4157_v26 = vadd.f32 %v13977_v63, %v4156_v25  ;;  %v4524_v29 = vunpack.c.l.b16 %v4391_v0 }
 0x618   : > { %v11335_v32 = vpop.eup %11334  ;;  %v4641_v9 = vpop.f32.mrf.mxu1 }
 0x619   : > { %v4642_v21 = vadd.f32 %v13987_v60, %v4641_v9  ;;  %v4169_v7 = vmul.f32 %v11335_v32, %v13979_v20  ;;  %vm4174_vm2 = vweird.f32 %v11335_v32  ;;  %v4161_v19 = vsel %vm14014_vm3, %v13977_v63, %v4157_v26  ;;  %v10931_v26 = vld [vmem:[%s17172_s3 + $0x1c8] sm:$0xff] }
 0x61a   : > { %v4325_v10 = vpop.f32.mrf.mxu0  ;;  %vm4175_vm5 = vmor %vm4173_vm4, %vm4174_vm2  ;;  %v4166_v30 = vsel %vm4163_vm6, %v4165_v52, %v4161_v19  ;;  %5244 = vmatpush.bf16.msra.mxu3 %v10931_v26 }
 0x61b   : > { %v4811_v12 = vmax.f32 %v4642_v21, 0.0  ;;  %v4326_v18 = vadd.f32 %v13993_v54, %v4325_v10  ;;  %v4170_v11 = vsub.f32 1.0, %v4169_v7 }
 0x61d   : > { %v4848_v62 = vpack.c.bf16 %v4811_v12, %v4810_v39  ;;  %v4392_v36 = vpack.c.bf16 %v4326_v18, %v4326_v18  ;;  %v11074_v50 = vpack.c.bf16 %v4326_v18, %v4324_v22  ;;  %v4171_v17 = vmul.f32 %v11335_v32, %v4170_v11  ;;  %v10943_v39 = vld [vmem:[%s17172_s3 + $0x228] sm:$0xff] }
 0x61e   : > { %5544 = vmatpush.bf16.msra.mxu0 %v10943_v39 }
 0x61f   : > { %11129 = vst [vmem:[%s13646_s17 + $0x48] sm:$0xff] %v11074_v50   ;;  %v4525_v41 = vunpack.c.l.b16 %v4392_v36  ;;  %4942 = vmatmul.bf16.vlgmr.msrb.gmra.mxu2 %v4848_v62  ;;  %v4172_v5 = vadd.f32 %v11335_v32, %v4171_v17 }
 0x620   : > { %v4644_v28 = vpop.f32.mrf.mxu1 }
 0x621   : > { %v4553_v6 = vpack.c.b16 %v4525_v41, %v4524_v29  ;;  %v4176_v61 = vsel %vm4175_vm5, %v11335_v32, %v4172_v5  ;;  %v4645_v4 = vadd.f32 %v13987_v60, %v4644_v28 }
 0x622   : > { %v4328_v31 = vpop.f32.mrf.mxu0  ;;  %v4181_v3 = vsel %vm4178_vm7, %v4180_v51, %v4176_v61 }
 0x623   : > { %4683 = vmatmul.bf16.gmra.mxu1 %v4553_v6  ;;  %v4201_v55 = vpack.c.bf16 %v4181_v3, %v4166_v30  ;;  %v4329_v56 = vadd.f32 %v13993_v54, %v4328_v31  ;;  %v4812_v8 = vmax.f32 %v4645_v4, 0.0 }
 0x625   : > { %4367 = vmatmul.bf16.gmra.mxu0 %v4201_v55  ;;  %v4393_v1 = vpack.c.bf16 %v4329_v56, %v4329_v56 }
 0x627   : > { %v4526_v20 = vunpack.c.l.b16 %v4393_v1 }
 0x628   : > { %v4646_v2 = vpop.f32.mrf.mxu1 }
 0x629   : > { %v4647_v58 = vadd.f32 %v13987_v60, %v4646_v2 }
 0x62a   : > { %v4330_v44 = vpop.f32.mrf.mxu0 }
 0x62b   : > { %v4813_v14 = vmax.f32 %v4647_v58, 0.0  ;;  %v4331_v48 = vadd.f32 %v13993_v54, %v4330_v44 }
 0x62d   : > { %v4394_v37 = vpack.c.bf16 %v4331_v48, %v4331_v48  ;;  %v11079_v27 = vpack.c.bf16 %v4331_v48, %v4329_v56  ;;  %v4849_v63 = vpack.c.bf16 %v4813_v14, %v4812_v8 }
 0x62f   : > { %11130 = vst [vmem:[%s13646_s17 + $0x50] sm:$0xff] %v11079_v27   ;;  %v4527_v57 = vunpack.c.l.b16 %v4394_v37  ;;  %4947 = vmatmul.bf16.gmra.mxu2 %v4849_v63  ;;  %v10942_v27 = vld [vmem:[%s17172_s3 + $0x220] sm:$0xff] }
 0x630   : > { %v4649_v15 = vpop.f32.mrf.mxu1  ;;  %5545 = vmatpush.bf16.msra.mxu0 %v10942_v27 }
 0x631   : > { %v4554_v45 = vpack.c.b16 %v4527_v57, %v4526_v20  ;;  %v4650_v42 = vadd.f32 %v13987_v60, %v4649_v15 }
 0x632   : > { %v4333_v13 = vpop.f32.mrf.mxu0 }
 0x633   : > { %4688 = vmatmul.bf16.gmra.mxu1 %v4554_v45  ;;  %v4334_v59 = vadd.f32 %v13993_v54, %v4333_v13  ;;  %v4814_v40 = vmax.f32 %v4650_v42, 0.0 }
 0x635   : > { %v4395_v46 = vpack.c.bf16 %v4334_v59, %v4334_v59 }
 0x637   : > { %v4528_v21 = vunpack.c.l.b16 %v4395_v46  ;;  %v10930_v46 = vld [vmem:[%s17172_s3 + $0x1c0] sm:$0xff] }
 0x638   : > { %v4651_v16 = vpop.f32.mrf.mxu1  ;;  %5245 = vmatpush.bf16.msra.mxu3 %v10930_v46 }
 0x639   : > { %v4652_v33 = vadd.f32 %v13987_v60, %v4651_v16 }
 0x63a   : > { %v4335_v35 = vpop.f32.mrf.mxu0 }
 0x63b   : > { %v4815_v49 = vmax.f32 %v4652_v33, 0.0  ;;  %v4336_v22 = vadd.f32 %v13993_v54, %v4335_v35 }
 0x63d   : > { %v4396_v25 = vpack.c.bf16 %v4336_v22, %v4336_v22  ;;  %v11084_v32 = vpack.c.bf16 %v4336_v22, %v4334_v59  ;;  %v4850_v9 = vpack.c.bf16 %v4815_v49, %v4814_v40 }
 0x63f   : > { %11131 = vst [vmem:[%s13646_s17 + $0x58] sm:$0xff] %v11084_v32   ;;  %v4529_v7 = vunpack.c.l.b16 %v4396_v25  ;;  %4952 = vmatmul.bf16.gmra.mxu2 %v4850_v9 }
 0x640   : > { %v4654_v0 = vpop.f32.mrf.mxu1 }
 0x641   : > { %v4555_v10 = vpack.c.b16 %v4529_v7, %v4528_v21  ;;  %v4655_v12 = vadd.f32 %v13987_v60, %v4654_v0 }
 0x642   : > { %v4338_v23 = vpop.f32.mrf.mxu0 }
 0x643   : > { %4693 = vmatmul.bf16.gmra.mxu1 %v4555_v10  ;;  %v4339_v18 = vadd.f32 %v13993_v54, %v4338_v23  ;;  %v4816_v47 = vmax.f32 %v4655_v12, 0.0 }
 0x645   : > { %v4397_v38 = vpack.c.bf16 %v4339_v18, %v4339_v18 }
 0x647   : > { %v4530_v29 = vunpack.c.l.b16 %v4397_v38 }
 0x648   : > { %v4656_v11 = vpop.f32.mrf.mxu1 }
 0x649   : > { %v4657_v53 = vadd.f32 %v13987_v60, %v4656_v11 }
 0x64a   : > { %v4340_v34 = vpop.f32.mrf.mxu0 }
 0x64b   : > { %v4817_v62 = vmax.f32 %v4657_v53, 0.0  ;;  %v4341_v36 = vadd.f32 %v13993_v54, %v4340_v34 }
 0x64d   : > { %v4398_v50 = vpack.c.bf16 %v4341_v36, %v4341_v36  ;;  %v11089_v17 = vpack.c.bf16 %v4341_v36, %v4339_v18  ;;  %v4851_v24 = vpack.c.bf16 %v4817_v62, %v4816_v47  ;;  %v10953_v47 = vld [vmem:[%s17172_s3 + $0x278] sm:$0xff] }
 0x64e   : > { %5846 = vmatpush.bf16.msra.mxu1 %v10953_v47 }
 0x64f   : > { %11132 = vst [vmem:[%s13646_s17 + $0x60] sm:$0xff] %v11089_v17   ;;  %v4531_v41 = vunpack.c.l.b16 %v4398_v50  ;;  %4957 = vmatmul.bf16.gmra.mxu2 %v4851_v24 }
 0x650   : > { %v4659_v19 = vpop.f32.mrf.mxu1 }
 0x651   : > { %v4556_v5 = vpack.c.b16 %v4531_v41, %v4530_v29  ;;  %v4660_v28 = vadd.f32 %v13987_v60, %v4659_v19 }
 0x652   : > { %v4343_v43 = vpop.f32.mrf.mxu0 }
 0x653   : > { %4698 = vmatmul.bf16.gmra.mxu1 %v4556_v5  ;;  %v4344_v52 = vadd.f32 %v13993_v54, %v4343_v43  ;;  %v4818_v31 = vmax.f32 %v4660_v28, 0.0 }
 0x655   : > { %v4399_v30 = vpack.c.bf16 %v4344_v52, %v4344_v52 }
 0x657   : > { %v4532_v58 = vunpack.c.l.b16 %v4399_v30  ;;  %v10941_v30 = vld [vmem:[%s17172_s3 + $0x218] sm:$0xff] }
 0x658   : > { %v4661_v51 = vpop.f32.mrf.mxu1  ;;  %5546 = vmatpush.bf16.msra.mxu0 %v10941_v30 }
 0x659   : > { %v4662_v6 = vadd.f32 %v13987_v60, %v4661_v51 }
 0x65a   : > { %v4345_v61 = vpop.f32.mrf.mxu0 }
 0x65b   : > { %v4819_v3 = vmax.f32 %v4662_v6, 0.0  ;;  %v4346_v55 = vadd.f32 %v13993_v54, %v4345_v61 }
 0x65d   : > { %v4400_v4 = vpack.c.bf16 %v4346_v55, %v4346_v55  ;;  %v11094_v56 = vpack.c.bf16 %v4346_v55, %v4344_v52  ;;  %v4852_v2 = vpack.c.bf16 %v4819_v3, %v4818_v31 }
 0x65f   : > { %11133 = vst [vmem:[%s13646_s17 + $0x68] sm:$0xff] %v11094_v56   ;;  %v4533_v44 = vunpack.c.l.b16 %v4400_v4  ;;  %4962 = vmatmul.bf16.gmra.mxu2 %v4852_v2 }
 0x660   : > { %v4664_v8 = vpop.f32.mrf.mxu1 }
 0x661   : > { %v4557_v1 = vpack.c.b16 %v4533_v44, %v4532_v58  ;;  %v4665_v48 = vadd.f32 %v13987_v60, %v4664_v8 }
 0x662   : > { %v4348_v14 = vpop.f32.mrf.mxu0 }
 0x663   : > { %4703 = vmatmul.bf16.gmra.mxu1 %v4557_v1  ;;  %v4349_v37 = vadd.f32 %v13993_v54, %v4348_v14  ;;  %v4820_v15 = vmax.f32 %v4665_v48, 0.0 }
 0x665   : > { %v4401_v45 = vpack.c.bf16 %v4349_v37, %v4349_v37 }
 0x667   : > { %v4534_v35 = vunpack.c.l.b16 %v4401_v45 }
 0x668   : > { %v4666_v63 = vpop.f32.mrf.mxu1 }
 0x669   : > { %v4667_v20 = vadd.f32 %v13987_v60, %v4666_v63 }
 0x66a   : > { %v4350_v57 = vpop.f32.mrf.mxu0 }
 0x66b   : > { %v4821_v13 = vmax.f32 %v4667_v20, 0.0  ;;  %v4351_v42 = vadd.f32 %v13993_v54, %v4350_v57 }
 0x66d   : > { %v4402_v59 = vpack.c.bf16 %v4351_v42, %v4351_v42  ;;  %v11099_v16 = vpack.c.bf16 %v4351_v42, %v4349_v37  ;;  %v4853_v33 = vpack.c.bf16 %v4821_v13, %v4820_v15 }
 0x66f   : > { %11134 = vst [vmem:[%s13646_s17 + $0x70] sm:$0xff] %v11099_v16   ;;  %v4535_v40 = vunpack.c.l.b16 %v4402_v59  ;;  %4967 = vmatmul.bf16.gmra.mxu2 %v4853_v33  ;;  %v14088_v16 = vld [vmem:[%s17176_s7 + $0x7] ss:$0 sm:$0xff]  ;;  %v10952_v33 = vld [vmem:[%s17172_s3 + $0x270] sm:$0xff] }
 0x670   : > { %v4669_v49 = vpop.f32.mrf.mxu1  ;;  %5847 = vmatpush.bf16.msra.mxu1 %v10952_v33 }
 0x671   : > { %v4558_v22 = vpack.c.b16 %v4535_v40, %v4534_v35  ;;  %v4670_v32 = vadd.f32 %v13987_v60, %v4669_v49 }
 0x672   : > { %v4353_v25 = vpop.f32.mrf.mxu0 }
 0x673   : > { %4708 = vmatmul.bf16.gmra.mxu1 %v4558_v22  ;;  %v4354_v9 = vadd.f32 %v13993_v54, %v4353_v25  ;;  %v4822_v0 = vmax.f32 %v4670_v32, 0.0 }
 0x675   : > { %v4403_v10 = vpack.c.bf16 %v4354_v9, %v4354_v9 }
 0x677   : > { %v4536_v53 = vunpack.c.l.b16 %v4403_v10 }
 0x678   : > { %v4671_v21 = vpop.f32.mrf.mxu1 }
 0x679   : > { %v4672_v7 = vadd.f32 %v13987_v60, %v4671_v21 }
 0x67a   : > { %v4355_v39 = vpop.f32.mrf.mxu0 }
 0x67b   : > { %v4823_v23 = vmax.f32 %v4672_v7, 0.0  ;;  %v4356_v12 = vadd.f32 %v13993_v54, %v4355_v39 }
 0x67d   : > { %v4404_v18 = vpack.c.bf16 %v4356_v12, %v4356_v12  ;;  %v11104_v26 = vpack.c.bf16 %v4356_v12, %v4354_v9  ;;  %v4854_v11 = vpack.c.bf16 %v4823_v23, %v4822_v0 }
 0x67f   : > { %11135 = vst [vmem:[%s13646_s17 + $0x78] sm:$0xff] %v11104_v26   ;;  %v4537_v34 = vunpack.c.l.b16 %v4404_v18  ;;  %4972 = vmatmul.bf16.gmra.mxu2 %v4854_v11 }
 0x680   : > { %v4674_v38 = vpop.f32.mrf.mxu1 }
 0x681   : > { %v4559_v62 = vpack.c.b16 %v4537_v34, %v4536_v53  ;;  %v4675_v50 = vadd.f32 %v13987_v60, %v4674_v38 }
 0x682   : > { %v4358_v36 = vpop.f32.mrf.mxu0 }
 0x683   : > { %4713 = vmatmul.bf16.gmra.mxu1 %v4559_v62  ;;  %v4359_v17 = vadd.f32 %v13993_v54, %v4358_v36  ;;  %v4824_v19 = vmax.f32 %v4675_v50, 0.0 }
 0x685   : > { %v4405_v5 = vpack.c.bf16 %v4359_v17, %v4359_v17 }
 0x687   : > { %v4538_v61 = vunpack.c.l.b16 %v4405_v5 }
 0x688   : > { %v4676_v24 = vpop.f32.mrf.mxu1 }
 0x689   : > { %v4677_v29 = vadd.f32 %v13987_v60, %v4676_v24 }
 0x68a   : > { %v4360_v41 = vpop.f32.mrf.mxu0 }
 0x68b   : > { %v4825_v43 = vmax.f32 %v4677_v29, 0.0  ;;  %v4361_v28 = vadd.f32 %v13993_v54, %v4360_v41 }
 0x68d   : > { %v4406_v52 = vpack.c.bf16 %v4361_v28, %v4361_v28  ;;  %v11109_v51 = vpack.c.bf16 %v4361_v28, %v4359_v17  ;;  %v4855_v6 = vpack.c.bf16 %v4825_v43, %v4824_v19 }
 0x68f   : > { %11136 = vst [vmem:[%s13646_s17 + $0x80] sm:$0xff] %v11109_v51   ;;  %v4539_v31 = vunpack.c.l.b16 %v4406_v52  ;;  %4977 = vmatmul.bf16.gmra.mxu2 %v4855_v6 }
 0x690   : > { %v4679_v3 = vpop.f32.mrf.mxu1 }
 0x691   : > { %v4560_v55 = vpack.c.b16 %v4539_v31, %v4538_v61  ;;  %v4680_v56 = vadd.f32 %v13987_v60, %v4679_v3 }
 0x692   : > { %v4363_v4 = vpop.f32.mrf.mxu0 }
 0x693   : > { %4718 = vmatmul.bf16.gmra.mxu1 %v4560_v55  ;;  %v4364_v2 = vadd.f32 %v13993_v54, %v4363_v4  ;;  %v4826_v1 = vmax.f32 %v4680_v56, 0.0 }
 0x695   : > { %v4407_v14 = vpack.c.bf16 %v4364_v2, %v4364_v2 }
 0x697   : > { %v4540_v57 = vunpack.c.l.b16 %v4407_v14  ;;  %v10951_v14 = vld [vmem:[%s17172_s3 + $0x268] sm:$0xff] }
 0x698   : > { %v4681_v58 = vpop.f32.mrf.mxu1  ;;  %5848 = vmatpush.bf16.msra.mxu1 %v10951_v14 }
 0x699   : > { %v4682_v44 = vadd.f32 %v13987_v60, %v4681_v58 }
 0x69a   : > { %v4365_v8 = vpop.f32.mrf.mxu0 }
 0x69b   : > { %v4827_v48 = vmax.f32 %v4682_v44, 0.0  ;;  %v4366_v37 = vadd.f32 %v13993_v54, %v4365_v8 }
 0x69d   : > { %v4408_v27 = vpack.c.bf16 %v4366_v37, %v4366_v37  ;;  %v11114_v63 = vpack.c.bf16 %v4366_v37, %v4364_v2  ;;  %v4856_v20 = vpack.c.bf16 %v4827_v48, %v4826_v1 }
 0x69f   : > { %11137 = vst [vmem:[%s13646_s17 + $0x88] sm:$0xff] %v11114_v63   ;;  %v4541_v15 = vunpack.c.l.b16 %v4408_v27  ;;  %4982 = vmatmul.bf16.gmra.mxu2 %v4856_v20  ;;  %v10939_v63 = vld [vmem:[%s17172_s3 + $0x208] sm:$0xff] }
 0x6a0   : > { %v4684_v45 = vpop.f32.mrf.mxu1 }
 0x6a1   : > { %v4561_v13 = vpack.c.b16 %v4541_v15, %v4540_v57  ;;  %v4685_v35 = vadd.f32 %v13987_v60, %v4684_v45 }
 0x6a2   : > { %v4368_v42 = vpop.f32.mrf.mxu0  ;;  %v4943_v59 = vpop.f32.mrf.mxu2 }
 0x6a3   : > { %4723 = vmatmul.bf16.gmra.mxu1 %v4561_v13  ;;  %v4369_v40 = vadd.f32 %v13993_v54, %v4368_v42  ;;  %v4944_v46 = vadd.f32 %v14088_v16, %v4943_v59  ;;  %v4828_v25 = vmax.f32 %v4685_v35, 0.0 }
 0x6a5   : > { %v4409_v21 = vpack.c.bf16 %v4369_v40, %v4369_v40  ;;  %v5114_v10 = vmax.f32 %v4944_v46, 0.0 }
 0x6a7   : > { %v4542_v11 = vunpack.c.l.b16 %v4409_v21 }
 0x6a8   : > { %v4686_v49 = vpop.f32.mrf.mxu1 }
 0x6a9   : > { %v4687_v22 = vadd.f32 %v13987_v60, %v4686_v49 }
 0x6aa   : > { %v4370_v32 = vpop.f32.mrf.mxu0  ;;  %v4945_v9 = vpop.f32.mrf.mxu2 }
 0x6ab   : > { %v4829_v7 = vmax.f32 %v4687_v22, 0.0  ;;  %v4371_v39 = vadd.f32 %v13993_v54, %v4370_v32  ;;  %v4946_v0 = vadd.f32 %v14088_v16, %v4945_v9  ;;  %v10940_v54 = vld [vmem:[%s17172_s3 + $0x210] sm:$0xff] }
 0x6ac   : > { %5547 = vmatpush.bf16.msra.mxu0 %v10940_v54 }
 0x6ad   : > { %v4410_v23 = vpack.c.bf16 %v4371_v39, %v4371_v39  ;;  %v11119_v12 = vpack.c.bf16 %v4371_v39, %v4369_v40  ;;  %v5115_v18 = vmax.f32 %v4946_v0, 0.0  ;;  %v4857_v26 = vpack.c.bf16 %v4829_v7, %v4828_v25 }
 0x6af   : > { %11138 = vst [vmem:[%s13646_s17 + $0x90] sm:$0xff] %v11119_v12   ;;  %v4543_v53 = vunpack.c.l.b16 %v4410_v23  ;;  %v5152_v34 = vpack.c.bf16 %v5115_v18, %v5114_v10  ;;  %4987 = vmatmul.bf16.gmra.mxu2 %v4857_v26 }
 0x6b0   : > { %v4689_v47 = vpop.f32.mrf.mxu1  ;;  %5548 = vmatpush.bf16.msra.mxu0 %v10939_v63 }
 0x6b1   : > { %5246 = vmatmul.bf16.vlgmr.msra.gmra.mxu3 %v5152_v34  ;;  %v4562_v38 = vpack.c.b16 %v4543_v53, %v4542_v11  ;;  %v4690_v36 = vadd.f32 %v13987_v60, %v4689_v47  ;;  %v10950_v47 = vld [vmem:[%s17172_s3 + $0x260] sm:$0xff] }
 0x6b2   : > { %v4948_v62 = vpop.f32.mrf.mxu2  ;;  %5849 = vmatpush.bf16.msra.mxu1 %v10950_v47 }
 0x6b3   : > { %4728 = vmatmul.bf16.gmra.mxu1 %v4562_v38  ;;  %v4949_v17 = vadd.f32 %v14088_v16, %v4948_v62  ;;  %v4830_v41 = vmax.f32 %v4690_v36, 0.0 }
 0x6b5   : > { %v5116_v43 = vmax.f32 %v4949_v17, 0.0 }
 0x6b8   : > { %v4691_v50 = vpop.f32.mrf.mxu1 }
 0x6b9   : > { %v4692_v24 = vadd.f32 %v13987_v60, %v4691_v50 }
 0x6ba   : > { %v4950_v29 = vpop.f32.mrf.mxu2 }
 0x6bb   : > { %v4831_v19 = vmax.f32 %v4692_v24, 0.0  ;;  %v4951_v5 = vadd.f32 %v14088_v16, %v4950_v29 }
 0x6bd   : > { %v5117_v28 = vmax.f32 %v4951_v5, 0.0  ;;  %v4858_v52 = vpack.c.bf16 %v4831_v19, %v4830_v41 }
 0x6bf   : > { %4992 = vmatmul.bf16.gmra.mxu2 %v4858_v52  ;;  %v5153_v51 = vpack.c.bf16 %v5117_v28, %v5116_v43  ;;  %v10938_v43 = vld [vmem:[%s17172_s3 + $0x200] sm:$0xff] }
 0x6c0   : > { %v4694_v6 = vpop.f32.mrf.mxu1  ;;  %5549 = vmatpush.bf16.msra.mxu0 %v10938_v43 }
 0x6c1   : > { %5251 = vmatmul.bf16.gmra.mxu3 %v5153_v51  ;;  %v4695_v31 = vadd.f32 %v13987_v60, %v4694_v6 }
 0x6c2   : > { %v4953_v61 = vpop.f32.mrf.mxu2 }
 0x6c3   : > { %v4954_v3 = vadd.f32 %v14088_v16, %v4953_v61  ;;  %v4832_v56 = vmax.f32 %v4695_v31, 0.0 }
 0x6c5   : > { %v5118_v44 = vmax.f32 %v4954_v3, 0.0 }
 0x6c8   : > { %v4696_v30 = vpop.f32.mrf.mxu1 }
 0x6c9   : > { %v4697_v55 = vadd.f32 %v13987_v60, %v4696_v30 }
 0x6ca   : > { %v4955_v4 = vpop.f32.mrf.mxu2 }
 0x6cb   : > { %v4833_v2 = vmax.f32 %v4697_v55, 0.0  ;;  %v4956_v58 = vadd.f32 %v14088_v16, %v4955_v4 }
 0x6cd   : > { %v5119_v8 = vmax.f32 %v4956_v58, 0.0  ;;  %v4859_v1 = vpack.c.bf16 %v4833_v2, %v4832_v56 }
 0x6cf   : > { %4997 = vmatmul.bf16.gmra.mxu2 %v4859_v1  ;;  %v5154_v48 = vpack.c.bf16 %v5119_v8, %v5118_v44  ;;  %v10961_v8 = vld [vmem:[%s17172_s3 + $0x2b8] sm:$0xff] }
 0x6d0   : > { %v4699_v37 = vpop.f32.mrf.mxu1  ;;  %6150 = vmatpush.bf16.msra.mxu2 %v10961_v8 }
 0x6d1   : > { %5256 = vmatmul.bf16.gmra.mxu3 %v5154_v48  ;;  %v4700_v20 = vadd.f32 %v13987_v60, %v4699_v37 }
 0x6d2   : > { %v4958_v27 = vpop.f32.mrf.mxu2 }
 0x6d3   : > { %v4959_v15 = vadd.f32 %v14088_v16, %v4958_v27  ;;  %v4834_v42 = vmax.f32 %v4700_v20, 0.0  ;;  %v10949_v27 = vld [vmem:[%s17172_s3 + $0x258] sm:$0xff] }
 0x6d4   : > { %5850 = vmatpush.bf16.msra.mxu1 %v10949_v27 }
 0x6d5   : > { %v5120_v35 = vmax.f32 %v4959_v15, 0.0 }
 0x6d8   : > { %v4701_v57 = vpop.f32.mrf.mxu1 }
 0x6d9   : > { %v4702_v45 = vadd.f32 %v13987_v60, %v4701_v57 }
 0x6da   : > { %v4960_v13 = vpop.f32.mrf.mxu2 }
 0x6db   : > { %v4835_v59 = vmax.f32 %v4702_v45, 0.0  ;;  %v4961_v33 = vadd.f32 %v14088_v16, %v4960_v13 }
 0x6dd   : > { %v5121_v40 = vmax.f32 %v4961_v33, 0.0  ;;  %v4860_v46 = vpack.c.bf16 %v4835_v59, %v4834_v42 }
 0x6df   : > { %5002 = vmatmul.bf16.gmra.mxu2 %v4860_v46  ;;  %v5155_v49 = vpack.c.bf16 %v5121_v40, %v5120_v35 }
 0x6e0   : > { %v4704_v22 = vpop.f32.mrf.mxu1 }
 0x6e1   : > { %5261 = vmatmul.bf16.gmra.mxu3 %v5155_v49  ;;  %v4705_v32 = vadd.f32 %v13987_v60, %v4704_v22 }
 0x6e2   : > { %v4963_v25 = vpop.f32.mrf.mxu2 }
 0x6e3   : > { %v4964_v21 = vadd.f32 %v14088_v16, %v4963_v25  ;;  %v4836_v0 = vmax.f32 %v4705_v32, 0.0 }
 0x6e5   : > { %v5122_v12 = vmax.f32 %v4964_v21, 0.0 }
 0x6e8   : > { %v4706_v9 = vpop.f32.mrf.mxu1 }
 0x6e9   : > { %v4707_v7 = vadd.f32 %v13987_v60, %v4706_v9 }
 0x6ea   : > { %v4965_v39 = vpop.f32.mrf.mxu2 }
 0x6eb   : > { %v4837_v10 = vmax.f32 %v4707_v7, 0.0  ;;  %v4966_v23 = vadd.f32 %v14088_v16, %v4965_v39 }
 0x6ed   : > { %v5123_v18 = vmax.f32 %v4966_v23, 0.0  ;;  %v4861_v26 = vpack.c.bf16 %v4837_v10, %v4836_v0 }
 0x6ef   : > { %5007 = vmatmul.bf16.gmra.mxu2 %v4861_v26  ;;  %v5156_v11 = vpack.c.bf16 %v5123_v18, %v5122_v12 }
 0x6f0   : > { %v4709_v53 = vpop.f32.mrf.mxu1 }
 0x6f1   : > { %5266 = vmatmul.bf16.gmra.mxu3 %v5156_v11  ;;  %v4710_v38 = vadd.f32 %v13987_v60, %v4709_v53  ;;  %v10960_v11 = vld [vmem:[%s17172_s3 + $0x2b0] sm:$0xff] }
 0x6f2   : > { %v4968_v34 = vpop.f32.mrf.mxu2  ;;  %6151 = vmatpush.bf16.msra.mxu2 %v10960_v11 }
 0x6f3   : > { %v4969_v54 = vadd.f32 %v14088_v16, %v4968_v34  ;;  %v4838_v17 = vmax.f32 %v4710_v38, 0.0  ;;  %v14160_v38 = vld [vmem:[%s17176_s7 + $0x8] ss:$0 sm:$0xff] }
 0x6f5   : > { %v5124_v41 = vmax.f32 %v4969_v54, 0.0 }
 0x6f8   : > { %v4711_v62 = vpop.f32.mrf.mxu1 }
 0x6f9   : > { %v4712_v36 = vadd.f32 %v13987_v60, %v4711_v62 }
 0x6fa   : > { %v4970_v50 = vpop.f32.mrf.mxu2 }
 0x6fb   : > { %v4839_v24 = vmax.f32 %v4712_v36, 0.0  ;;  %v4971_v29 = vadd.f32 %v14088_v16, %v4970_v50 }
 0x6fd   : > { %v5125_v19 = vmax.f32 %v4971_v29, 0.0  ;;  %v4862_v5 = vpack.c.bf16 %v4839_v24, %v4838_v17 }
 0x6ff   : > { %5012 = vmatmul.bf16.gmra.mxu2 %v4862_v5  ;;  %v5157_v28 = vpack.c.bf16 %v5125_v19, %v5124_v41 }
 0x700   : > { %v4714_v52 = vpop.f32.mrf.mxu1 }
 0x701   : > { %5271 = vmatmul.bf16.gmra.mxu3 %v5157_v28  ;;  %v4715_v6 = vadd.f32 %v13987_v60, %v4714_v52 }
 0x702   : > { %v4973_v51 = vpop.f32.mrf.mxu2 }
 0x703   : > { %v4974_v31 = vadd.f32 %v14088_v16, %v4973_v51  ;;  %v4840_v55 = vmax.f32 %v4715_v6, 0.0 }
 0x705   : > { %v5126_v2 = vmax.f32 %v4974_v31, 0.0 }
 0x708   : > { %v4716_v61 = vpop.f32.mrf.mxu1 }
 0x709   : > { %v4717_v30 = vadd.f32 %v13987_v60, %v4716_v61 }
 0x70a   : > { %v4975_v3 = vpop.f32.mrf.mxu2 }
 0x70b   : > { %v4841_v4 = vmax.f32 %v4717_v30, 0.0  ;;  %v4976_v56 = vadd.f32 %v14088_v16, %v4975_v3 }
 0x70d   : > { %v5127_v58 = vmax.f32 %v4976_v56, 0.0  ;;  %v4863_v44 = vpack.c.bf16 %v4841_v4, %v4840_v55 }
 0x70f   : > { %5017 = vmatmul.bf16.gmra.mxu2 %v4863_v44  ;;  %v5158_v1 = vpack.c.bf16 %v5127_v58, %v5126_v2 }
 0x710   : > { %v4719_v14 = vpop.f32.mrf.mxu1 }
 0x711   : > { %5276 = vmatmul.bf16.gmra.mxu3 %v5158_v1  ;;  %v4720_v37 = vadd.f32 %v13987_v60, %v4719_v14 }
 0x712   : > { %v4978_v48 = vpop.f32.mrf.mxu2 }
 0x713   : > { %v4979_v20 = vadd.f32 %v14088_v16, %v4978_v48  ;;  %v4842_v45 = vmax.f32 %v4720_v37, 0.0 }
 0x715   : > { %v5128_v59 = vmax.f32 %v4979_v20, 0.0 }
 0x718   : > { %v4721_v63 = vpop.f32.mrf.mxu1 }
 0x719   : > { %v4722_v57 = vadd.f32 %v13987_v60, %v4721_v63 }
 0x71a   : > { %v4980_v15 = vpop.f32.mrf.mxu2 }
 0x71b   : > { %v4843_v13 = vmax.f32 %v4722_v57, 0.0  ;;  %v4981_v42 = vadd.f32 %v14088_v16, %v4980_v15  ;;  %v10959_v57 = vld [vmem:[%s17172_s3 + $0x2a8] sm:$0xff] }
 0x71c   : > { %6152 = vmatpush.bf16.msra.mxu2 %v10959_v57 }
 0x71d   : > { %v5129_v33 = vmax.f32 %v4981_v42, 0.0  ;;  %v4864_v35 = vpack.c.bf16 %v4843_v13, %v4842_v45 }
 0x71f   : > { %5022 = vmatmul.bf16.gmra.mxu2 %v4864_v35  ;;  %v5159_v40 = vpack.c.bf16 %v5129_v33, %v5128_v59 }
 0x720   : > { %v4724_v46 = vpop.f32.mrf.mxu1 }
 0x721   : > { %5281 = vmatmul.bf16.gmra.mxu3 %v5159_v40  ;;  %v4725_v22 = vadd.f32 %v13987_v60, %v4724_v46 }
 0x722   : > { %v4983_v49 = vpop.f32.mrf.mxu2 }
 0x723   : > { %v4984_v32 = vadd.f32 %v14088_v16, %v4983_v49  ;;  %v4844_v7 = vmax.f32 %v4725_v22, 0.0 }
 0x725   : > { %v5130_v10 = vmax.f32 %v4984_v32, 0.0 }
 0x728   : > { %v4726_v25 = vpop.f32.mrf.mxu1 }
 0x729   : > { %v4727_v9 = vadd.f32 %v13987_v60, %v4726_v25 }
 0x72a   : > { %v4985_v21 = vpop.f32.mrf.mxu2 }
 0x72b   : > { %v4845_v39 = vmax.f32 %v4727_v9, 0.0  ;;  %v4986_v0 = vadd.f32 %v14088_v16, %v4985_v21  ;;  %v10947_v21 = vld [vmem:[%s17172_s3 + $0x248] sm:$0xff] }
 0x72d   : > { %v5131_v23 = vmax.f32 %v4986_v0, 0.0  ;;  %v4865_v12 = vpack.c.bf16 %v4845_v39, %v4844_v7 }
 0x72f   : > { %5027 = vmatmul.bf16.gmra.mxu2 %v4865_v12  ;;  %v5160_v18 = vpack.c.bf16 %v5131_v23, %v5130_v10 }
 0x730   : > { %v4729_v26 = vpop.f32.mrf.mxu1 }
 0x731   : > { %5286 = vmatmul.bf16.gmra.mxu3 %v5160_v18  ;;  %v4730_v47 = vadd.f32 %v13987_v60, %v4729_v26 }
 0x732   : > { %v4988_v53 = vpop.f32.mrf.mxu2 }
 0x733   : > { %v4989_v54 = vadd.f32 %v14088_v16, %v4988_v53  ;;  %v4846_v17 = vmax.f32 %v4730_v47, 0.0 }
 0x734   : > { %v5247_v34 = vpop.f32.mrf.mxu3 }
 0x735   : > { %v5248_v24 = vadd.f32 %v14160_v38, %v5247_v34  ;;  %v5132_v5 = vmax.f32 %v4989_v54, 0.0 }
 0x737   : > { %v5418_v51 = vmax.f32 %v5248_v24, 0.0 }
 0x738   : > { %v4731_v62 = vpop.f32.mrf.mxu1 }
 0x739   : > { %v4732_v36 = vadd.f32 %v13987_v60, %v4731_v62  ;;  %v10948_v60 = vld [vmem:[%s17172_s3 + $0x250] sm:$0xff] }
 0x73a   : > { %v4990_v50 = vpop.f32.mrf.mxu2  ;;  %5851 = vmatpush.bf16.msra.mxu1 %v10948_v60 }
 0x73b   : > { %v4847_v29 = vmax.f32 %v4732_v36, 0.0  ;;  %v4991_v41 = vadd.f32 %v14088_v16, %v4990_v50 }
 0x73c   : > { %v5249_v19 = vpop.f32.mrf.mxu3 }
 0x73d   : > { %v5133_v43 = vmax.f32 %v4991_v41, 0.0  ;;  %v5250_v28 = vadd.f32 %v14160_v38, %v5249_v19  ;;  %v4866_v52 = vpack.c.bf16 %v4847_v29, %v4846_v17 }
 0x73e   : > { %5852 = vmatpush.bf16.msra.mxu1 %v10947_v21 }
 0x73f   : > { %v5419_v6 = vmax.f32 %v5250_v28, 0.0  ;;  %5032 = vmatmul.bf16.gmra.mxu2 %v4866_v52  ;;  %v5161_v61 = vpack.c.bf16 %v5133_v43, %v5132_v5 }
 0x741   : > { %v5456_v31 = vpack.c.bf16 %v5419_v6, %v5418_v51  ;;  %5291 = vmatmul.bf16.gmra.mxu3 %v5161_v61  ;;  %v10958_v51 = vld [vmem:[%s17172_s3 + $0x2a0] sm:$0xff] }
 0x742   : > { %v4993_v30 = vpop.f32.mrf.mxu2  ;;  %6153 = vmatpush.bf16.msra.mxu2 %v10958_v51 }
 0x743   : > { %5550 = vmatmul.bf16.vlgmr.msra.gmra.mxu0 %v5456_v31  ;;  %v4994_v55 = vadd.f32 %v14088_v16, %v4993_v30  ;;  %v10946_v31 = vld [vmem:[%s17172_s3 + $0x240] sm:$0xff] }
 0x744   : > { %v5252_v3 = vpop.f32.mrf.mxu3  ;;  %5853 = vmatpush.bf16.msra.mxu1 %v10946_v31 }
 0x745   : > { %v5253_v56 = vadd.f32 %v14160_v38, %v5252_v3  ;;  %v5134_v44 = vmax.f32 %v4994_v55, 0.0 }
 0x747   : > { %v5420_v14 = vmax.f32 %v5253_v56, 0.0 }
 0x74a   : > { %v4995_v4 = vpop.f32.mrf.mxu2 }
 0x74b   : > { %v4996_v2 = vadd.f32 %v14088_v16, %v4995_v4 }
 0x74c   : > { %v5254_v58 = vpop.f32.mrf.mxu3 }
 0x74d   : > { %v5135_v8 = vmax.f32 %v4996_v2, 0.0  ;;  %v5255_v1 = vadd.f32 %v14160_v38, %v5254_v58 }
 0x74f   : > { %v5421_v48 = vmax.f32 %v5255_v1, 0.0  ;;  %v5162_v37 = vpack.c.bf16 %v5135_v8, %v5134_v44 }
 0x751   : > { %5296 = vmatmul.bf16.gmra.mxu3 %v5162_v37  ;;  %v5457_v27 = vpack.c.bf16 %v5421_v48, %v5420_v14 }
 0x752   : > { %v4998_v63 = vpop.f32.mrf.mxu2 }
 0x753   : > { %5555 = vmatmul.bf16.gmra.mxu0 %v5457_v27  ;;  %v4999_v15 = vadd.f32 %v14088_v16, %v4998_v63 }
 0x754   : > { %v5257_v20 = vpop.f32.mrf.mxu3 }
 0x755   : > { %v5258_v13 = vadd.f32 %v14160_v38, %v5257_v20  ;;  %v5136_v33 = vmax.f32 %v4999_v15, 0.0 }
 0x757   : > { %v5422_v46 = vmax.f32 %v5258_v13, 0.0 }
 0x75a   : > { %v5000_v45 = vpop.f32.mrf.mxu2 }
 0x75b   : > { %v5001_v42 = vadd.f32 %v14088_v16, %v5000_v45 }
 0x75c   : > { %v5259_v59 = vpop.f32.mrf.mxu3 }
 0x75d   : > { %v5137_v35 = vmax.f32 %v5001_v42, 0.0  ;;  %v5260_v40 = vadd.f32 %v14160_v38, %v5259_v59 }
 0x75f   : > { %v5423_v49 = vmax.f32 %v5260_v40, 0.0  ;;  %v5163_v22 = vpack.c.bf16 %v5137_v35, %v5136_v33 }
 0x761   : > { %5301 = vmatmul.bf16.gmra.mxu3 %v5163_v22  ;;  %v5458_v25 = vpack.c.bf16 %v5423_v49, %v5422_v46  ;;  %v10477_v46 = vld [vmem:[%s17173_s4 + $0x70] sm:$0xf]  ;;  %v10977_v49 = vld [vmem:[%s17173_s4 + $0x74] sm:$0xf0] }
 0x762   : > { %v5003_v32 = vpop.f32.mrf.mxu2  ;;  %v10478_v22 = vor.u32 %v10977_v49, %v10477_v46 }
 0x763   : > { %5560 = vmatmul.bf16.gmra.mxu0 %v5458_v25  ;;  %v5004_v7 = vadd.f32 %v14088_v16, %v5003_v32  ;;  %v10976_v25 = vld [vmem:[%s17173_s4 + $0x74] sm:$0xf]  ;;  %v10479_v32 = vld [vmem:[%s17173_s4 + $0x78] sm:$0xf0] }
 0x764   : > { %v5262_v9 = vpop.f32.mrf.mxu3  ;;  %v10482_v21 = vor.u32 %v10976_v25, %v10479_v32  ;;  %6490 = vmatpush.bf16.msrb.mxu3 %v10478_v22 }
 0x765   : > { %v5263_v0 = vadd.f32 %v14160_v38, %v5262_v9  ;;  %v5138_v12 = vmax.f32 %v5004_v7, 0.0 }
 0x766   : > { %6594 = vmatpush.bf16.msrb.mxu0 %v10482_v21 }
 0x767   : > { %v5424_v11 = vmax.f32 %v5263_v0, 0.0  ;;  %v10957_v0 = vld [vmem:[%s17172_s3 + $0x298] sm:$0xff] }
 0x768   : > { %6154 = vmatpush.bf16.msra.mxu2 %v10957_v0 }
 0x76a   : > { %v5005_v39 = vpop.f32.mrf.mxu2 }
 0x76b   : > { %v5006_v10 = vadd.f32 %v14088_v16, %v5005_v39 }
 0x76c   : > { %v5264_v23 = vpop.f32.mrf.mxu3 }
 0x76d   : > { %v5139_v18 = vmax.f32 %v5006_v10, 0.0  ;;  %v5265_v26 = vadd.f32 %v14160_v38, %v5264_v23 }
 0x76f   : > { %v5425_v53 = vmax.f32 %v5265_v26, 0.0  ;;  %v5164_v34 = vpack.c.bf16 %v5139_v18, %v5138_v12 }
 0x771   : > { %5306 = vmatmul.bf16.gmra.mxu3 %v5164_v34  ;;  %v5459_v47 = vpack.c.bf16 %v5425_v53, %v5424_v11 }
 0x772   : > { %v5008_v62 = vpop.f32.mrf.mxu2 }
 0x773   : > { %5565 = vmatmul.bf16.gmra.mxu0 %v5459_v47  ;;  %v5009_v36 = vadd.f32 %v14088_v16, %v5008_v62 }
 0x774   : > { %v5267_v54 = vpop.f32.mrf.mxu3 }
 0x775   : > { %v5268_v17 = vadd.f32 %v14160_v38, %v5267_v54  ;;  %v5140_v41 = vmax.f32 %v5009_v36, 0.0 }
 0x777   : > { %v5426_v43 = vmax.f32 %v5268_v17, 0.0 }
 0x77a   : > { %v5010_v50 = vpop.f32.mrf.mxu2 }
 0x77b   : > { %v5011_v24 = vadd.f32 %v14088_v16, %v5010_v50 }
 0x77c   : > { %v5269_v29 = vpop.f32.mrf.mxu3 }
 0x77d   : > { %v5141_v19 = vmax.f32 %v5011_v24, 0.0  ;;  %v5270_v5 = vadd.f32 %v14160_v38, %v5269_v29 }
 0x77f   : > { %v5427_v28 = vmax.f32 %v5270_v5, 0.0  ;;  %v5165_v52 = vpack.c.bf16 %v5141_v19, %v5140_v41 }
 0x781   : > { %5311 = vmatmul.bf16.gmra.mxu3 %v5165_v52  ;;  %v5460_v6 = vpack.c.bf16 %v5427_v28, %v5426_v43 }
 0x782   : > { %v5013_v61 = vpop.f32.mrf.mxu2 }
 0x783   : > { %5570 = vmatmul.bf16.gmra.mxu0 %v5460_v6  ;;  %v5014_v30 = vadd.f32 %v14088_v16, %v5013_v61 }
 0x784   : > { %v5272_v60 = vpop.f32.mrf.mxu3 }
 0x785   : > { %v5273_v55 = vadd.f32 %v14160_v38, %v5272_v60  ;;  %v5142_v2 = vmax.f32 %v5014_v30, 0.0 }
 0x787   : > { %v5428_v8 = vmax.f32 %v5273_v55, 0.0  ;;  %v10469_v55 = vld [vmem:[%s17173_s4 + $0x60] sm:$0xf] }
 0x78a   : > { %v5015_v3 = vpop.f32.mrf.mxu2 }
 0x78b   : > { %v5016_v4 = vadd.f32 %v14088_v16, %v5015_v3  ;;  %v14232_v3 = vld [vmem:[%s17176_s7 + $0x9] ss:$0 sm:$0xff] }
 0x78c   : > { %v5274_v56 = vpop.f32.mrf.mxu3 }
 0x78d   : > { %v5143_v58 = vmax.f32 %v5016_v4, 0.0  ;;  %v5275_v44 = vadd.f32 %v14160_v38, %v5274_v56  ;;  %v10975_v4 = vld [vmem:[%s17173_s4 + $0x64] sm:$0xf0] }
 0x78f   : > { %v5429_v1 = vmax.f32 %v5275_v44, 0.0  ;;  %v5166_v14 = vpack.c.bf16 %v5143_v58, %v5142_v2  ;;  %v10470_v2 = vor.u32 %v10975_v4, %v10469_v55  ;;  %v10974_v44 = vld [vmem:[%s17173_s4 + $0x64] sm:$0xf] }
 0x791   : > { %5316 = vmatmul.bf16.gmra.mxu3 %v5166_v14  ;;  %v5461_v48 = vpack.c.bf16 %v5429_v1, %v5428_v8  ;;  %v10471_v8 = vld [vmem:[%s17173_s4 + $0x68] sm:$0xf0] }
 0x792   : > { %v5018_v37 = vpop.f32.mrf.mxu2  ;;  %6491 = vmatpush.bf16.msrb.mxu3 %v10470_v2  ;;  %v10474_v14 = vor.u32 %v10974_v44, %v10471_v8 }
 0x793   : > { %5575 = vmatmul.bf16.gmra.mxu0 %v5461_v48  ;;  %v5019_v63 = vadd.f32 %v14088_v16, %v5018_v37 }
 0x794   : > { %v5277_v27 = vpop.f32.mrf.mxu3  ;;  %6595 = vmatpush.bf16.msrb.mxu0 %v10474_v14 }
 0x795   : > { %v5278_v57 = vadd.f32 %v14160_v38, %v5277_v27  ;;  %v5144_v13 = vmax.f32 %v5019_v63, 0.0 }
 0x797   : > { %v5430_v33 = vmax.f32 %v5278_v57, 0.0 }
 0x79a   : > { %v5020_v20 = vpop.f32.mrf.mxu2 }
 0x79b   : > { %v5021_v15 = vadd.f32 %v14088_v16, %v5020_v20 }
 0x79c   : > { %v5279_v45 = vpop.f32.mrf.mxu3 }
 0x79d   : > { %v5145_v42 = vmax.f32 %v5021_v15, 0.0  ;;  %v5280_v59 = vadd.f32 %v14160_v38, %v5279_v45  ;;  %v10956_v45 = vld [vmem:[%s17172_s3 + $0x290] sm:$0xff] }
 0x79e   : > { %6155 = vmatpush.bf16.msra.mxu2 %v10956_v45 }
 0x79f   : > { %v5431_v35 = vmax.f32 %v5280_v59, 0.0  ;;  %v5167_v40 = vpack.c.bf16 %v5145_v42, %v5144_v13 }
 0x7a1   : > { %5321 = vmatmul.bf16.gmra.mxu3 %v5167_v40  ;;  %v5462_v9 = vpack.c.bf16 %v5431_v35, %v5430_v33 }
 0x7a2   : > { %v5023_v7 = vpop.f32.mrf.mxu2 }
 0x7a3   : > { %5580 = vmatmul.bf16.gmra.mxu0 %v5462_v9  ;;  %v5024_v10 = vadd.f32 %v14088_v16, %v5023_v7 }
 0x7a4   : > { %v5282_v39 = vpop.f32.mrf.mxu3 }
 0x7a5   : > { %v5283_v12 = vadd.f32 %v14160_v38, %v5282_v39  ;;  %v5146_v11 = vmax.f32 %v5024_v10, 0.0 }
 0x7a7   : > { %v5432_v47 = vmax.f32 %v5283_v12, 0.0 }
 0x7aa   : > { %v5025_v23 = vpop.f32.mrf.mxu2 }
 0x7ab   : > { %v5026_v18 = vadd.f32 %v14088_v16, %v5025_v23 }
 0x7ac   : > { %v5284_v26 = vpop.f32.mrf.mxu3 }
 0x7ad   : > { %v5147_v53 = vmax.f32 %v5026_v18, 0.0  ;;  %v5285_v34 = vadd.f32 %v14160_v38, %v5284_v26 }
 0x7af   : > { %v5433_v62 = vmax.f32 %v5285_v34, 0.0  ;;  %v5168_v54 = vpack.c.bf16 %v5147_v53, %v5146_v11 }
 0x7b1   : > { %5326 = vmatmul.bf16.gmra.mxu3 %v5168_v54  ;;  %v5463_v36 = vpack.c.bf16 %v5433_v62, %v5432_v47 }
 0x7b2   : > { %v5028_v50 = vpop.f32.mrf.mxu2 }
 0x7b3   : > { %5585 = vmatmul.bf16.gmra.mxu0 %v5463_v36  ;;  %v5029_v24 = vadd.f32 %v14088_v16, %v5028_v50 }
 0x7b4   : > { %v5287_v17 = vpop.f32.mrf.mxu3 }
 0x7b5   : > { %v5288_v41 = vadd.f32 %v14160_v38, %v5287_v17  ;;  %v5148_v43 = vmax.f32 %v5029_v24, 0.0  ;;  %v10461_v24 = vld [vmem:[%s17173_s4 + $0x50] sm:$0xf] }
 0x7b7   : > { %v5434_v51 = vmax.f32 %v5288_v41, 0.0 }
 0x7ba   : > { %v5030_v29 = vpop.f32.mrf.mxu2 }
 0x7bb   : > { %v5031_v19 = vadd.f32 %v14088_v16, %v5030_v29  ;;  %v10973_v29 = vld [vmem:[%s17173_s4 + $0x54] sm:$0xf0] }
 0x7bc   : > { %v5289_v5 = vpop.f32.mrf.mxu3 }
 0x7bd   : > { %v5149_v28 = vmax.f32 %v5031_v19, 0.0  ;;  %v5290_v52 = vadd.f32 %v14160_v38, %v5289_v5  ;;  %v10462_v19 = vor.u32 %v10973_v29, %v10461_v24  ;;  %v10972_v5 = vld [vmem:[%s17173_s4 + $0x54] sm:$0xf] }
 0x7bf   : > { %v5435_v6 = vmax.f32 %v5290_v52, 0.0  ;;  %v5169_v61 = vpack.c.bf16 %v5149_v28, %v5148_v43  ;;  %v10463_v43 = vld [vmem:[%s17173_s4 + $0x58] sm:$0xf0]  ;;  %6492 = vmatpush.bf16.msrb.mxu3 %v10462_v19 }
 0x7c0   : > { %v5551_v60 = vpop.f32.mrf.mxu0 }
 0x7c1   : > { %5331 = vmatmul.bf16.gmra.mxu3 %v5169_v61  ;;  %v5464_v31 = vpack.c.bf16 %v5435_v6, %v5434_v51  ;;  %v5552_v58 = vadd.f32 %v14232_v3, %v5551_v60  ;;  %v10466_v51 = vor.u32 %v10972_v5, %v10463_v43  ;;  %v10955_v60 = vld [vmem:[%s17172_s3 + $0x288] sm:$0xff] }
 0x7c2   : > { %v5033_v30 = vpop.f32.mrf.mxu2  ;;  %6156 = vmatpush.bf16.msra.mxu2 %v10955_v60 }
 0x7c3   : > { %5590 = vmatmul.bf16.gmra.mxu0 %v5464_v31  ;;  %v5034_v48 = vadd.f32 %v14088_v16, %v5033_v30  ;;  %v5722_v63 = vmax.f32 %v5552_v58, 0.0 }
 0x7c4   : > { %v5292_v56 = vpop.f32.mrf.mxu3  ;;  %6596 = vmatpush.bf16.msrb.mxu0 %v10466_v51 }
 0x7c5   : > { %v5293_v20 = vadd.f32 %v14160_v38, %v5292_v56  ;;  %v5150_v42 = vmax.f32 %v5034_v48, 0.0 }
 0x7c7   : > { %v5436_v40 = vmax.f32 %v5293_v20, 0.0 }
 0x7c8   : > { %v5553_v1 = vpop.f32.mrf.mxu0 }
 0x7c9   : > { %v5554_v37 = vadd.f32 %v14232_v3, %v5553_v1 }
 0x7ca   : > { %v5035_v27 = vpop.f32.mrf.mxu2 }
 0x7cb   : > { %v5723_v57 = vmax.f32 %v5554_v37, 0.0  ;;  %v5036_v15 = vadd.f32 %v14088_v16, %v5035_v27 }
 0x7cc   : > { %v5294_v13 = vpop.f32.mrf.mxu3 }
 0x7cd   : > { %v5760_v59 = vpack.c.bf16 %v5723_v57, %v5722_v63  ;;  %v5151_v33 = vmax.f32 %v5036_v15, 0.0  ;;  %v5295_v35 = vadd.f32 %v14160_v38, %v5294_v13 }
 0x7cf   : > { %v5437_v46 = vmax.f32 %v5295_v35, 0.0  ;;  %5854 = vmatmul.bf16.vlgmr.msra.gmra.mxu1 %v5760_v59  ;;  %v5170_v49 = vpack.c.bf16 %v5151_v33, %v5150_v42 }
 0x7d0   : > { %v5556_v22 = vpop.f32.mrf.mxu0 }
 0x7d1   : > { %5336 = vmatmul.bf16.gmra.mxu3 %v5170_v49  ;;  %v5465_v25 = vpack.c.bf16 %v5437_v46, %v5436_v40  ;;  %v5557_v32 = vadd.f32 %v14232_v3, %v5556_v22 }
 0x7d3   : > { %5595 = vmatmul.bf16.gmra.mxu0 %v5465_v25  ;;  %v5724_v7 = vmax.f32 %v5557_v32, 0.0  ;;  %v10453_v25 = vld [vmem:[%s17173_s4 + $0x40] sm:$0xf] }
 0x7d4   : > { %v5297_v16 = vpop.f32.mrf.mxu3 }
 0x7d5   : > { %v5298_v39 = vadd.f32 %v14160_v38, %v5297_v16  ;;  %v10971_v16 = vld [vmem:[%s17173_s4 + $0x44] sm:$0xf0] }
 0x7d7   : > { %v5438_v18 = vmax.f32 %v5298_v39, 0.0  ;;  %v10455_v39 = vld [vmem:[%s17173_s4 + $0x48] sm:$0xf0] }
 0x7d8   : > { %v5558_v9 = vpop.f32.mrf.mxu0 }
 0x7d9   : > { %v5559_v21 = vadd.f32 %v14232_v3, %v5558_v9  ;;  %v10454_v9 = vor.u32 %v10971_v16, %v10453_v25 }
 0x7db   : > { %v5725_v0 = vmax.f32 %v5559_v21, 0.0  ;;  %6493 = vmatpush.bf16.msrb.mxu3 %v10454_v9 }
 0x7dc   : > { %v5299_v10 = vpop.f32.mrf.mxu3 }
 0x7dd   : > { %v5300_v23 = vadd.f32 %v14160_v38, %v5299_v10  ;;  %v5761_v12 = vpack.c.bf16 %v5725_v0, %v5724_v7  ;;  %v10970_v7 = vld [vmem:[%s17173_s4 + $0x44] sm:$0xf] }
 0x7de   : > { %v10458_v10 = vor.u32 %v10970_v7, %v10455_v39  ;;  %v10645_v7 = vld [vmem:[%s17174_s5 + $0xa8] sm:$0xf]  ;;  %v11000_v39 = vld [vmem:[%s17174_s5 + $0xb0] sm:$0xf0] }
 0x7df   : > { %v5439_v26 = vmax.f32 %v5300_v23, 0.0  ;;  %5859 = vmatmul.bf16.gmra.mxu1 %v5761_v12  ;;  %v10954_v12 = vld [vmem:[%s17172_s3 + $0x280] sm:$0xff] }
 0x7e0   : > { %v5561_v11 = vpop.f32.mrf.mxu0  ;;  %6597 = vmatpush.bf16.msrb.mxu0 %v10458_v10  ;;  %6157 = vmatpush.bf16.msra.mxu2 %v10954_v12 }
 0x7e1   : > { %v5466_v53 = vpack.c.bf16 %v5439_v26, %v5438_v18  ;;  %v5562_v47 = vadd.f32 %v14232_v3, %v5561_v11 }
 0x7e3   : > { %5600 = vmatmul.bf16.gmra.mxu0 %v5466_v53  ;;  %v5726_v36 = vmax.f32 %v5562_v47, 0.0 }
 0x7e4   : > { %v5302_v34 = vpop.f32.mrf.mxu3 }
 0x7e5   : > { %v5303_v50 = vadd.f32 %v14160_v38, %v5302_v34 }
 0x7e7   : > { %v5440_v6 = vmax.f32 %v5303_v50, 0.0 }
 0x7e8   : > { %v5563_v62 = vpop.f32.mrf.mxu0 }
 0x7e9   : > { %v5564_v54 = vadd.f32 %v14232_v3, %v5563_v62 }
 0x7eb   : > { %v5727_v17 = vmax.f32 %v5564_v54, 0.0 }
 0x7ec   : > { %v5304_v41 = vpop.f32.mrf.mxu3 }
 0x7ed   : > { %v5305_v28 = vadd.f32 %v14160_v38, %v5304_v41  ;;  %v5762_v52 = vpack.c.bf16 %v5727_v17, %v5726_v36 }
 0x7ef   : > { %v5441_v61 = vmax.f32 %v5305_v28, 0.0  ;;  %5864 = vmatmul.bf16.gmra.mxu1 %v5762_v52 }
 0x7f0   : > { %v5566_v31 = vpop.f32.mrf.mxu0 }
 0x7f1   : > { %v5467_v30 = vpack.c.bf16 %v5441_v61, %v5440_v6  ;;  %v5567_v4 = vadd.f32 %v14232_v3, %v5566_v31 }
 0x7f3   : > { %5605 = vmatmul.bf16.gmra.mxu0 %v5467_v30  ;;  %v5728_v58 = vmax.f32 %v5567_v4, 0.0 }
 0x7f4   : > { %v5307_v55 = vpop.f32.mrf.mxu3 }
 0x7f5   : > { %v5308_v44 = vadd.f32 %v14160_v38, %v5307_v55 }
 0x7f7   : > { %v5442_v37 = vmax.f32 %v5308_v44, 0.0  ;;  %v10445_v44 = vld [vmem:[%s17173_s4 + $0x30] sm:$0xf] }
 0x7f8   : > { %v5568_v56 = vpop.f32.mrf.mxu0 }
 0x7f9   : > { %v5569_v2 = vadd.f32 %v14232_v3, %v5568_v56 }
 0x7fb   : > { %v5729_v8 = vmax.f32 %v5569_v2, 0.0 }
 0x7fc   : > { %v5309_v1 = vpop.f32.mrf.mxu3 }
 0x7fd   : > { %v5310_v14 = vadd.f32 %v14160_v38, %v5309_v1  ;;  %v5763_v48 = vpack.c.bf16 %v5729_v8, %v5728_v58  ;;  %v10969_v8 = vld [vmem:[%s17173_s4 + $0x34] sm:$0xf0]  ;;  %v10968_v1 = vld [vmem:[%s17173_s4 + $0x34] sm:$0xf] }
 0x7ff   : > { %v5443_v27 = vmax.f32 %v5310_v14, 0.0  ;;  %5869 = vmatmul.bf16.gmra.mxu1 %v5763_v48  ;;  %v10446_v14 = vor.u32 %v10969_v8, %v10445_v44  ;;  %v10447_v48 = vld [vmem:[%s17173_s4 + $0x38] sm:$0xf0] }
 0x800   : > { %v5571_v63 = vpop.f32.mrf.mxu0 }
 0x801   : > { %v5468_v20 = vpack.c.bf16 %v5443_v27, %v5442_v37  ;;  %v5572_v15 = vadd.f32 %v14232_v3, %v5571_v63  ;;  %6494 = vmatpush.bf16.msrb.mxu3 %v10446_v14 }
 0x803   : > { %5610 = vmatmul.bf16.gmra.mxu0 %v5468_v20  ;;  %v5730_v42 = vmax.f32 %v5572_v15, 0.0  ;;  %v10450_v20 = vor.u32 %v10968_v1, %v10447_v48 }
 0x804   : > { %v5312_v57 = vpop.f32.mrf.mxu3 }
 0x805   : > { %v5313_v59 = vadd.f32 %v14160_v38, %v5312_v57  ;;  %6598 = vmatpush.bf16.msrb.mxu0 %v10450_v20 }
 0x807   : > { %v5444_v49 = vmax.f32 %v5313_v59, 0.0 }
 0x808   : > { %v5573_v45 = vpop.f32.mrf.mxu0 }
 0x809   : > { %v5574_v13 = vadd.f32 %v14232_v3, %v5573_v45 }
 0x80b   : > { %v5731_v33 = vmax.f32 %v5574_v13, 0.0 }
 0x80c   : > { %v5314_v35 = vpop.f32.mrf.mxu3 }
 0x80d   : > { %v5315_v40 = vadd.f32 %v14160_v38, %v5314_v35  ;;  %v5764_v46 = vpack.c.bf16 %v5731_v33, %v5730_v42 }
 0x80f   : > { %v5445_v22 = vmax.f32 %v5315_v40, 0.0  ;;  %5874 = vmatmul.bf16.gmra.mxu1 %v5764_v46  ;;  %v10741_v46 = vld [vmem:[%s17174_s5 + $0x168] sm:$0xf] }
 0x810   : > { %v5576_v32 = vpop.f32.mrf.mxu0 }
 0x811   : > { %v5469_v21 = vpack.c.bf16 %v5445_v22, %v5444_v49  ;;  %v5577_v23 = vadd.f32 %v14232_v3, %v5576_v32  ;;  %v11024_v49 = vld [vmem:[%s17174_s5 + $0x170] sm:$0xf0] }
 0x812   : > { %v10742_v25 = vor.u32 %v11024_v49, %v10741_v46  ;;  %v10633_v46 = vld [vmem:[%s17174_s5 + $0x90] sm:$0xf]  ;;  %v10997_v49 = vld [vmem:[%s17174_s5 + $0x98] sm:$0xf0] }
 0x813   : > { %5615 = vmatmul.bf16.gmra.mxu0 %v5469_v21  ;;  %v5732_v11 = vmax.f32 %v5577_v23, 0.0  ;;  %v10646_v23 = vor.u32 %v11000_v39, %v10645_v7 }
 0x814   : > { %v5317_v0 = vpop.f32.mrf.mxu3  ;;  %8612 = vmatpush.bf16.msrb.mxu2 %v10742_v25  ;;  %v10634_v25 = vor.u32 %v10997_v49, %v10633_v46 }
 0x815   : > { %v5318_v53 = vadd.f32 %v14160_v38, %v5317_v0  ;;  %8508 = vmatpush.bf16.msrb.mxu1 %v10646_v23 }
 0x817   : > { %v5446_v36 = vmax.f32 %v5318_v53, 0.0  ;;  %v14344_v53 = vld [vmem:[%s17176_s7 + $0xa] ss:$0 sm:$0xff] }
 0x818   : > { %v5578_v18 = vpop.f32.mrf.mxu0 }
 0x819   : > { %v5579_v26 = vadd.f32 %v14232_v3, %v5578_v18  ;;  %8509 = vmatpush.bf16.msrb.mxu1 %v10634_v25  ;;  %v10963_v25 = vld [vmem:[%s17173_s4 + $0x4] sm:$0xf0] }
 0x81b   : > { %v5733_v34 = vmax.f32 %v5579_v26, 0.0 }
 0x81c   : > { %v5319_v47 = vpop.f32.mrf.mxu3 }
 0x81d   : > { %v5320_v62 = vadd.f32 %v14160_v38, %v5319_v47  ;;  %v5765_v54 = vpack.c.bf16 %v5733_v34, %v5732_v11 }
 0x81f   : > { %v5447_v50 = vmax.f32 %v5320_v62, 0.0  ;;  %5879 = vmatmul.bf16.gmra.mxu1 %v5765_v54 }
 0x820   : > { %v5581_v17 = vpop.f32.mrf.mxu0 }
 0x821   : > { %v5470_v24 = vpack.c.bf16 %v5447_v50, %v5446_v36  ;;  %v5582_v41 = vadd.f32 %v14232_v3, %v5581_v17 }
 0x823   : > { %5620 = vmatmul.bf16.gmra.mxu0 %v5470_v24  ;;  %v5734_v43 = vmax.f32 %v5582_v41, 0.0 }
 0x824   : > { %v5322_v29 = vpop.f32.mrf.mxu3 }
 0x825   : > { %v5323_v28 = vadd.f32 %v14160_v38, %v5322_v29 }
 0x827   : > { %v5448_v60 = vmax.f32 %v5323_v28, 0.0 }
 0x828   : > { %v5583_v19 = vpop.f32.mrf.mxu0 }
 0x829   : > { %v5584_v5 = vadd.f32 %v14232_v3, %v5583_v19 }
 0x82b   : > { %v5735_v52 = vmax.f32 %v5584_v5, 0.0 }
 0x82c   : > { %v5324_v51 = vpop.f32.mrf.mxu3 }
 0x82d   : > { %v5325_v6 = vadd.f32 %v14160_v38, %v5324_v51  ;;  %v5766_v61 = vpack.c.bf16 %v5735_v52, %v5734_v43  ;;  %v10437_v51 = vld [vmem:[%s17173_s4 + $0x20] sm:$0xf] }
 0x82f   : > { %v5449_v31 = vmax.f32 %v5325_v6, 0.0  ;;  %5884 = vmatmul.bf16.gmra.mxu1 %v5766_v61  ;;  %v10967_v6 = vld [vmem:[%s17173_s4 + $0x24] sm:$0xf0] }
 0x830   : > { %v5586_v30 = vpop.f32.mrf.mxu0 }
 0x831   : > { %v5471_v55 = vpack.c.bf16 %v5449_v31, %v5448_v60  ;;  %v5587_v56 = vadd.f32 %v14232_v3, %v5586_v30  ;;  %v10438_v31 = vor.u32 %v10967_v6, %v10437_v51 }
 0x833   : > { %5625 = vmatmul.bf16.gmra.mxu0 %v5471_v55  ;;  %v5736_v37 = vmax.f32 %v5587_v56, 0.0  ;;  %6495 = vmatpush.bf16.msrb.mxu3 %v10438_v31 }
 0x834   : > { %v5327_v4 = vpop.f32.mrf.mxu3 }
 0x835   : > { %v5328_v27 = vadd.f32 %v14160_v38, %v5327_v4 }
 0x837   : > { %v5450_v13 = vmax.f32 %v5328_v27, 0.0 }
 0x838   : > { %v5588_v2 = vpop.f32.mrf.mxu0 }
 0x839   : > { %v5589_v58 = vadd.f32 %v14232_v3, %v5588_v2  ;;  %v10966_v2 = vld [vmem:[%s17173_s4 + $0x24] sm:$0xf] }
 0x83b   : > { %v5737_v63 = vmax.f32 %v5589_v58, 0.0  ;;  %v10439_v58 = vld [vmem:[%s17173_s4 + $0x28] sm:$0xf0] }
 0x83c   : > { %v5329_v57 = vpop.f32.mrf.mxu3  ;;  %v10442_v8 = vor.u32 %v10966_v2, %v10439_v58 }
 0x83d   : > { %v5330_v15 = vadd.f32 %v14160_v38, %v5329_v57  ;;  %v5767_v45 = vpack.c.bf16 %v5737_v63, %v5736_v37 }
 0x83e   : > { %6599 = vmatpush.bf16.msrb.mxu0 %v10442_v8 }
 0x83f   : > { %v5451_v42 = vmax.f32 %v5330_v15, 0.0  ;;  %5889 = vmatmul.bf16.gmra.mxu1 %v5767_v45 }
 0x840   : > { %v5591_v59 = vpop.f32.mrf.mxu0 }
 0x841   : > { %v5472_v33 = vpack.c.bf16 %v5451_v42, %v5450_v13  ;;  %v5592_v40 = vadd.f32 %v14232_v3, %v5591_v59  ;;  %v10729_v42 = vld [vmem:[%s17174_s5 + $0x150] sm:$0xf]  ;;  %v11021_v59 = vld [vmem:[%s17174_s5 + $0x158] sm:$0xf0] }
 0x843   : > { %5630 = vmatmul.bf16.gmra.mxu0 %v5472_v33  ;;  %v5738_v32 = vmax.f32 %v5592_v40, 0.0 }
 0x844   : > { %v5332_v35 = vpop.f32.mrf.mxu3 }
 0x845   : > { %v5333_v9 = vadd.f32 %v14160_v38, %v5332_v35  ;;  %v10730_v35 = vor.u32 %v11021_v59, %v10729_v42 }
 0x847   : > { %v5452_v26 = vmax.f32 %v5333_v9, 0.0  ;;  %8613 = vmatpush.bf16.msrb.mxu2 %v10730_v35 }
 0x848   : > { %v5593_v22 = vpop.f32.mrf.mxu0 }
 0x849   : > { %v5594_v16 = vadd.f32 %v14232_v3, %v5593_v22 }
 0x84b   : > { %v5739_v21 = vmax.f32 %v5594_v16, 0.0 }
 0x84c   : > { %v5334_v0 = vpop.f32.mrf.mxu3  ;;  %v5855_v10 = vpop.f32.mrf.mxu1 }
 0x84d   : > { %v5335_v12 = vadd.f32 %v14160_v38, %v5334_v0  ;;  %v5768_v18 = vpack.c.bf16 %v5739_v21, %v5738_v32  ;;  %v5856_v62 = vadd.f32 %v14344_v53, %v5855_v10 }
 0x84f   : > { %v5453_v11 = vmax.f32 %v5335_v12, 0.0  ;;  %5894 = vmatmul.bf16.gmra.mxu1 %v5768_v18  ;;  %v6026_v17 = vmax.f32 %v5856_v62, 0.0  ;;  %v10429_v62 = vld [vmem:[%s17173_s4 + $0x10] sm:$0xf] }
 0x850   : > { %v5596_v34 = vpop.f32.mrf.mxu0 }
 0x851   : > { %v5473_v47 = vpack.c.bf16 %v5453_v11, %v5452_v26  ;;  %v5597_v24 = vadd.f32 %v14232_v3, %v5596_v34 }
 0x853   : > { %5635 = vmatmul.bf16.gmra.mxu0 %v5473_v47  ;;  %v5740_v43 = vmax.f32 %v5597_v24, 0.0  ;;  %v10431_v24 = vld [vmem:[%s17173_s4 + $0x18] sm:$0xf0] }
 0x854   : > { %v5337_v54 = vpop.f32.mrf.mxu3  ;;  %v5857_v36 = vpop.f32.mrf.mxu1 }
 0x855   : > { %v5858_v50 = vadd.f32 %v14344_v53, %v5857_v36  ;;  %v5338_v28 = vadd.f32 %v14160_v38, %v5337_v54  ;;  %v10965_v54 = vld [vmem:[%s17173_s4 + $0x14] sm:$0xf0] }
 0x857   : > { %v6027_v29 = vmax.f32 %v5858_v50, 0.0  ;;  %v5454_v4 = vmax.f32 %v5338_v28, 0.0  ;;  %v10430_v50 = vor.u32 %v10965_v54, %v10429_v62 }
 0x858   : > { %v5598_v41 = vpop.f32.mrf.mxu0 }
 0x859   : > { %v6064_v19 = vpack.c.bf16 %v6027_v29, %v6026_v17  ;;  %v5599_v5 = vadd.f32 %v14232_v3, %v5598_v41  ;;  %v10964_v17 = vld [vmem:[%s17173_s4 + $0x14] sm:$0xf]  ;;  %6496 = vmatpush.bf16.msrb.mxu3 %v10430_v50  ;;  %v10705_v50 = vld [vmem:[%s17174_s5 + $0x120] sm:$0xf] }
 0x85a   : > { %v10434_v41 = vor.u32 %v10964_v17, %v10431_v24  ;;  %v11015_v17 = vld [vmem:[%s17174_s5 + $0x128] sm:$0xf0] }
 0x85b   : > { %v5741_v52 = vmax.f32 %v5599_v5, 0.0  ;;  %6158 = vmatmul.bf16.vlgmr.msra.gmra.mxu2 %v6064_v19 }
 0x85c   : > { %v5339_v61 = vpop.f32.mrf.mxu3  ;;  %v5860_v60 = vpop.f32.mrf.mxu1  ;;  %6600 = vmatpush.bf16.msrb.mxu0 %v10434_v41 }
 0x85d   : > { %v5340_v30 = vadd.f32 %v14160_v38, %v5339_v61  ;;  %v5769_v55 = vpack.c.bf16 %v5741_v52, %v5740_v43  ;;  %v5861_v14 = vadd.f32 %v14344_v53, %v5860_v60 }
 0x85f   : > { %v5455_v56 = vmax.f32 %v5340_v30, 0.0  ;;  %5899 = vmatmul.bf16.gmra.mxu1 %v5769_v55  ;;  %v6028_v37 = vmax.f32 %v5861_v14, 0.0 }
 0x860   : > { %v5601_v44 = vpop.f32.mrf.mxu0 }
 0x861   : > { %v5474_v1 = vpack.c.bf16 %v5455_v56, %v5454_v4  ;;  %v5602_v27 = vadd.f32 %v14232_v3, %v5601_v44  ;;  %v10717_v4 = vld [vmem:[%s17174_s5 + $0x138] sm:$0xf]  ;;  %v11018_v56 = vld [vmem:[%s17174_s5 + $0x140] sm:$0xf0] }
 0x862   : > { %v10718_v58 = vor.u32 %v11018_v56, %v10717_v4 }
 0x863   : > { %5640 = vmatmul.bf16.gmra.mxu0 %v5474_v1  ;;  %v5742_v45 = vmax.f32 %v5602_v27, 0.0 }
 0x864   : > { %v5862_v38 = vpop.f32.mrf.mxu1  ;;  %8614 = vmatpush.bf16.msrb.mxu2 %v10718_v58 }
 0x865   : > { %v5863_v48 = vadd.f32 %v14344_v53, %v5862_v38  ;;  %v10621_v38 = vld [vmem:[%s17174_s5 + $0x78] sm:$0xf] }
 0x867   : > { %v6029_v63 = vmax.f32 %v5863_v48, 0.0  ;;  %v10994_v48 = vld [vmem:[%s17174_s5 + $0x80] sm:$0xf0] }
 0x868   : > { %v5603_v20 = vpop.f32.mrf.mxu0  ;;  %v10622_v27 = vor.u32 %v10994_v48, %v10621_v38 }
 0x869   : > { %v5604_v57 = vadd.f32 %v14232_v3, %v5603_v20  ;;  %v6065_v15 = vpack.c.bf16 %v6029_v63, %v6028_v37 }
 0x86a   : > { %8510 = vmatpush.bf16.msrb.mxu1 %v10622_v27 }
 0x86b   : > { %v5743_v13 = vmax.f32 %v5604_v57, 0.0  ;;  %6163 = vmatmul.bf16.gmra.mxu2 %v6065_v15 }
 0x86c   : > { %v5865_v33 = vpop.f32.mrf.mxu1 }
 0x86d   : > { %v5770_v40 = vpack.c.bf16 %v5743_v13, %v5742_v45  ;;  %v5866_v16 = vadd.f32 %v14344_v53, %v5865_v33 }
 0x86f   : > { %5904 = vmatmul.bf16.gmra.mxu1 %v5770_v40  ;;  %v6030_v21 = vmax.f32 %v5866_v16, 0.0 }
 0x870   : > { %v5606_v22 = vpop.f32.mrf.mxu0 }
 0x871   : > { %v5607_v7 = vadd.f32 %v14232_v3, %v5606_v22  ;;  %v10421_v22 = vld [vmem:[%s17173_s4] sm:$0xf] }
 0x873   : > { %v5744_v12 = vmax.f32 %v5607_v7, 0.0 }
 0x874   : > { %v5867_v32 = vpop.f32.mrf.mxu1 }
 0x875   : > { %v5868_v9 = vadd.f32 %v14344_v53, %v5867_v32  ;;  %v10422_v32 = vor.u32 %v10963_v25, %v10421_v22  ;;  %v10693_v22 = vld [vmem:[%s17174_s5 + $0x108] sm:$0xf]  ;;  %v11012_v25 = vld [vmem:[%s17174_s5 + $0x110] sm:$0xf0] }
 0x877   : > { %v6031_v39 = vmax.f32 %v5868_v9, 0.0  ;;  %6497 = vmatpush.bf16.msrb.mxu3 %v10422_v32  ;;  %v10694_v32 = vor.u32 %v11012_v25, %v10693_v22 }
 0x878   : > { %v5608_v0 = vpop.f32.mrf.mxu0 }
 0x879   : > { %v5609_v10 = vadd.f32 %v14232_v3, %v5608_v0  ;;  %v6066_v23 = vpack.c.bf16 %v6031_v39, %v6030_v21  ;;  %v10962_v0 = vld [vmem:[%s17173_s4 + $0x4] sm:$0xf] }
 0x87b   : > { %v5745_v18 = vmax.f32 %v5609_v10, 0.0  ;;  %6168 = vmatmul.bf16.gmra.mxu2 %v6066_v23  ;;  %v10423_v10 = vld [vmem:[%s17173_s4 + $0x8] sm:$0xf0] }
 0x87c   : > { %v5870_v26 = vpop.f32.mrf.mxu1 }
 0x87d   : > { %v5771_v11 = vpack.c.bf16 %v5745_v18, %v5744_v12  ;;  %v5871_v47 = vadd.f32 %v14344_v53, %v5870_v26  ;;  %v10426_v12 = vor.u32 %v10962_v0, %v10423_v10 }
 0x87f   : > { %5909 = vmatmul.bf16.gmra.mxu1 %v5771_v11  ;;  %v6032_v19 = vmax.f32 %v5871_v47, 0.0  ;;  %6601 = vmatpush.bf16.msrb.mxu0 %v10426_v12 }
 0x880   : > { %v5611_v34 = vpop.f32.mrf.mxu0 }
 0x881   : > { %v5612_v5 = vadd.f32 %v14232_v3, %v5611_v34 }
 0x883   : > { %v5746_v6 = vmax.f32 %v5612_v5, 0.0 }
 0x884   : > { %v5872_v36 = vpop.f32.mrf.mxu1 }
 0x885   : > { %v5873_v29 = vadd.f32 %v14344_v53, %v5872_v36 }
 0x887   : > { %v6033_v43 = vmax.f32 %v5873_v29, 0.0  ;;  %v10706_v29 = vor.u32 %v11015_v17, %v10705_v50 }
 0x888   : > { %v5613_v28 = vpop.f32.mrf.mxu0 }
 0x889   : > { %v5614_v52 = vadd.f32 %v14232_v3, %v5613_v28  ;;  %v6067_v51 = vpack.c.bf16 %v6033_v43, %v6032_v19  ;;  %8615 = vmatpush.bf16.msrb.mxu2 %v10706_v29  ;;  %v10609_v28 = vld [vmem:[%s17174_s5 + $0x60] sm:$0xf] }
 0x88b   : > { %v5747_v61 = vmax.f32 %v5614_v52, 0.0  ;;  %6173 = vmatmul.bf16.gmra.mxu2 %v6067_v51  ;;  %v10991_v52 = vld [vmem:[%s17174_s5 + $0x68] sm:$0xf0] }
 0x88c   : > { %v5875_v60 = vpop.f32.mrf.mxu1 }
 0x88d   : > { %v5772_v31 = vpack.c.bf16 %v5747_v61, %v5746_v6  ;;  %v5876_v55 = vadd.f32 %v14344_v53, %v5875_v60  ;;  %v10610_v6 = vor.u32 %v10991_v52, %v10609_v28  ;;  %8616 = vmatpush.bf16.msrb.mxu2 %v10694_v32 }
 0x88f   : > { %5914 = vmatmul.bf16.gmra.mxu1 %v5772_v31  ;;  %v6034_v8 = vmax.f32 %v5876_v55, 0.0 }
 0x890   : > { %v5616_v30 = vpop.f32.mrf.mxu0  ;;  %8511 = vmatpush.bf16.msrb.mxu1 %v10610_v6 }
 0x891   : > { %v5617_v1 = vadd.f32 %v14232_v3, %v5616_v30 }
 0x893   : > { %v5748_v57 = vmax.f32 %v5617_v1, 0.0 }
 0x894   : > { %v5877_v2 = vpop.f32.mrf.mxu1 }
 0x895   : > { %v5878_v44 = vadd.f32 %v14344_v53, %v5877_v2 }
 0x897   : > { %v6035_v14 = vmax.f32 %v5878_v44, 0.0 }
 0x898   : > { %v5618_v37 = vpop.f32.mrf.mxu0 }
 0x899   : > { %v5619_v63 = vadd.f32 %v14232_v3, %v5618_v37  ;;  %v6068_v20 = vpack.c.bf16 %v6035_v14, %v6034_v8 }
 0x89b   : > { %v5749_v15 = vmax.f32 %v5619_v63, 0.0  ;;  %6178 = vmatmul.bf16.gmra.mxu2 %v6068_v20 }
 0x89c   : > { %v5880_v45 = vpop.f32.mrf.mxu1 }
 0x89d   : > { %v5773_v13 = vpack.c.bf16 %v5749_v15, %v5748_v57  ;;  %v5881_v59 = vadd.f32 %v14344_v53, %v5880_v45 }
 0x89f   : > { %5919 = vmatmul.bf16.gmra.mxu1 %v5773_v13  ;;  %v6036_v40 = vmax.f32 %v5881_v59, 0.0 }
 0x8a0   : > { %v5621_v42 = vpop.f32.mrf.mxu0 }
 0x8a1   : > { %v5622_v46 = vadd.f32 %v14232_v3, %v5621_v42 }
 0x8a3   : > { %v5750_v7 = vmax.f32 %v5622_v46, 0.0 }
 0x8a4   : > { %v5882_v33 = vpop.f32.mrf.mxu1 }
 0x8a5   : > { %v5883_v35 = vadd.f32 %v14344_v53, %v5882_v33 }
 0x8a7   : > { %v6037_v49 = vmax.f32 %v5883_v35, 0.0 }
 0x8a8   : > { %v5623_v16 = vpop.f32.mrf.mxu0 }
 0x8a9   : > { %v5624_v9 = vadd.f32 %v14232_v3, %v5623_v16  ;;  %v6069_v21 = vpack.c.bf16 %v6037_v49, %v6036_v40 }
 0x8ab   : > { %v5751_v39 = vmax.f32 %v5624_v9, 0.0  ;;  %6183 = vmatmul.bf16.gmra.mxu2 %v6069_v21  ;;  %v14465_v9 = vld [vmem:[%s17176_s7 + $0xb] ss:$0 sm:$0xff] }
 0x8ac   : > { %v5885_v23 = vpop.f32.mrf.mxu1  ;;  %v10597_v21 = vld [vmem:[%s17174_s5 + $0x48] sm:$0xf] }
 0x8ad   : > { %v5774_v18 = vpack.c.bf16 %v5751_v39, %v5750_v7  ;;  %v5886_v11 = vadd.f32 %v14344_v53, %v5885_v23  ;;  %v10988_v7 = vld [vmem:[%s17174_s5 + $0x50] sm:$0xf0] }
 0x8ae   : > { %v10598_v39 = vor.u32 %v10988_v7, %v10597_v21 }
 0x8af   : > { %5924 = vmatmul.bf16.gmra.mxu1 %v5774_v18  ;;  %v6038_v62 = vmax.f32 %v5886_v11, 0.0 }
 0x8b0   : > { %v5626_v26 = vpop.f32.mrf.mxu0  ;;  %8512 = vmatpush.bf16.msrb.mxu1 %v10598_v39 }
 0x8b1   : > { %v5627_v54 = vadd.f32 %v14232_v3, %v5626_v26 }
 0x8b3   : > { %v5752_v5 = vmax.f32 %v5627_v54, 0.0 }
 0x8b4   : > { %v5887_v34 = vpop.f32.mrf.mxu1 }
 0x8b5   : > { %v5888_v47 = vadd.f32 %v14344_v53, %v5887_v34 }
 0x8b7   : > { %v6039_v36 = vmax.f32 %v5888_v47, 0.0 }
 0x8b8   : > { %v5628_v24 = vpop.f32.mrf.mxu0 }
 0x8b9   : > { %v5629_v41 = vadd.f32 %v14232_v3, %v5628_v24  ;;  %v6070_v19 = vpack.c.bf16 %v6039_v36, %v6038_v62 }
 0x8bb   : > { %v5753_v43 = vmax.f32 %v5629_v41, 0.0  ;;  %6188 = vmatmul.bf16.gmra.mxu2 %v6070_v19 }
 0x8bc   : > { %v5890_v51 = vpop.f32.mrf.mxu1 }
 0x8bd   : > { %v5775_v61 = vpack.c.bf16 %v5753_v43, %v5752_v5  ;;  %v5891_v31 = vadd.f32 %v14344_v53, %v5890_v51 }
 0x8bf   : > { %5929 = vmatmul.bf16.gmra.mxu1 %v5775_v61  ;;  %v6040_v4 = vmax.f32 %v5891_v31, 0.0 }
 0x8c0   : > { %v5631_v60 = vpop.f32.mrf.mxu0 }
 0x8c1   : > { %v5632_v56 = vadd.f32 %v14232_v3, %v5631_v60 }
 0x8c3   : > { %v5754_v1 = vmax.f32 %v5632_v56, 0.0 }
 0x8c4   : > { %v5892_v30 = vpop.f32.mrf.mxu1 }
 0x8c5   : > { %v5893_v55 = vadd.f32 %v14344_v53, %v5892_v30 }
 0x8c7   : > { %v6041_v2 = vmax.f32 %v5893_v55, 0.0 }
 0x8c8   : > { %v5633_v58 = vpop.f32.mrf.mxu0 }
 0x8c9   : > { %v5634_v44 = vadd.f32 %v14232_v3, %v5633_v58  ;;  %v6071_v8 = vpack.c.bf16 %v6041_v2, %v6040_v4 }
 0x8cb   : > { %v5755_v14 = vmax.f32 %v5634_v44, 0.0  ;;  %6193 = vmatmul.bf16.gmra.mxu2 %v6071_v8  ;;  %v10681_v44 = vld [vmem:[%s17174_s5 + $0xf0] sm:$0xf]  ;;  %v11009_v8 = vld [vmem:[%s17174_s5 + $0xf8] sm:$0xf0] }
 0x8cc   : > { %v5895_v38 = vpop.f32.mrf.mxu1 }
 0x8cd   : > { %v5776_v48 = vpack.c.bf16 %v5755_v14, %v5754_v1  ;;  %v5896_v27 = vadd.f32 %v14344_v53, %v5895_v38  ;;  %v10682_v1 = vor.u32 %v11009_v8, %v10681_v44 }
 0x8cf   : > { %5934 = vmatmul.bf16.gmra.mxu1 %v5776_v48  ;;  %v6042_v57 = vmax.f32 %v5896_v27, 0.0  ;;  %8617 = vmatpush.bf16.msrb.mxu2 %v10682_v1 }
 0x8d0   : > { %v5636_v37 = vpop.f32.mrf.mxu0 }
 0x8d1   : > { %v5637_v15 = vadd.f32 %v14232_v3, %v5636_v37 }
 0x8d3   : > { %v5756_v33 = vmax.f32 %v5637_v15, 0.0 }
 0x8d4   : > { %v5897_v63 = vpop.f32.mrf.mxu1 }
 0x8d5   : > { %v5898_v20 = vadd.f32 %v14344_v53, %v5897_v63 }
 0x8d7   : > { %v6043_v45 = vmax.f32 %v5898_v20, 0.0 }
 0x8d8   : > { %v5638_v13 = vpop.f32.mrf.mxu0 }
 0x8d9   : > { %v5639_v42 = vadd.f32 %v14232_v3, %v5638_v13  ;;  %v6072_v59 = vpack.c.bf16 %v6043_v45, %v6042_v57 }
 0x8db   : > { %v5757_v35 = vmax.f32 %v5639_v42, 0.0  ;;  %6198 = vmatmul.bf16.gmra.mxu2 %v6072_v59  ;;  %v10585_v42 = vld [vmem:[%s17174_s5 + $0x30] sm:$0xf]  ;;  %v10985_v59 = vld [vmem:[%s17174_s5 + $0x38] sm:$0xf0] }
 0x8dc   : > { %v5900_v40 = vpop.f32.mrf.mxu1 }
 0x8dd   : > { %v5777_v46 = vpack.c.bf16 %v5757_v35, %v5756_v33  ;;  %v5901_v0 = vadd.f32 %v14344_v53, %v5900_v40  ;;  %v10586_v33 = vor.u32 %v10985_v59, %v10585_v42 }
 0x8de   : > { %v6159_v49 = vpop.f32.mrf.mxu2 }
 0x8df   : > { %5939 = vmatmul.bf16.gmra.mxu1 %v5777_v46  ;;  %v6160_v23 = vadd.f32 %v14465_v9, %v6159_v49  ;;  %v6044_v26 = vmax.f32 %v5901_v0, 0.0 }
 0x8e0   : > { %v5641_v16 = vpop.f32.mrf.mxu0  ;;  %8513 = vmatpush.bf16.msrb.mxu1 %v10586_v33 }
 0x8e1   : > { %v5642_v11 = vadd.f32 %v14232_v3, %v5641_v16  ;;  %v6330_v54 = vmax.f32 %v6160_v23, 0.0 }
 0x8e3   : > { %v5758_v24 = vmax.f32 %v5642_v11, 0.0 }
 0x8e4   : > { %v5902_v10 = vpop.f32.mrf.mxu1 }
 0x8e5   : > { %v5903_v12 = vadd.f32 %v14344_v53, %v5902_v10 }
 0x8e6   : > { %v6161_v18 = vpop.f32.mrf.mxu2 }
 0x8e7   : > { %v6045_v34 = vmax.f32 %v5903_v12, 0.0  ;;  %v6162_v47 = vadd.f32 %v14465_v9, %v6161_v18 }
 0x8e8   : > { %v5643_v62 = vpop.f32.mrf.mxu0 }
 0x8e9   : > { %v6331_v36 = vmax.f32 %v6162_v47, 0.0  ;;  %v5644_v50 = vadd.f32 %v14232_v3, %v5643_v62  ;;  %v6073_v17 = vpack.c.bf16 %v6045_v34, %v6044_v26 }
 0x8eb   : > { %v6368_v29 = vpack.c.bf16 %v6331_v36, %v6330_v54  ;;  %v5759_v41 = vmax.f32 %v5644_v50, 0.0  ;;  %6203 = vmatmul.bf16.gmra.mxu2 %v6073_v17 }
 0x8ec   : > { %v5905_v19 = vpop.f32.mrf.mxu1 }
 0x8ed   : > { %6498 = vmatmul.bf16.vlgmr.msrb.gmra.mxu3 %v6368_v29  ;;  %6602 = vmatmul.bf16.vlgmr.msrb.gmra.mxu0 %v6368_v29  ;;  %v5778_v5 = vpack.c.bf16 %v5759_v41, %v5758_v24  ;;  %v5906_v28 = vadd.f32 %v14344_v53, %v5905_v19  ;;  %v10669_v19 = vld [vmem:[%s17174_s5 + $0xd8] sm:$0xf] }
 0x8ee   : > { %v6164_v43 = vpop.f32.mrf.mxu2 }
 0x8ef   : > { %5944 = vmatmul.bf16.gmra.mxu1 %v5778_v5  ;;  %v6165_v51 = vadd.f32 %v14465_v9, %v6164_v43  ;;  %v6046_v3 = vmax.f32 %v5906_v28, 0.0  ;;  %v11006_v5 = vld [vmem:[%s17174_s5 + $0xe0] sm:$0xf0] }
 0x8f0   : > { %v10670_v43 = vor.u32 %v11006_v5, %v10669_v19 }
 0x8f1   : > { %v6332_v30 = vmax.f32 %v6165_v51, 0.0 }
 0x8f2   : > { %8618 = vmatpush.bf16.msrb.mxu2 %v10670_v43 }
 0x8f4   : > { %v5907_v52 = vpop.f32.mrf.mxu1 }
 0x8f5   : > { %v5908_v6 = vadd.f32 %v14344_v53, %v5907_v52 }
 0x8f6   : > { %v6166_v61 = vpop.f32.mrf.mxu2 }
 0x8f7   : > { %v6047_v60 = vmax.f32 %v5908_v6, 0.0  ;;  %v6167_v31 = vadd.f32 %v14465_v9, %v6166_v61  ;;  %v10573_v6 = vld [vmem:[%s17174_s5 + $0x18] sm:$0xf]  ;;  %v10982_v61 = vld [vmem:[%s17174_s5 + $0x20] sm:$0xf0] }
 0x8f9   : > { %v6333_v55 = vmax.f32 %v6167_v31, 0.0  ;;  %v6074_v4 = vpack.c.bf16 %v6047_v60, %v6046_v3  ;;  %v10574_v3 = vor.u32 %v10982_v61, %v10573_v6 }
 0x8fb   : > { %6208 = vmatmul.bf16.gmra.mxu2 %v6074_v4  ;;  %v6369_v56 = vpack.c.bf16 %v6333_v55, %v6332_v30  ;;  %8514 = vmatpush.bf16.msrb.mxu1 %v10574_v3  ;;  %v10561_v3 = vld [vmem:[%s17174_s5] sm:$0xf] }
 0x8fc   : > { %v5910_v2 = vpop.f32.mrf.mxu1 }
 0x8fd   : > { %6503 = vmatmul.bf16.gmra.mxu3 %v6369_v56  ;;  %6607 = vmatmul.bf16.gmra.mxu0 %v6369_v56  ;;  %v5911_v14 = vadd.f32 %v14344_v53, %v5910_v2 }
 0x8fe   : > { %v6169_v58 = vpop.f32.mrf.mxu2 }
 0x8ff   : > { %v6170_v48 = vadd.f32 %v14465_v9, %v6169_v58  ;;  %v6048_v63 = vmax.f32 %v5911_v14, 0.0 }
 0x901   : > { %v6334_v15 = vmax.f32 %v6170_v48, 0.0 }
 0x904   : > { %v5912_v38 = vpop.f32.mrf.mxu1 }
 0x905   : > { %v5913_v37 = vadd.f32 %v14344_v53, %v5912_v38 }
 0x906   : > { %v6171_v27 = vpop.f32.mrf.mxu2 }
 0x907   : > { %v6049_v20 = vmax.f32 %v5913_v37, 0.0  ;;  %v6172_v57 = vadd.f32 %v14465_v9, %v6171_v27 }
 0x909   : > { %v6335_v45 = vmax.f32 %v6172_v57, 0.0  ;;  %v6075_v13 = vpack.c.bf16 %v6049_v20, %v6048_v63 }
 0x90b   : > { %6213 = vmatmul.bf16.gmra.mxu2 %v6075_v13  ;;  %v6370_v35 = vpack.c.bf16 %v6335_v45, %v6334_v15 }
 0x90c   : > { %v5915_v40 = vpop.f32.mrf.mxu1 }
 0x90d   : > { %6508 = vmatmul.bf16.gmra.mxu3 %v6370_v35  ;;  %6612 = vmatmul.bf16.gmra.mxu0 %v6370_v35  ;;  %v5916_v49 = vadd.f32 %v14344_v53, %v5915_v40 }
 0x90e   : > { %v6174_v46 = vpop.f32.mrf.mxu2 }
 0x90f   : > { %v6175_v25 = vadd.f32 %v14465_v9, %v6174_v46  ;;  %v6050_v21 = vmax.f32 %v5916_v49, 0.0 }
 0x911   : > { %v6336_v0 = vmax.f32 %v6175_v25, 0.0 }
 0x914   : > { %v5917_v22 = vpop.f32.mrf.mxu1 }
 0x915   : > { %v5918_v16 = vadd.f32 %v14344_v53, %v5917_v22 }
 0x916   : > { %v6176_v32 = vpop.f32.mrf.mxu2 }
 0x917   : > { %v6051_v7 = vmax.f32 %v5918_v16, 0.0  ;;  %v6177_v39 = vadd.f32 %v14465_v9, %v6176_v32 }
 0x919   : > { %v6337_v10 = vmax.f32 %v6177_v39, 0.0  ;;  %v6076_v23 = vpack.c.bf16 %v6051_v7, %v6050_v21 }
 0x91b   : > { %6218 = vmatmul.bf16.gmra.mxu2 %v6076_v23  ;;  %v6371_v12 = vpack.c.bf16 %v6337_v10, %v6336_v0 }
 0x91c   : > { %v5920_v18 = vpop.f32.mrf.mxu1 }
 0x91d   : > { %6513 = vmatmul.bf16.gmra.mxu3 %v6371_v12  ;;  %6617 = vmatmul.bf16.gmra.mxu0 %v6371_v12  ;;  %v5921_v11 = vadd.f32 %v14344_v53, %v5920_v18 }
 0x91e   : > { %v6179_v26 = vpop.f32.mrf.mxu2 }
 0x91f   : > { %v6180_v47 = vadd.f32 %v14465_v9, %v6179_v26  ;;  %v6052_v36 = vmax.f32 %v5921_v11, 0.0 }
 0x921   : > { %v6338_v24 = vmax.f32 %v6180_v47, 0.0  ;;  %v11003_v47 = vld [vmem:[%s17174_s5 + $0xc8] sm:$0xf0] }
 0x924   : > { %v5922_v34 = vpop.f32.mrf.mxu1 }
 0x925   : > { %v5923_v62 = vadd.f32 %v14344_v53, %v5922_v34  ;;  %v10657_v34 = vld [vmem:[%s17174_s5 + $0xc0] sm:$0xf] }
 0x926   : > { %v6181_v54 = vpop.f32.mrf.mxu2 }
 0x927   : > { %v6053_v50 = vmax.f32 %v5923_v62, 0.0  ;;  %v6182_v17 = vadd.f32 %v14465_v9, %v6181_v54  ;;  %v10418_v54 = vld [vmem:[%s17175_s6 + $0x1] ss:$2 sm:$0x3] }
 0x928   : > { %v14544_v5 = vperm.slane %v10418_v54, 1 }
 0x929   : > { %v6339_v29 = vmax.f32 %v6182_v17, 0.0  ;;  %v6077_v41 = vpack.c.bf16 %v6053_v50, %v6052_v36  ;;  %v10658_v36 = vor.u32 %v11003_v47, %v10657_v34 }
 0x92b   : > { %6223 = vmatmul.bf16.gmra.mxu2 %v6077_v41  ;;  %v6372_v28 = vpack.c.bf16 %v6339_v29, %v6338_v24 }
 0x92c   : > { %v5925_v52 = vpop.f32.mrf.mxu1  ;;  %8619 = vmatpush.bf16.msrb.mxu2 %v10658_v36 }
 0x92d   : > { %6518 = vmatmul.bf16.gmra.mxu3 %v6372_v28  ;;  %6622 = vmatmul.bf16.gmra.mxu0 %v6372_v28  ;;  %v5926_v60 = vadd.f32 %v14344_v53, %v5925_v52 }
 0x92e   : > { %v6184_v51 = vpop.f32.mrf.mxu2 }
 0x92f   : > { %v6185_v30 = vadd.f32 %v14465_v9, %v6184_v51  ;;  %v6054_v56 = vmax.f32 %v5926_v60, 0.0  ;;  %v10979_v60 = vld [vmem:[%s17174_s5 + $0x8] sm:$0xf0] }
 0x931   : > { %v6340_v44 = vmax.f32 %v6185_v30, 0.0  ;;  %v10562_v30 = vor.u32 %v10979_v60, %v10561_v3  ;;  %v10999_v60 = vld [vmem:[%s17174_s5 + $0xac] sm:$0xf] }
 0x933   : > { %8515 = vmatpush.bf16.msrb.mxu1 %v10562_v30 }
 0x934   : > { %v5927_v31 = vpop.f32.mrf.mxu1 }
 0x935   : > { %v5928_v55 = vadd.f32 %v14344_v53, %v5927_v31 }
 0x936   : > { %v6186_v4 = vpop.f32.mrf.mxu2 }
 0x937   : > { %v6055_v2 = vmax.f32 %v5928_v55, 0.0  ;;  %v6187_v58 = vadd.f32 %v14465_v9, %v6186_v4  ;;  %v14553_v4 = vperm.slane %v10418_v54, 0 }
 0x939   : > { %v6341_v8 = vmax.f32 %v6187_v58, 0.0  ;;  %v6078_v1 = vpack.c.bf16 %v6055_v2, %v6054_v56 }
 0x93b   : > { %6228 = vmatmul.bf16.gmra.mxu2 %v6078_v1  ;;  %v6373_v14 = vpack.c.bf16 %v6341_v8, %v6340_v44 }
 0x93c   : > { %v5930_v38 = vpop.f32.mrf.mxu1 }
 0x93d   : > { %6523 = vmatmul.bf16.gmra.mxu3 %v6373_v14  ;;  %6627 = vmatmul.bf16.gmra.mxu0 %v6373_v14  ;;  %v5931_v37 = vadd.f32 %v14344_v53, %v5930_v38 }
 0x93e   : > { %v6189_v48 = vpop.f32.mrf.mxu2 }
 0x93f   : > { %v6190_v63 = vadd.f32 %v14465_v9, %v6189_v48  ;;  %v6056_v15 = vmax.f32 %v5931_v37, 0.0 }
 0x941   : > { %v6342_v42 = vmax.f32 %v6190_v63, 0.0 }
 0x944   : > { %v5932_v27 = vpop.f32.mrf.mxu1 }
 0x945   : > { %v5933_v20 = vadd.f32 %v14344_v53, %v5932_v27 }
 0x946   : > { %v6191_v57 = vpop.f32.mrf.mxu2 }
 0x947   : > { %v6057_v45 = vmax.f32 %v5933_v20, 0.0  ;;  %v6192_v13 = vadd.f32 %v14465_v9, %v6191_v57 }
 0x949   : > { %v6343_v59 = vmax.f32 %v6192_v13, 0.0  ;;  %v6079_v33 = vpack.c.bf16 %v6057_v45, %v6056_v15 }
 0x94b   : > { %6233 = vmatmul.bf16.gmra.mxu2 %v6079_v33  ;;  %v6374_v35 = vpack.c.bf16 %v6343_v59, %v6342_v42 }
 0x94c   : > { %v5935_v40 = vpop.f32.mrf.mxu1 }
 0x94d   : > { %6528 = vmatmul.bf16.gmra.mxu3 %v6374_v35  ;;  %6632 = vmatmul.bf16.gmra.mxu0 %v6374_v35  ;;  %v5936_v49 = vadd.f32 %v14344_v53, %v5935_v40 }
 0x94e   : > { %v6194_v46 = vpop.f32.mrf.mxu2 }
 0x94f   : > { %v6195_v25 = vadd.f32 %v14465_v9, %v6194_v46  ;;  %v6058_v21 = vmax.f32 %v5936_v49, 0.0 }
 0x951   : > { %v6344_v0 = vmax.f32 %v6195_v25, 0.0 }
 0x954   : > { %v5937_v22 = vpop.f32.mrf.mxu1 }
 0x955   : > { %v5938_v16 = vadd.f32 %v14344_v53, %v5937_v22 }
 0x956   : > { %v6196_v32 = vpop.f32.mrf.mxu2 }
 0x957   : > { %v6059_v7 = vmax.f32 %v5938_v16, 0.0  ;;  %v6197_v39 = vadd.f32 %v14465_v9, %v6196_v32 }
 0x959   : > { %v6345_v10 = vmax.f32 %v6197_v39, 0.0  ;;  %v6080_v23 = vpack.c.bf16 %v6059_v7, %v6058_v21 }
 0x95b   : > { %6238 = vmatmul.bf16.gmra.mxu2 %v6080_v23  ;;  %v6375_v12 = vpack.c.bf16 %v6345_v10, %v6344_v0 }
 0x95c   : > { %v5940_v18 = vpop.f32.mrf.mxu1 }
 0x95d   : > { %6533 = vmatmul.bf16.gmra.mxu3 %v6375_v12  ;;  %6637 = vmatmul.bf16.gmra.mxu0 %v6375_v12  ;;  %v5941_v11 = vadd.f32 %v14344_v53, %v5940_v18 }
 0x95e   : > { %v6199_v26 = vpop.f32.mrf.mxu2 }
 0x95f   : > { %v6200_v50 = vadd.f32 %v14465_v9, %v6199_v26  ;;  %v6060_v29 = vmax.f32 %v5941_v11, 0.0 }
 0x961   : > { %v6346_v43 = vmax.f32 %v6200_v50, 0.0 }
 0x964   : > { %v5942_v62 = vpop.f32.mrf.mxu1 }
 0x965   : > { %v5943_v17 = vadd.f32 %v14344_v53, %v5942_v62 }
 0x966   : > { %v6201_v24 = vpop.f32.mrf.mxu2 }
 0x967   : > { %v6061_v41 = vmax.f32 %v5943_v17, 0.0  ;;  %v6202_v19 = vadd.f32 %v14465_v9, %v6201_v24 }
 0x969   : > { %v6347_v28 = vmax.f32 %v6202_v19, 0.0  ;;  %v6081_v52 = vpack.c.bf16 %v6061_v41, %v6060_v29 }
 0x96a   : > { %v6603_v51 = vpop.f32.mrf.mxu0 }
 0x96b   : > { %v6604_v6 = vadd.f32 %v6603_v51, %v14544_v5  ;;  %6243 = vmatmul.bf16.gmra.mxu2 %v6081_v52  ;;  %v6376_v61 = vpack.c.bf16 %v6347_v28, %v6346_v43 }
 0x96c   : > { %v5945_v31 = vpop.f32.mrf.mxu1 }
 0x96d   : > { %v10484_v55 = vmul.f32 -1.442695, %v6604_v6  ;;  %6538 = vmatmul.bf16.gmra.mxu3 %v6376_v61  ;;  %6642 = vmatmul.bf16.gmra.mxu0 %v6376_v61  ;;  %v5946_v8 = vadd.f32 %v14344_v53, %v5945_v31  ;;  %v10647_v31 = vld [vmem:[%s17174_s5 + $0xb4] sm:$0xf0] }
 0x96e   : > { %v6204_v56 = vpop.f32.mrf.mxu2 }
 0x96f   : > { %11336 = vpow2.f32 %v10484_v55  ;;  %v6205_v37 = vadd.f32 %v14465_v9, %v6204_v56  ;;  %v6062_v15 = vmax.f32 %v5946_v8, 0.0 }
 0x970   : > { %v6499_v2 = vpop.f32.mrf.mxu3 }
 0x971   : > { %v6500_v58 = vadd.f32 %v6499_v2, %v14553_v4  ;;  %v6348_v59 = vmax.f32 %v6205_v37, 0.0 }
 0x972   : > { %v6605_v44 = vpop.f32.mrf.mxu0 }
 0x973   : > { %v10483_v1 = vmul.f32 -1.442695, %v6500_v58  ;;  %v6606_v14 = vadd.f32 %v6605_v44, %v14544_v5 }
 0x974   : > { %v5947_v38 = vpop.f32.mrf.mxu1 }
 0x975   : > { %v11337_v48 = vpop.eup %11336  ;;  %11338 = vpow2.f32 %v10483_v1  ;;  %v10486_v27 = vmul.f32 -1.442695, %v6606_v14  ;;  %v5948_v63 = vadd.f32 %v14344_v53, %v5947_v38  ;;  %v10749_v14 = vld [vmem:[%s17174_s5 + $0x170] sm:$0xf]  ;;  %v11025_v38 = vld [vmem:[%s17174_s5 + $0x178] sm:$0xf0] }
 0x976   : > { %v14560_v20 = vadd.f32 1.0, %v11337_v48  ;;  %v6206_v57 = vpop.f32.mrf.mxu2 }
 0x977   : > { %11340 = vpow2.f32 %v10486_v27  ;;  %v6063_v45 = vmax.f32 %v5948_v63, 0.0  ;;  %v6207_v13 = vadd.f32 %v14465_v9, %v6206_v57  ;;  %v10650_v63 = vor.u32 %v10999_v60, %v10647_v31 }
 0x978   : > { %11342 = vrcp.f32 %v14560_v20  ;;  %v6501_v42 = vpop.f32.mrf.mxu3  ;;  %v7028_v23 = vand.u32 2147483648, %v14560_v20  ;;  %v7026_v47 = vand.u32 2147483647, %v14560_v20  ;;  %vm7022_vm8 = vweird.f32 %v14560_v20 }
 0x979   : > { %v6349_v33 = vmax.f32 %v6207_v13, 0.0  ;;  %v6502_v35 = vadd.f32 %v6501_v42, %v14553_v4  ;;  %v6082_v40 = vpack.c.bf16 %v6063_v45, %v6062_v15  ;;  %8716 = vmatpush.bf16.msra.mxu3 %v10650_v63 }
 0x97a   : > { %v6608_v46 = vpop.f32.mrf.mxu0  ;;  %v14585_v50 = vor.u32 1.1754944e-38, %v7028_v23  ;;  %vm14601_vm11 = vcmp.eq.f32.partialorder %v7026_v47, 8.507059e+37 }
 0x97b   : > { %v11339_v49 = vpop.eup %11338  ;;  %v10485_v22 = vmul.f32 -1.442695, %v6502_v35  ;;  %v6609_v53 = vadd.f32 %v6608_v46, %v14544_v5  ;;  %6248 = vmatmul.bf16.gmra.mxu2 %v6082_v40  ;;  %v6377_v25 = vpack.c.bf16 %v6349_v33, %v6348_v59  ;;  %v10750_v40 = vor.u32 %v11025_v38, %v10749_v14 }
 0x97c   : > { %v14566_v16 = vadd.f32 1.0, %v11339_v49 }
 0x97d   : > { %v11341_v32 = vpop.eup %11340  ;;  %11344 = vpow2.f32 %v10485_v22  ;;  %v10488_v21 = vmul.f32 -1.442695, %v6609_v53  ;;  %6543 = vmatmul.bf16.gmra.mxu3 %v6377_v25  ;;  %6647 = vmatmul.bf16.gmra.mxu0 %v6377_v25 }
 0x97e   : > { %v14568_v7 = vpop.eup %11342  ;;  %11346 = vrcp.f32 %v14566_v16  ;;  %v14571_v39 = vadd.f32 1.0, %v11341_v32  ;;  %v6209_v0 = vpop.f32.mrf.mxu2  ;;  %v7013_v12 = vand.u32 2147483648, %v14566_v16  ;;  %vm7007_vm10 = vweird.f32 %v14566_v16  ;;  %9028 = vmatpush.bf16.msra.mxu2 %v10750_v40 }
 0x97f   : > { %v7018_v10 = vmul.f32 %v14568_v7, %v14560_v20  ;;  %11348 = vpow2.f32 %v10488_v21  ;;  %v14579_v18 = vadd.f32 %v14465_v9, %v6209_v0  ;;  %vm7023_vm9 = vweird.f32 %v14568_v7 }
 0x980   : > { %11350 = vrcp.f32 %v14571_v39  ;;  %v6504_v26 = vpop.f32.mrf.mxu3  ;;  %v7058_v62 = vand.u32 2147483648, %v14571_v39  ;;  %v14587_v17 = vor.u32 1.1754944e-38, %v7013_v12  ;;  %v7056_v52 = vand.u32 2147483647, %v14571_v39  ;;  %vm14640_vm15 = vmor %vm7022_vm8, %vm7023_vm9 }
 0x981   : > { %v7019_v11 = vsub.f32 1.0, %v7018_v10  ;;  %v6505_v34 = vadd.f32 %v6504_v26, %v14553_v4  ;;  %v6350_v28 = vmax.f32 %v14579_v18, 0.0  ;;  %vm7052_vm12 = vweird.f32 %v14571_v39  ;;  %v10653_v26 = vld [vmem:[%s17174_s5 + $0xb0] sm:$0xf] }
 0x982   : > { %v6610_v54 = vpop.f32.mrf.mxu0  ;;  %v14617_v2 = vor.u32 1.1754944e-38, %v7058_v62  ;;  %v7011_v58 = vand.u32 2147483647, %v14566_v16  ;;  %vm14632_vm14 = vcmp.eq.f32.partialorder %v7056_v52, 8.507059e+37 }
 0x983   : > { %v11345_v36 = vpop.eup %11344  ;;  %v10487_v24 = vmul.f32 -1.442695, %v6505_v34  ;;  %v6611_v29 = vadd.f32 %v6610_v54, %v14544_v5  ;;  %v7020_v19 = vmul.f32 %v14568_v7, %v7019_v11  ;;  %v11001_v11 = vld [vmem:[%s17174_s5 + $0xb8] sm:$0xf0] }
 0x984   : > { %v14590_v41 = vpop.eup %11346  ;;  %v14593_v43 = vadd.f32 1.0, %v11345_v36  ;;  %vm14650_vm0 = vcmp.eq.f32.partialorder %v7011_v58, 8.507059e+37 }
 0x985   : > { %v11349_v51 = vpop.eup %11348  ;;  %v7003_v6 = vmul.f32 %v14590_v41, %v14566_v16  ;;  %11352 = vpow2.f32 %v10487_v24  ;;  %v10490_v61 = vmul.f32 -1.442695, %v6611_v29  ;;  %vm7008_vm13 = vweird.f32 %v14590_v41 }
 0x986   : > { %v14611_v30 = vpop.eup %11350  ;;  %11354 = vrcp.f32 %v14593_v43  ;;  %v14615_v55 = vadd.f32 1.0, %v11349_v51  ;;  %v6211_v56 = vpop.f32.mrf.mxu2  ;;  %v7021_v37 = vadd.f32 %v14568_v7, %v7020_v19  ;;  %v7043_v59 = vand.u32 2147483648, %v14593_v43  ;;  %vm14679_vm3 = vmor %vm7007_vm10, %vm7008_vm13 }
 0x987   : > { %v7004_v44 = vsub.f32 1.0, %v7003_v6  ;;  %v7048_v8 = vmul.f32 %v14611_v30, %v14571_v39  ;;  %11356 = vpow2.f32 %v10490_v61  ;;  %v6212_v1 = vadd.f32 %v14465_v9, %v6211_v56 }
 0x988   : > { %11358 = vrcp.f32 %v14615_v55  ;;  %v6506_v48 = vpop.f32.mrf.mxu3  ;;  %v7025_v35 = vsel %vm14640_vm15, %v14568_v7, %v7021_v37  ;;  %v7041_v46 = vand.u32 2147483647, %v14593_v43  ;;  %vm7037_vm1 = vweird.f32 %v14593_v43 }
 0x989   : > { %v7005_v15 = vmul.f32 %v14590_v41, %v7004_v44  ;;  %v7049_v45 = vsub.f32 1.0, %v7048_v8  ;;  %v6351_v13 = vmax.f32 %v6212_v1, 0.0  ;;  %v6507_v42 = vadd.f32 %v6506_v48, %v14553_v4 }
 0x98a   : > { %v6613_v33 = vpop.f32.mrf.mxu0  ;;  %vm7053_vm2 = vweird.f32 %v14611_v30  ;;  %v7030_v36 = vsel %vm14601_vm11, %v14585_v50, %v7025_v35  ;;  %v7044_v24 = vor.u32 1.1754944e-38, %v7043_v59  ;;  %vm14695_vm5 = vcmp.eq.f32.partialorder %v7041_v46, 8.507059e+37  ;;  %v10743_v50 = vld [vmem:[%s17174_s5 + $0x174] sm:$0xf0] }
 0x98b   : > { %v11353_v49 = vpop.eup %11352  ;;  %v7050_v22 = vmul.f32 %v14611_v30, %v7049_v45  ;;  %v10489_v53 = vmul.f32 -1.442695, %v6507_v42  ;;  %v6614_v25 = vadd.f32 %v6613_v33, %v14544_v5  ;;  %v6378_v32 = vpack.c.bf16 %v6351_v13, %v6350_v28  ;;  %vm7054_vm4 = vmor %vm7052_vm12, %vm7053_vm2  ;;  %v11023_v28 = vld [vmem:[%s17174_s5 + $0x16c] sm:$0xf] }
 0x98c   : > { %v14657_v21 = vpop.eup %11354  ;;  %v14660_v7 = vadd.f32 1.0, %v11353_v49  ;;  %v7006_v0 = vadd.f32 %v14590_v41, %v7005_v15  ;;  %v10654_v6 = vor.u32 %v11001_v11, %v10653_v26  ;;  %vm7082_vm8 = vweird.f32 %v14615_v55 }
 0x98d   : > { %v11357_v10 = vpop.eup %11356  ;;  %v7033_v23 = vmul.f32 %v14657_v21, %v14593_v43  ;;  %11360 = vpow2.f32 %v10489_v53  ;;  %v10492_v12 = vmul.f32 -1.442695, %v6614_v25  ;;  %6548 = vmatmul.bf16.gmra.mxu3 %v6378_v32  ;;  %6652 = vmatmul.bf16.gmra.mxu0 %v6378_v32  ;;  %v7051_v18 = vadd.f32 %v14611_v30, %v7050_v22 }
 0x98e   : > { %v14673_v34 = vpop.eup %11358  ;;  %11362 = vrcp.f32 %v14660_v7  ;;  %v14684_v62 = vadd.f32 1.0, %v11357_v10  ;;  %v6214_v54 = vpop.f32.mrf.mxu2  ;;  %v7010_v39 = vsel %vm14679_vm3, %v14590_v41, %v7006_v0  ;;  %vm7038_vm6 = vweird.f32 %v14657_v21  ;;  %8924 = vmatpush.bf16.msra.mxu1 %v10654_v6 }
 0x98f   : > { %v7034_v29 = vsub.f32 1.0, %v7033_v23  ;;  %v7078_v19 = vmul.f32 %v14673_v34, %v14615_v55  ;;  %11364 = vpow2.f32 %v10492_v12  ;;  %v7055_v51 = vsel %vm7054_vm4, %v14611_v30, %v7051_v18  ;;  %vm7039_vm7 = vmor %vm7037_vm1, %vm7038_vm6 }
 0x990   : > { %11366 = vrcp.f32 %v14684_v62  ;;  %v6509_v52 = vpop.f32.mrf.mxu3  ;;  %v7060_v60 = vsel %vm14632_vm14, %v14617_v2, %v7055_v51  ;;  %v6215_v31 = vadd.f32 %v14465_v9, %v6214_v54  ;;  %v10746_v30 = vor.u32 %v11023_v28, %v10743_v50 }
 0x991   : > { %v7035_v61 = vmul.f32 %v14657_v21, %v7034_v29  ;;  %v6510_v3 = vadd.f32 %v6509_v52, %v14553_v4  ;;  %v14717_v58 = vpack.c.bf16 %v7060_v60, %v7030_v36  ;;  %v7079_v44 = vsub.f32 1.0, %v7078_v19 }
 0x992   : > { %v6615_v56 = vpop.f32.mrf.mxu0  ;;  %v7015_v14 = vsel %vm14650_vm0, %v14587_v17, %v7010_v39  ;;  %8820 = vmatpush.bf16.msra.mxu0 %v10746_v30  ;;  %v7086_v17 = vand.u32 2147483647, %v14615_v55  ;;  %vm7083_vm9 = vweird.f32 %v14673_v34  ;;  %v7088_v59 = vand.u32 2147483648, %v14615_v55 }
 0x993   : > { %17427 = vst [vmem:[#allocation14_spill] sm:$0xff] %v14717_v58  ;;  %v11361_v41 = vpop.eup %11360  ;;  %v10491_v8 = vmul.f32 -1.442695, %v6510_v3  ;;  %v6616_v1 = vadd.f32 %v6615_v56, %v14544_v5  ;;  %v7036_v2 = vadd.f32 %v14657_v21, %v7035_v61  ;;  %8620 = vmatmul.bf16.vlgmr.msrb.gmra.mxu2 %v14717_v58  ;;  %v7080_v37 = vmul.f32 %v14673_v34, %v7079_v44  ;;  %vm14754_vm10 = vmor %vm7082_vm8, %vm7083_vm9 }
 0x994   : > { %v14724_v38 = vpop.eup %11362  ;;  %v14726_v48 = vadd.f32 1.0, %v11361_v41  ;;  %v6352_v20 = vmax.f32 %v6215_v31, 0.0  ;;  %vm14758_vm11 = vcmp.eq.f32.partialorder %v7086_v17, 8.507059e+37  ;;  %v7089_v0 = vor.u32 1.1754944e-38, %v7088_v59 }
 0x995   : > { %v11365_v27 = vpop.eup %11364  ;;  %11368 = vpow2.f32 %v10491_v8  ;;  %v10494_v63 = vmul.f32 -1.442695, %v6616_v1  ;;  %v7040_v57 = vsel %vm7039_vm7, %v14657_v21, %v7036_v2  ;;  %v7081_v42 = vadd.f32 %v14673_v34, %v7080_v37 }
 0x996   : > { %v14738_v15 = vpop.eup %11366  ;;  %v14740_v45 = vadd.f32 1.0, %v11365_v27  ;;  %v6216_v43 = vpop.f32.mrf.mxu2  ;;  %v7045_v13 = vsel %vm14695_vm5, %v7044_v24, %v7040_v57  ;;  %v7063_v33 = vmul.f32 %v14724_v38, %v14660_v7  ;;  %v7116_v23 = vand.u32 2147483647, %v14684_v62 }
 0x997   : > { %11370 = vpow2.f32 %v10494_v63  ;;  %v6217_v35 = vadd.f32 %v14465_v9, %v6216_v43  ;;  %v14749_v40 = vpack.c.bf16 %v7045_v13, %v7015_v14  ;;  %v7108_v53 = vmul.f32 %v14738_v15, %v14684_v62 }
 0x998   : > { %11372 = vrcp.f32 %v14726_v48  ;;  %v6511_v46 = vpop.f32.mrf.mxu3  ;;  %v7085_v55 = vsel %vm14754_vm10, %v14673_v34, %v7081_v42  ;;  %v7118_v12 = vand.u32 2147483648, %v14684_v62  ;;  %v7064_v54 = vsub.f32 1.0, %v7063_v33 }
 0x999   : > { %17428 = vst [vmem:[#allocation7_spill] sm:$0xff] %v14749_v40  ;;  %11374 = vrcp.f32 %v14740_v45  ;;  %v6353_v25 = vmax.f32 %v6217_v35, 0.0  ;;  %v6512_v32 = vadd.f32 %v6511_v46, %v14553_v4  ;;  %8516 = vmatmul.bf16.vlgmr.msrb.gmra.mxu1 %v14749_v40  ;;  %v7109_v10 = vsub.f32 1.0, %v7108_v53 }
 0x99a   : > { %v6618_v21 = vpop.f32.mrf.mxu0  ;;  %vm7112_vm12 = vweird.f32 %v14684_v62  ;;  %vm7113_vm13 = vweird.f32 %v14738_v15  ;;  %v7090_v19 = vsel %vm14758_vm11, %v7089_v0, %v7085_v55  ;;  %v7065_v16 = vmul.f32 %v14724_v38, %v7064_v54 }
 0x99b   : > { %v11369_v18 = vpop.eup %11368  ;;  %v10493_v26 = vmul.f32 -1.442695, %v6512_v32  ;;  %v6619_v11 = vadd.f32 %v6618_v21, %v14544_v5  ;;  %v6379_v47 = vpack.c.bf16 %v6353_v25, %v6352_v20  ;;  %v7110_v24 = vmul.f32 %v14738_v15, %v7109_v10  ;;  %vm7114_vm15 = vmor %vm7112_vm12, %vm7113_vm13 }
 0x99c   : > { %v14773_v36 = vadd.f32 1.0, %v11369_v18  ;;  %vm7117_vm14 = vcmp.eq.f32.partialorder %v7116_v23, 8.507059e+37  ;;  %v7119_v39 = vor.u32 1.1754944e-38, %v7118_v12  ;;  %v7066_v3 = vadd.f32 %v14724_v38, %v7065_v16 }
 0x99d   : > { %v11371_v34 = vpop.eup %11370  ;;  %11376 = vpow2.f32 %v10493_v26  ;;  %v10496_v29 = vmul.f32 -1.442695, %v6619_v11  ;;  %6553 = vmatmul.bf16.gmra.mxu3 %v6379_v47  ;;  %6657 = vmatmul.bf16.gmra.mxu0 %v6379_v47  ;;  %v7111_v51 = vadd.f32 %v14738_v15, %v7110_v24  ;;  %vm7068_vm0 = vweird.f32 %v14724_v38 }
 0x99e   : > { %v14781_v28 = vpop.eup %11372  ;;  %v14783_v50 = vadd.f32 1.0, %v11371_v34  ;;  %v6219_v52 = vpop.f32.mrf.mxu2  ;;  %v7071_v56 = vand.u32 2147483647, %v14660_v7  ;;  %v7073_v30 = vand.u32 2147483648, %v14660_v7  ;;  %vm7067_vm1 = vweird.f32 %v14660_v7 }
 0x99f   : > { %v14786_v6 = vpop.eup %11374  ;;  %11378 = vpow2.f32 %v10496_v29  ;;  %v14789_v61 = vadd.f32 %v14465_v9, %v6219_v52  ;;  %v7115_v31 = vsel %vm7114_vm15, %v14738_v15, %v7111_v51  ;;  %vm14809_vm2 = vmor %vm7067_vm1, %vm7068_vm0  ;;  %v7093_v37 = vmul.f32 %v14781_v28, %v14726_v48 }
 0x9a0   : > { %11380 = vrcp.f32 %v14773_v36  ;;  %v6514_v60 = vpop.f32.mrf.mxu3  ;;  %v7120_v41 = vsel %vm7117_vm14, %v7119_v39, %v7115_v31  ;;  %v7138_v62 = vmul.f32 %v14786_v6, %v14740_v45  ;;  %v7070_v7 = vsel %vm14809_vm2, %v14724_v38, %v7066_v3 }
 0x9a1   : > { %11382 = vrcp.f32 %v14783_v50  ;;  %v6515_v44 = vadd.f32 %v6514_v60, %v14553_v4  ;;  %v6354_v8 = vmax.f32 %v14789_v61, 0.0  ;;  %v14807_v14 = vpack.c.bf16 %v7120_v41, %v7090_v19 }
 0x9a2   : > { %v6620_v1 = vpop.f32.mrf.mxu0  ;;  %vm14819_vm3 = vcmp.eq.f32.partialorder %v7071_v56, 8.507059e+37  ;;  %v7074_v43 = vor.u32 1.1754944e-38, %v7073_v30  ;;  %v7094_v13 = vsub.f32 1.0, %v7093_v37  ;;  %v7101_v42 = vand.u32 2147483647, %v14726_v48 }
 0x9a3   : > { %17433 = vst [vmem:[#allocation6_spill] sm:$0xff] %v14807_v14  ;;  %v11377_v17 = vpop.eup %11376  ;;  %v10495_v27 = vmul.f32 -1.442695, %v6515_v44  ;;  %v6621_v63 = vadd.f32 %v6620_v1, %v14544_v5  ;;  %8625 = vmatmul.bf16.gmra.mxu2 %v14807_v14  ;;  %vm7097_vm4 = vweird.f32 %v14726_v48  ;;  %v7103_v35 = vand.u32 2147483648, %v14726_v48 }
 0x9a4   : > { %v14823_v15 = vadd.f32 1.0, %v11377_v17  ;;  %v7095_v49 = vmul.f32 %v14781_v28, %v7094_v13  ;;  %vm7098_vm5 = vweird.f32 %v14781_v28  ;;  %v7075_v25 = vsel %vm14819_vm3, %v7074_v43, %v7070_v7  ;;  %v14893_v17 = vld [vmem:[%s17176_s7 + $0xb] ss:$0 sm:$0xff] }
 0x9a5   : > { %v11379_v59 = vpop.eup %11378  ;;  %11384 = vpow2.f32 %v10495_v27  ;;  %v10498_v33 = vmul.f32 -1.442695, %v6621_v63  ;;  %v7139_v32 = vsub.f32 1.0, %v7138_v62  ;;  %vm7102_vm6 = vcmp.eq.f32.partialorder %v7101_v42, 8.507059e+37  ;;  %vm7099_vm7 = vmor %vm7097_vm4, %vm7098_vm5 }
 0x9a6   : > { %v14829_v38 = vpop.eup %11380  ;;  %11386 = vrcp.f32 %v14823_v15  ;;  %v14832_v20 = vadd.f32 1.0, %v11379_v59  ;;  %v6221_v46 = vpop.f32.mrf.mxu2  ;;  %v7096_v21 = vadd.f32 %v14781_v28, %v7095_v49  ;;  %v7104_v0 = vor.u32 1.1754944e-38, %v7103_v35 }
 0x9a7   : > { %v14836_v22 = vpop.eup %11382  ;;  %11388 = vpow2.f32 %v10498_v33  ;;  %v6222_v53 = vadd.f32 %v14465_v9, %v6221_v46  ;;  %v7140_v12 = vmul.f32 %v14786_v6, %v7139_v32  ;;  %vm7143_vm8 = vweird.f32 %v14786_v6 }
 0x9a8   : > { %11390 = vrcp.f32 %v14832_v20  ;;  %v6516_v55 = vpop.f32.mrf.mxu3  ;;  %v7100_v9 = vsel %vm7099_vm7, %v14781_v28, %v7096_v21  ;;  %v7146_v26 = vand.u32 2147483647, %v14740_v45  ;;  %v7148_v11 = vand.u32 2147483648, %v14740_v45 }
 0x9a9   : > { %v6355_v10 = vmax.f32 %v6222_v53, 0.0  ;;  %v6517_v23 = vadd.f32 %v6516_v55, %v14553_v4  ;;  %v7168_v47 = vmul.f32 %v14836_v22, %v14783_v50  ;;  %v7105_v34 = vsel %vm7102_vm6, %v7104_v0, %v7100_v9 }
 0x9aa   : > { %v6623_v18 = vpop.f32.mrf.mxu0  ;;  %v7123_v16 = vmul.f32 %v14829_v38, %v14773_v36  ;;  %v14858_v28 = vpack.c.bf16 %v7105_v34, %v7075_v25  ;;  %v7141_v52 = vadd.f32 %v14786_v6, %v7140_v12  ;;  %vm7142_vm9 = vweird.f32 %v14740_v45 }
 0x9ab   : > { %v11385_v54 = vpop.eup %11384  ;;  %v10497_v24 = vmul.f32 -1.442695, %v6517_v23  ;;  %v6624_v48 = vadd.f32 %v6623_v18, %v14544_v5  ;;  %v6380_v29 = vpack.c.bf16 %v6355_v10, %v6354_v8  ;;  %v7169_v3 = vsub.f32 1.0, %v7168_v47  ;;  %vm14871_vm10 = vmor %vm7142_vm9, %vm7143_vm8  ;;  %v10996_v10 = vld [vmem:[%s17174_s5 + $0x94] sm:$0xf] }
 0x9ac   : > { %v14854_v19 = vpop.eup %11386  ;;  %17438 = vst [vmem:[#allocation42_spill] sm:$0xff] %v14858_v28  ;;  %v14861_v39 = vadd.f32 1.0, %v11385_v54  ;;  %8521 = vmatmul.bf16.gmra.mxu1 %v14858_v28  ;;  %vm7172_vm11 = vweird.f32 %v14783_v50  ;;  %v7145_v45 = vsel %vm14871_vm10, %v14786_v6, %v7141_v52  ;;  %vm7147_vm12 = vcmp.eq.f32.partialorder %v7146_v26, 8.507059e+37  ;;  %v10635_v23 = vld [vmem:[%s17174_s5 + $0x9c] sm:$0xf0] }
 0x9ad   : > { %v11389_v51 = vpop.eup %11388  ;;  %v10500_v61 = vmul.f32 -1.442695, %v6624_v48  ;;  %6558 = vmatmul.bf16.gmra.mxu3 %v6380_v29  ;;  %6662 = vmatmul.bf16.gmra.mxu0 %v6380_v29  ;;  %11392 = vpow2.f32 %v10497_v24  ;;  %v7149_v44 = vor.u32 1.1754944e-38, %v7148_v11  ;;  %v7170_v62 = vmul.f32 %v14836_v22, %v7169_v3  ;;  %v10737_v26 = vld [vmem:[%s17174_s5 + $0x158] sm:$0xf] }
 0x9ae   : > { %v14864_v60 = vpop.eup %11390  ;;  %v14866_v31 = vadd.f32 1.0, %v11389_v51  ;;  %v6224_v56 = vpop.f32.mrf.mxu2  ;;  %vm7173_vm13 = vweird.f32 %v14836_v22  ;;  %v7176_v8 = vand.u32 2147483647, %v14783_v50  ;;  %v7178_v1 = vand.u32 2147483648, %v14783_v50  ;;  %v11022_v11 = vld [vmem:[%s17174_s5 + $0x160] sm:$0xf0] }
 0x9af   : > { %11394 = vpow2.f32 %v10500_v61  ;;  %v14885_v2 = vmul.f32 %v14864_v60, %v14832_v20  ;;  %v7124_v6 = vsub.f32 1.0, %v7123_v16  ;;  %v6225_v27 = vadd.f32 %v14893_v17, %v6224_v56  ;;  %vm7174_vm14 = vmor %vm7172_vm11, %vm7173_vm13  ;;  %v10641_v29 = vld [vmem:[%s17174_s5 + $0x98] sm:$0xf]  ;;  %v10998_v61 = vld [vmem:[%s17174_s5 + $0xa0] sm:$0xf0] }
 0x9b0   : > { %v6519_v41 = vpop.f32.mrf.mxu3  ;;  %11396 = vrcp.f32 %v14861_v39  ;;  %v7150_v7 = vsel %vm7147_vm12, %v7149_v44, %v7145_v45  ;;  %v7171_v57 = vadd.f32 %v14836_v22, %v7170_v62  ;;  %v7179_v42 = vor.u32 1.1754944e-38, %v7178_v1  ;;  %v11020_v3 = vld [vmem:[%s17174_s5 + $0x154] sm:$0xf] }
 0x9b1   : > { %v6520_v37 = vadd.f32 %v6519_v41, %v14553_v4  ;;  %11398 = vrcp.f32 %v14866_v31  ;;  %v7125_v59 = vmul.f32 %v14829_v38, %v7124_v6  ;;  %vm7177_vm15 = vcmp.eq.f32.partialorder %v7176_v8, 8.507059e+37 }
 0x9b2   : > { %v6625_v63 = vpop.f32.mrf.mxu0  ;;  %v7175_v35 = vsel %vm7174_vm14, %v14836_v22, %v7171_v57  ;;  %v7133_v46 = vand.u32 2147483648, %v14773_v36  ;;  %v7153_v49 = vmul.f32 %v14854_v19, %v14823_v15  ;;  %vm7128_vm0 = vweird.f32 %v14829_v38 }
 0x9b3   : > { %v10499_v43 = vmul.f32 -1.442695, %v6520_v37  ;;  %v6626_v13 = vadd.f32 %v6625_v63, %v14544_v5  ;;  %v11393_v33 = vpop.eup %11392  ;;  %v7180_v32 = vsel %vm7177_vm15, %v7179_v42, %v7175_v35  ;;  %v6356_v55 = vmax.f32 %v6225_v27, 0.0 }
 0x9b4   : > { %v14910_v21 = vpack.c.bf16 %v7180_v32, %v7150_v7  ;;  %v7126_v22 = vadd.f32 %v14829_v38, %v7125_v59  ;;  %vm7127_vm1 = vweird.f32 %v14773_v36  ;;  %v7131_v18 = vand.u32 2147483647, %v14773_v36 }
 0x9b5   : > { %v11395_v53 = vpop.eup %11394  ;;  %11400 = vpow2.f32 %v10499_v43  ;;  %v10502_v25 = vmul.f32 -1.442695, %v6626_v13  ;;  %v14932_v54 = vadd.f32 1.0, %v11393_v33  ;;  %vm14938_vm2 = vmor %vm7127_vm1, %vm7128_vm0  ;;  %v7134_v34 = vor.u32 1.1754944e-38, %v7133_v46 }
 0x9b6   : > { %v14908_v50 = vadd.f32 1.0, %v11395_v53  ;;  %17441 = vst [vmem:[#allocation44_spill] sm:$0xff] %v14910_v21  ;;  %v6226_v0 = vpop.f32.mrf.mxu2  ;;  %v14919_v12 = vpop.eup %11396  ;;  %8630 = vmatmul.bf16.gmra.mxu2 %v14910_v21  ;;  %v7154_v48 = vsub.f32 1.0, %v7153_v49  ;;  %v7130_v51 = vsel %vm14938_vm2, %v14829_v38, %v7126_v22  ;;  %vm7158_vm3 = vweird.f32 %v14854_v19  ;;  %v10731_v38 = vld [vmem:[%s17174_s5 + $0x15c] sm:$0xf0] }
 0x9b7   : > { %11402 = vpow2.f32 %v10502_v25  ;;  %v6227_v9 = vadd.f32 %v14893_v17, %v6226_v0  ;;  %v14930_v47 = vpop.eup %11398  ;;  %v7161_v30 = vand.u32 2147483647, %v14823_v15  ;;  %v7163_v45 = vand.u32 2147483648, %v14823_v15 }
 0x9b8   : > { %11404 = vrcp.f32 %v14908_v50  ;;  %v6521_v24 = vpop.f32.mrf.mxu3  ;;  %v7155_v56 = vmul.f32 %v14854_v19, %v7154_v48  ;;  %v10638_v44 = vor.u32 %v10996_v10, %v10635_v23  ;;  %v10738_v37 = vor.u32 %v11022_v11, %v10737_v26 }
 0x9b9   : > { %v6357_v16 = vmax.f32 %v6227_v9, 0.0  ;;  %v6522_v52 = vadd.f32 %v6521_v24, %v14553_v4  ;;  %vm7157_vm4 = vweird.f32 %v14823_v15  ;;  %v7164_v7 = vor.u32 1.1754944e-38, %v7163_v45 }
 0x9ba   : > { %v6628_v41 = vpop.f32.mrf.mxu0  ;;  %v7156_v63 = vadd.f32 %v14854_v19, %v7155_v56  ;;  %8717 = vmatpush.bf16.msra.mxu3 %v10638_v44  ;;  %vm14969_vm5 = vmor %vm7157_vm4, %vm7158_vm3  ;;  %9029 = vmatpush.bf16.msra.mxu2 %v10738_v37  ;;  %v10642_v42 = vor.u32 %v10998_v61, %v10641_v29  ;;  %v10734_v59 = vor.u32 %v11020_v3, %v10731_v38  ;;  %vm7132_vm6 = vcmp.eq.f32.partialorder %v7131_v18, 8.507059e+37 }
 0x9bb   : > { %v11401_v62 = vpop.eup %11400  ;;  %v10501_v8 = vmul.f32 -1.442695, %v6522_v52  ;;  %v6629_v1 = vadd.f32 %v6628_v41, %v14544_v5  ;;  %v6381_v6 = vpack.c.bf16 %v6357_v16, %v6356_v55  ;;  %vm7162_vm7 = vcmp.eq.f32.partialorder %v7161_v30, 8.507059e+37 }
 0x9bc   : > { %v14963_v27 = vadd.f32 1.0, %v11401_v62  ;;  %v7160_v15 = vsel %vm14969_vm5, %v14854_v19, %v7156_v63  ;;  %v7199_v46 = vsub.f32 1.0, %v14885_v2  ;;  %v7135_v53 = vsel %vm7132_vm6, %v7134_v34, %v7130_v51  ;;  %8925 = vmatpush.bf16.msra.mxu1 %v10642_v42  ;;  %8821 = vmatpush.bf16.msra.mxu0 %v10734_v59 }
 0x9bd   : > { %v11403_v57 = vpop.eup %11402  ;;  %11406 = vpow2.f32 %v10501_v8  ;;  %v10504_v13 = vmul.f32 -1.442695, %v6629_v1  ;;  %6563 = vmatmul.bf16.gmra.mxu3 %v6381_v6  ;;  %6667 = vmatmul.bf16.gmra.mxu0 %v6381_v6  ;;  %v7165_v25 = vsel %vm7162_vm7, %v7164_v7, %v7160_v15  ;;  %v7183_v19 = vmul.f32 %v14919_v12, %v14861_v39 }
 0x9be   : > { %v14973_v33 = vpop.eup %11404  ;;  %v6229_v35 = vpop.f32.mrf.mxu2  ;;  %11408 = vrcp.f32 %v14932_v54  ;;  %v14980_v49 = vadd.f32 1.0, %v11403_v57  ;;  %v14982_v32 = vpack.c.bf16 %v7165_v25, %v7135_v53  ;;  %v7200_v0 = vmul.f32 %v14864_v60, %v7199_v46 }
 0x9bf   : > { %11410 = vpow2.f32 %v10504_v13  ;;  %v14991_v22 = vmul.f32 %v14973_v33, %v14908_v50  ;;  %vm7203_vm8 = vweird.f32 %v14864_v60  ;;  %v7228_v9 = vmul.f32 %v14930_v47, %v14866_v31 }
 0x9c0   : > { %17446 = vst [vmem:[#allocation43_spill] sm:$0xff] %v14982_v32  ;;  %v6524_v55 = vpop.f32.mrf.mxu3  ;;  %11412 = vrcp.f32 %v14963_v27  ;;  %8526 = vmatmul.bf16.gmra.mxu1 %v14982_v32  ;;  %v7201_v23 = vadd.f32 %v14864_v60, %v7200_v0  ;;  %v7208_v24 = vand.u32 2147483648, %v14832_v20  ;;  %vm7202_vm9 = vweird.f32 %v14832_v20 }
 0x9c1   : > { %v6525_v2 = vadd.f32 %v6524_v55, %v14553_v4  ;;  %11414 = vrcp.f32 %v14980_v49  ;;  %v7206_v34 = vand.u32 2147483647, %v14832_v20  ;;  %v7229_v48 = vsub.f32 1.0, %v7228_v9  ;;  %vm15010_vm10 = vmor %vm7202_vm9, %vm7203_vm8 }
 0x9c2   : > { %v6630_v10 = vpop.f32.mrf.mxu0  ;;  %v6230_v16 = vadd.f32 %v14893_v17, %v6229_v35  ;;  %vm7232_vm11 = vweird.f32 %v14866_v31  ;;  %v7205_v20 = vsel %vm15010_vm10, %v14864_v60, %v7201_v23  ;;  %vm7233_vm12 = vweird.f32 %v14930_v47 }
 0x9c3   : > { %v11407_v18 = vpop.eup %11406  ;;  %v10503_v26 = vmul.f32 -1.442695, %v6525_v2  ;;  %v6631_v11 = vadd.f32 %v6630_v10, %v14544_v5  ;;  %v7230_v3 = vmul.f32 %v14930_v47, %v7229_v48  ;;  %v7236_v56 = vand.u32 2147483647, %v14866_v31  ;;  %vm7234_vm14 = vmor %vm7232_vm11, %vm7233_vm12 }
 0x9c4   : > { %v15001_v36 = vadd.f32 1.0, %v11407_v18  ;;  %v15005_v29 = vpop.eup %11408  ;;  %v7209_v44 = vor.u32 1.1754944e-38, %v7208_v24  ;;  %v7238_v41 = vand.u32 2147483648, %v14866_v31  ;;  %vm7207_vm13 = vcmp.eq.f32.partialorder %v7206_v34, 8.507059e+37 }
 0x9c5   : > { %11416 = vpow2.f32 %v10503_v26  ;;  %v10506_v52 = vmul.f32 -1.442695, %v6631_v11  ;;  %v11411_v61 = vpop.eup %11410  ;;  %v7231_v60 = vadd.f32 %v14930_v47, %v7230_v3  ;;  %v7184_v8 = vsub.f32 1.0, %v7183_v19 }
 0x9c6   : > { %v6231_v30 = vpop.f32.mrf.mxu2  ;;  %v15021_v45 = vpop.eup %11412  ;;  %11418 = vrcp.f32 %v15001_v36  ;;  %v15029_v37 = vadd.f32 1.0, %v11411_v61  ;;  %v7210_v6 = vsel %vm7207_vm13, %v7209_v44, %v7205_v20  ;;  %v7239_v63 = vor.u32 1.1754944e-38, %v7238_v41 }
 0x9c7   : > { %v6232_v38 = vadd.f32 %v14893_v17, %v6231_v30  ;;  %11420 = vpow2.f32 %v10506_v52  ;;  %v15027_v1 = vpop.eup %11414  ;;  %v7235_v57 = vsel %vm7234_vm14, %v14930_v47, %v7231_v60  ;;  %vm7237_vm15 = vcmp.eq.f32.partialorder %v7236_v56, 8.507059e+37 }
 0x9c8   : > { %v6526_v62 = vpop.f32.mrf.mxu3  ;;  %v7185_v13 = vmul.f32 %v14919_v12, %v7184_v8  ;;  %v7240_v15 = vsel %vm7237_vm15, %v7239_v63, %v7235_v57  ;;  %vm7188_vm0 = vweird.f32 %v14919_v12  ;;  %v7213_v46 = vmul.f32 %v15005_v29, %v14932_v54 }
 0x9c9   : > { %v6527_v7 = vadd.f32 %v6526_v62, %v14553_v4  ;;  %v6359_v43 = vmax.f32 %v6232_v38, 0.0  ;;  %v15041_v31 = vpack.c.bf16 %v7240_v15, %v7210_v6  ;;  %v7191_v25 = vand.u32 2147483647, %v14861_v39 }
 0x9ca   : > { %v6633_v42 = vpop.f32.mrf.mxu0  ;;  %v7186_v53 = vadd.f32 %v14919_v12, %v7185_v13  ;;  %v7193_v47 = vand.u32 2147483648, %v14861_v39  ;;  %vm7187_vm1 = vweird.f32 %v14861_v39  ;;  %v7214_v19 = vsub.f32 1.0, %v7213_v46 }
 0x9cb   : > { %v11417_v59 = vpop.eup %11416  ;;  %v10505_v35 = vmul.f32 -1.442695, %v6527_v7  ;;  %17449 = vst [vmem:[#allocation18_spill] sm:$0xff] %v15041_v31  ;;  %v6358_v10 = vmax.f32 %v6230_v16, 0.0  ;;  %8635 = vmatmul.bf16.gmra.mxu2 %v15041_v31  ;;  %vm15055_vm2 = vmor %vm7187_vm1, %vm7188_vm0  ;;  %vm7217_vm3 = vweird.f32 %v14932_v54  ;;  %vm7218_vm4 = vweird.f32 %v15005_v29 }
 0x9cc   : > { %v15046_v55 = vpop.eup %11418  ;;  %v15048_v0 = vadd.f32 1.0, %v11417_v59  ;;  %v7190_v39 = vsel %vm15055_vm2, %v14919_v12, %v7186_v53  ;;  %v7215_v18 = vmul.f32 %v15005_v29, %v7214_v19  ;;  %v7221_v26 = vand.u32 2147483647, %v14932_v54  ;;  %vm7219_vm6 = vmor %vm7217_vm3, %vm7218_vm4 }
 0x9cd   : > { %11422 = vpow2.f32 %v10505_v35  ;;  %v11421_v2 = vpop.eup %11420  ;;  %v7223_v11 = vand.u32 2147483648, %v14932_v54  ;;  %vm7192_vm5 = vcmp.eq.f32.partialorder %v7191_v25, 8.507059e+37  ;;  %v7194_v24 = vor.u32 1.1754944e-38, %v7193_v47 }
 0x9ce   : > { %11424 = vrcp.f32 %v15029_v37  ;;  %v6234_v9 = vpop.f32.mrf.mxu2  ;;  %v6634_v34 = vadd.f32 %v6633_v42, %v14544_v5  ;;  %v6382_v48 = vpack.c.bf16 %v6359_v43, %v6358_v10  ;;  %v15069_v52 = vadd.f32 1.0, %v11421_v2 }
 0x9cf   : > { %11426 = vrcp.f32 %v15048_v0  ;;  %v7216_v51 = vadd.f32 %v15005_v29, %v7215_v18  ;;  %v7195_v61 = vsel %vm7192_vm5, %v7194_v24, %v7190_v39  ;;  %v7224_v20 = vor.u32 1.1754944e-38, %v7223_v11 }
 0x9d0   : > { %v6529_v16 = vpop.f32.mrf.mxu3  ;;  %v10508_v3 = vmul.f32 -1.442695, %v6634_v34  ;;  %6568 = vmatmul.bf16.gmra.mxu3 %v6382_v48  ;;  %6672 = vmatmul.bf16.gmra.mxu0 %v6382_v48  ;;  %v7259_v30 = vsub.f32 1.0, %v14991_v22  ;;  %vm7222_vm7 = vcmp.eq.f32.partialorder %v7221_v26, 8.507059e+37  ;;  %v15083_v54 = vadd.f32 %v14893_v17, %v6234_v9 }
 0x9d1   : > { %v6530_v12 = vadd.f32 %v6529_v16, %v14553_v4  ;;  %v7220_v41 = vsel %vm7219_vm6, %v15005_v29, %v7216_v51  ;;  %vm7263_vm8 = vweird.f32 %v14973_v33  ;;  %v7243_v29 = vmul.f32 %v15021_v45, %v14963_v27 }
 0x9d2   : > { %v6635_v56 = vpop.f32.mrf.mxu0  ;;  %v7225_v8 = vsel %vm7222_vm7, %v7224_v20, %v7220_v41  ;;  %11428 = vpow2.f32 %v10508_v3  ;;  %v7260_v6 = vmul.f32 %v14973_v33, %v7259_v30  ;;  %v7268_v43 = vand.u32 2147483648, %v14908_v50 }
 0x9d3   : > { %v11423_v44 = vpop.eup %11422  ;;  %v10507_v38 = vmul.f32 -1.442695, %v6530_v12  ;;  %v6636_v60 = vadd.f32 %v6635_v56, %v14544_v5  ;;  %v15088_v7 = vpack.c.bf16 %v7225_v8, %v7195_v61  ;;  %vm7262_vm9 = vweird.f32 %v14908_v50  ;;  %v10993_v8 = vld [vmem:[%s17174_s5 + $0x7c] sm:$0xf] }
 0x9d4   : > { %v15080_v62 = vpop.eup %11424  ;;  %v15086_v63 = vadd.f32 1.0, %v11423_v44  ;;  %v7261_v57 = vadd.f32 %v14973_v33, %v7260_v6  ;;  %v7266_v59 = vand.u32 2147483647, %v14908_v50  ;;  %v7288_v15 = vmul.f32 %v15027_v1, %v14980_v49  ;;  %vm15110_vm10 = vmor %vm7262_vm9, %vm7263_vm8 }
 0x9d5   : > { %17452 = vst [vmem:[#allocation10_spill] sm:$0xff] %v15088_v7  ;;  %v10510_v22 = vmul.f32 -1.442695, %v6636_v60  ;;  %11430 = vpow2.f32 %v10507_v38  ;;  %v15095_v42 = vpop.eup %11426  ;;  %8531 = vmatmul.bf16.gmra.mxu1 %v15088_v7  ;;  %v15105_v35 = vmul.f32 %v15080_v62, %v15029_v37  ;;  %v6360_v46 = vmax.f32 %v15083_v54, 0.0 }
 0x9d6   : > { %v6236_v13 = vpop.f32.mrf.mxu2  ;;  %11432 = vrcp.f32 %v15069_v52  ;;  %v7265_v50 = vsel %vm15110_vm10, %v14973_v33, %v7261_v57  ;;  %v7289_v47 = vsub.f32 1.0, %v7288_v15  ;;  %v7296_v19 = vand.u32 2147483647, %v14980_v49  ;;  %v10623_v57 = vld [vmem:[%s17174_s5 + $0x84] sm:$0xf0] }
 0x9d7   : > { %11434 = vpow2.f32 %v10510_v22  ;;  %v7269_v10 = vor.u32 1.1754944e-38, %v7268_v43  ;;  %v7298_v23 = vand.u32 2147483648, %v14980_v49  ;;  %v6237_v9 = vadd.f32 %v14893_v17, %v6236_v13 }
 0x9d8   : > { %v6531_v25 = vpop.f32.mrf.mxu3  ;;  %11436 = vrcp.f32 %v15086_v63  ;;  %v11429_v2 = vpop.eup %11428  ;;  %v7244_v39 = vsub.f32 1.0, %v7243_v29  ;;  %vm7267_vm11 = vcmp.eq.f32.partialorder %v7266_v59, 8.507059e+37  ;;  %v7290_v26 = vmul.f32 %v15027_v1, %v7289_v47 }
 0x9d9   : > { %vm7293_vm12 = vweird.f32 %v15027_v1  ;;  %v6532_v11 = vadd.f32 %v6531_v25, %v14553_v4  ;;  %v15124_v33 = vadd.f32 1.0, %v11429_v2  ;;  %v7270_v34 = vsel %vm7267_vm11, %v7269_v10, %v7265_v50 }
 0x9da   : > { %v6638_v18 = vpop.f32.mrf.mxu0  ;;  %vm7292_vm13 = vweird.f32 %v14980_v49  ;;  %v7245_v48 = vmul.f32 %v15021_v45, %v7244_v39  ;;  %v7291_v51 = vadd.f32 %v15027_v1, %v7290_v26  ;;  %vm15131_vm14 = vcmp.eq.f32.partialorder %v7296_v19, 8.507059e+37 }
 0x9db   : > { %v11431_v24 = vpop.eup %11430  ;;  %vm7247_vm15 = vweird.f32 %v14963_v27  ;;  %vm7248_vm0 = vweird.f32 %v15021_v45  ;;  %vm7294_vm1 = vmor %vm7292_vm13, %vm7293_vm12  ;;  %v7299_v20 = vor.u32 1.1754944e-38, %v7298_v23  ;;  %v6361_v3 = vmax.f32 %v6237_v9, 0.0  ;;  %v11019_v9 = vld [vmem:[%s17174_s5 + $0x148] sm:$0xf0] }
 0x9dc   : > { %v15128_v16 = vpop.eup %11432  ;;  %v7246_v49 = vadd.f32 %v15021_v45, %v7245_v48  ;;  %v7273_v56 = vmul.f32 %v15046_v55, %v15001_v36  ;;  %v15142_v44 = vadd.f32 1.0, %v11431_v24  ;;  %v7295_v41 = vsel %vm7294_vm1, %v15027_v1, %v7291_v51  ;;  %vm15156_vm2 = vmor %vm7247_vm15, %vm7248_vm0 }
 0x9dd   : > { %v11435_v61 = vpop.eup %11434  ;;  %v10509_v38 = vmul.f32 -1.442695, %v6532_v11  ;;  %v7253_v60 = vand.u32 2147483648, %v14963_v27  ;;  %11438 = vrcp.f32 %v15124_v33  ;;  %v7300_v54 = vsel %vm15131_vm14, %v7299_v20, %v7295_v41  ;;  %v11017_v41 = vld [vmem:[%s17174_s5 + $0x13c] sm:$0xf] }
 0x9de   : > { %v15140_v30 = vpop.eup %11436  ;;  %v7251_v1 = vand.u32 2147483647, %v14963_v27  ;;  %v7274_v22 = vsub.f32 1.0, %v7273_v56  ;;  %v6239_v29 = vpop.f32.mrf.mxu2  ;;  %v15164_v13 = vadd.f32 1.0, %v11435_v61  ;;  %v15166_v59 = vpack.c.bf16 %v7300_v54, %v7270_v34  ;;  %v10629_v56 = vld [vmem:[%s17174_s5 + $0x80] sm:$0xf] }
 0x9df   : > { %v7250_v15 = vsel %vm15156_vm2, %v15021_v45, %v7246_v49  ;;  %vm7278_vm3 = vweird.f32 %v15046_v55  ;;  %v7281_v27 = vand.u32 2147483647, %v15001_v36  ;;  %v7283_v25 = vand.u32 2147483648, %v15001_v36  ;;  %v10725_v45 = vld [vmem:[%s17174_s5 + $0x140] sm:$0xf] }
 0x9e0   : > { %v6534_v43 = vpop.f32.mrf.mxu3  ;;  %17459 = vst [vmem:[#allocation9_spill] sm:$0xff] %v15166_v59  ;;  %v7275_v53 = vmul.f32 %v15046_v55, %v7274_v22  ;;  %v6639_v50 = vadd.f32 %v6638_v18, %v14544_v5  ;;  %8640 = vmatmul.bf16.gmra.mxu2 %v15166_v59  ;;  %v7254_v19 = vor.u32 1.1754944e-38, %v7253_v60  ;;  %v6383_v2 = vpack.c.bf16 %v6361_v3, %v6360_v46  ;;  %v10719_v22 = vld [vmem:[%s17174_s5 + $0x144] sm:$0xf0] }
 0x9e1   : > { %v10626_v10 = vor.u32 %v10993_v8, %v10623_v57  ;;  %v6535_v23 = vadd.f32 %v6534_v43, %v14553_v4  ;;  %11440 = vpow2.f32 %v10509_v38  ;;  %vm7252_vm4 = vcmp.eq.f32.partialorder %v7251_v1, 8.507059e+37 }
 0x9e2   : > { %v6640_v47 = vpop.f32.mrf.mxu0  ;;  %v7276_v39 = vadd.f32 %v15046_v55, %v7275_v53  ;;  %vm7277_vm5 = vweird.f32 %v15001_v36  ;;  %v7255_v18 = vsel %vm7252_vm4, %v7254_v19, %v7250_v15  ;;  %v7284_v46 = vor.u32 1.1754944e-38, %v7283_v25  ;;  %6573 = vmatmul.bf16.gmra.mxu3 %v6383_v2  ;;  %6677 = vmatmul.bf16.gmra.mxu0 %v6383_v2 }
 0x9e3   : > { %vm7279_vm6 = vmor %vm7277_vm5, %vm7278_vm3  ;;  %v10512_v26 = vmul.f32 -1.442695, %v6639_v50  ;;  %v15189_v11 = vadd.f32 %v14893_v17, %v6239_v29  ;;  %v15191_v24 = vpop.eup %11438  ;;  %vm7282_vm7 = vcmp.eq.f32.partialorder %v7281_v27, 8.507059e+37  ;;  %8718 = vmatpush.bf16.msra.mxu3 %v10626_v10  ;;  %v10726_v48 = vor.u32 %v11019_v9, %v10725_v45 }
 0x9e4   : > { %v7280_v34 = vsel %vm7279_vm6, %v15046_v55, %v7276_v39  ;;  %v6641_v36 = vadd.f32 %v6640_v47, %v14544_v5  ;;  %v10511_v12 = vmul.f32 -1.442695, %v6535_v23  ;;  %v7319_v61 = vsub.f32 1.0, %v15105_v35  ;;  %v10995_v35 = vld [vmem:[%s17174_s5 + $0x88] sm:$0xf0] }
 0x9e5   : > { %v7285_v51 = vsel %vm7282_vm7, %v7284_v46, %v7280_v34  ;;  %11442 = vpow2.f32 %v10512_v26  ;;  %9030 = vmatpush.bf16.msra.mxu2 %v10726_v48  ;;  %v7303_v49 = vmul.f32 %v15095_v42, %v15048_v0  ;;  %v15214_v60 = vmul.f32 %v15191_v24, %v15124_v33 }
 0x9e6   : > { %11444 = vrcp.f32 %v15142_v44  ;;  %v15197_v20 = vpack.c.bf16 %v7285_v51, %v7255_v18  ;;  %v7320_v55 = vmul.f32 %v15080_v62, %v7319_v61  ;;  %v6362_v8 = vmax.f32 %v15189_v11, 0.0  ;;  %v6241_v1 = vpop.f32.mrf.mxu2 }
 0x9e7   : > { %11446 = vrcp.f32 %v15164_v13  ;;  %v11441_v38 = vpop.eup %11440  ;;  %v10514_v54 = vmul.f32 -1.442695, %v6641_v36  ;;  %v7348_v6 = vmul.f32 %v15128_v16, %v15069_v52  ;;  %vm7322_vm8 = vweird.f32 %v15029_v37 }
 0x9e8   : > { %17460 = vst [vmem:[#allocation48_spill] sm:$0xff] %v15197_v20  ;;  %v6536_v3 = vpop.f32.mrf.mxu3  ;;  %8536 = vmatmul.bf16.gmra.mxu1 %v15197_v20  ;;  %11448 = vpow2.f32 %v10511_v12  ;;  %v7321_v57 = vadd.f32 %v15080_v62, %v7320_v55  ;;  %vm7323_vm9 = vweird.f32 %v15080_v62  ;;  %v7326_v43 = vand.u32 2147483647, %v15029_v37 }
 0x9e9   : > { %v7328_v15 = vand.u32 2147483648, %v15029_v37  ;;  %v7349_v53 = vsub.f32 1.0, %v7348_v6  ;;  %v10630_v27 = vor.u32 %v10995_v35, %v10629_v56  ;;  %v7356_v50 = vand.u32 2147483647, %v15069_v52  ;;  %vm15233_vm10 = vmor %vm7322_vm8, %vm7323_vm9 }
 0x9ea   : > { %v6643_v29 = vpop.f32.mrf.mxu0  ;;  %v7358_v47 = vand.u32 2147483648, %v15069_v52  ;;  %v10722_v19 = vor.u32 %v11017_v41, %v10719_v22  ;;  %v6537_v2 = vadd.f32 %v6536_v3, %v14553_v4  ;;  %11450 = vpow2.f32 %v10514_v54 }
 0x9eb   : > { %v11443_v25 = vpop.eup %11442  ;;  %v7350_v45 = vmul.f32 %v15128_v16, %v7349_v53  ;;  %vm7353_vm11 = vweird.f32 %v15128_v16  ;;  %8926 = vmatpush.bf16.msra.mxu1 %v10630_v27  ;;  %v6242_v37 = vadd.f32 %v14893_v17, %v6241_v1  ;;  %v15242_v39 = vadd.f32 1.0, %v11441_v38 }
 0x9ec   : > { %v15231_v10 = vpop.eup %11444  ;;  %v7325_v18 = vsel %vm15233_vm10, %v15080_v62, %v7321_v57  ;;  %vm7352_vm12 = vweird.f32 %v15069_v52  ;;  %8822 = vmatpush.bf16.msra.mxu0 %v10722_v19  ;;  %v7304_v46 = vsub.f32 1.0, %v7303_v49  ;;  %v15248_v26 = vadd.f32 1.0, %v11443_v25 }
 0x9ed   : > { %v15240_v9 = vpop.eup %11446  ;;  %vm7327_vm13 = vcmp.eq.f32.partialorder %v7326_v43, 8.507059e+37  ;;  %v7329_v34 = vor.u32 1.1754944e-38, %v7328_v15  ;;  %v7351_v48 = vadd.f32 %v15128_v16, %v7350_v45  ;;  %vm7354_vm14 = vmor %vm7352_vm12, %vm7353_vm11  ;;  %vm7357_vm15 = vcmp.eq.f32.partialorder %v7356_v50, 8.507059e+37 }
 0x9ee   : > { %v11449_v51 = vpop.eup %11448  ;;  %v7359_v12 = vor.u32 1.1754944e-38, %v7358_v47  ;;  %v10513_v61 = vmul.f32 -1.442695, %v6537_v2  ;;  %v7305_v62 = vmul.f32 %v15095_v42, %v7304_v46  ;;  %v6363_v49 = vmax.f32 %v6242_v37, 0.0  ;;  %v6244_v1 = vpop.f32.mrf.mxu2 }
 0x9ef   : > { %v7330_v3 = vsel %vm7327_vm13, %v7329_v34, %v7325_v18  ;;  %v7355_v52 = vsel %vm7354_vm14, %v15128_v16, %v7351_v48  ;;  %v7333_v55 = vmul.f32 %v15140_v30, %v15086_v63  ;;  %vm7307_vm0 = vweird.f32 %v15048_v0 }
 0x9f0   : > { %v6539_v36 = vpop.f32.mrf.mxu3  ;;  %v7360_v35 = vsel %vm7357_vm15, %v7359_v12, %v7355_v52  ;;  %v7306_v41 = vadd.f32 %v15095_v42, %v7305_v62  ;;  %vm7308_vm1 = vweird.f32 %v15095_v42  ;;  %v11451_v38 = vpop.eup %11450  ;;  %11452 = vrcp.f32 %v15248_v26 }
 0x9f1   : > { %v15261_v54 = vpack.c.bf16 %v7360_v35, %v7330_v3  ;;  %v7313_v6 = vand.u32 2147483648, %v15048_v0  ;;  %v7334_v16 = vsub.f32 1.0, %v7333_v55  ;;  %11454 = vpow2.f32 %v10513_v61  ;;  %vm15268_vm3 = vmor %vm7307_vm0, %vm7308_vm1 }
 0x9f2   : > { %v6645_v56 = vpop.f32.mrf.mxu0  ;;  %v7311_v22 = vand.u32 2147483647, %v15048_v0  ;;  %vm7338_vm2 = vweird.f32 %v15140_v30  ;;  %v7343_v57 = vand.u32 2147483648, %v15086_v63  ;;  %v7341_v53 = vand.u32 2147483647, %v15086_v63 }
 0x9f3   : > { %17463 = vst [vmem:[#allocation50_spill] sm:$0xff] %v15261_v54  ;;  %8645 = vmatmul.bf16.gmra.mxu2 %v15261_v54  ;;  %v7335_v15 = vmul.f32 %v15140_v30, %v7334_v16  ;;  %v6644_v27 = vadd.f32 %v6643_v29, %v14544_v5  ;;  %v6384_v25 = vpack.c.bf16 %v6363_v49, %v6362_v8  ;;  %11456 = vrcp.f32 %v15242_v39 }
 0x9f4   : > { %v15278_v0 = vadd.f32 1.0, %v11449_v51  ;;  %v15280_v50 = vadd.f32 1.0, %v11451_v38  ;;  %v7310_v47 = vsel %vm15268_vm3, %v15095_v42, %v7306_v41  ;;  %v7314_v19 = vor.u32 1.1754944e-38, %v7313_v6 }
 0x9f5   : > { %v7336_v2 = vadd.f32 %v15140_v30, %v7335_v15  ;;  %vm7337_vm4 = vweird.f32 %v15086_v63  ;;  %v10516_v23 = vmul.f32 -1.442695, %v6644_v27  ;;  %6578 = vmatmul.bf16.gmra.mxu3 %v6384_v25  ;;  %6682 = vmatmul.bf16.gmra.mxu0 %v6384_v25  ;;  %vm7312_vm5 = vcmp.eq.f32.partialorder %v7311_v22, 8.507059e+37 }
 0x9f6   : > { %vm7339_vm6 = vmor %vm7337_vm4, %vm7338_vm2  ;;  %v7344_v8 = vor.u32 1.1754944e-38, %v7343_v57  ;;  %v6540_v29 = vadd.f32 %v6539_v36, %v14553_v4  ;;  %v7379_v45 = vsub.f32 1.0, %v15214_v60  ;;  %v15291_v37 = vpop.eup %11452  ;;  %v7315_v42 = vsel %vm7312_vm5, %v7314_v19, %v7310_v47 }
 0x9f7   : > { %v7340_v18 = vsel %vm7339_vm6, %v15140_v30, %v7336_v2  ;;  %vm7342_vm7 = vcmp.eq.f32.partialorder %v7341_v53, 8.507059e+37  ;;  %v15295_v63 = vadd.f32 %v14893_v17, %v6244_v1  ;;  %v11455_v34 = vpop.eup %11454  ;;  %11458 = vpow2.f32 %v10516_v23 }
 0x9f8   : > { %v6541_v11 = vpop.f32.mrf.mxu3  ;;  %v7345_v48 = vsel %vm7342_vm7, %v7344_v8, %v7340_v18  ;;  %v6646_v51 = vadd.f32 %v6645_v56, %v14544_v5  ;;  %v7380_v36 = vmul.f32 %v15191_v24, %v7379_v45  ;;  %v7363_v60 = vmul.f32 %v15231_v10, %v15142_v44  ;;  %v6246_v56 = vpop.f32.mrf.mxu2 }
 0x9f9   : > { %11460 = vrcp.f32 %v15278_v0  ;;  %v15304_v12 = vpack.c.bf16 %v7345_v48, %v7315_v42  ;;  %v15306_v30 = vpop.eup %11456  ;;  %v15310_v61 = vmul.f32 %v15291_v37, %v15248_v26  ;;  %v10515_v62 = vmul.f32 -1.442695, %v6540_v29 }
 0x9fa   : > { %v15297_v46 = vpop.f32.mrf.mxu0  ;;  %11462 = vrcp.f32 %v15280_v50  ;;  %v7408_v3 = vmul.f32 %v15240_v9, %v15164_v13  ;;  %v15315_v52 = vadd.f32 1.0, %v11455_v34  ;;  %v6364_v49 = vmax.f32 %v15295_v63, 0.0 }
 0x9fb   : > { %17466 = vst [vmem:[#allocation49_spill] sm:$0xff] %v15304_v12  ;;  %8541 = vmatmul.bf16.gmra.mxu1 %v15304_v12  ;;  %v7381_v55 = vadd.f32 %v15191_v24, %v7380_v36  ;;  %vm7383_vm8 = vweird.f32 %v15191_v24  ;;  %v10518_v35 = vmul.f32 -1.442695, %v6646_v51  ;;  %vm7382_vm9 = vweird.f32 %v15124_v33 }
 0x9fc   : > { %v7388_v41 = vand.u32 2147483648, %v15124_v33  ;;  %v7409_v38 = vsub.f32 1.0, %v7408_v3  ;;  %v7386_v6 = vand.u32 2147483647, %v15124_v33  ;;  %v7416_v16 = vand.u32 2147483647, %v15164_v13  ;;  %vm15326_vm10 = vmor %vm7382_vm9, %vm7383_vm8 }
 0x9fd   : > { %v7418_v1 = vand.u32 2147483648, %v15164_v13  ;;  %v7364_v22 = vsub.f32 1.0, %v7363_v60  ;;  %v11459_v43 = vpop.eup %11458  ;;  %11464 = vpow2.f32 %v10515_v62  ;;  %vm7413_vm11 = vweird.f32 %v15240_v9 }
 0x9fe   : > { %v7410_v53 = vmul.f32 %v15240_v9, %v7409_v38  ;;  %v6247_v27 = vadd.f32 %v14893_v17, %v6246_v56  ;;  %11466 = vrcp.f32 %v15315_v52  ;;  %v7385_v33 = vsel %vm15326_vm10, %v15191_v24, %v7381_v55 }
 0x9ff   : > { %v15333_v25 = vpop.eup %11460  ;;  %v6542_v47 = vadd.f32 %v6541_v11, %v14553_v4  ;;  %v7365_v19 = vmul.f32 %v15231_v10, %v7364_v22  ;;  %11468 = vpow2.f32 %v10518_v35  ;;  %v7389_v8 = vor.u32 1.1754944e-38, %v7388_v41 }
 0xa00   : > { %v6544_v57 = vpop.f32.mrf.mxu3  ;;  %v15341_v23 = vpop.eup %11462  ;;  %v7411_v29 = vadd.f32 %v15240_v9, %v7410_v53  ;;  %vm7412_vm12 = vweird.f32 %v15164_v13  ;;  %v15345_v17 = vadd.f32 1.0, %v11459_v43  ;;  %vm7387_vm13 = vcmp.eq.f32.partialorder %v7386_v6, 8.507059e+37 }
 0xa01   : > { %vm7414_vm14 = vmor %vm7412_vm12, %vm7413_vm11  ;;  %vm7417_vm15 = vcmp.eq.f32.partialorder %v7416_v16, 8.507059e+37  ;;  %v7419_v24 = vor.u32 1.1754944e-38, %v7418_v1  ;;  %v7390_v11 = vsel %vm7387_vm13, %v7389_v8, %v7385_v33  ;;  %v6365_v42 = vmax.f32 %v6247_v27, 0.0  ;;  %v6249_v55 = vpop.f32.mrf.mxu2 }
 0xa02   : > { %v6650_v2 = vpop.f32.mrf.mxu0  ;;  %v7415_v45 = vsel %vm7414_vm14, %v15240_v9, %v7411_v29  ;;  %v7393_v18 = vmul.f32 %v15306_v30, %v15242_v39  ;;  %v10517_v34 = vmul.f32 -1.442695, %v6542_v47  ;;  %v7366_v48 = vadd.f32 %v15231_v10, %v7365_v19 }
 0xa03   : > { %v7420_v63 = vsel %vm7417_vm15, %v7419_v24, %v7415_v45  ;;  %vm7368_vm0 = vweird.f32 %v15231_v10  ;;  %v11465_v13 = vpop.eup %11464  ;;  %vm7367_vm1 = vweird.f32 %v15142_v44  ;;  %v7371_v36 = vand.u32 2147483647, %v15142_v44 }
 0xa04   : > { %v15354_v51 = vpack.c.bf16 %v7420_v63, %v7390_v11  ;;  %v7394_v60 = vsub.f32 1.0, %v7393_v18  ;;  %v15358_v62 = vpop.eup %11466  ;;  %11470 = vrcp.f32 %v15345_v17  ;;  %v7373_v9 = vand.u32 2147483648, %v15142_v44  ;;  %vm15369_vm3 = vmor %vm7367_vm1, %vm7368_vm0  ;;  %v10713_v63 = vld [vmem:[%s17174_s5 + $0x128] sm:$0xf] }
 0xa05   : > { %vm7398_vm2 = vweird.f32 %v15306_v30  ;;  %v7403_v3 = vand.u32 2147483648, %v15242_v39  ;;  %v11469_v35 = vpop.eup %11468  ;;  %v7401_v44 = vand.u32 2147483647, %v15242_v39  ;;  %v6649_v6 = vadd.f32 %v15297_v46, %v14544_v5 }
 0xa06   : > { %17469 = vst [vmem:[#allocation22_spill] sm:$0xff] %v15354_v51  ;;  %8650 = vmatmul.bf16.gmra.mxu2 %v15354_v51  ;;  %v7395_v38 = vmul.f32 %v15306_v30, %v7394_v60  ;;  %v6385_v16 = vpack.c.bf16 %v6365_v42, %v6364_v49  ;;  %v15377_v1 = vadd.f32 1.0, %v11465_v13  ;;  %11472 = vpow2.f32 %v10517_v34  ;;  %v11016_v34 = vld [vmem:[%s17174_s5 + $0x130] sm:$0xf0]  ;;  %v11644_v13 = vld [vmem:[%s17176_s7 + $0xb] ss:$0 sm:$0xff] }
 0xa07   : > { %v7370_v22 = vsel %vm15369_vm3, %v15231_v10, %v7366_v48  ;;  %v6545_v43 = vadd.f32 %v6544_v57, %v14553_v4  ;;  %vm7397_vm4 = vweird.f32 %v15242_v39  ;;  %v10520_v27 = vmul.f32 -1.442695, %v6649_v6 }
 0xa08   : > { %v15364_v56 = vpop.f32.mrf.mxu3  ;;  %v7396_v53 = vadd.f32 %v15306_v30, %v7395_v38  ;;  %6583 = vmatmul.bf16.gmra.mxu3 %v6385_v16  ;;  %6687 = vmatmul.bf16.gmra.mxu0 %v6385_v16  ;;  %v6651_v46 = vadd.f32 %v6650_v2, %v14544_v5  ;;  %v7374_v49 = vor.u32 1.1754944e-38, %v7373_v9  ;;  %vm7399_vm5 = vmor %vm7397_vm4, %vm7398_vm2  ;;  %v7404_v33 = vor.u32 1.1754944e-38, %v7403_v3 }
 0xa09   : > { %v10519_v47 = vmul.f32 -1.442695, %v6545_v43  ;;  %v7439_v10 = vsub.f32 1.0, %v15310_v61  ;;  %v15391_v57 = vadd.f32 1.0, %v11469_v35  ;;  %vm7372_vm6 = vcmp.eq.f32.partialorder %v7371_v36, 8.507059e+37  ;;  %v6251_v41 = vpop.f32.mrf.mxu2 }
 0xa0a   : > { %v15383_v15 = vpop.f32.mrf.mxu0  ;;  %v7400_v19 = vsel %vm7399_vm5, %v15306_v30, %v7396_v53  ;;  %vm7402_vm7 = vcmp.eq.f32.partialorder %v7401_v44, 8.507059e+37  ;;  %v15394_v39 = vpop.eup %11470  ;;  %11474 = vrcp.f32 %v15377_v1  ;;  %v7375_v8 = vsel %vm7372_vm6, %v7374_v49, %v7370_v22  ;;  %v10990_v61 = vld [vmem:[%s17174_s5 + $0x64] sm:$0xf]  ;;  %v10611_v30 = vld [vmem:[%s17174_s5 + $0x6c] sm:$0xf0] }
 0xa0b   : > { %v7405_v2 = vsel %vm7402_vm7, %v7404_v33, %v7400_v19  ;;  %v7440_v29 = vmul.f32 %v15291_v37, %v7439_v10  ;;  %11476 = vpow2.f32 %v10520_v27  ;;  %v10522_v11 = vmul.f32 -1.442695, %v6651_v46 }
 0xa0c   : > { %v15398_v24 = vpack.c.bf16 %v7405_v2, %v7375_v8  ;;  %v11473_v45 = vpop.eup %11472  ;;  %11478 = vpow2.f32 %v10519_v47  ;;  %vm7443_vm8 = vweird.f32 %v15291_v37  ;;  %v7468_v18 = vmul.f32 %v15341_v23, %v15280_v50 }
 0xa0d   : > { %v7441_v42 = vadd.f32 %v15291_v37, %v7440_v29  ;;  %v7423_v48 = vmul.f32 %v15333_v25, %v15278_v0  ;;  %11480 = vrcp.f32 %v15391_v57  ;;  %v15423_v36 = vadd.f32 %v11644_v13, %v6249_v55 }
 0xa0e   : > { %17472 = vst [vmem:[#allocation13_spill] sm:$0xff] %v15398_v24  ;;  %8546 = vmatmul.bf16.gmra.mxu1 %v15398_v24  ;;  %v7448_v60 = vand.u32 2147483648, %v15248_v26  ;;  %vm7442_vm9 = vweird.f32 %v15248_v26  ;;  %v7446_v9 = vand.u32 2147483647, %v15248_v26  ;;  %v7469_v3 = vsub.f32 1.0, %v7468_v18 }
 0xa0f   : > { %v10614_v35 = vor.u32 %v10990_v61, %v10611_v30  ;;  %v15430_v44 = vadd.f32 1.0, %v11473_v45  ;;  %11482 = vpow2.f32 %v10522_v11  ;;  %vm15434_vm10 = vmor %vm7442_vm9, %vm7443_vm8  ;;  %v7478_v55 = vand.u32 2147483648, %v15280_v50 }
 0xa10   : > { %v15428_v38 = vpop.f32.mrf.mxu3  ;;  %v10714_v16 = vor.u32 %v11016_v34, %v10713_v63  ;;  %v15441_v26 = vpop.eup %11474  ;;  %v7445_v43 = vsel %vm15434_vm10, %v15291_v37, %v7441_v42  ;;  %v7470_v53 = vmul.f32 %v15341_v23, %v7469_v3  ;;  %vm7473_vm11 = vweird.f32 %v15341_v23 }
 0xa11   : > { %v7476_v27 = vand.u32 2147483647, %v15280_v50  ;;  %8719 = vmatpush.bf16.msra.mxu3 %v10614_v35  ;;  %v11477_v46 = vpop.eup %11476  ;;  %v15451_v49 = vmul.f32 %v15394_v39, %v15345_v17  ;;  %v7449_v33 = vor.u32 1.1754944e-38, %v7448_v60  ;;  %v6252_v47 = vadd.f32 %v11644_v13, %v6251_v41  ;;  %v10992_v35 = vld [vmem:[%s17174_s5 + $0x70] sm:$0xf0] }
 0xa12   : > { %v15439_v22 = vpop.f32.mrf.mxu0  ;;  %9031 = vmatpush.bf16.msra.mxu2 %v10714_v16  ;;  %v7424_v10 = vsub.f32 1.0, %v7423_v48  ;;  %v11479_v19 = vpop.eup %11478  ;;  %v6366_v8 = vmax.f32 %v15423_v36, 0.0  ;;  %vm7447_vm12 = vcmp.eq.f32.partialorder %v7446_v9, 8.507059e+37  ;;  %v7471_v37 = vadd.f32 %v15341_v23, %v7470_v53  ;;  %v10617_v36 = vld [vmem:[%s17174_s5 + $0x68] sm:$0xf] }
 0xa13   : > { %vm7472_vm13 = vweird.f32 %v15280_v50  ;;  %v15456_v2 = vpop.eup %11480  ;;  %11484 = vrcp.f32 %v15430_v44  ;;  %v7450_v29 = vsel %vm7447_vm12, %v7449_v33, %v7445_v43  ;;  %v7479_v11 = vor.u32 1.1754944e-38, %v7478_v55  ;;  %v11014_v50 = vld [vmem:[%s17174_s5 + $0x124] sm:$0xf]  ;;  %v10599_v16 = vld [vmem:[%s17174_s5 + $0x54] sm:$0xf0] }
 0xa14   : > { %vm7474_vm14 = vmor %vm7472_vm13, %vm7473_vm11  ;;  %v7425_v61 = vmul.f32 %v15333_v25, %v7424_v10  ;;  %v15462_v30 = vadd.f32 1.0, %v11477_v46  ;;  %vm7477_vm15 = vcmp.eq.f32.partialorder %v7476_v27, 8.507059e+37  ;;  %v7453_v42 = vmul.f32 %v15358_v62, %v15315_v52  ;;  %v10695_v10 = vld [vmem:[%s17174_s5 + $0x114] sm:$0xf0] }
 0xa15   : > { %v7475_v45 = vsel %vm7474_vm14, %v15341_v23, %v7471_v37  ;;  %v11483_v18 = vpop.eup %11482  ;;  %v15470_v63 = vadd.f32 1.0, %v11479_v19  ;;  %v6367_v48 = vmax.f32 %v6252_v47, 0.0  ;;  %v6547_v13 = vadd.f32 %v15364_v56, %v14553_v4  ;;  %v10707_v23 = vld [vmem:[%s17174_s5 + $0x12c] sm:$0xf0]  ;;  %v10987_v56 = vld [vmem:[%s17174_s5 + $0x4c] sm:$0xf] }
 0xa16   : > { %v7480_v34 = vsel %vm7477_vm15, %v7479_v11, %v7475_v45  ;;  %v7426_v9 = vadd.f32 %v15333_v25, %v7425_v61  ;;  %vm7428_vm0 = vweird.f32 %v15333_v25  ;;  %v7454_v3 = vsub.f32 1.0, %v7453_v42  ;;  %v15497_v43 = vpop.f32.mrf.mxu1  ;;  %v15499_v53 = vpop.f32.mrf.mxu2  ;;  %v11011_v47 = vld [vmem:[%s17174_s5 + $0x10c] sm:$0xf]  ;;  %v11005_v45 = vld [vmem:[%s17174_s5 + $0xdc] sm:$0xf] }
 0xa17   : > { %v15480_v60 = vpack.c.bf16 %v7480_v34, %v7450_v29  ;;  %vm7427_vm1 = vweird.f32 %v15278_v0  ;;  %v7431_v41 = vand.u32 2147483647, %v15278_v0  ;;  %v7433_v6 = vand.u32 2147483648, %v15278_v0  ;;  %v10587_v0 = vld [vmem:[%s17174_s5 + $0x3c] sm:$0xf0] }
 0xa18   : > { %v7463_v55 = vand.u32 2147483648, %v15315_v52  ;;  %v7455_v27 = vmul.f32 %v15358_v62, %v7454_v3  ;;  %vm7458_vm2 = vweird.f32 %v15358_v62  ;;  %v7461_v46 = vand.u32 2147483647, %v15315_v52  ;;  %v15511_v19 = vpop.f32.mrf.mxu3  ;;  %vm15524_vm3 = vmor %vm7427_vm1, %vm7428_vm0 }
 0xa19   : > { %17475 = vst [vmem:[#allocation12_spill] sm:$0xff] %v15480_v60  ;;  %8655 = vmatmul.bf16.gmra.mxu2 %v15480_v60  ;;  %v10710_v33 = vor.u32 %v11014_v50, %v10707_v23  ;;  %v15515_v29 = vpop.eup %11484  ;;  %11486 = vrcp.f32 %v15462_v30  ;;  %v15518_v11 = vadd.f32 1.0, %v11483_v18  ;;  %v10521_v61 = vmul.f32 -1.442695, %v6547_v13  ;;  %v10984_v13 = vld [vmem:[%s17174_s5 + $0x34] sm:$0xf] }
 0xa1a   : > { %v15513_v37 = vpop.f32.mrf.mxu0  ;;  %v10618_v42 = vor.u32 %v10992_v35, %v10617_v36  ;;  %v7430_v50 = vsel %vm15524_vm3, %v15333_v25, %v7426_v9  ;;  %v7456_v34 = vadd.f32 %v15358_v62, %v7455_v27  ;;  %vm7457_vm4 = vweird.f32 %v15315_v52  ;;  %v11008_v52 = vld [vmem:[%s17174_s5 + $0xf4] sm:$0xf] }
 0xa1b   : > { %8823 = vmatpush.bf16.msra.mxu0 %v10710_v33  ;;  %v6386_v18 = vpack.c.bf16 %v6367_v48, %v6366_v8  ;;  %v7434_v23 = vor.u32 1.1754944e-38, %v7433_v6  ;;  %vm7459_vm5 = vmor %vm7457_vm4, %vm7458_vm2  ;;  %v7464_v36 = vor.u32 1.1754944e-38, %v7463_v55  ;;  %v10602_v25 = vor.u32 %v10987_v56, %v10599_v16  ;;  %v10683_v8 = vld [vmem:[%s17174_s5 + $0xfc] sm:$0xf0]  ;;  %v10575_v33 = vld [vmem:[%s17174_s5 + $0x24] sm:$0xf0] }
 0xa1c   : > { %8927 = vmatpush.bf16.msra.mxu1 %v10618_v42  ;;  %v10698_v9 = vor.u32 %v11011_v47, %v10695_v10  ;;  %vm7432_vm6 = vcmp.eq.f32.partialorder %v7431_v41, 8.507059e+37  ;;  %v7460_v48 = vsel %vm7459_vm5, %v15358_v62, %v7456_v34  ;;  %vm7462_vm7 = vcmp.eq.f32.partialorder %v7461_v46, 8.507059e+37  ;;  %v10981_v46 = vld [vmem:[%s17174_s5 + $0x1c] sm:$0xf]  ;;  %v10671_v42 = vld [vmem:[%s17174_s5 + $0xe4] sm:$0xf0] }
 0xa1d   : > { %v6654_v3 = vadd.f32 %v15383_v15, %v14544_v5  ;;  %6588 = vmatmul.bf16.gmra.mxu3 %v6386_v18  ;;  %6692 = vmatmul.bf16.gmra.mxu0 %v6386_v18  ;;  %v7435_v35 = vsel %vm7432_vm6, %v7434_v23, %v7430_v50  ;;  %v7465_v56 = vsel %vm7462_vm7, %v7464_v36, %v7460_v48  ;;  %11488 = vrcp.f32 %v15470_v63 }
 0xa1e   : > { %8720 = vmatpush.bf16.msra.mxu3 %v10602_v25  ;;  %v6550_v6 = vadd.f32 %v15428_v38, %v14553_v4  ;;  %v10590_v55 = vor.u32 %v10984_v13, %v10587_v0  ;;  %v15553_v16 = vpack.c.bf16 %v7465_v56, %v7435_v35  ;;  %v10686_v41 = vor.u32 %v11008_v52, %v10683_v8  ;;  %v8244_v38 = vld [vmem:[%s17177_s8] sm:$0x7]  ;;  %v15584_v34 = vpop.f32.mrf.mxu1  ;;  %v15586_v18 = vpop.f32.mrf.mxu2 }
 0xa1f   : > { %8824 = vmatpush.bf16.msra.mxu0 %v10698_v9  ;;  %v7499_v62 = vsub.f32 1.0, %v15451_v49  ;;  %v15556_v27 = vpop.eup %11486  ;;  %v7483_v15 = vmul.f32 %v15441_v26, %v15377_v1  ;;  %11490 = vrcp.f32 %v15518_v11  ;;  %v10524_v49 = vmul.f32 -1.442695, %v6654_v3 }
 0xa20   : > { %17478 = vst [vmem:[#allocation26_spill] sm:$0xff] %v15553_v16  ;;  %11492 = vpow2.f32 %v10521_v61  ;;  %8551 = vmatmul.bf16.gmra.mxu1 %v15553_v16  ;;  %v7528_v10 = vmul.f32 %v15456_v2, %v15391_v57  ;;  %v10523_v50 = vmul.f32 -1.442695, %v6550_v6  ;;  %v6656_v61 = vadd.f32 %v15439_v22, %v14544_v5  ;;  %v15592_v25 = vpop.f32.mrf.mxu3 }
 0xa21   : > { %v7500_v47 = vmul.f32 %v15394_v39, %v7499_v62  ;;  %vm7502_vm8 = vweird.f32 %v15345_v17  ;;  %vm7503_vm9 = vweird.f32 %v15394_v39  ;;  %v7506_v0 = vand.u32 2147483647, %v15345_v17 }
 0xa22   : > { %8721 = vmatpush.bf16.msra.mxu3 %v10590_v55  ;;  %v7529_v23 = vsub.f32 1.0, %v7528_v10  ;;  %v15590_v36 = vperm.slane %v8244_v38, 0  ;;  %v15594_v22 = vpop.f32.mrf.mxu0  ;;  %v7508_v9 = vand.u32 2147483648, %v15345_v17  ;;  %v7538_v52 = vand.u32 2147483648, %v15391_v57  ;;  %vm15611_vm11 = vmor %vm7502_vm8, %vm7503_vm9 }
 0xa23   : > { %8825 = vmatpush.bf16.msra.mxu0 %v10686_v41  ;;  %v7501_v13 = vadd.f32 %v15394_v39, %v7500_v47  ;;  %v10578_v8 = vor.u32 %v10981_v46, %v10575_v33  ;;  %v10674_v48 = vor.u32 %v11005_v45, %v10671_v42  ;;  %v15598_v3 = vpop.eup %11488  ;;  %vm7533_vm10 = vweird.f32 %v15456_v2 }
 0xa24   : > { %v7530_v35 = vmul.f32 %v15456_v2, %v7529_v23  ;;  %v7536_v56 = vand.u32 2147483647, %v15391_v57  ;;  %v8518_v6 = vadd.f32 %v15497_v43, %v15590_v36  ;;  %11494 = vpow2.f32 %v10524_v49  ;;  %v10563_v23 = vld [vmem:[%s17174_s5 + $0xc] sm:$0xf0] }
 0xa25   : > { %v15605_v55 = vpop.eup %11490  ;;  %v10526_v41 = vmul.f32 -1.442695, %v6656_v61  ;;  %v6552_v38 = vadd.f32 %v15511_v19, %v14553_v4  ;;  %v7484_v46 = vsub.f32 1.0, %v7483_v15  ;;  %v7505_v43 = vsel %vm15611_vm11, %v15394_v39, %v7501_v13 }
 0xa26   : > { %8722 = vmatpush.bf16.msra.mxu3 %v10578_v8  ;;  %v11493_v33 = vpop.eup %11492  ;;  %v7531_v49 = vadd.f32 %v15456_v2, %v7530_v35  ;;  %vm7532_vm12 = vweird.f32 %v15391_v57  ;;  %v15623_v17 = vadd.f32 %v15499_v53, %v8518_v6  ;;  %11496 = vpow2.f32 %v10523_v50  ;;  %v10978_v50 = vld [vmem:[%s17174_s5 + $0x4] sm:$0xf]  ;;  %v15638_v13 = vpop.f32.mrf.mxu2 }
 0xa27   : > { %8826 = vmatpush.bf16.msra.mxu0 %v10674_v48  ;;  %v7509_v47 = vor.u32 1.1754944e-38, %v7508_v9  ;;  %vm7534_vm13 = vmor %vm7532_vm12, %vm7533_vm10  ;;  %v7539_v19 = vor.u32 1.1754944e-38, %v7538_v52  ;;  %v7485_v15 = vmul.f32 %v15441_v26, %v7484_v46  ;;  %vm7507_vm14 = vcmp.eq.f32.partialorder %v7506_v0, 8.507059e+37  ;;  %v11002_v9 = vld [vmem:[%s17174_s5 + $0xc4] sm:$0xf] }
 0xa28   : > { %v7535_v10 = vsel %vm7534_vm13, %v15456_v2, %v7531_v49  ;;  %vm7537_vm15 = vcmp.eq.f32.partialorder %v7536_v56, 8.507059e+37  ;;  %v10525_v39 = vmul.f32 -1.442695, %v6552_v38  ;;  %v7558_v57 = vmul.f32 %v15556_v27, %v15462_v30  ;;  %v10659_v52 = vld [vmem:[%s17174_s5 + $0xcc] sm:$0xf0]  ;;  %v15653_v8 = vpop.f32.mrf.mxu3 }
 0xa29   : > { %v7510_v45 = vsel %vm7507_vm14, %v7509_v47, %v7505_v43  ;;  %v7540_v53 = vsel %vm7537_vm15, %v7539_v19, %v7535_v10  ;;  %v7513_v42 = vmul.f32 %v15515_v29, %v15430_v44  ;;  %v15636_v61 = vpop.f32.mrf.mxu1  ;;  %11498 = vpow2.f32 %v10526_v41 }
 0xa2a   : > { %v15640_v2 = vpack.c.bf16 %v7540_v53, %v7510_v45  ;;  %v7486_v0 = vadd.f32 %v15441_v26, %v7485_v15  ;;  %vm7488_vm0 = vweird.f32 %v15441_v26  ;;  %v15655_v48 = vpop.f32.mrf.mxu0  ;;  %v11495_v35 = vpop.eup %11494  ;;  %vm7487_vm1 = vweird.f32 %v15377_v1 }
 0xa2b   : > { %v7491_v56 = vand.u32 2147483647, %v15377_v1  ;;  %v7493_v6 = vand.u32 2147483648, %v15377_v1  ;;  %v7514_v41 = vsub.f32 1.0, %v7513_v42  ;;  %11500 = vpow2.f32 %v10525_v39  ;;  %vm15666_vm3 = vmor %vm7487_vm1, %vm7488_vm0 }
 0xa2c   : > { %17481 = vst [vmem:[#allocation17_spill] sm:$0xff] %v15640_v2  ;;  %8660 = vmatmul.bf16.gmra.mxu2 %v15640_v2  ;;  %vm7518_vm2 = vweird.f32 %v15515_v29  ;;  %v7521_v62 = vand.u32 2147483647, %v15430_v44  ;;  %v7523_v38 = vand.u32 2147483648, %v15430_v44  ;;  %v11497_v46 = vpop.eup %11496  ;;  %v6659_v1 = vadd.f32 %v15513_v37, %v14544_v5 }
 0xa2d   : > { %v7515_v49 = vmul.f32 %v15515_v29, %v7514_v41  ;;  %v10566_v47 = vor.u32 %v10978_v50, %v10563_v23  ;;  %v10662_v19 = vor.u32 %v11002_v9, %v10659_v52  ;;  %v7543_v15 = vmul.f32 %v15598_v3, %v15470_v63 }
 0xa2e   : > { %v15675_v10 = vadd.f32 1.0, %v11493_v33  ;;  %v15677_v39 = vadd.f32 1.0, %v11495_v35  ;;  %v7490_v45 = vsel %vm15666_vm3, %v15441_v26, %v7486_v0  ;;  %v7494_v53 = vor.u32 1.1754944e-38, %v7493_v6 }
 0xa2f   : > { %v7516_v42 = vadd.f32 %v15515_v29, %v7515_v49  ;;  %vm7517_vm4 = vweird.f32 %v15430_v44  ;;  %8723 = vmatpush.bf16.msra.mxu3 %v10566_v47  ;;  %8827 = vmatpush.bf16.msra.mxu0 %v10662_v19  ;;  %v6555_v37 = vadd.f32 %v15592_v25, %v14553_v4  ;;  %v11499_v50 = vpop.eup %11498  ;;  %vm7492_vm5 = vcmp.eq.f32.partialorder %v7491_v56, 8.507059e+37 }
 0xa30   : > { %vm7519_vm6 = vmor %vm7517_vm4, %vm7518_vm2  ;;  %v7524_v33 = vor.u32 1.1754944e-38, %v7523_v38  ;;  %v10528_v23 = vmul.f32 -1.442695, %v6659_v1  ;;  %v7559_v9 = vsub.f32 1.0, %v7558_v57  ;;  %v15688_v52 = vadd.f32 1.0, %v11497_v46  ;;  %v15710_v46 = vpop.f32.mrf.mxu3 }
 0xa31   : > { %v7495_v26 = vsel %vm7492_vm5, %v7494_v53, %v7490_v45  ;;  %v7520_v0 = vsel %vm7519_vm6, %v15515_v29, %v7516_v42  ;;  %vm7522_vm7 = vcmp.eq.f32.partialorder %v7521_v62, 8.507059e+37  ;;  %v11501_v44 = vpop.eup %11500  ;;  %11502 = vrcp.f32 %v15677_v39  ;;  %v15702_v41 = vpop.f32.mrf.mxu1 }
 0xa32   : > { %v7525_v35 = vsel %vm7522_vm7, %v7524_v33, %v7520_v0  ;;  %8724 = vmatmul.bf16.vlgmr.msra.gmra.mxu3 %v14749_v40  ;;  %8828 = vmatmul.bf16.vlgmr.msra.gmra.mxu0 %v14717_v58  ;;  %v6661_v25 = vadd.f32 %v15594_v22, %v14544_v5  ;;  %v7560_v56 = vmul.f32 %v15556_v27, %v7559_v9  ;;  %11504 = vrcp.f32 %v15675_v10  ;;  %v15704_v62 = vpop.f32.mrf.mxu2  ;;  %v15712_v43 = vpop.f32.mrf.mxu0 }
 0xa33   : > { %v15698_v57 = vadd.f32 1.0, %v11499_v50  ;;  %v15700_v6 = vpack.c.bf16 %v7525_v35, %v7495_v26  ;;  %v10527_v29 = vmul.f32 -1.442695, %v6555_v37  ;;  %17485 = vst [vmem:[#allocation30_spill] sm:$0xff] %v15704_v62  ;;  %11506 = vpow2.f32 %v10528_v23 }
 0xa34   : > { %v7561_v38 = vadd.f32 %v15556_v27, %v7560_v56  ;;  %vm7563_vm8 = vweird.f32 %v15556_v27  ;;  %v7588_v22 = vmul.f32 %v15605_v55, %v15518_v11  ;;  %11508 = vrcp.f32 %v15688_v52 }
 0xa35   : > { %17484 = vst [vmem:[#allocation16_spill] sm:$0xff] %v15700_v6  ;;  %v15715_v49 = vadd.f32 1.0, %v11501_v44  ;;  %8556 = vmatmul.bf16.gmra.mxu1 %v15700_v6  ;;  %vm7562_vm9 = vweird.f32 %v15462_v30  ;;  %v7568_v1 = vand.u32 2147483648, %v15462_v30  ;;  %v10530_v47 = vmul.f32 -1.442695, %v6661_v25 }
 0xa36   : > { %v7566_v19 = vand.u32 2147483647, %v15462_v30  ;;  %v7589_v45 = vsub.f32 1.0, %v7588_v22  ;;  %v8523_v53 = vadd.f32 %v15636_v61, %v15590_v36  ;;  %11510 = vpow2.f32 %v10527_v29  ;;  %vm15723_vm10 = vmor %vm7562_vm9, %vm7563_vm8 }
 0xa37   : > { %vm7593_vm11 = vweird.f32 %v15605_v55  ;;  %v7598_v37 = vand.u32 2147483648, %v15518_v11  ;;  %v7544_v50 = vsub.f32 1.0, %v7543_v15  ;;  %v15729_v33 = vpop.eup %11502  ;;  %v7565_v30 = vsel %vm15723_vm10, %v15556_v27, %v7561_v38 }
 0xa38   : > { %v7590_v23 = vmul.f32 %v15605_v55, %v7589_v45  ;;  %v7596_v61 = vand.u32 2147483647, %v15518_v11  ;;  %v15737_v9 = vadd.f32 %v15638_v13, %v8523_v53  ;;  %v15739_v26 = vpop.eup %11504  ;;  %11512 = vrcp.f32 %v15698_v57  ;;  %v15773_v42 = vpop.f32.mrf.mxu3 }
 0xa39   : > { %v7569_v0 = vor.u32 1.1754944e-38, %v7568_v1  ;;  %v7545_v15 = vmul.f32 %v15598_v3, %v7544_v50  ;;  %v11507_v44 = vpop.eup %11506  ;;  %11514 = vrcp.f32 %v15715_v49  ;;  %vm7567_vm12 = vcmp.eq.f32.partialorder %v7566_v19, 8.507059e+37 }
 0xa3a   : > { %17488 = vst [vmem:[#allocation21_spill] sm:$0xff] %v15737_v9  ;;  %v7591_v27 = vadd.f32 %v15605_v55, %v7590_v23  ;;  %vm7592_vm13 = vweird.f32 %v15518_v11  ;;  %v15746_v35 = vpop.eup %11508  ;;  %v15750_v13 = vmul.f32 %v15729_v33, %v15677_v39  ;;  %11516 = vpow2.f32 %v10530_v47  ;;  %v15761_v1 = vpop.f32.mrf.mxu2 }
 0xa3b   : > { %v7570_v25 = vsel %vm7567_vm12, %v7569_v0, %v7565_v30  ;;  %vm7594_vm14 = vmor %vm7592_vm13, %vm7593_vm11  ;;  %v7599_v56 = vor.u32 1.1754944e-38, %v7598_v37  ;;  %vm7597_vm15 = vcmp.eq.f32.partialorder %v7596_v61, 8.507059e+37  ;;  %v6557_v38 = vadd.f32 %v15653_v8, %v14553_v4  ;;  %v11013_v8 = vld [vmem:[%s17174_s5 + $0x118] sm:$0xf0]  ;;  %v15779_v23 = vpop.f32.mrf.mxu0 }
 0xa3c   : > { %v7595_v29 = vsel %vm7594_vm14, %v15605_v55, %v7591_v27  ;;  %v7573_v11 = vmul.f32 %v15739_v26, %v15675_v10  ;;  %v11511_v19 = vpop.eup %11510  ;;  %v15763_v47 = vadd.f32 1.0, %v11507_v44  ;;  %v7546_v53 = vadd.f32 %v15598_v3, %v7545_v15  ;;  %v10701_v55 = vld [vmem:[%s17174_s5 + $0x110] sm:$0xf] }
 0xa3d   : > { %v15759_v22 = vpop.f32.mrf.mxu1  ;;  %v7600_v45 = vsel %vm7597_vm15, %v7599_v56, %v7595_v29  ;;  %vm7548_vm0 = vweird.f32 %v15598_v3  ;;  %vm7547_vm1 = vweird.f32 %v15470_v63  ;;  %v7553_v50 = vand.u32 2147483648, %v15470_v63 }
 0xa3e   : > { %v15775_v37 = vpack.c.bf16 %v7600_v45, %v7570_v25  ;;  %v7574_v30 = vsub.f32 1.0, %v7573_v11  ;;  %v15781_v61 = vpop.eup %11512  ;;  %v7551_v0 = vand.u32 2147483647, %v15470_v63  ;;  %vm7578_vm2 = vweird.f32 %v15739_v26  ;;  %vm15793_vm3 = vmor %vm7547_vm1, %vm7548_vm0  ;;  %v10989_v45 = vld [vmem:[%s17174_s5 + $0x58] sm:$0xf0] }
 0xa3f   : > { %v7583_v15 = vand.u32 2147483648, %v15675_v10  ;;  %v6664_v44 = vadd.f32 %v15655_v48, %v14544_v5  ;;  %v15788_v27 = vpop.eup %11514  ;;  %v7581_v63 = vand.u32 2147483647, %v15675_v10  ;;  %v10702_v29 = vor.u32 %v11013_v8, %v10701_v55  ;;  %v10605_v48 = vld [vmem:[%s17174_s5 + $0x50] sm:$0xf] }
 0xa40   : > { %17489 = vst [vmem:[#allocation20_spill] sm:$0xff] %v15775_v37  ;;  %8665 = vmatmul.bf16.gmra.mxu2 %v15775_v37  ;;  %v7575_v56 = vmul.f32 %v15739_v26, %v7574_v30  ;;  %v6560_v11 = vadd.f32 %v15710_v46, %v14553_v4  ;;  %v11517_v40 = vpop.eup %11516  ;;  %v15807_v58 = vadd.f32 1.0, %v11511_v19  ;;  %v10529_v62 = vmul.f32 -1.442695, %v6557_v38 }
 0xa41   : > { %v7550_v30 = vsel %vm15793_vm3, %v15598_v3, %v7546_v53  ;;  %v10532_v55 = vmul.f32 -1.442695, %v6664_v44  ;;  %v7554_v8 = vor.u32 1.1754944e-38, %v7553_v50  ;;  %vm7577_vm4 = vweird.f32 %v15675_v10  ;;  %9032 = vmatpush.bf16.msra.mxu2 %v10702_v29 }
 0xa42   : > { %v7576_v46 = vadd.f32 %v15739_v26, %v7575_v56  ;;  %8729 = vmatmul.bf16.gmra.mxu3 %v14858_v28  ;;  %8833 = vmatmul.bf16.gmra.mxu0 %v14807_v14  ;;  %v10531_v9 = vmul.f32 -1.442695, %v6560_v11  ;;  %vm7579_vm5 = vmor %vm7577_vm4, %vm7578_vm2  ;;  %v7584_v19 = vor.u32 1.1754944e-38, %v7583_v15  ;;  %v10606_v38 = vor.u32 %v10989_v45, %v10605_v48 }
 0xa43   : > { %11518 = vpow2.f32 %v10532_v55  ;;  %v6666_v3 = vadd.f32 %v15712_v43, %v14544_v5  ;;  %vm7552_vm6 = vcmp.eq.f32.partialorder %v7551_v0, 8.507059e+37  ;;  %vm7582_vm7 = vcmp.eq.f32.partialorder %v7581_v63, 8.507059e+37  ;;  %v15830_v0 = vpop.f32.mrf.mxu2  ;;  %v15835_v63 = vpop.f32.mrf.mxu3 }
 0xa44   : > { %v7580_v53 = vsel %vm7579_vm5, %v15739_v26, %v7576_v46  ;;  %v7619_v10 = vsub.f32 1.0, %v15750_v13  ;;  %11520 = vrcp.f32 %v15763_v47  ;;  %v7555_v50 = vsel %vm7552_vm6, %v7554_v8, %v7550_v30  ;;  %8928 = vmatpush.bf16.msra.mxu1 %v10606_v38 }
 0xa45   : > { %v7585_v44 = vsel %vm7582_vm7, %v7584_v19, %v7580_v53  ;;  %v7603_v15 = vmul.f32 %v15746_v35, %v15688_v52  ;;  %11522 = vpow2.f32 %v10531_v9  ;;  %v15828_v43 = vpop.f32.mrf.mxu1  ;;  %v10534_v26 = vmul.f32 -1.442695, %v6666_v3  ;;  %v15841_v9 = vpop.f32.mrf.mxu0 }
 0xa46   : > { %v15825_v25 = vpack.c.bf16 %v7585_v44, %v7555_v50  ;;  %v7620_v56 = vmul.f32 %v15729_v33, %v7619_v10  ;;  %11524 = vrcp.f32 %v15807_v58  ;;  %v7648_v13 = vmul.f32 %v15781_v61, %v15698_v57 }
 0xa47   : > { %v15837_v29 = vadd.f32 1.0, %v11517_v40  ;;  %11526 = vpow2.f32 %v10529_v62  ;;  %vm7622_vm8 = vweird.f32 %v15677_v39  ;;  %vm7623_vm9 = vweird.f32 %v15729_v33 }
 0xa48   : > { %17492 = vst [vmem:[#allocation38_spill] sm:$0xff] %v15825_v25  ;;  %8561 = vmatmul.bf16.gmra.mxu1 %v15825_v25  ;;  %v7621_v48 = vadd.f32 %v15729_v33, %v7620_v56  ;;  %v7649_v45 = vsub.f32 1.0, %v7648_v13  ;;  %v8528_v30 = vadd.f32 %v15759_v22, %v15590_v36  ;;  %v7626_v55 = vand.u32 2147483647, %v15677_v39  ;;  %vm15862_vm11 = vmor %vm7622_vm8, %vm7623_vm9 }
 0xa49   : > { %v11519_v11 = vpop.eup %11518  ;;  %v7628_v40 = vand.u32 2147483648, %v15677_v39  ;;  %v7658_v62 = vand.u32 2147483648, %v15698_v57  ;;  %v7604_v8 = vsub.f32 1.0, %v7603_v15  ;;  %11528 = vpow2.f32 %v10534_v26 }
 0xa4a   : > { %v15850_v46 = vpop.eup %11520  ;;  %v7650_v19 = vmul.f32 %v15781_v61, %v7649_v45  ;;  %vm7653_vm10 = vweird.f32 %v15781_v61  ;;  %v7656_v38 = vand.u32 2147483647, %v15698_v57  ;;  %11530 = vrcp.f32 %v15837_v29 }
 0xa4b   : > { %v11523_v3 = vpop.eup %11522  ;;  %v15856_v22 = vadd.f32 1.0, %v11519_v11  ;;  %v15867_v10 = vadd.f32 %v15761_v1, %v8528_v30  ;;  %v6562_v50 = vadd.f32 %v15773_v42, %v14553_v4  ;;  %v7625_v15 = vsel %vm15862_vm11, %v15729_v33, %v7621_v48 }
 0xa4c   : > { %v15871_v44 = vpop.eup %11524  ;;  %v7651_v56 = vadd.f32 %v15781_v61, %v7650_v19  ;;  %vm7652_vm12 = vweird.f32 %v15698_v57  ;;  %v7605_v39 = vmul.f32 %v15746_v35, %v7604_v8  ;;  %v7678_v1 = vmul.f32 %v15850_v46, %v15763_v47 }
 0xa4d   : > { %v11527_v26 = vpop.eup %11526  ;;  %vm7627_vm13 = vcmp.eq.f32.partialorder %v7626_v55, 8.507059e+37  ;;  %v7629_v13 = vor.u32 1.1754944e-38, %v7628_v40  ;;  %vm7654_vm14 = vmor %vm7652_vm12, %vm7653_vm10  ;;  %v7659_v42 = vor.u32 1.1754944e-38, %v7658_v62  ;;  %v15883_v11 = vadd.f32 1.0, %v11523_v3  ;;  %v15899_v3 = vpop.f32.mrf.mxu0 }
 0xa4e   : > { %v7655_v33 = vsel %vm7654_vm14, %v15781_v61, %v7651_v56  ;;  %vm7657_vm15 = vcmp.eq.f32.partialorder %v7656_v38, 8.507059e+37  ;;  %v7633_v57 = vmul.f32 %v15788_v27, %v15715_v49  ;;  %11532 = vrcp.f32 %v15856_v22  ;;  %v15891_v55 = vpop.f32.mrf.mxu2  ;;  %v15897_v38 = vpop.f32.mrf.mxu3 }
 0xa4f   : > { %v7630_v48 = vsel %vm7627_vm13, %v7629_v13, %v7625_v15  ;;  %v7660_v45 = vsel %vm7657_vm15, %v7659_v42, %v7655_v33  ;;  %v10533_v30 = vmul.f32 -1.442695, %v6562_v50  ;;  %v11529_v40 = vpop.eup %11528  ;;  %v7606_v62 = vadd.f32 %v15746_v35, %v7605_v39 }
 0xa50   : > { %v15893_v19 = vpack.c.bf16 %v7660_v45, %v7630_v48  ;;  %vm7608_vm0 = vweird.f32 %v15746_v35  ;;  %v7634_v61 = vsub.f32 1.0, %v7633_v57  ;;  %v15901_v53 = vpop.eup %11530  ;;  %vm7607_vm1 = vweird.f32 %v15688_v52 }
 0xa51   : > { %v7613_v50 = vand.u32 2147483648, %v15688_v52  ;;  %v7643_v15 = vand.u32 2147483648, %v15715_v49  ;;  %v6669_v56 = vadd.f32 %v15779_v23, %v14544_v5  ;;  %v7611_v39 = vand.u32 2147483647, %v15688_v52  ;;  %vm15926_vm3 = vmor %vm7607_vm1, %vm7608_vm0 }
 0xa52   : > { %v15889_v8 = vpop.f32.mrf.mxu1  ;;  %8734 = vmatmul.bf16.gmra.mxu3 %v14982_v32  ;;  %8838 = vmatmul.bf16.gmra.mxu0 %v14910_v21  ;;  %v7635_v13 = vmul.f32 %v15788_v27, %v7634_v61  ;;  %vm7638_vm2 = vweird.f32 %v15788_v27  ;;  %v7641_v42 = vand.u32 2147483647, %v15715_v49  ;;  %v7663_v33 = vmul.f32 %v15871_v44, %v15807_v58 }
 0xa53   : > { %8670 = vmatmul.bf16.gmra.mxu2 %v15893_v19  ;;  %v15917_v57 = vadd.f32 1.0, %v11527_v26  ;;  %11534 = vrcp.f32 %v15883_v11  ;;  %v15920_v23 = vadd.f32 1.0, %v11529_v40  ;;  %v7610_v45 = vsel %vm15926_vm3, %v15746_v35, %v7606_v62 }
 0xa54   : > { %v7636_v61 = vadd.f32 %v15788_v27, %v7635_v13  ;;  %vm7637_vm4 = vweird.f32 %v15715_v49  ;;  %v10536_v26 = vmul.f32 -1.442695, %v6669_v56  ;;  %v15935_v32 = vpop.eup %11532  ;;  %v7614_v40 = vor.u32 1.1754944e-38, %v7613_v50 }
 0xa55   : > { %vm7639_vm5 = vmor %vm7637_vm4, %vm7638_vm2  ;;  %v7644_v21 = vor.u32 1.1754944e-38, %v7643_v15  ;;  %v6565_v52 = vadd.f32 %v15835_v63, %v14553_v4  ;;  %v7679_v28 = vsub.f32 1.0, %v7678_v1  ;;  %11536 = vpow2.f32 %v10533_v30 }
 0xa56   : > { %vm7612_vm6 = vcmp.eq.f32.partialorder %v7611_v39, 8.507059e+37  ;;  %v7640_v14 = vsel %vm7639_vm5, %v15788_v27, %v7636_v61  ;;  %vm7642_vm7 = vcmp.eq.f32.partialorder %v7641_v42, 8.507059e+37  ;;  %11538 = vrcp.f32 %v15917_v57  ;;  %v6569_v15 = vpop.f32.mrf.mxu3  ;;  %v15960_v39 = vpop.f32.mrf.mxu0 }
 0xa57   : > { %v7615_v35 = vsel %vm7612_vm6, %v7614_v40, %v7610_v45  ;;  %v7645_v62 = vsel %vm7642_vm7, %v7644_v21, %v7640_v14  ;;  %v7680_v49 = vmul.f32 %v15850_v46, %v7679_v28  ;;  %11540 = vpow2.f32 %v10536_v26  ;;  %v15954_v14 = vpop.f32.mrf.mxu2 }
 0xa58   : > { %v15942_v56 = vpack.c.bf16 %v7645_v62, %v7615_v35  ;;  %v6671_v50 = vadd.f32 %v15841_v9, %v14544_v5  ;;  %v7708_v63 = vmul.f32 %v15901_v53, %v15837_v29  ;;  %11542 = vrcp.f32 %v15920_v23  ;;  %17498 = vst [vmem:[#allocation25_spill] sm:$0xff] %v15954_v14 }
 0xa59   : > { %v15948_v1 = vpop.eup %11534  ;;  %v10535_v27 = vmul.f32 -1.442695, %v6565_v52  ;;  %vm7682_vm8 = vweird.f32 %v15763_v47  ;;  %v7681_v28 = vadd.f32 %v15850_v46, %v7680_v49  ;;  %vm7683_vm9 = vweird.f32 %v15850_v46 }
 0xa5a   : > { %v15952_v30 = vpop.f32.mrf.mxu1  ;;  %8566 = vmatmul.bf16.gmra.mxu1 %v15942_v56  ;;  %v7686_v21 = vand.u32 2147483647, %v15763_v47  ;;  %v7709_v9 = vsub.f32 1.0, %v7708_v63  ;;  %v7688_v13 = vand.u32 2147483648, %v15763_v47  ;;  %v7718_v42 = vand.u32 2147483648, %v15837_v29  ;;  %vm15979_vm11 = vmor %vm7682_vm8, %vm7683_vm9 }
 0xa5b   : > { %17497 = vst [vmem:[#allocation34_spill] sm:$0xff] %v15952_v30  ;;  %v8533_v48 = vadd.f32 %v15889_v8, %v15590_v36  ;;  %v7664_v45 = vsub.f32 1.0, %v7663_v33  ;;  %v11537_v61 = vpop.eup %11536  ;;  %v10538_v26 = vmul.f32 -1.442695, %v6671_v50  ;;  %vm7713_vm10 = vweird.f32 %v15901_v53 }
 0xa5c   : > { %v7710_v40 = vmul.f32 %v15901_v53, %v7709_v9  ;;  %v7716_v52 = vand.u32 2147483647, %v15837_v29  ;;  %v15969_v35 = vpop.eup %11538  ;;  %v15973_v62 = vmul.f32 %v15935_v32, %v15856_v22  ;;  %11544 = vpow2.f32 %v10535_v27 }
 0xa5d   : > { %vm7712_vm12 = vweird.f32 %v15837_v29  ;;  %v15985_v33 = vadd.f32 %v15891_v55, %v8533_v48  ;;  %v11541_v49 = vpop.eup %11540  ;;  %v7685_v50 = vsel %vm15979_vm11, %v15850_v46, %v7681_v28  ;;  %v6567_v27 = vadd.f32 %v15897_v38, %v14553_v4 }
 0xa5e   : > { %v7711_v63 = vadd.f32 %v15901_v53, %v7710_v40  ;;  %v7665_v47 = vmul.f32 %v15871_v44, %v7664_v45  ;;  %v15994_v9 = vpop.eup %11542  ;;  %v15998_v29 = vmul.f32 %v15948_v1, %v15883_v11  ;;  %v16000_v55 = vadd.f32 1.0, %v11537_v61  ;;  %vm7714_vm13 = vmor %vm7712_vm12, %vm7713_vm10 }
 0xa5f   : > { %v7689_v48 = vor.u32 1.1754944e-38, %v7688_v13  ;;  %v7719_v46 = vor.u32 1.1754944e-38, %v7718_v42  ;;  %11546 = vpow2.f32 %v10538_v26  ;;  %vm7687_vm14 = vcmp.eq.f32.partialorder %v7686_v21, 8.507059e+37  ;;  %v16019_v26 = vpop.f32.mrf.mxu3 }
 0xa60   : > { %v7715_v28 = vsel %vm7714_vm13, %v15901_v53, %v7711_v63  ;;  %vm7717_vm15 = vcmp.eq.f32.partialorder %v7716_v52, 8.507059e+37  ;;  %v16005_v38 = vadd.f32 1.0, %v11541_v49  ;;  %v7693_v8 = vmul.f32 %v15969_v35, %v15917_v57  ;;  %v16024_v63 = vpop.f32.mrf.mxu0 }
 0xa61   : > { %v7690_v45 = vsel %vm7687_vm14, %v7689_v48, %v7685_v50  ;;  %v7720_v40 = vsel %vm7717_vm15, %v7719_v46, %v7715_v28  ;;  %v10537_v42 = vmul.f32 -1.442695, %v6567_v27  ;;  %v7666_v21 = vadd.f32 %v15871_v44, %v7665_v47 }
 0xa62   : > { %8739 = vmatmul.bf16.gmra.mxu3 %v15088_v7  ;;  %8843 = vmatmul.bf16.gmra.mxu0 %v15041_v31  ;;  %v16013_v61 = vpack.c.bf16 %v7720_v40, %v7690_v45  ;;  %vm7668_vm0 = vweird.f32 %v15871_v44  ;;  %v11545_v52 = vpop.eup %11544  ;;  %11548 = vrcp.f32 %v16000_v55  ;;  %vm7667_vm1 = vweird.f32 %v15807_v58 }
 0xa63   : > { %v16011_v13 = vpop.f32.mrf.mxu2  ;;  %v7671_v49 = vand.u32 2147483647, %v15807_v58  ;;  %v7694_v50 = vsub.f32 1.0, %v7693_v8  ;;  %v7673_v27 = vand.u32 2147483648, %v15807_v58  ;;  %v7703_v47 = vand.u32 2147483648, %v15917_v57  ;;  %vm16035_vm2 = vmor %vm7667_vm1, %vm7668_vm0 }
 0xa64   : > { %8675 = vmatmul.bf16.gmra.mxu2 %v16013_v61  ;;  %v6674_v48 = vadd.f32 %v15899_v3, %v14544_v5  ;;  %v6570_v46 = vadd.f32 %v6569_v15, %v14553_v4  ;;  %11550 = vrcp.f32 %v16005_v38  ;;  %vm7698_vm3 = vweird.f32 %v15969_v35 }
 0xa65   : > { %v16017_v53 = vpop.f32.mrf.mxu1  ;;  %v7695_v45 = vmul.f32 %v15969_v35, %v7694_v50  ;;  %v7701_v58 = vand.u32 2147483647, %v15917_v57  ;;  %v11547_v40 = vpop.eup %11546  ;;  %v16042_v8 = vadd.f32 1.0, %v11545_v52  ;;  %11552 = vpow2.f32 %v10537_v42 }
 0xa66   : > { %v7670_v3 = vsel %vm16035_vm2, %v15871_v44, %v7666_v21  ;;  %vm7697_vm4 = vweird.f32 %v15917_v57  ;;  %v10540_v7 = vmul.f32 -1.442695, %v6674_v48  ;;  %v6676_v50 = vadd.f32 %v15960_v39, %v14544_v5 }
 0xa67   : > { %v7696_v15 = vadd.f32 %v15969_v35, %v7695_v45  ;;  %v7739_v31 = vsub.f32 1.0, %v15973_v62  ;;  %vm7672_vm5 = vcmp.eq.f32.partialorder %v7671_v49, 8.507059e+37  ;;  %v7674_v14 = vor.u32 1.1754944e-38, %v7673_v27  ;;  %vm7699_vm6 = vmor %vm7697_vm4, %vm7698_vm3  ;;  %v10689_v62 = vld [vmem:[%s17174_s5 + $0xf8] sm:$0xf] }
 0xa68   : > { %v7704_v52 = vor.u32 1.1754944e-38, %v7703_v47  ;;  %v10539_v30 = vmul.f32 -1.442695, %v6570_v46  ;;  %v16052_v42 = vpop.eup %11548  ;;  %vm7702_vm7 = vcmp.eq.f32.partialorder %v7701_v58, 8.507059e+37  ;;  %v10542_v44 = vmul.f32 -1.442695, %v6676_v50 }
 0xa69   : > { %v7700_v28 = vsel %vm7699_vm6, %v15969_v35, %v7696_v15  ;;  %v7740_v57 = vmul.f32 %v15935_v32, %v7739_v31  ;;  %11554 = vrcp.f32 %v16042_v8  ;;  %v16057_v21 = vadd.f32 1.0, %v11547_v40  ;;  %v11010_v49 = vld [vmem:[%s17174_s5 + $0x100] sm:$0xf0]  ;;  %v16087_v15 = vpop.f32.mrf.mxu0 }
 0xa6a   : > { %v7675_v39 = vsel %vm7672_vm5, %v7674_v14, %v7670_v3  ;;  %v7705_v48 = vsel %vm7702_vm7, %v7704_v52, %v7700_v28  ;;  %v16065_v27 = vpop.eup %11550  ;;  %11556 = vpow2.f32 %v10540_v7  ;;  %vm7742_vm8 = vweird.f32 %v15856_v22  ;;  %v10593_v14 = vld [vmem:[%s17174_s5 + $0x38] sm:$0xf]  ;;  %v10986_v47 = vld [vmem:[%s17174_s5 + $0x40] sm:$0xf0]  ;;  %v16085_v3 = vpop.f32.mrf.mxu3 }
 0xa6b   : > { %v16067_v35 = vpack.c.bf16 %v7705_v48, %v7675_v39  ;;  %v7768_v31 = vmul.f32 %v15994_v9, %v15920_v23  ;;  %v16080_v45 = vpop.f32.mrf.mxu2  ;;  %v11553_v58 = vpop.eup %11552  ;;  %11558 = vpow2.f32 %v10539_v30  ;;  %v7741_v7 = vadd.f32 %v15935_v32, %v7740_v57 }
 0xa6c   : > { %17504 = vst [vmem:[#allocation39_spill] sm:$0xff] %v16080_v45  ;;  %vm7743_vm9 = vweird.f32 %v15935_v32  ;;  %v7746_v40 = vand.u32 2147483647, %v15856_v22  ;;  %11560 = vpow2.f32 %v10542_v44  ;;  %v7748_v50 = vand.u32 2147483648, %v15856_v22 }
 0xa6d   : > { %v16078_v46 = vpop.f32.mrf.mxu1  ;;  %8571 = vmatmul.bf16.gmra.mxu1 %v16067_v35  ;;  %v7769_v52 = vsub.f32 1.0, %v7768_v31  ;;  %v10690_v28 = vor.u32 %v11010_v49, %v10689_v62  ;;  %vm7773_vm10 = vweird.f32 %v15994_v9  ;;  %v7778_v30 = vand.u32 2147483648, %v15920_v23  ;;  %vm16097_vm11 = vmor %vm7742_vm8, %vm7743_vm9 }
 0xa6e   : > { %17503 = vst [vmem:[#allocation24_spill] sm:$0xff] %v16078_v46  ;;  %v8538_v57 = vadd.f32 %v16017_v53, %v15590_v36  ;;  %v10594_v39 = vor.u32 %v10986_v47, %v10593_v14  ;;  %v7776_v45 = vand.u32 2147483647, %v15920_v23  ;;  %v6572_v62 = vadd.f32 %v16019_v26, %v14553_v4 }
 0xa6f   : > { %v7770_v44 = vmul.f32 %v15994_v9, %v7769_v52  ;;  %9033 = vmatpush.bf16.msra.mxu2 %v10690_v28  ;;  %v7724_v49 = vsub.f32 1.0, %v15998_v29  ;;  %v16106_v31 = vpop.eup %11554  ;;  %v16110_v53 = vmul.f32 %v16065_v27, %v16005_v38  ;;  %11562 = vrcp.f32 %v16057_v21 }
 0xa70   : > { %v7745_v22 = vsel %vm16097_vm11, %v15935_v32, %v7741_v7  ;;  %v16117_v14 = vadd.f32 %v16011_v13, %v8538_v57  ;;  %8929 = vmatpush.bf16.msra.mxu1 %v10594_v39  ;;  %v11557_v47 = vpop.eup %11556  ;;  %v7749_v26 = vor.u32 1.1754944e-38, %v7748_v50  ;;  %vm7772_vm12 = vweird.f32 %v15920_v23 }
 0xa71   : > { %v7771_v29 = vadd.f32 %v15994_v9, %v7770_v44  ;;  %v7725_v52 = vmul.f32 %v15948_v1, %v7724_v49  ;;  %v11559_v28 = vpop.eup %11558  ;;  %v16124_v46 = vadd.f32 1.0, %v11553_v58  ;;  %vm7747_vm13 = vcmp.eq.f32.partialorder %v7746_v40, 8.507059e+37  ;;  %vm7774_vm14 = vmor %vm7772_vm12, %vm7773_vm10 }
 0xa72   : > { %17507 = vst [vmem:[#allocation29_spill] sm:$0xff] %v16117_v14  ;;  %8744 = vmatmul.bf16.gmra.mxu3 %v15197_v20  ;;  %8848 = vmatmul.bf16.gmra.mxu0 %v15166_v59  ;;  %v7779_v32 = vor.u32 1.1754944e-38, %v7778_v30  ;;  %v10541_v13 = vmul.f32 -1.442695, %v6572_v62  ;;  %v11561_v7 = vpop.eup %11560  ;;  %v7750_v50 = vsel %vm7747_vm13, %v7749_v26, %v7745_v22  ;;  %vm7777_vm15 = vcmp.eq.f32.partialorder %v7776_v45, 8.507059e+37  ;;  %v16137_v40 = vpop.f32.mrf.mxu3 }
 0xa73   : > { %v7775_v57 = vsel %vm7774_vm14, %v15994_v9, %v7771_v29  ;;  %v7753_v23 = vmul.f32 %v16052_v42, %v16000_v55  ;;  %v16131_v39 = vadd.f32 1.0, %v11557_v47  ;;  %vm7727_vm0 = vweird.f32 %v15883_v11  ;;  %v16144_v62 = vpop.f32.mrf.mxu0 }
 0xa74   : > { %v7780_v48 = vsel %vm7777_vm15, %v7779_v32, %v7775_v57  ;;  %vm7728_vm1 = vweird.f32 %v15948_v1  ;;  %v16139_v30 = vadd.f32 1.0, %v11559_v28  ;;  %v7726_v9 = vadd.f32 %v15948_v1, %v7725_v52 }
 0xa75   : > { %v16141_v44 = vpack.c.bf16 %v7780_v48, %v7750_v50  ;;  %v7754_v45 = vsub.f32 1.0, %v7753_v23  ;;  %v16146_v49 = vpop.eup %11562  ;;  %11564 = vpow2.f32 %v10541_v13  ;;  %v7731_v22 = vand.u32 2147483647, %v15883_v11  ;;  %vm16164_vm3 = vmor %vm7727_vm0, %vm7728_vm1 }
 0xa76   : > { %v16135_v58 = vpop.f32.mrf.mxu2  ;;  %v7733_v47 = vand.u32 2147483648, %v15883_v11  ;;  %vm7758_vm2 = vweird.f32 %v16052_v42  ;;  %v7761_v28 = vand.u32 2147483647, %v16000_v55  ;;  %v7763_v52 = vand.u32 2147483648, %v16000_v55 }
 0xa77   : > { %8680 = vmatmul.bf16.gmra.mxu2 %v16141_v44  ;;  %v7755_v29 = vmul.f32 %v16052_v42, %v7754_v45  ;;  %v6679_v32 = vadd.f32 %v16024_v63, %v14544_v5  ;;  %11566 = vrcp.f32 %v16131_v39  ;;  %v16158_v13 = vadd.f32 1.0, %v11561_v7 }
 0xa78   : > { %v8542_v26 = vpop.f32.mrf.mxu1  ;;  %v6575_v57 = vadd.f32 %v16085_v3, %v14553_v4  ;;  %v7799_v23 = vsub.f32 1.0, %v16110_v53  ;;  %11568 = vrcp.f32 %v16139_v30  ;;  %v7730_v63 = vsel %vm16164_vm3, %v15948_v1, %v7726_v9 }
 0xa79   : > { %v7756_v7 = vadd.f32 %v16052_v42, %v7755_v29  ;;  %vm7757_vm4 = vweird.f32 %v16000_v55  ;;  %v7734_v11 = vor.u32 1.1754944e-38, %v7733_v47  ;;  %v7764_v48 = vor.u32 1.1754944e-38, %v7763_v52 }
 0xa7a   : > { %vm7759_vm5 = vmor %vm7757_vm4, %vm7758_vm2  ;;  %v10544_v45 = vmul.f32 -1.442695, %v6679_v32  ;;  %v6681_v3 = vadd.f32 %v16087_v15, %v14544_v5  ;;  %vm7732_vm6 = vcmp.eq.f32.partialorder %v7731_v22, 8.507059e+37  ;;  %vm7762_vm7 = vcmp.eq.f32.partialorder %v7761_v28, 8.507059e+37  ;;  %v16191_v22 = vpop.f32.mrf.mxu3 }
 0xa7b   : > { %v7760_v53 = vsel %vm7759_vm5, %v16052_v42, %v7756_v7  ;;  %v10543_v20 = vmul.f32 -1.442695, %v6575_v57  ;;  %v11565_v50 = vpop.eup %11564  ;;  %11570 = vrcp.f32 %v16124_v46  ;;  %v7735_v1 = vsel %vm7732_vm6, %v7734_v11, %v7730_v63 }
 0xa7c   : > { %v7765_v9 = vsel %vm7762_vm7, %v7764_v48, %v7760_v53  ;;  %v7800_v55 = vmul.f32 %v16065_v27, %v7799_v23  ;;  %v7783_v47 = vmul.f32 %v16106_v31, %v16042_v8  ;;  %11572 = vrcp.f32 %v16158_v13 }
 0xa7d   : > { %v16187_v29 = vpack.c.bf16 %v7765_v9, %v7735_v1  ;;  %v16193_v42 = vpop.eup %11566  ;;  %v16197_v28 = vadd.f32 %v15584_v34, %v15590_v36  ;;  %11574 = vpow2.f32 %v10544_v45  ;;  %v10546_v52 = vmul.f32 -1.442695, %v6681_v3  ;;  %v16210_v34 = vpop.f32.mrf.mxu0 }
 0xa7e   : > { %v16189_v15 = vpop.f32.mrf.mxu2  ;;  %v7828_v32 = vmul.f32 %v16146_v49, %v16057_v21  ;;  %v16201_v57 = vpop.eup %11568  ;;  %v16203_v23 = vadd.f32 1.0, %v11565_v50  ;;  %11576 = vpow2.f32 %v10543_v20  ;;  %vm7802_vm8 = vweird.f32 %v16005_v38 }
 0xa7f   : > { %17510 = vst [vmem:[#allocation28_spill] sm:$0xff] %v16189_v15  ;;  %8576 = vmatmul.bf16.gmra.mxu1 %v16187_v29  ;;  %vm7803_vm9 = vweird.f32 %v16065_v27  ;;  %v7801_v7 = vadd.f32 %v16065_v27, %v7800_v55  ;;  %v7806_v11 = vand.u32 2147483647, %v16005_v38  ;;  %v8543_v45 = vadd.f32 %v8542_v26, %v15590_v36 }
 0xa80   : > { %v16208_v63 = vpop.f32.mrf.mxu1  ;;  %v7829_v48 = vsub.f32 1.0, %v7828_v32  ;;  %v7808_v3 = vand.u32 2147483648, %v16005_v38  ;;  %v7838_v53 = vand.u32 2147483648, %v16057_v21  ;;  %v6577_v20 = vadd.f32 %v16137_v40, %v14553_v4  ;;  %vm16240_vm11 = vmor %vm7802_vm8, %vm7803_vm9 }
 0xa81   : > { %17511 = vst [vmem:[#allocation45_spill] sm:$0xff] %v16208_v63  ;;  %v7784_v50 = vsub.f32 1.0, %v7783_v47  ;;  %v16221_v1 = vpop.eup %11570  ;;  %11578 = vpow2.f32 %v10546_v52  ;;  %vm7833_vm10 = vweird.f32 %v16146_v49  ;;  %v7836_v26 = vand.u32 2147483647, %v16057_v21 }
 0xa82   : > { %8749 = vmatmul.bf16.gmra.mxu3 %v15304_v12  ;;  %8853 = vmatmul.bf16.gmra.mxu0 %v15261_v54  ;;  %v7830_v9 = vmul.f32 %v16146_v49, %v7829_v48  ;;  %v16226_v55 = vpop.eup %11572  ;;  %v16230_v32 = vmul.f32 %v16193_v42, %v16131_v39  ;;  %v16234_v40 = vmul.f32 %v16201_v57, %v16139_v30  ;;  %vm7832_vm12 = vweird.f32 %v16057_v21 }
 0xa83   : > { %v16245_v52 = vadd.f32 %v16135_v58, %v8543_v45  ;;  %v7785_v48 = vmul.f32 %v16106_v31, %v7784_v50  ;;  %v11575_v12 = vpop.eup %11574  ;;  %v7805_v54 = vsel %vm16240_vm11, %v16065_v27, %v7801_v7  ;;  %v10545_v15 = vmul.f32 -1.442695, %v6577_v20  ;;  %vm7834_vm14 = vmor %vm7832_vm12, %vm7833_vm10 }
 0xa84   : > { %v7831_v59 = vadd.f32 %v16146_v49, %v7830_v9  ;;  %v11577_v38 = vpop.eup %11576  ;;  %11580 = vrcp.f32 %v16203_v23  ;;  %vm7807_vm13 = vcmp.eq.f32.partialorder %v7806_v11, 8.507059e+37  ;;  %v7809_v63 = vor.u32 1.1754944e-38, %v7808_v3  ;;  %v6581_v3 = vpop.f32.mrf.mxu3 }
 0xa85   : > { %17514 = vst [vmem:[#allocation33_spill] sm:$0xff] %v16245_v52  ;;  %v7839_v58 = vor.u32 1.1754944e-38, %v7838_v53  ;;  %vm7837_vm15 = vcmp.eq.f32.partialorder %v7836_v26, 8.507059e+37  ;;  %vm7787_vm0 = vweird.f32 %v16042_v8  ;;  %v7813_v27 = vmul.f32 %v16221_v1, %v16124_v46 }
 0xa86   : > { %v7835_v45 = vsel %vm7834_vm14, %v16146_v49, %v7831_v59  ;;  %v7810_v7 = vsel %vm7807_vm13, %v7809_v63, %v7805_v54  ;;  %v7786_v20 = vadd.f32 %v16106_v31, %v7785_v48  ;;  %vm7788_vm1 = vweird.f32 %v16106_v31  ;;  %v16273_v48 = vpop.f32.mrf.mxu0 }
 0xa87   : > { %v7840_v21 = vsel %vm7837_vm15, %v7839_v58, %v7835_v45  ;;  %v11579_v50 = vpop.eup %11578  ;;  %11582 = vpow2.f32 %v10545_v15  ;;  %v7793_v59 = vand.u32 2147483648, %v16042_v8  ;;  %v7814_v49 = vsub.f32 1.0, %v7813_v27  ;;  %vm16291_vm3 = vmor %vm7787_vm0, %vm7788_vm1 }
 0xa88   : > { %v16264_v9 = vpack.c.bf16 %v7840_v21, %v7810_v7  ;;  %v16267_v53 = vadd.f32 1.0, %v11575_v12  ;;  %v7791_v26 = vand.u32 2147483647, %v16042_v8  ;;  %v7823_v54 = vand.u32 2147483648, %v16124_v46 }
 0xa89   : > { %v16262_v11 = vpop.f32.mrf.mxu2  ;;  %v6684_v63 = vadd.f32 %v16144_v62, %v14544_v5  ;;  %v7815_v58 = vmul.f32 %v16221_v1, %v7814_v49  ;;  %vm7818_vm2 = vweird.f32 %v16221_v1  ;;  %v7821_v15 = vand.u32 2147483647, %v16124_v46 }
 0xa8a   : > { %17515 = vst [vmem:[#allocation32_spill] sm:$0xff] %v16264_v9  ;;  %8685 = vmatmul.bf16.gmra.mxu2 %v16264_v9  ;;  %v6580_v12 = vadd.f32 %v16191_v22, %v14553_v4  ;;  %v16281_v45 = vpop.eup %11580  ;;  %v16283_v27 = vadd.f32 1.0, %v11577_v38  ;;  %v16285_v7 = vadd.f32 1.0, %v11579_v50  ;;  %vm7817_vm4 = vweird.f32 %v16124_v46 }
 0xa8b   : > { %v8547_v47 = vpop.f32.mrf.mxu1  ;;  %v10548_v21 = vmul.f32 -1.442695, %v6684_v63  ;;  %v7790_v22 = vsel %vm16291_vm3, %v16106_v31, %v7786_v20  ;;  %v7794_v49 = vor.u32 1.1754944e-38, %v7793_v59  ;;  %v7816_v38 = vadd.f32 %v16221_v1, %v7815_v58  ;;  %vm7819_vm5 = vmor %vm7817_vm4, %vm7818_vm2 }
 0xa8c   : > { %v10547_v50 = vmul.f32 -1.442695, %v6580_v12  ;;  %v7824_v52 = vor.u32 1.1754944e-38, %v7823_v54  ;;  %v6686_v8 = vadd.f32 %v16210_v34, %v14544_v5  ;;  %v7859_v9 = vsub.f32 1.0, %v16230_v32 }
 0xa8d   : > { %11584 = vpow2.f32 %v10548_v21  ;;  %v11583_v14 = vpop.eup %11582  ;;  %vm7792_vm6 = vcmp.eq.f32.partialorder %v7791_v26, 8.507059e+37  ;;  %v7820_v46 = vsel %vm7819_vm5, %v16221_v1, %v7816_v38  ;;  %vm7822_vm7 = vcmp.eq.f32.partialorder %v7821_v15, 8.507059e+37 }
 0xa8e   : > { %11586 = vrcp.f32 %v16267_v53  ;;  %v7795_v31 = vsel %vm7792_vm6, %v7794_v49, %v7790_v22  ;;  %v7825_v20 = vsel %vm7822_vm7, %v7824_v52, %v7820_v46  ;;  %v7860_v59 = vmul.f32 %v16193_v42, %v7859_v9  ;;  %v16335_v22 = vpop.f32.mrf.mxu0 }
 0xa8f   : > { %11588 = vrcp.f32 %v16283_v27  ;;  %v16309_v54 = vadd.f32 %v15586_v18, %v16197_v28  ;;  %v16311_v34 = vpack.c.bf16 %v7825_v20, %v7795_v31  ;;  %v7888_v32 = vmul.f32 %v16226_v55, %v16158_v13  ;;  %v16323_v18 = vpop.f32.mrf.mxu3 }
 0xa90   : > { %11590 = vpow2.f32 %v10547_v50  ;;  %v16318_v1 = vadd.f32 1.0, %v11583_v14  ;;  %v10550_v63 = vmul.f32 -1.442695, %v6686_v8  ;;  %vm7862_vm8 = vweird.f32 %v16131_v39 }
 0xa91   : > { %v16315_v26 = vpop.f32.mrf.mxu2  ;;  %11592 = vrcp.f32 %v16285_v7  ;;  %8581 = vmatmul.bf16.gmra.mxu1 %v16311_v34  ;;  %v7861_v28 = vadd.f32 %v16193_v42, %v7860_v59  ;;  %vm7863_vm9 = vweird.f32 %v16193_v42  ;;  %v7868_v52 = vand.u32 2147483648, %v16131_v39 }
 0xa92   : > { %17518 = vst [vmem:[#allocation37_spill] sm:$0xff] %v16315_v26  ;;  %8754 = vmatmul.bf16.gmra.mxu3 %v15398_v24  ;;  %8858 = vmatmul.bf16.gmra.mxu0 %v15354_v51  ;;  %v7889_v9 = vsub.f32 1.0, %v7888_v32  ;;  %v7898_v58 = vand.u32 2147483648, %v16158_v13  ;;  %v8548_v15 = vadd.f32 %v8547_v47, %v15590_v36  ;;  %v6582_v12 = vadd.f32 %v6581_v3, %v14553_v4  ;;  %vm16353_vm11 = vmor %vm7862_vm8, %vm7863_vm9 }
 0xa93   : > { %v11585_v14 = vpop.eup %11584  ;;  %v7844_v62 = vsub.f32 1.0, %v16234_v40  ;;  %v16333_v21 = vpop.f32.mrf.mxu1  ;;  %v7866_v38 = vand.u32 2147483647, %v16131_v39  ;;  %vm7893_vm10 = vweird.f32 %v16226_v55  ;;  %v7896_v8 = vand.u32 2147483647, %v16158_v13 }
 0xa94   : > { %17519 = vst [vmem:[#allocation36_spill] sm:$0xff] %v16333_v21  ;;  %v16337_v49 = vpop.eup %11586  ;;  %v7890_v50 = vmul.f32 %v16226_v55, %v7889_v9  ;;  %v16347_v3 = vadd.f32 %v15702_v41, %v15590_v36  ;;  %11594 = vpow2.f32 %v10550_v63  ;;  %vm7892_vm12 = vweird.f32 %v16158_v13 }
 0xa95   : > { %v16343_v46 = vpop.eup %11588  ;;  %v16359_v47 = vadd.f32 %v16262_v11, %v8548_v15  ;;  %v16361_v20 = vadd.f32 1.0, %v11585_v14  ;;  %v7865_v41 = vsel %vm16353_vm11, %v16193_v42, %v7861_v28  ;;  %v7845_v39 = vmul.f32 %v16201_v57, %v7844_v62  ;;  %vm7894_vm13 = vmor %vm7892_vm12, %vm7893_vm10  ;;  %v10677_v28 = vld [vmem:[%s17174_s5 + $0xe0] sm:$0xf]  ;;  %v11007_v14 = vld [vmem:[%s17174_s5 + $0xe8] sm:$0xf0] }
 0xa96   : > { %v11591_v31 = vpop.eup %11590  ;;  %v7891_v59 = vadd.f32 %v16226_v55, %v7890_v50  ;;  %v7918_v63 = vmul.f32 %v16337_v49, %v16267_v53  ;;  %v7869_v13 = vor.u32 1.1754944e-38, %v7868_v52  ;;  %v7899_v11 = vor.u32 1.1754944e-38, %v7898_v58 }
 0xa97   : > { %v16368_v32 = vpop.eup %11592  ;;  %v10549_v9 = vmul.f32 -1.442695, %v6582_v12  ;;  %11596 = vrcp.f32 %v16318_v1  ;;  %vm7867_vm14 = vcmp.eq.f32.partialorder %v7866_v38, 8.507059e+37  ;;  %vm7897_vm15 = vcmp.eq.f32.partialorder %v7896_v8, 8.507059e+37  ;;  %v10983_v12 = vld [vmem:[%s17174_s5 + $0x28] sm:$0xf0] }
 0xa98   : > { %v7895_v42 = vsel %vm7894_vm13, %v16226_v55, %v7891_v59  ;;  %v16382_v52 = vadd.f32 1.0, %v11591_v31  ;;  %v7870_v15 = vsel %vm7867_vm14, %v7869_v13, %v7865_v41  ;;  %v7873_v58 = vmul.f32 %v16281_v45, %v16203_v23  ;;  %v10581_v55 = vld [vmem:[%s17174_s5 + $0x20] sm:$0xf]  ;;  %v6586_v59 = vpop.f32.mrf.mxu3 }
 0xa99   : > { %v7900_v62 = vsel %vm7897_vm15, %v7899_v11, %v7895_v42  ;;  %11598 = vrcp.f32 %v16361_v20  ;;  %v7846_v50 = vadd.f32 %v16201_v57, %v7845_v39  ;;  %vm7848_vm0 = vweird.f32 %v16201_v57 }
 0xa9a   : > { %v16393_v38 = vpack.c.bf16 %v7900_v62, %v7870_v15  ;;  %v11595_v40 = vpop.eup %11594  ;;  %11600 = vpow2.f32 %v10549_v9  ;;  %vm7847_vm1 = vweird.f32 %v16139_v30  ;;  %v7853_v31 = vand.u32 2147483648, %v16139_v30  ;;  %v16401_v13 = vpop.f32.mrf.mxu0 }
 0xa9b   : > { %v7874_v41 = vsub.f32 1.0, %v7873_v58  ;;  %v7883_v11 = vand.u32 2147483648, %v16203_v23  ;;  %v10678_v42 = vor.u32 %v11007_v14, %v10677_v28  ;;  %v6689_v39 = vadd.f32 %v16273_v48, %v14544_v5  ;;  %vm16407_vm2 = vmor %vm7847_vm1, %vm7848_vm0 }
 0xa9c   : > { %v16397_v8 = vpop.f32.mrf.mxu2  ;;  %8690 = vmatmul.bf16.gmra.mxu2 %v16393_v38  ;;  %v10582_v15 = vor.u32 %v10983_v12, %v10581_v55  ;;  %v7851_v9 = vand.u32 2147483647, %v16139_v30  ;;  %vm7878_vm3 = vweird.f32 %v16281_v45  ;;  %v7881_v24 = vand.u32 2147483647, %v16203_v23 }
 0xa9d   : > { %v7875_v58 = vmul.f32 %v16281_v45, %v7874_v41  ;;  %v8552_v51 = vpop.f32.mrf.mxu1  ;;  %v16415_v26 = vpop.eup %11596  ;;  %v16417_v28 = vadd.f32 1.0, %v11595_v40  ;;  %v7850_v48 = vsel %vm16407_vm2, %v16201_v57, %v7846_v50  ;;  %9034 = vmatpush.bf16.msra.mxu2 %v10678_v42  ;;  %v10552_v14 = vmul.f32 -1.442695, %v6689_v39 }
 0xa9e   : > { %8930 = vmatpush.bf16.msra.mxu1 %v10582_v15  ;;  %v6585_v30 = vadd.f32 %v16323_v18, %v14553_v4  ;;  %vm7877_vm4 = vweird.f32 %v16203_v23  ;;  %v6691_v12 = vadd.f32 %v16335_v22, %v14544_v5  ;;  %v7919_v41 = vsub.f32 1.0, %v7918_v63 }
 0xa9f   : > { %v7876_v55 = vadd.f32 %v16281_v45, %v7875_v58  ;;  %v16428_v40 = vpop.eup %11598  ;;  %v7854_v21 = vor.u32 1.1754944e-38, %v7853_v31  ;;  %vm7879_vm5 = vmor %vm7877_vm4, %vm7878_vm3  ;;  %v7884_v57 = vor.u32 1.1754944e-38, %v7883_v11  ;;  %11602 = vpow2.f32 %v10552_v14 }
 0xaa0   : > { %v10551_v50 = vmul.f32 -1.442695, %v6585_v30  ;;  %v11601_v42 = vpop.eup %11600  ;;  %vm7852_vm6 = vcmp.eq.f32.partialorder %v7851_v9, 8.507059e+37  ;;  %vm7882_vm7 = vcmp.eq.f32.partialorder %v7881_v24, 8.507059e+37  ;;  %v7920_v23 = vmul.f32 %v16337_v49, %v7919_v41 }
 0xaa1   : > { %v7880_v18 = vsel %vm7879_vm5, %v16281_v45, %v7876_v55  ;;  %11604 = vrcp.f32 %v16382_v52  ;;  %v7855_v22 = vsel %vm7852_vm6, %v7854_v21, %v7850_v48  ;;  %v10554_v31 = vmul.f32 -1.442695, %v6691_v12  ;;  %v6589_v48 = vpop.f32.mrf.mxu3 }
 0xaa2   : > { %8759 = vmatmul.bf16.gmra.mxu3 %v15553_v16  ;;  %8863 = vmatmul.bf16.gmra.mxu0 %v15480_v60  ;;  %v7885_v63 = vsel %vm7882_vm7, %v7884_v57, %v7880_v18  ;;  %v7903_v11 = vmul.f32 %v16343_v46, %v16283_v27  ;;  %11606 = vpow2.f32 %v10551_v50  ;;  %v7948_v24 = vmul.f32 %v16368_v32, %v16285_v7  ;;  %v6695_v14 = vpop.f32.mrf.mxu0 }
 0xaa3   : > { %v16439_v39 = vpack.c.bf16 %v7885_v63, %v7855_v22  ;;  %11608 = vrcp.f32 %v16417_v28  ;;  %v7921_v45 = vadd.f32 %v16337_v49, %v7920_v23  ;;  %vm7922_vm8 = vweird.f32 %v16267_v53 }
 0xaa4   : > { %vm7923_vm9 = vweird.f32 %v16337_v49  ;;  %v16447_v21 = vpop.f32.mrf.mxu2  ;;  %v16449_v15 = vadd.f32 1.0, %v11601_v42  ;;  %v7926_v62 = vand.u32 2147483647, %v16267_v53  ;;  %v7928_v9 = vand.u32 2147483648, %v16267_v53 }
 0xaa5   : > { %8586 = vmatmul.bf16.gmra.mxu1 %v16439_v39  ;;  %v7949_v58 = vsub.f32 1.0, %v7948_v24  ;;  %v11603_v30 = vpop.eup %11602  ;;  %11610 = vpow2.f32 %v10554_v31  ;;  %v7958_v55 = vand.u32 2147483648, %v16285_v7  ;;  %v8553_v12 = vadd.f32 %v8552_v51, %v15590_v36  ;;  %vm16459_vm10 = vmor %vm7922_vm8, %vm7923_vm9  ;;  %v16466_v23 = vpop.f32.mrf.mxu1 }
 0xaa6   : > { %v6587_v41 = vadd.f32 %v6586_v59, %v14553_v4  ;;  %vm7953_vm11 = vweird.f32 %v16368_v32  ;;  %v7956_v42 = vand.u32 2147483647, %v16285_v7  ;;  %v7904_v18 = vsub.f32 1.0, %v7903_v11 }
 0xaa7   : > { %v7950_v50 = vmul.f32 %v16368_v32, %v7949_v58  ;;  %v16468_v22 = vpop.eup %11604  ;;  %v16472_v51 = vmul.f32 %v16428_v40, %v16361_v20  ;;  %v16474_v53 = vadd.f32 1.0, %v11603_v30  ;;  %v7925_v59 = vsel %vm16459_vm10, %v16337_v49, %v7921_v45 }
 0xaa8   : > { %v16480_v63 = vadd.f32 %v16397_v8, %v8553_v12  ;;  %v11607_v31 = vpop.eup %11606  ;;  %v7929_v24 = vor.u32 1.1754944e-38, %v7928_v9  ;;  %vm7952_vm12 = vweird.f32 %v16285_v7  ;;  %v7905_v58 = vmul.f32 %v16343_v46, %v7904_v18 }
 0xaa9   : > { %v7951_v11 = vadd.f32 %v16368_v32, %v7950_v50  ;;  %v16485_v16 = vpop.eup %11608  ;;  %11612 = vrcp.f32 %v16449_v15  ;;  %vm7927_vm13 = vcmp.eq.f32.partialorder %v7926_v62, 8.507059e+37  ;;  %vm7954_vm14 = vmor %vm7952_vm12, %vm7953_vm11  ;;  %v7959_v49 = vor.u32 1.1754944e-38, %v7958_v55 }
 0xaaa   : > { %v10553_v45 = vmul.f32 -1.442695, %v6587_v41  ;;  %v7930_v8 = vsel %vm7927_vm13, %v7929_v24, %v7925_v59  ;;  %vm7957_vm15 = vcmp.eq.f32.partialorder %v7956_v42, 8.507059e+37  ;;  %v7933_v9 = vmul.f32 %v16415_v26, %v16318_v1 }
 0xaab   : > { %v7955_v30 = vsel %vm7954_vm14, %v16368_v32, %v7951_v11  ;;  %v11611_v7 = vpop.eup %11610  ;;  %11614 = vrcp.f32 %v16474_v53  ;;  %v16494_v12 = vadd.f32 1.0, %v11607_v31  ;;  %vm7907_vm0 = vweird.f32 %v16283_v27  ;;  %v16501_v32 = vpop.f32.mrf.mxu3 }
 0xaac   : > { %v7960_v57 = vsel %vm7957_vm15, %v7959_v49, %v7955_v30  ;;  %v7906_v55 = vadd.f32 %v16343_v46, %v7905_v58  ;;  %vm7908_vm1 = vweird.f32 %v16343_v46  ;;  %v7934_v41 = vsub.f32 1.0, %v7933_v9 }
 0xaad   : > { %v16497_v62 = vpack.c.bf16 %v7960_v57, %v7930_v8  ;;  %11616 = vpow2.f32 %v10553_v45  ;;  %v7911_v50 = vand.u32 2147483647, %v16283_v27  ;;  %v7913_v42 = vand.u32 2147483648, %v16283_v27  ;;  %vm16525_vm3 = vmor %vm7907_vm0, %vm7908_vm1 }
 0xaae   : > { %vm7938_vm2 = vweird.f32 %v16415_v26  ;;  %v7935_v31 = vmul.f32 %v16415_v26, %v7934_v41  ;;  %v7941_v24 = vand.u32 2147483647, %v16318_v1  ;;  %v7943_v11 = vand.u32 2147483648, %v16318_v1 }
 0xaaf   : > { %v16506_v18 = vpop.f32.mrf.mxu2  ;;  %v16508_v59 = vpop.f32.mrf.mxu0  ;;  %8695 = vmatmul.bf16.gmra.mxu2 %v16497_v62  ;;  %v6694_v58 = vadd.f32 %v16401_v13, %v14544_v5  ;;  %11618 = vrcp.f32 %v16494_v12  ;;  %v16519_v45 = vadd.f32 1.0, %v11611_v7  ;;  %v6590_v30 = vadd.f32 %v6589_v48, %v14553_v4 }
 0xab0   : > { %v16516_v49 = vpop.eup %11612  ;;  %v6696_v9 = vadd.f32 %v6695_v14, %v14544_v5  ;;  %v7910_v13 = vsel %vm16525_vm3, %v16343_v46, %v7906_v55  ;;  %v7936_v57 = vadd.f32 %v16415_v26, %v7935_v31  ;;  %vm7937_vm4 = vweird.f32 %v16318_v1 }
 0xab1   : > { %v10556_v7 = vmul.f32 -1.442695, %v6694_v58  ;;  %v16538_v27 = vpop.eup %11614  ;;  %v7914_v60 = vor.u32 1.1754944e-38, %v7913_v42  ;;  %vm7939_vm5 = vmor %vm7937_vm4, %vm7938_vm2  ;;  %v7944_v5 = vor.u32 1.1754944e-38, %v7943_v11  ;;  %v10555_v48 = vmul.f32 -1.442695, %v6590_v30 }
 0xab2   : > { %v8557_v41 = vpop.f32.mrf.mxu1  ;;  %8764 = vmatmul.bf16.gmra.mxu3 %v15700_v6  ;;  %8868 = vmatmul.bf16.gmra.mxu0 %v15640_v2  ;;  %v7979_v46 = vsub.f32 1.0, %v16472_v51  ;;  %vm7912_vm6 = vcmp.eq.f32.partialorder %v7911_v50, 8.507059e+37  ;;  %v7940_v14 = vsel %vm7939_vm5, %v16415_v26, %v7936_v57  ;;  %vm7942_vm7 = vcmp.eq.f32.partialorder %v7941_v24, 8.507059e+37 }
 0xab3   : > { %v10558_v1 = vmul.f32 -1.442695, %v6696_v9  ;;  %v11617_v55 = vpop.eup %11616  ;;  %v7915_v31 = vsel %vm7912_vm6, %v7914_v60, %v7910_v13  ;;  %v7945_v58 = vsel %vm7942_vm7, %v7944_v5, %v7940_v14  ;;  %11620 = vpow2.f32 %v10556_v7 }
 0xab4   : > { %v7980_v8 = vmul.f32 %v16428_v40, %v7979_v46  ;;  %v7963_v42 = vmul.f32 %v16468_v22, %v16382_v52  ;;  %v16547_v6 = vpack.c.bf16 %v7945_v58, %v7915_v31  ;;  %11622 = vpow2.f32 %v10555_v48 }
 0xab5   : > { %vm7983_vm8 = vweird.f32 %v16428_v40  ;;  %v16550_v51 = vpop.f32.mrf.mxu3  ;;  %v16552_v50 = vpop.eup %11618  ;;  %11624 = vrcp.f32 %v16519_v45  ;;  %v7988_v26 = vand.u32 2147483648, %v16361_v20  ;;  %v8008_v24 = vmul.f32 %v16485_v16, %v16417_v28 }
 0xab6   : > { %v7981_v60 = vadd.f32 %v16428_v40, %v7980_v8  ;;  %v16561_v30 = vadd.f32 1.0, %v11617_v55  ;;  %8591 = vmatmul.bf16.gmra.mxu1 %v16547_v6  ;;  %11626 = vpow2.f32 %v10558_v1  ;;  %vm7982_vm9 = vweird.f32 %v16361_v20 }
 0xab7   : > { %v16559_v11 = vpop.f32.mrf.mxu0  ;;  %v7986_v9 = vand.u32 2147483647, %v16361_v20  ;;  %v16568_v13 = vmul.f32 %v16538_v27, %v16474_v53  ;;  %vm16570_vm10 = vmor %vm7982_vm9, %vm7983_vm8  ;;  %v8009_v7 = vsub.f32 1.0, %v8008_v24  ;;  %v8016_v5 = vand.u32 2147483647, %v16417_v28  ;;  %v16576_v46 = vpop.f32.mrf.mxu2 }
 0xab8   : > { %v8558_v48 = vadd.f32 %v8557_v41, %v15590_v36  ;;  %17530 = vst [vmem:[#allocation2_spill] sm:$0xff] %v16576_v46  ;;  %v7985_v14 = vsel %vm16570_vm10, %v16428_v40, %v7981_v60  ;;  %v8018_v20 = vand.u32 2147483648, %v16417_v28  ;;  %v6592_v1 = vadd.f32 %v16501_v32, %v14553_v4 }
 0xab9   : > { %v7964_v55 = vsub.f32 1.0, %v7963_v42  ;;  %v11621_v31 = vpop.eup %11620  ;;  %v7989_v58 = vor.u32 1.1754944e-38, %v7988_v26  ;;  %v8010_v8 = vmul.f32 %v16485_v16, %v8009_v7  ;;  %vm8013_vm11 = vweird.f32 %v16485_v16 }
 0xaba   : > { %v16587_v41 = vadd.f32 %v16506_v18, %v8558_v48  ;;  %v16589_v24 = vpop.f32.mrf.mxu1  ;;  %v11623_v2 = vpop.eup %11622  ;;  %11628 = vrcp.f32 %v16561_v30  ;;  %v16592_v40 = vadd.f32 1.0, %v11621_v31  ;;  %vm7987_vm12 = vcmp.eq.f32.partialorder %v7986_v9, 8.507059e+37  ;;  %v10665_v31 = vld [vmem:[%s17174_s5 + $0xc8] sm:$0xf] }
 0xabb   : > { %17532 = vst [vmem:[#allocation40_spill] sm:$0xff] %v16589_v24  ;;  %v7965_v4 = vmul.f32 %v16468_v22, %v7964_v55  ;;  %v16595_v32 = vpop.eup %11624  ;;  %v7990_v42 = vsel %vm7987_vm12, %v7989_v58, %v7985_v14  ;;  %v8011_v60 = vadd.f32 %v16485_v16, %v8010_v8  ;;  %vm8012_vm13 = vweird.f32 %v16417_v28 }
 0xabc   : > { %17531 = vst [vmem:[#allocation41_spill] sm:$0xff] %v16587_v41  ;;  %v10557_v26 = vmul.f32 -1.442695, %v6592_v1  ;;  %v11627_v18 = vpop.eup %11626  ;;  %vm8014_vm14 = vmor %vm8012_vm13, %vm8013_vm11  ;;  %vm8017_vm15 = vcmp.eq.f32.partialorder %v8016_v5, 8.507059e+37  ;;  %v8019_v57 = vor.u32 1.1754944e-38, %v8018_v20  ;;  %vm7967_vm0 = vweird.f32 %v16382_v52 }
 0xabd   : > { %v7993_v7 = vmul.f32 %v16516_v49, %v16449_v15  ;;  %v16602_v9 = vpop.f32.mrf.mxu3  ;;  %v16604_v48 = vadd.f32 1.0, %v11623_v2  ;;  %v8015_v14 = vsel %vm8014_vm14, %v16485_v16, %v8011_v60  ;;  %v7966_v55 = vadd.f32 %v16468_v22, %v7965_v4  ;;  %v11004_v16 = vld [vmem:[%s17174_s5 + $0xd0] sm:$0xf0] }
 0xabe   : > { %vm7968_vm1 = vweird.f32 %v16468_v22  ;;  %11630 = vrcp.f32 %v16592_v40  ;;  %v8020_v5 = vsel %vm8017_vm15, %v8019_v57, %v8015_v14  ;;  %v7973_v20 = vand.u32 2147483648, %v16382_v52 }
 0xabf   : > { %v16609_v28 = vpop.f32.mrf.mxu0  ;;  %v7994_v1 = vsub.f32 1.0, %v7993_v7  ;;  %v16619_v2 = vadd.f32 1.0, %v11627_v18  ;;  %v16621_v58 = vpack.c.bf16 %v8020_v5, %v7990_v42  ;;  %11632 = vpow2.f32 %v10557_v26  ;;  %vm16628_vm2 = vmor %vm7967_vm0, %vm7968_vm1  ;;  %v16645_v7 = vld [vmem:[%s17177_s8] sm:$0x7] }
 0xac0   : > { %v7971_v8 = vand.u32 2147483647, %v16382_v52  ;;  %v16624_v4 = vpop.eup %11628  ;;  %vm7998_vm3 = vweird.f32 %v16516_v49  ;;  %v8001_v18 = vand.u32 2147483647, %v16449_v15  ;;  %v8003_v42 = vand.u32 2147483648, %v16449_v15  ;;  %17535 = vst [vmem:[#allocation3_spill] sm:$0xff] %v16645_v7 }
 0xac1   : > { %v7995_v57 = vmul.f32 %v16516_v49, %v7994_v1  ;;  %8700 = vmatmul.bf16.gmra.mxu2 %v16621_v58  ;;  %v7970_v52 = vsel %vm16628_vm2, %v16468_v22, %v7966_v55  ;;  %v10666_v26 = vor.u32 %v11004_v16, %v10665_v31  ;;  %v16648_v14 = vperm.slane %v16645_v7, 1 }
 0xac2   : > { %8769 = vmatmul.bf16.gmra.mxu3 %v15825_v25  ;;  %8873 = vmatmul.bf16.gmra.mxu0 %v15775_v37  ;;  %v8039_v5 = vsub.f32 1.0, %v16568_v13  ;;  %11634 = vrcp.f32 %v16604_v48  ;;  %v7974_v25 = vor.u32 1.1754944e-38, %v7973_v20  ;;  %vm7997_vm4 = vweird.f32 %v16449_v15 }
 0xac3   : > { %v8666_v1 = vpop.f32.mrf.mxu2  ;;  %v7996_v37 = vadd.f32 %v16516_v49, %v7995_v57  ;;  %vm7972_vm5 = vcmp.eq.f32.partialorder %v7971_v8, 8.507059e+37  ;;  %vm7999_vm6 = vmor %vm7997_vm4, %vm7998_vm3  ;;  %v8004_v22 = vor.u32 1.1754944e-38, %v8003_v42  ;;  %9035 = vmatpush.bf16.msra.mxu2 %v10666_v26  ;;  %v8726_v55 = vadd.f32 %v16550_v51, %v16648_v14 }
 0xac4   : > { %v8040_v31 = vmul.f32 %v16538_v27, %v8039_v5  ;;  %v16659_v16 = vpop.eup %11630  ;;  %v7975_v20 = vsel %vm7972_vm5, %v7974_v25, %v7970_v52  ;;  %vm8002_vm7 = vcmp.eq.f32.partialorder %v8001_v18, 8.507059e+37  ;;  %v8046_v15 = vand.u32 2147483647, %v16474_v53  ;;  %v10980_v18 = vld [vmem:[%s17174_s5 + $0x10] sm:$0xf0] }
 0xac5   : > { %v8562_v13 = vpop.f32.mrf.mxu1  ;;  %v8000_v60 = vsel %vm7999_vm6, %v16516_v49, %v7996_v37  ;;  %v16663_v8 = vpop.f32.mrf.mxu3  ;;  %v8830_v26 = vadd.f32 %v16508_v59, %v8726_v55  ;;  %vm8043_vm8 = vweird.f32 %v16538_v27  ;;  %v8023_v25 = vmul.f32 %v16552_v50, %v16494_v12  ;;  %v10569_v49 = vld [vmem:[%s17174_s5 + $0x8] sm:$0xf] }
 0xac6   : > { %v11633_v57 = vpop.eup %11632  ;;  %v8005_v42 = vsel %vm8002_vm7, %v8004_v22, %v8000_v60  ;;  %v8041_v51 = vadd.f32 %v16538_v27, %v8040_v31  ;;  %11636 = vrcp.f32 %v16619_v2  ;;  %v8068_v59 = vmul.f32 %v16595_v32, %v16519_v45 }
 0xac7   : > { %v16668_v5 = vpop.f32.mrf.mxu0  ;;  %v16673_v37 = vpack.c.bf16 %v8005_v42, %v7975_v20  ;;  %v16692_v52 = vmul.f32 %v16659_v16, %v16592_v40  ;;  %v9132_v22 = vpack.c.bf16 %v8830_v26, %v15623_v17  ;;  %vm8042_vm9 = vweird.f32 %v16474_v53 }
 0xac8   : > { %v8048_v55 = vand.u32 2147483648, %v16474_v53  ;;  %v16697_v31 = vpop.eup %11634  ;;  %v16699_v20 = vadd.f32 1.0, %v11633_v57  ;;  %vm16704_vm10 = vmor %vm8042_vm9, %vm8043_vm8  ;;  %vm16708_vm11 = vcmp.eq.f32.partialorder %v8046_v15, 8.507059e+37  ;;  %v8069_v17 = vsub.f32 1.0, %v8068_v59 }
 0xac9   : > { %8596 = vmatmul.bf16.gmra.mxu1 %v16673_v37  ;;  %v8076_v26 = vand.u32 2147483647, %v16519_v45  ;;  %9208 = vst [vmem:[%s16680_s26] sm:$0xff] %v9132_v22  ;;  %v8045_v53 = vsel %vm16704_vm10, %v16538_v27, %v8041_v51  ;;  %v8078_v57 = vand.u32 2147483648, %v16519_v45  ;;  %v10570_v7 = vor.u32 %v10980_v18, %v10569_v49 }
 0xaca   : > { %v8563_v46 = vadd.f32 %v8562_v13, %v15590_v36  ;;  %v8070_v24 = vmul.f32 %v16595_v32, %v8069_v17  ;;  %vm8073_vm12 = vweird.f32 %v16595_v32  ;;  %v8728_v15 = vadd.f32 %v16602_v9, %v16648_v14 }
 0xacb   : > { %v8024_v59 = vsub.f32 1.0, %v8023_v25  ;;  %v16723_v41 = vpop.f32.mrf.mxu2  ;;  %v8049_v22 = vor.u32 1.1754944e-38, %v8048_v55  ;;  %vm8072_vm13 = vweird.f32 %v16519_v45  ;;  %vm16726_vm14 = vcmp.eq.f32.partialorder %v8076_v26, 8.507059e+37  ;;  %8931 = vmatpush.bf16.msra.mxu1 %v10570_v7 }
 0xacc   : > { %v16730_v51 = vadd.f32 %v8666_v1, %v8563_v46  ;;  %v16732_v13 = vpop.eup %11636  ;;  %v8071_v49 = vadd.f32 %v16595_v32, %v8070_v24  ;;  %v8832_v18 = vadd.f32 %v16559_v11, %v8728_v15  ;;  %vm8028_vm15 = vweird.f32 %v16552_v50  ;;  %vm8074_vm0 = vmor %vm8072_vm13, %vm8073_vm12 }
 0xacd   : > { %v8025_v9 = vmul.f32 %v16552_v50, %v8024_v59  ;;  %v16738_v25 = vpop.f32.mrf.mxu1  ;;  %v8732_v45 = vpop.f32.mrf.mxu3  ;;  %v8079_v55 = vor.u32 1.1754944e-38, %v8078_v57  ;;  %vm8027_vm1 = vweird.f32 %v16494_v12  ;;  %v8033_v46 = vand.u32 2147483648, %v16494_v12 }
 0xace   : > { %v8053_v24 = vmul.f32 %v16624_v4, %v16561_v30  ;;  %v8075_v7 = vsel %vm8074_vm0, %v16595_v32, %v8071_v49  ;;  %v9134_v1 = vpack.c.bf16 %v8832_v18, %v16309_v54  ;;  %v8031_v17 = vand.u32 2147483647, %v16494_v12  ;;  %vm16758_vm2 = vmor %vm8027_vm1, %vm8028_vm15 }
 0xacf   : > { %v16746_v11 = vpop.f32.mrf.mxu0  ;;  %v8026_v60 = vadd.f32 %v16552_v50, %v8025_v9  ;;  %v8050_v26 = vsel %vm16708_vm11, %v8049_v22, %v8045_v53  ;;  %v8080_v57 = vsel %vm16726_vm14, %v8079_v55, %v8075_v7  ;;  %v8061_v32 = vand.u32 2147483647, %v16561_v30 }
 0xad0   : > { %v8054_v59 = vsub.f32 1.0, %v8053_v24  ;;  %v8083_v54 = vmul.f32 %v16697_v31, %v16604_v48  ;;  %v16765_v49 = vpack.c.bf16 %v8080_v57, %v8050_v26  ;;  %9210 = vst [vmem:[%s16680_s26 + $0xc] sm:$0xff] %v9134_v1  ;;  %v8063_v42 = vand.u32 2147483648, %v16561_v30  ;;  %v17544_v1 = vld [vmem:[#allocation21_spill] sm:$0xff] }
 0xad1   : > { %v8030_v12 = vsel %vm16758_vm2, %v16552_v50, %v8026_v60  ;;  %v8034_v53 = vor.u32 1.1754944e-38, %v8033_v46  ;;  %vm8058_vm3 = vweird.f32 %v16624_v4  ;;  %v8731_v27 = vadd.f32 %v16663_v8, %v16648_v14 }
 0xad2   : > { %8774 = vmatmul.bf16.gmra.mxu3 %v15942_v56  ;;  %v8055_v22 = vmul.f32 %v16624_v4, %v8054_v59  ;;  %8878 = vmatmul.bf16.gmra.mxu0 %v15893_v19  ;;  %11638 = vrcp.f32 %v16699_v20  ;;  %vm8032_vm4 = vcmp.eq.f32.partialorder %v8031_v17, 8.507059e+37  ;;  %vm8057_vm5 = vweird.f32 %v16561_v30 }
 0xad3   : > { %8705 = vmatmul.bf16.gmra.mxu2 %v16765_v49  ;;  %v8099_v50 = vsub.f32 1.0, %v16692_v52  ;;  %v8035_v18 = vsel %vm8032_vm4, %v8034_v53, %v8030_v12  ;;  %vm8062_vm6 = vcmp.eq.f32.partialorder %v8061_v32, 8.507059e+37  ;;  %v8835_v55 = vadd.f32 %v16609_v28, %v8731_v27  ;;  %vm8059_vm7 = vmor %vm8057_vm5, %vm8058_vm3 }
 0xad4   : > { %v8056_v9 = vadd.f32 %v16624_v4, %v8055_v22  ;;  %v8064_v46 = vor.u32 1.1754944e-38, %v8063_v42  ;;  %vm8102_vm8 = vweird.f32 %v16592_v40  ;;  %v8128_v24 = vmul.f32 %v16732_v13, %v16619_v2 }
 0xad5   : > { %v8100_v8 = vmul.f32 %v16659_v16, %v8099_v50  ;;  %v8735_v30 = vpop.f32.mrf.mxu3  ;;  %v9136_v60 = vpack.c.bf16 %v8835_v55, %v17544_v1  ;;  %vm8103_vm9 = vweird.f32 %v16659_v16  ;;  %v8106_v28 = vand.u32 2147483647, %v16592_v40  ;;  %v17547_v55 = vld [vmem:[#allocation30_spill] sm:$0xff] }
 0xad6   : > { %v8671_v7 = vpop.f32.mrf.mxu2  ;;  %v8060_v52 = vsel %vm8059_vm7, %v16624_v4, %v8056_v9  ;;  %v8108_v15 = vand.u32 2147483648, %v16592_v40  ;;  %v8129_v59 = vsub.f32 1.0, %v8128_v24  ;;  %vm8133_vm10 = vweird.f32 %v16732_v13  ;;  %vm16804_vm11 = vmor %vm8102_vm8, %vm8103_vm9 }
 0xad7   : > { %v16792_v17 = vpop.f32.mrf.mxu0  ;;  %v8065_v26 = vsel %vm8062_vm6, %v8064_v46, %v8060_v52  ;;  %v8101_v57 = vadd.f32 %v16659_v16, %v8100_v8  ;;  %v8567_v32 = vpop.f32.mrf.mxu1  ;;  %9212 = vst [vmem:[%s16680_s26 + $0x18] sm:$0xff] %v9136_v60  ;;  %v8138_v4 = vand.u32 2147483648, %v16619_v2  ;;  %v8136_v50 = vand.u32 2147483647, %v16619_v2 }
 0xad8   : > { %v16796_v12 = vpack.c.bf16 %v8065_v26, %v8035_v18  ;;  %v8568_v42 = vadd.f32 %v8567_v32, %v15590_v36  ;;  %v11639_v53 = vpop.eup %11638  ;;  %v8130_v27 = vmul.f32 %v16732_v13, %v8129_v59  ;;  %v8733_v18 = vadd.f32 %v8732_v45, %v16648_v14 }
 0xad9   : > { %v8084_v9 = vsub.f32 1.0, %v8083_v54  ;;  %v8629_v46 = vadd.f32 %v17547_v55, %v16347_v3  ;;  %v8105_v40 = vsel %vm16804_vm11, %v16659_v16, %v8101_v57  ;;  %vm8132_vm12 = vweird.f32 %v16619_v2 }
 0xada   : > { %8601 = vmatmul.bf16.gmra.mxu1 %v16796_v12  ;;  %v16818_v8 = vadd.f32 %v8671_v7, %v8568_v42  ;;  %v8109_v24 = vor.u32 1.1754944e-38, %v8108_v15  ;;  %v8131_v52 = vadd.f32 %v16732_v13, %v8130_v27  ;;  %v8837_v1 = vadd.f32 %v16668_v5, %v8733_v18  ;;  %vm8134_vm14 = vmor %vm8132_vm12, %vm8133_vm10 }
 0xadb   : > { %v8085_v45 = vmul.f32 %v16697_v31, %v8084_v9  ;;  %v8530_v3 = vadd.f32 %v15828_v43, %v15590_v36  ;;  %vm8107_vm13 = vcmp.eq.f32.partialorder %v8106_v28, 8.507059e+37  ;;  %v8139_v16 = vor.u32 1.1754944e-38, %v8138_v4 }
 0xadc   : > { %v8113_v2 = vmul.f32 %v11639_v53, %v16699_v20  ;;  %v8110_v54 = vsel %vm8107_vm13, %v8109_v24, %v8105_v40  ;;  %v8135_v7 = vsel %vm8134_vm14, %v16732_v13, %v8131_v52  ;;  %vm8137_vm15 = vcmp.eq.f32.partialorder %v8136_v50, 8.507059e+37  ;;  %v17552_v50 = vld [vmem:[#allocation14_spill] sm:$0xff] }
 0xadd   : > { %v9138_v60 = vpack.c.bf16 %v8837_v1, %v8629_v46  ;;  %v8737_v5 = vpop.f32.mrf.mxu3  ;;  %v8140_v57 = vsel %vm8137_vm15, %v8139_v16, %v8135_v7  ;;  %v8086_v15 = vadd.f32 %v16697_v31, %v8085_v45  ;;  %vm8088_vm0 = vweird.f32 %v16697_v31 }
 0xade   : > { %v16829_v26 = vpop.f32.mrf.mxu2  ;;  %v8114_v43 = vsub.f32 1.0, %v8113_v2  ;;  %v16833_v59 = vpack.c.bf16 %v8140_v57, %v8110_v54  ;;  %vm8087_vm1 = vweird.f32 %v16604_v48  ;;  %v8091_v32 = vand.u32 2147483647, %v16604_v48 }
 0xadf   : > { %v8844_v28 = vpop.f32.mrf.mxu0  ;;  %9214 = vst [vmem:[%s16680_s26 + $0x24] sm:$0xff] %v9138_v60  ;;  %v8093_v13 = vand.u32 2147483648, %v16604_v48  ;;  %vm8118_vm2 = vweird.f32 %v11639_v53  ;;  %v8121_v42 = vand.u32 2147483647, %v16699_v20  ;;  %v8123_v22 = vand.u32 2147483648, %v16699_v20  ;;  %v16841_v27 = vpop.f32.mrf.mxu1  ;;  %vm16843_vm3 = vmor %vm8087_vm1, %vm8088_vm0 }
 0xae0   : > { %v8115_v4 = vmul.f32 %v11639_v53, %v8114_v43  ;;  %v8736_v18 = vadd.f32 %v8735_v30, %v16648_v14  ;;  %v8738_v9 = vadd.f32 %v8737_v5, %v16648_v14  ;;  %v8634_v48 = vadd.f32 %v15830_v0, %v8530_v3 }
 0xae1   : > { %v8090_v55 = vsel %vm16843_vm3, %v16697_v31, %v8086_v15  ;;  %vm8117_vm4 = vweird.f32 %v16699_v20  ;;  %v8094_v40 = vor.u32 1.1754944e-38, %v8093_v13  ;;  %v8124_v30 = vor.u32 1.1754944e-38, %v8123_v22  ;;  %v17551_v13 = vld [vmem:[#allocation25_spill] sm:$0xff] }
 0xae2   : > { %8779 = vmatmul.bf16.gmra.mxu3 %v16067_v35  ;;  %v8116_v46 = vadd.f32 %v11639_v53, %v8115_v4  ;;  %8883 = vmatmul.bf16.gmra.mxu0 %v16013_v61  ;;  %vm8119_vm5 = vmor %vm8117_vm4, %vm8118_vm2  ;;  %v8840_v24 = vadd.f32 %v16746_v11, %v8736_v18  ;;  %v8842_v0 = vadd.f32 %v16792_v17, %v8738_v9  ;;  %vm8092_vm6 = vcmp.eq.f32.partialorder %v8091_v32, 8.507059e+37 }
 0xae3   : > { %8710 = vmatmul.bf16.gmra.mxu2 %v16833_v59  ;;  %vm8122_vm7 = vcmp.eq.f32.partialorder %v8121_v42, 8.507059e+37  ;;  %v8095_v31 = vsel %vm8092_vm6, %v8094_v40, %v8090_v55 }
 0xae4   : > { %v8120_v52 = vsel %vm8119_vm5, %v11639_v53, %v8116_v46  ;;  %v9140_v20 = vpack.c.bf16 %v8840_v24, %v15867_v10  ;;  %v9142_v45 = vpack.c.bf16 %v8842_v0, %v8634_v48  ;;  %v17550_v10 = vld [vmem:[#allocation34_spill] sm:$0xff]  ;;  %v17553_v46 = vld [vmem:[#allocation7_spill] sm:$0xff]  ;;  %v17555_v0 = vld [vmem:[#allocation24_spill] sm:$0xff] }
 0xae5   : > { %v8125_v1 = vsel %vm8122_vm7, %v8124_v30, %v8120_v52  ;;  %v8740_v3 = vpop.f32.mrf.mxu3  ;;  %v8535_v5 = vadd.f32 %v17550_v10, %v15590_v36  ;;  %v17554_v30 = vld [vmem:[#allocation29_spill] sm:$0xff]  ;;  %v8540_v52 = vadd.f32 %v17555_v0, %v15590_v36 }
 0xae6   : > { %v16861_v16 = vpack.c.bf16 %v8125_v1, %v8095_v31  ;;  %v8741_v2 = vadd.f32 %v8740_v3, %v16648_v14  ;;  %9216 = vst [vmem:[%s16680_s26 + $0x30] sm:$0xff] %v9140_v20 }
 0xae7   : > { %v8846_v54 = vpop.f32.mrf.mxu0  ;;  %v8676_v7 = vpop.f32.mrf.mxu2  ;;  %9218 = vst [vmem:[%s16680_s26 + $0x3c] sm:$0xff] %v9142_v45 }
 0xae8   : > { %v8845_v11 = vadd.f32 %v8844_v28, %v8741_v2  ;;  %v8639_v28 = vadd.f32 %v17551_v13, %v8535_v5 }
 0xaea   : > { %8606 = vmatmul.bf16.gmra.mxu1 %v16861_v16  ;;  %v8572_v17 = vpop.f32.mrf.mxu1  ;;  %v9144_v53 = vpack.c.bf16 %v8845_v11, %v15985_v33 }
 0xaeb   : > { %v8573_v60 = vadd.f32 %v8572_v17, %v15590_v36 }
 0xaec   : > { %9220 = vst [vmem:[%s16680_s26 + $0x48] sm:$0xff] %v9144_v53  ;;  %v17557_v53 = vld [vmem:[#allocation32_spill] sm:$0xff] }
 0xaed   : > { %v16872_v57 = vadd.f32 %v8676_v7, %v8573_v60  ;;  %v8742_v15 = vpop.f32.mrf.mxu3  ;;  %v17558_v60 = vld [vmem:[#allocation6_spill] sm:$0xff] }
 0xaee   : > { %v8743_v43 = vadd.f32 %v8742_v15, %v16648_v14 }
 0xaef   : > { %v8849_v32 = vpop.f32.mrf.mxu0  ;;  %v16876_v4 = vpop.f32.mrf.mxu2 }
 0xaf0   : > { %v8847_v42 = vadd.f32 %v8846_v54, %v8743_v43  ;;  %v17556_v54 = vld [vmem:[#allocation39_spill] sm:$0xff] }
 0xaf1   : > { %v8644_v7 = vadd.f32 %v17556_v54, %v8540_v52 }
 0xaf2   : > { %8784 = vmatmul.bf16.gmra.mxu3 %v16187_v29  ;;  %v16879_v33 = vpop.f32.mrf.mxu1  ;;  %v9146_v22 = vpack.c.bf16 %v8847_v42, %v8639_v28  ;;  %8888 = vmatmul.bf16.gmra.mxu0 %v16141_v44  ;;  %v17559_v28 = vld [vmem:[#allocation42_spill] sm:$0xff]  ;;  %v17560_v42 = vld [vmem:[#allocation33_spill] sm:$0xff] }
 0xaf3   : > { %9036 = vmatmul.bf16.vlgmr.msra.gmra.mxu2 %v17552_v50  ;;  %v17561_v50 = vld [vmem:[#allocation45_spill] sm:$0xff] }
 0xaf4   : > { %9222 = vst [vmem:[%s16680_s26 + $0x54] sm:$0xff] %v9146_v22 }
 0xaf5   : > { %v8745_v18 = vpop.f32.mrf.mxu3 }
 0xaf6   : > { %v8746_v9 = vadd.f32 %v8745_v18, %v16648_v14  ;;  %v8545_v18 = vadd.f32 %v17561_v50, %v15590_v36  ;;  %v17566_v50 = vld [vmem:[#allocation37_spill] sm:$0xff] }
 0xaf7   : > { %v8851_v48 = vpop.f32.mrf.mxu0 }
 0xaf8   : > { %v8850_v55 = vadd.f32 %v8849_v32, %v8746_v9 }
 0xafa   : > { %8932 = vmatmul.bf16.vlgmr.msra.gmra.mxu1 %v17553_v46  ;;  %v8681_v40 = vpop.f32.mrf.mxu2  ;;  %v9148_v24 = vpack.c.bf16 %v8850_v55, %v17554_v30  ;;  %v17562_v30 = vld [vmem:[#allocation28_spill] sm:$0xff] }
 0xafc   : > { %v8577_v31 = vpop.f32.mrf.mxu1  ;;  %9224 = vst [vmem:[%s16680_s26 + $0x60] sm:$0xff] %v9148_v24  ;;  %v8649_v24 = vadd.f32 %v17562_v30, %v8545_v18 }
 0xafd   : > { %v8578_v1 = vadd.f32 %v8577_v31, %v15590_v36  ;;  %v8747_v20 = vpop.f32.mrf.mxu3 }
 0xafe   : > { %v8748_v45 = vadd.f32 %v8747_v20, %v16648_v14  ;;  %v17563_v20 = vld [vmem:[#allocation44_spill] sm:$0xff] }
 0xaff   : > { %v8854_v3 = vpop.f32.mrf.mxu0  ;;  %v16892_v2 = vadd.f32 %v8681_v40, %v8578_v1 }
 0xb00   : > { %v8852_v11 = vadd.f32 %v8851_v48, %v8748_v45 }
 0xb02   : > { %8789 = vmatmul.bf16.gmra.mxu3 %v16311_v34  ;;  %v9150_v17 = vpack.c.bf16 %v8852_v11, %v8644_v7  ;;  %8893 = vmatmul.bf16.gmra.mxu0 %v17557_v53  ;;  %v16898_v10 = vpop.f32.mrf.mxu2 }
 0xb03   : > { %9041 = vmatmul.bf16.gmra.mxu2 %v17558_v60  ;;  %v17564_v60 = vld [vmem:[#allocation43_spill] sm:$0xff] }
 0xb04   : > { %9226 = vst [vmem:[%s16680_s26 + $0x6c] sm:$0xff] %v9150_v17  ;;  %v16901_v5 = vpop.f32.mrf.mxu1 }
 0xb05   : > { %v8750_v15 = vpop.f32.mrf.mxu3 }
 0xb06   : > { %v8751_v43 = vadd.f32 %v8750_v15, %v16648_v14 }
 0xb07   : > { %v8856_v32 = vpop.f32.mrf.mxu0 }
 0xb08   : > { %v8855_v13 = vadd.f32 %v8854_v3, %v8751_v43  ;;  %v17565_v43 = vld [vmem:[#allocation36_spill] sm:$0xff] }
 0xb0a   : > { %8937 = vmatmul.bf16.gmra.mxu1 %v17559_v28  ;;  %v9152_v22 = vpack.c.bf16 %v8855_v13, %v17560_v42 }
 0xb0c   : > { %9228 = vst [vmem:[%s16680_s26 + $0x78] sm:$0xff] %v9152_v22 }
 0xb0d   : > { %v8686_v9 = vpop.f32.mrf.mxu2  ;;  %v8752_v48 = vpop.f32.mrf.mxu3 }
 0xb0e   : > { %v8753_v55 = vadd.f32 %v8752_v48, %v16648_v14  ;;  %v8582_v40 = vpop.f32.mrf.mxu1 }
 0xb0f   : > { %v8859_v46 = vpop.f32.mrf.mxu0  ;;  %v8583_v0 = vadd.f32 %v8582_v40, %v15590_v36 }
 0xb10   : > { %v8857_v52 = vadd.f32 %v8856_v32, %v8753_v55  ;;  %v8550_v32 = vadd.f32 %v17565_v43, %v15590_v36 }
 0xb11   : > { %v16913_v31 = vadd.f32 %v8686_v9, %v8583_v0 }
 0xb12   : > { %8794 = vmatmul.bf16.gmra.mxu3 %v16439_v39  ;;  %v9154_v1 = vpack.c.bf16 %v8857_v52, %v8649_v24  ;;  %8898 = vmatmul.bf16.gmra.mxu0 %v16393_v38  ;;  %v8654_v18 = vadd.f32 %v17566_v50, %v8550_v32 }
 0xb13   : > { %9046 = vmatmul.bf16.gmra.mxu2 %v17563_v20  ;;  %v17568_v20 = vld [vmem:[#allocation10_spill] sm:$0xff] }
 0xb14   : > { %9230 = vst [vmem:[%s16680_s26 + $0x84] sm:$0xff] %v9154_v1 }
 0xb15   : > { %v16918_v45 = vpop.f32.mrf.mxu2  ;;  %v8755_v3 = vpop.f32.mrf.mxu3 }
 0xb16   : > { %v8756_v54 = vadd.f32 %v8755_v3, %v16648_v14  ;;  %v16921_v11 = vpop.f32.mrf.mxu1 }
 0xb17   : > { %v8861_v7 = vpop.f32.mrf.mxu0 }
 0xb18   : > { %v8860_v17 = vadd.f32 %v8859_v46, %v8756_v54 }
 0xb1a   : > { %8942 = vmatmul.bf16.gmra.mxu1 %v17564_v60  ;;  %v9156_v15 = vpack.c.bf16 %v8860_v17, %v16359_v47  ;;  %v17567_v47 = vld [vmem:[#allocation18_spill] sm:$0xff]  ;;  %v8555_v17 = vadd.f32 %v16466_v23, %v15590_v36 }
 0xb1c   : > { %9232 = vst [vmem:[%s16680_s26 + $0x90] sm:$0xff] %v9156_v15 }
 0xb1d   : > { %v8757_v13 = vpop.f32.mrf.mxu3 }
 0xb1e   : > { %v8758_v28 = vadd.f32 %v8757_v13, %v16648_v14  ;;  %v8659_v13 = vadd.f32 %v16447_v21, %v8555_v17 }
 0xb1f   : > { %v8864_v42 = vpop.f32.mrf.mxu0  ;;  %v8691_v22 = vpop.f32.mrf.mxu2 }
 0xb20   : > { %v8862_v9 = vadd.f32 %v8861_v7, %v8758_v28 }
 0xb22   : > { %8799 = vmatmul.bf16.gmra.mxu3 %v16547_v6  ;;  %v8587_v48 = vpop.f32.mrf.mxu1  ;;  %v9158_v55 = vpack.c.bf16 %v8862_v9, %v8654_v18  ;;  %8903 = vmatmul.bf16.gmra.mxu0 %v16497_v62 }
 0xb23   : > { %9051 = vmatmul.bf16.gmra.mxu2 %v17567_v47  ;;  %v8588_v46 = vadd.f32 %v8587_v48, %v15590_v36  ;;  %v17570_v47 = vld [vmem:[#allocation48_spill] sm:$0xff] }
 0xb24   : > { %9234 = vst [vmem:[%s16680_s26 + $0x9c] sm:$0xff] %v9158_v55 }
 0xb25   : > { %v16935_v40 = vadd.f32 %v8691_v22, %v8588_v46  ;;  %v8760_v30 = vpop.f32.mrf.mxu3  ;;  %v17569_v22 = vld [vmem:[#allocation9_spill] sm:$0xff] }
 0xb26   : > { %v8761_v24 = vadd.f32 %v8760_v30, %v16648_v14  ;;  %v17571_v46 = vld [vmem:[#allocation41_spill] sm:$0xff] }
 0xb27   : > { %v8866_v0 = vpop.f32.mrf.mxu0  ;;  %v8693_v52 = vpop.f32.mrf.mxu2 }
 0xb28   : > { %v8865_v1 = vadd.f32 %v8864_v42, %v8761_v24 }
 0xb2a   : > { %8947 = vmatmul.bf16.gmra.mxu1 %v17568_v20  ;;  %v8589_v3 = vpop.f32.mrf.mxu1  ;;  %v9160_v54 = vpack.c.bf16 %v8865_v1, %v16480_v63 }
 0xb2b   : > { %v8590_v7 = vadd.f32 %v8589_v3, %v15590_v36 }
 0xb2c   : > { %9236 = vst [vmem:[%s16680_s26 + $0xa8] sm:$0xff] %v9160_v54 }
 0xb2d   : > { %v16944_v60 = vadd.f32 %v8693_v52, %v8590_v7  ;;  %v8762_v15 = vpop.f32.mrf.mxu3 }
 0xb2e   : > { %v8763_v43 = vadd.f32 %v8762_v15, %v16648_v14  ;;  %v17573_v15 = vld [vmem:[#allocation2_spill] sm:$0xff] }
 0xb2f   : > { %v8869_v32 = vpop.f32.mrf.mxu0 }
 0xb30   : > { %v8867_v28 = vadd.f32 %v8866_v0, %v8763_v43  ;;  %v17572_v0 = vld [vmem:[#allocation40_spill] sm:$0xff] }
 0xb31   : > { %v8560_v52 = vadd.f32 %v17572_v0, %v15590_v36 }
 0xb32   : > { %8804 = vmatmul.bf16.gmra.mxu3 %v16673_v37  ;;  %v8696_v42 = vpop.f32.mrf.mxu2  ;;  %v9162_v63 = vpack.c.bf16 %v8867_v28, %v8659_v13  ;;  %8908 = vmatmul.bf16.gmra.mxu0 %v16621_v58  ;;  %v17574_v28 = vld [vmem:[#allocation50_spill] sm:$0xff] }
 0xb33   : > { %9056 = vmatmul.bf16.gmra.mxu2 %v17569_v22  ;;  %v8592_v23 = vpop.f32.mrf.mxu1  ;;  %v8664_v43 = vadd.f32 %v17573_v15, %v8560_v52 }
 0xb34   : > { %9238 = vst [vmem:[%s16680_s26 + $0xb4] sm:$0xff] %v9162_v63  ;;  %v8593_v50 = vadd.f32 %v8592_v23, %v15590_v36 }
 0xb35   : > { %v8765_v18 = vpop.f32.mrf.mxu3 }
 0xb36   : > { %v8766_v9 = vadd.f32 %v8765_v18, %v16648_v14  ;;  %v16954_v55 = vadd.f32 %v8696_v42, %v8593_v50 }
 0xb37   : > { %v8871_v48 = vpop.f32.mrf.mxu0 }
 0xb38   : > { %v8870_v21 = vadd.f32 %v8869_v32, %v8766_v9 }
 0xb3a   : > { %8952 = vmatmul.bf16.gmra.mxu1 %v17570_v47  ;;  %v9164_v30 = vpack.c.bf16 %v8870_v21, %v17571_v46  ;;  %v8698_v24 = vpop.f32.mrf.mxu2  ;;  %v8565_v46 = vadd.f32 %v16738_v25, %v15590_v36  ;;  %v17576_v25 = vld [vmem:[#allocation22_spill] sm:$0xff] }
 0xb3b   : > { %v8594_v1 = vpop.f32.mrf.mxu1 }
 0xb3c   : > { %9240 = vst [vmem:[%s16680_s26 + $0xc0] sm:$0xff] %v9164_v30  ;;  %v8595_v20 = vadd.f32 %v8594_v1, %v15590_v36 }
 0xb3d   : > { %v8767_v3 = vpop.f32.mrf.mxu3 }
 0xb3e   : > { %v8768_v54 = vadd.f32 %v8767_v3, %v16648_v14  ;;  %v16963_v17 = vadd.f32 %v8698_v24, %v8595_v20  ;;  %v8669_v3 = vadd.f32 %v16723_v41, %v8565_v46 }
 0xb3f   : > { %v8874_v7 = vpop.f32.mrf.mxu0 }
 0xb40   : > { %v8872_v32 = vadd.f32 %v8871_v48, %v8768_v54  ;;  %v17575_v48 = vld [vmem:[#allocation49_spill] sm:$0xff] }
 0xb42   : > { %8809 = vmatmul.bf16.gmra.mxu3 %v16796_v12  ;;  %v9166_v13 = vpack.c.bf16 %v8872_v32, %v8664_v43  ;;  %8913 = vmatmul.bf16.gmra.mxu0 %v16765_v49 }
 0xb43   : > { %9061 = vmatmul.bf16.gmra.mxu2 %v17574_v28 }
 0xb44   : > { %9242 = vst [vmem:[%s16680_s26 + $0xcc] sm:$0xff] %v9166_v13  ;;  %v8701_v42 = vpop.f32.mrf.mxu2 }
 0xb45   : > { %v8770_v63 = vpop.f32.mrf.mxu3 }
 0xb46   : > { %v8597_v22 = vpop.f32.mrf.mxu1  ;;  %v8771_v23 = vadd.f32 %v8770_v63, %v16648_v14 }
 0xb47   : > { %v8876_v50 = vpop.f32.mrf.mxu0  ;;  %v8598_v18 = vadd.f32 %v8597_v22, %v15590_v36  ;;  %v17577_v22 = vld [vmem:[#allocation13_spill] sm:$0xff] }
 0xb48   : > { %v8875_v9 = vadd.f32 %v8874_v7, %v8771_v23 }
 0xb49   : > { %v16972_v21 = vadd.f32 %v8701_v42, %v8598_v18 }
 0xb4a   : > { %8957 = vmatmul.bf16.gmra.mxu1 %v17575_v48  ;;  %v9168_v47 = vpack.c.bf16 %v8875_v9, %v16730_v51 }
 0xb4c   : > { %9244 = vst [vmem:[%s16680_s26 + $0xd8] sm:$0xff] %v9168_v47  ;;  %v8703_v30 = vpop.f32.mrf.mxu2 }
 0xb4d   : > { %v8772_v24 = vpop.f32.mrf.mxu3 }
 0xb4e   : > { %v8599_v0 = vpop.f32.mrf.mxu1  ;;  %v8773_v52 = vadd.f32 %v8772_v24, %v16648_v14 }
 0xb4f   : > { %v8600_v1 = vadd.f32 %v8599_v0, %v15590_v36  ;;  %v8879_v20 = vpop.f32.mrf.mxu0 }
 0xb50   : > { %v8877_v54 = vadd.f32 %v8876_v50, %v8773_v52  ;;  %v8570_v50 = vadd.f32 %v16841_v27, %v15590_v36 }
 0xb51   : > { %v16982_v7 = vadd.f32 %v8703_v30, %v8600_v1  ;;  %v17578_v1 = vld [vmem:[#allocation12_spill] sm:$0xff] }
 0xb52   : > { %8814 = vmatmul.bf16.gmra.mxu3 %v16861_v16  ;;  %v9170_v51 = vpack.c.bf16 %v8877_v54, %v8669_v3  ;;  %8918 = vmatmul.bf16.gmra.mxu0 %v16833_v59  ;;  %v8674_v24 = vadd.f32 %v16829_v26, %v8570_v50  ;;  %v17579_v26 = vld [vmem:[#allocation26_spill] sm:$0xff] }
 0xb53   : > { %9066 = vmatmul.bf16.gmra.mxu2 %v17576_v25 }
 0xb54   : > { %9246 = vst [vmem:[%s16680_s26 + $0xe4] sm:$0xff] %v9170_v51 }
 0xb55   : > { %v8775_v15 = vpop.f32.mrf.mxu3 }
 0xb56   : > { %v8706_v43 = vpop.f32.mrf.mxu2  ;;  %v8776_v32 = vadd.f32 %v8775_v15, %v16648_v14 }
 0xb57   : > { %v8602_v13 = vpop.f32.mrf.mxu1  ;;  %v8881_v28 = vpop.f32.mrf.mxu0 }
 0xb58   : > { %v8603_v41 = vadd.f32 %v8602_v13, %v15590_v36  ;;  %v8880_v42 = vadd.f32 %v8879_v20, %v8776_v32  ;;  %v8575_v13 = vadd.f32 %v16879_v33, %v15590_v36 }
 0xb5a   : > { %v16990_v63 = vadd.f32 %v8706_v43, %v8603_v41  ;;  %8962 = vmatmul.bf16.gmra.mxu1 %v17577_v22  ;;  %v9172_v23 = vpack.c.bf16 %v8880_v42, %v16818_v8 }
 0xb5c   : > { %9248 = vst [vmem:[%s16680_s26 + $0xf0] sm:$0xff] %v9172_v23 }
 0xb5d   : > { %v8777_v9 = vpop.f32.mrf.mxu3 }
 0xb5e   : > { %v8708_v18 = vpop.f32.mrf.mxu2  ;;  %v8778_v47 = vadd.f32 %v8777_v9, %v16648_v14 }
 0xb5f   : > { %v8604_v48 = vpop.f32.mrf.mxu1  ;;  %v8884_v46 = vpop.f32.mrf.mxu0 }
 0xb60   : > { %v8605_v30 = vadd.f32 %v8604_v48, %v15590_v36  ;;  %v8882_v0 = vadd.f32 %v8881_v28, %v8778_v47  ;;  %v17580_v47 = vld [vmem:[#allocation17_spill] sm:$0xff] }
 0xb62   : > { %v17000_v52 = vadd.f32 %v8708_v18, %v8605_v30  ;;  %v9174_v8 = vpack.c.bf16 %v8882_v0, %v8674_v24  ;;  %v8679_v18 = vadd.f32 %v16876_v4, %v8575_v13 }
 0xb63   : > { %9071 = vmatmul.bf16.gmra.mxu2 %v17578_v1 }
 0xb64   : > { %9250 = vst [vmem:[%s16680_s26 + $0xfc] sm:$0xff] %v9174_v8 }
 0xb65   : > { %v8780_v27 = vpop.f32.mrf.mxu3 }
 0xb66   : > { %v8711_v20 = vpop.f32.mrf.mxu2  ;;  %v8781_v54 = vadd.f32 %v8780_v27, %v16648_v14 }
 0xb67   : > { %v8607_v3 = vpop.f32.mrf.mxu1  ;;  %v8886_v51 = vpop.f32.mrf.mxu0 }
 0xb68   : > { %v8608_v25 = vadd.f32 %v8607_v3, %v15590_v36  ;;  %v8885_v15 = vadd.f32 %v8884_v46, %v8781_v54  ;;  %v17581_v46 = vld [vmem:[#allocation3_spill] sm:$0xff]  ;;  %v17582_v3 = vld [vmem:[#allocation16_spill] sm:$0xff] }
 0xb69   : > { %v17020_v33 = vperm.slane %v17581_v46, 2 }
 0xb6a   : > { %v17006_v43 = vadd.f32 %v8711_v20, %v8608_v25  ;;  %8967 = vmatmul.bf16.gmra.mxu1 %v17579_v26  ;;  %v9176_v32 = vpack.c.bf16 %v8885_v15, %v16872_v57  ;;  %v8580_v25 = vadd.f32 %v16901_v5, %v15590_v36 }
 0xb6c   : > { %9252 = vst [vmem:[%s16680_s26 + $0x108] sm:$0xff] %v9176_v32 }
 0xb6d   : > { %v8782_v41 = vpop.f32.mrf.mxu3 }
 0xb6e   : > { %v8713_v28 = vpop.f32.mrf.mxu2  ;;  %v8783_v22 = vadd.f32 %v8782_v41, %v16648_v14 }
 0xb6f   : > { %v8609_v42 = vpop.f32.mrf.mxu1  ;;  %v8889_v23 = vpop.f32.mrf.mxu0 }
 0xb70   : > { %v8610_v50 = vadd.f32 %v8609_v42, %v15590_v36  ;;  %v8887_v9 = vadd.f32 %v8886_v51, %v8783_v22  ;;  %v8684_v42 = vadd.f32 %v16898_v10, %v8580_v25 }
 0xb72   : > { %v17016_v48 = vadd.f32 %v8713_v28, %v8610_v50  ;;  %v9178_v57 = vpack.c.bf16 %v8887_v9, %v8679_v18 }
 0xb73   : > { %9076 = vmatmul.bf16.gmra.mxu2 %v17580_v47 }
 0xb74   : > { %9254 = vst [vmem:[%s16680_s26 + $0x114] sm:$0xff] %v9178_v57 }
 0xb75   : > { %v8785_v24 = vpop.f32.mrf.mxu3 }
 0xb76   : > { %v9037_v30 = vpop.f32.mrf.mxu2  ;;  %v8786_v1 = vadd.f32 %v8785_v24, %v16648_v14 }
 0xb77   : > { %v8933_v0 = vpop.f32.mrf.mxu1  ;;  %v8891_v8 = vpop.f32.mrf.mxu0 }
 0xb78   : > { %v8934_v4 = vadd.f32 %v8933_v0, %v17020_v33  ;;  %v8890_v20 = vadd.f32 %v8889_v23, %v8786_v1  ;;  %v17583_v23 = vld [vmem:[#allocation20_spill] sm:$0xff]  ;;  %v17584_v0 = vld [vmem:[#allocation38_spill] sm:$0xff] }
 0xb7a   : > { %v9038_v27 = vadd.f32 %v9037_v30, %v8934_v4  ;;  %8972 = vmatmul.bf16.gmra.mxu1 %v17582_v3  ;;  %v9180_v54 = vpack.c.bf16 %v8890_v20, %v16892_v2  ;;  %v8585_v4 = vadd.f32 %v16921_v11, %v15590_v36 }
 0xb7c   : > { %v9133_v51 = vpack.c.bf16 %v9038_v27, %v9038_v27  ;;  %9256 = vst [vmem:[%s16680_s26 + $0x120] sm:$0xff] %v9180_v54 }
 0xb7d   : > { %v8787_v26 = vpop.f32.mrf.mxu3 }
 0xb7e   : > { %9209 = vst [vmem:[%s16680_s26 + $0x8] sm:$0xf] %v9133_v51  ;;  %v9039_v15 = vpop.f32.mrf.mxu2  ;;  %v8788_v13 = vadd.f32 %v8787_v26, %v16648_v14 }
 0xb7f   : > { %v8935_v32 = vpop.f32.mrf.mxu1  ;;  %v8894_v28 = vpop.f32.mrf.mxu0 }
 0xb80   : > { %v8936_v41 = vadd.f32 %v8935_v32, %v17020_v33  ;;  %v8892_v22 = vadd.f32 %v8891_v8, %v8788_v13 }
 0xb82   : > { %v9040_v2 = vadd.f32 %v9039_v15, %v8936_v41  ;;  %v9182_v50 = vpack.c.bf16 %v8892_v22, %v8684_v42  ;;  %v8689_v15 = vadd.f32 %v16918_v45, %v8585_v4 }
 0xb83   : > { %9081 = vmatmul.bf16.gmra.mxu2 %v17583_v23 }
 0xb84   : > { %v9135_v5 = vpack.c.bf16 %v9040_v2, %v9040_v2  ;;  %9258 = vst [vmem:[%s16680_s26 + $0x12c] sm:$0xff] %v9182_v50 }
 0xb85   : > { %v8790_v9 = vpop.f32.mrf.mxu3 }
 0xb86   : > { %9211 = vst [vmem:[%s16680_s26 + $0x14] sm:$0xf] %v9135_v5  ;;  %v9042_v18 = vpop.f32.mrf.mxu2  ;;  %v8791_v57 = vadd.f32 %v8790_v9, %v16648_v14 }
 0xb87   : > { %v8938_v47 = vpop.f32.mrf.mxu1  ;;  %v8896_v46 = vpop.f32.mrf.mxu0 }
 0xb88   : > { %v8939_v30 = vadd.f32 %v8938_v47, %v17020_v33  ;;  %v8895_v24 = vadd.f32 %v8894_v28, %v8791_v57 }
 0xb8a   : > { %v9043_v10 = vadd.f32 %v9042_v18, %v8939_v30  ;;  %8977 = vmatmul.bf16.gmra.mxu1 %v17584_v0  ;;  %v9184_v1 = vpack.c.bf16 %v8895_v24, %v16913_v31 }
 0xb8c   : > { %v9137_v8 = vpack.c.bf16 %v9043_v10, %v9043_v10  ;;  %9260 = vst [vmem:[%s16680_s26 + $0x138] sm:$0xff] %v9184_v1 }
 0xb8d   : > { %v8792_v27 = vpop.f32.mrf.mxu3 }
 0xb8e   : > { %9213 = vst [vmem:[%s16680_s26 + $0x20] sm:$0xf] %v9137_v8  ;;  %v9044_v20 = vpop.f32.mrf.mxu2  ;;  %v8793_v54 = vadd.f32 %v8792_v27, %v16648_v14 }
 0xb8f   : > { %v8940_v3 = vpop.f32.mrf.mxu1  ;;  %v8899_v51 = vpop.f32.mrf.mxu0 }
 0xb90   : > { %v8941_v25 = vadd.f32 %v8940_v3, %v17020_v33  ;;  %v8897_v26 = vadd.f32 %v8896_v46, %v8793_v54 }
 0xb92   : > { %v9045_v31 = vadd.f32 %v9044_v20, %v8941_v25  ;;  %v9186_v32 = vpack.c.bf16 %v8897_v26, %v8689_v15 }
 0xb93   : > { %9086 = vmatmul.bf16.gmra.mxu2 %v15893_v19 }
 0xb94   : > { %v9139_v36 = vpack.c.bf16 %v9045_v31, %v9045_v31  ;;  %9262 = vst [vmem:[%s16680_s26 + $0x144] sm:$0xff] %v9186_v32 }
 0xb95   : > { %v8795_v13 = vpop.f32.mrf.mxu3 }
 0xb96   : > { %9215 = vst [vmem:[%s16680_s26 + $0x2c] sm:$0xf] %v9139_v36  ;;  %v9047_v11 = vpop.f32.mrf.mxu2  ;;  %v8796_v41 = vadd.f32 %v8795_v13, %v16648_v14 }
 0xb97   : > { %v8943_v28 = vpop.f32.mrf.mxu1  ;;  %v8901_v42 = vpop.f32.mrf.mxu0 }
 0xb98   : > { %v8944_v22 = vadd.f32 %v8943_v28, %v17020_v33  ;;  %v8900_v2 = vadd.f32 %v8899_v51, %v8796_v41 }
 0xb9a   : > { %v9048_v45 = vadd.f32 %v9047_v11, %v8944_v22  ;;  %8982 = vmatmul.bf16.gmra.mxu1 %v15942_v56  ;;  %v9188_v19 = vpack.c.bf16 %v8900_v2, %v16935_v40 }
 0xb9c   : > { %v9141_v23 = vpack.c.bf16 %v9048_v45, %v9048_v45  ;;  %9264 = vst [vmem:[%s16680_s26 + $0x150] sm:$0xff] %v9188_v19 }
 0xb9d   : > { %v8797_v5 = vpop.f32.mrf.mxu3 }
 0xb9e   : > { %9217 = vst [vmem:[%s16680_s26 + $0x38] sm:$0xf] %v9141_v23  ;;  %v9049_v50 = vpop.f32.mrf.mxu2  ;;  %v8798_v9 = vadd.f32 %v8797_v5, %v16648_v14 }
 0xb9f   : > { %v8945_v18 = vpop.f32.mrf.mxu1  ;;  %v8904_v47 = vpop.f32.mrf.mxu0 }
 0xba0   : > { %v8946_v57 = vadd.f32 %v8945_v18, %v17020_v33  ;;  %v8902_v46 = vadd.f32 %v8901_v42, %v8798_v9 }
 0xba2   : > { %v9050_v30 = vadd.f32 %v9049_v50, %v8946_v57  ;;  %v9190_v56 = vpack.c.bf16 %v8902_v46, %v16944_v60 }
 0xba3   : > { %9091 = vmatmul.bf16.gmra.mxu2 %v16013_v61 }
 0xba4   : > { %v9143_v40 = vpack.c.bf16 %v9050_v30, %v9050_v30  ;;  %9266 = vst [vmem:[%s16680_s26 + $0x15c] sm:$0xff] %v9190_v56 }
 0xba5   : > { %v8800_v10 = vpop.f32.mrf.mxu3 }
 0xba6   : > { %9219 = vst [vmem:[%s16680_s26 + $0x44] sm:$0xf] %v9143_v40  ;;  %v9052_v24 = vpop.f32.mrf.mxu2  ;;  %v8801_v1 = vadd.f32 %v8800_v10, %v16648_v14 }
 0xba7   : > { %v8948_v0 = vpop.f32.mrf.mxu1  ;;  %v8906_v8 = vpop.f32.mrf.mxu0 }
 0xba8   : > { %v8949_v4 = vadd.f32 %v8948_v0, %v17020_v33  ;;  %v8905_v20 = vadd.f32 %v8904_v47, %v8801_v1 }
 0xbaa   : > { %v9053_v27 = vadd.f32 %v9052_v24, %v8949_v4  ;;  %8987 = vmatmul.bf16.gmra.mxu1 %v16067_v35  ;;  %v9192_v61 = vpack.c.bf16 %v8905_v20, %v16954_v55 }
 0xbac   : > { %v9145_v60 = vpack.c.bf16 %v9053_v27, %v9053_v27  ;;  %9268 = vst [vmem:[%s16680_s26 + $0x168] sm:$0xff] %v9192_v61 }
 0xbad   : > { %v8802_v54 = vpop.f32.mrf.mxu3 }
 0xbae   : > { %9221 = vst [vmem:[%s16680_s26 + $0x50] sm:$0xf] %v9145_v60  ;;  %v9054_v3 = vpop.f32.mrf.mxu2  ;;  %v8803_v25 = vadd.f32 %v8802_v54, %v16648_v14 }
 0xbaf   : > { %v8950_v51 = vpop.f32.mrf.mxu1  ;;  %v8909_v15 = vpop.f32.mrf.mxu0 }
 0xbb0   : > { %v8951_v26 = vadd.f32 %v8950_v51, %v17020_v33  ;;  %v8907_v31 = vadd.f32 %v8906_v8, %v8803_v25 }
 0xbb2   : > { %v9055_v32 = vadd.f32 %v9054_v3, %v8951_v26  ;;  %v9194_v35 = vpack.c.bf16 %v8907_v31, %v16963_v17 }
 0xbb3   : > { %9096 = vmatmul.bf16.gmra.mxu2 %v16141_v44 }
 0xbb4   : > { %v9147_v55 = vpack.c.bf16 %v9055_v32, %v9055_v32  ;;  %9270 = vst [vmem:[%s16680_s26 + $0x174] sm:$0xff] %v9194_v35 }
 0xbb5   : > { %v8805_v11 = vpop.f32.mrf.mxu3 }
 0xbb6   : > { %9223 = vst [vmem:[%s16680_s26 + $0x5c] sm:$0xf] %v9147_v55  ;;  %v9057_v36 = vpop.f32.mrf.mxu2  ;;  %v8806_v28 = vadd.f32 %v8805_v11, %v16648_v14 }
 0xbb7   : > { %v8953_v13 = vpop.f32.mrf.mxu1  ;;  %v8911_v41 = vpop.f32.mrf.mxu0 }
 0xbb8   : > { %v8954_v42 = vadd.f32 %v8953_v13, %v17020_v33  ;;  %v8910_v22 = vadd.f32 %v8909_v15, %v8806_v28 }
 0xbba   : > { %v9058_v2 = vadd.f32 %v9057_v36, %v8954_v42  ;;  %8992 = vmatmul.bf16.gmra.mxu1 %v16187_v29  ;;  %v9196_v44 = vpack.c.bf16 %v8910_v22, %v16972_v21 }
 0xbbc   : > { %v9149_v17 = vpack.c.bf16 %v9058_v2, %v9058_v2  ;;  %9272 = vst [vmem:[%s16680_s26 + $0x180] sm:$0xff] %v9196_v44 }
 0xbbd   : > { %v8807_v19 = vpop.f32.mrf.mxu3 }
 0xbbe   : > { %9225 = vst [vmem:[%s16680_s26 + $0x68] sm:$0xf] %v9149_v17  ;;  %v9059_v45 = vpop.f32.mrf.mxu2  ;;  %v8808_v50 = vadd.f32 %v8807_v19, %v16648_v14 }
 0xbbf   : > { %v8955_v23 = vpop.f32.mrf.mxu1  ;;  %v8914_v9 = vpop.f32.mrf.mxu0 }
 0xbc0   : > { %v8956_v5 = vadd.f32 %v8955_v23, %v17020_v33  ;;  %v8912_v18 = vadd.f32 %v8911_v41, %v8808_v50 }
 0xbc2   : > { %v9060_v47 = vadd.f32 %v9059_v45, %v8956_v5  ;;  %v9198_v29 = vpack.c.bf16 %v8912_v18, %v16982_v7 }
 0xbc3   : > { %9101 = vmatmul.bf16.gmra.mxu2 %v17557_v53 }
 0xbc4   : > { %v9151_v21 = vpack.c.bf16 %v9060_v47, %v9060_v47  ;;  %9274 = vst [vmem:[%s16680_s26 + $0x18c] sm:$0xff] %v9198_v29 }
 0xbc5   : > { %v8810_v46 = vpop.f32.mrf.mxu3 }
 0xbc6   : > { %9227 = vst [vmem:[%s16680_s26 + $0x74] sm:$0xf] %v9151_v21  ;;  %v9062_v57 = vpop.f32.mrf.mxu2  ;;  %v8811_v56 = vadd.f32 %v8810_v46, %v16648_v14 }
 0xbc7   : > { %v8958_v30 = vpop.f32.mrf.mxu1  ;;  %v8916_v0 = vpop.f32.mrf.mxu0 }
 0xbc8   : > { %v8959_v40 = vadd.f32 %v8958_v30, %v17020_v33  ;;  %v8915_v24 = vadd.f32 %v8914_v9, %v8811_v56 }
 0xbca   : > { %v9063_v10 = vadd.f32 %v9062_v57, %v8959_v40  ;;  %8997 = vmatmul.bf16.gmra.mxu1 %v16311_v34  ;;  %v9200_v53 = vpack.c.bf16 %v8915_v24, %v16990_v63 }
 0xbcc   : > { %v9153_v7 = vpack.c.bf16 %v9063_v10, %v9063_v10  ;;  %9276 = vst [vmem:[%s16680_s26 + $0x198] sm:$0xff] %v9200_v53 }
 0xbcd   : > { %v8812_v8 = vpop.f32.mrf.mxu3 }
 0xbce   : > { %9229 = vst [vmem:[%s16680_s26 + $0x80] sm:$0xf] %v9153_v7  ;;  %v9064_v1 = vpop.f32.mrf.mxu2  ;;  %v8813_v20 = vadd.f32 %v8812_v8, %v16648_v14 }
 0xbcf   : > { %v8960_v4 = vpop.f32.mrf.mxu1  ;;  %v8919_v3 = vpop.f32.mrf.mxu0 }
 0xbd0   : > { %v8961_v27 = vadd.f32 %v8960_v4, %v17020_v33  ;;  %v8917_v61 = vadd.f32 %v8916_v0, %v8813_v20 }
 0xbd2   : > { %v9065_v60 = vadd.f32 %v9064_v1, %v8961_v27  ;;  %v9202_v34 = vpack.c.bf16 %v8917_v61, %v17000_v52 }
 0xbd3   : > { %9106 = vmatmul.bf16.gmra.mxu2 %v16393_v38 }
 0xbd4   : > { %v9155_v63 = vpack.c.bf16 %v9065_v60, %v9065_v60  ;;  %9278 = vst [vmem:[%s16680_s26 + $0x1a4] sm:$0xff] %v9202_v34 }
 0xbd5   : > { %v8815_v51 = vpop.f32.mrf.mxu3 }
 0xbd6   : > { %9231 = vst [vmem:[%s16680_s26 + $0x8c] sm:$0xf] %v9155_v63  ;;  %v9067_v54 = vpop.f32.mrf.mxu2  ;;  %v8816_v15 = vadd.f32 %v8815_v51, %v16648_v14 }
 0xbd7   : > { %v8963_v25 = vpop.f32.mrf.mxu1  ;;  %v8921_v28 = vpop.f32.mrf.mxu0 }
 0xbd8   : > { %v8964_v26 = vadd.f32 %v8963_v25, %v17020_v33  ;;  %v8920_v31 = vadd.f32 %v8919_v3, %v8816_v15 }
 0xbda   : > { %v9068_v32 = vadd.f32 %v9067_v54, %v8964_v26  ;;  %9002 = vmatmul.bf16.gmra.mxu1 %v16439_v39  ;;  %v9204_v38 = vpack.c.bf16 %v8920_v31, %v17006_v43 }
 0xbdc   : > { %v9157_v52 = vpack.c.bf16 %v9068_v32, %v9068_v32  ;;  %9280 = vst [vmem:[%s16680_s26 + $0x1b0] sm:$0xff] %v9204_v38 }
 0xbdd   : > { %v8817_v55 = vpop.f32.mrf.mxu3 }
 0xbde   : > { %9233 = vst [vmem:[%s16680_s26 + $0x98] sm:$0xf] %v9157_v52  ;;  %v9069_v35 = vpop.f32.mrf.mxu2  ;;  %v8818_v11 = vadd.f32 %v8817_v55, %v16648_v14 }
 0xbdf   : > { %v8965_v36 = vpop.f32.mrf.mxu1 }
 0xbe0   : > { %v8966_v13 = vadd.f32 %v8965_v36, %v17020_v33  ;;  %v8922_v41 = vadd.f32 %v8921_v28, %v8818_v11 }
 0xbe2   : > { %v9070_v42 = vadd.f32 %v9069_v35, %v8966_v13  ;;  %v9206_v39 = vpack.c.bf16 %v8922_v41, %v17016_v48 }
 0xbe3   : > { %9111 = vmatmul.bf16.gmra.mxu2 %v16497_v62 }
 0xbe4   : > { %v9159_v43 = vpack.c.bf16 %v9070_v42, %v9070_v42  ;;  %9282 = vst [vmem:[%s16680_s26 + $0x1bc] sm:$0xff] %v9206_v39 }
 0xbe6   : > { %9235 = vst [vmem:[%s16680_s26 + $0xa4] sm:$0xf] %v9159_v43  ;;  %v9072_v22 = vpop.f32.mrf.mxu2 }
 0xbe7   : > { %v8968_v2 = vpop.f32.mrf.mxu1 }
 0xbe8   : > { %v8969_v44 = vadd.f32 %v8968_v2, %v17020_v33 }
 0xbea   : > { %v9073_v17 = vadd.f32 %v9072_v22, %v8969_v44  ;;  %9007 = vmatmul.bf16.gmra.mxu1 %v16547_v6 }
 0xbec   : > { %v9161_v14 = vpack.c.bf16 %v9073_v17, %v9073_v17 }
 0xbee   : > { %9237 = vst [vmem:[%s16680_s26 + $0xb0] sm:$0xf] %v9161_v14  ;;  %v9074_v45 = vpop.f32.mrf.mxu2 }
 0xbef   : > { %v8970_v19 = vpop.f32.mrf.mxu1 }
 0xbf0   : > { %v8971_v62 = vadd.f32 %v8970_v19, %v17020_v33 }
 0xbf2   : > { %v9075_v23 = vadd.f32 %v9074_v45, %v8971_v62 }
 0xbf3   : > { %9116 = vmatmul.bf16.gmra.mxu2 %v16621_v58 }
 0xbf4   : > { %v9163_v48 = vpack.c.bf16 %v9075_v23, %v9075_v23 }
 0xbf6   : > { %9239 = vst [vmem:[%s16680_s26 + $0xbc] sm:$0xf] %v9163_v48  ;;  %v9077_v50 = vpop.f32.mrf.mxu2 }
 0xbf7   : > { %v8973_v5 = vpop.f32.mrf.mxu1 }
 0xbf8   : > { %v8974_v18 = vadd.f32 %v8973_v5, %v17020_v33 }
 0xbfa   : > { %v9078_v9 = vadd.f32 %v9077_v50, %v8974_v18  ;;  %9012 = vmatmul.bf16.gmra.mxu1 %v16673_v37 }
 0xbfc   : > { %v9165_v6 = vpack.c.bf16 %v9078_v9, %v9078_v9 }
 0xbfe   : > { %9241 = vst [vmem:[%s16680_s26 + $0xc8] sm:$0xf] %v9165_v6  ;;  %v9079_v47 = vpop.f32.mrf.mxu2 }
 0xbff   : > { %v8975_v29 = vpop.f32.mrf.mxu1 }
 0xc00   : > { %v8976_v21 = vadd.f32 %v8975_v29, %v17020_v33 }
 0xc02   : > { %v9080_v57 = vadd.f32 %v9079_v47, %v8976_v21 }
 0xc03   : > { %9121 = vmatmul.bf16.gmra.mxu2 %v16765_v49 }
 0xc04   : > { %v9167_v58 = vpack.c.bf16 %v9080_v57, %v9080_v57 }
 0xc06   : > { %9243 = vst [vmem:[%s16680_s26 + $0xd4] sm:$0xf] %v9167_v58  ;;  %v9082_v46 = vpop.f32.mrf.mxu2 }
 0xc07   : > { %v8978_v30 = vpop.f32.mrf.mxu1 }
 0xc08   : > { %v8979_v56 = vadd.f32 %v8978_v30, %v17020_v33 }
 0xc0a   : > { %v9083_v40 = vadd.f32 %v9082_v46, %v8979_v56  ;;  %9017 = vmatmul.bf16.gmra.mxu1 %v16796_v12 }
 0xc0c   : > { %v9169_v37 = vpack.c.bf16 %v9083_v40, %v9083_v40 }
 0xc0e   : > { %9245 = vst [vmem:[%s16680_s26 + $0xe0] sm:$0xf] %v9169_v37  ;;  %v9084_v24 = vpop.f32.mrf.mxu2 }
 0xc0f   : > { %v8980_v10 = vpop.f32.mrf.mxu1 }
 0xc10   : > { %v8981_v53 = vadd.f32 %v8980_v10, %v17020_v33 }
 0xc12   : > { %v9085_v0 = vadd.f32 %v9084_v24, %v8981_v53 }
 0xc13   : > { %9126 = vmatmul.bf16.gmra.mxu2 %v16833_v59 }
 0xc14   : > { %v9171_v49 = vpack.c.bf16 %v9085_v0, %v9085_v0 }
 0xc16   : > { %9247 = vst [vmem:[%s16680_s26 + $0xec] sm:$0xf] %v9171_v49  ;;  %v9087_v7 = vpop.f32.mrf.mxu2 }
 0xc17   : > { %v8983_v1 = vpop.f32.mrf.mxu1 }
 0xc18   : > { %v8984_v8 = vadd.f32 %v8983_v1, %v17020_v33 }
 0xc1a   : > { %v9088_v4 = vadd.f32 %v9087_v7, %v8984_v8  ;;  %9022 = vmatmul.bf16.gmra.mxu1 %v16861_v16 }
 0xc1c   : > { %v9173_v12 = vpack.c.bf16 %v9088_v4, %v9088_v4 }
 0xc1e   : > { %9249 = vst [vmem:[%s16680_s26 + $0xf8] sm:$0xf] %v9173_v12  ;;  %v9089_v20 = vpop.f32.mrf.mxu2 }
 0xc1f   : > { %v8985_v27 = vpop.f32.mrf.mxu1 }
 0xc20   : > { %v8986_v61 = vadd.f32 %v8985_v27, %v17020_v33 }
 0xc22   : > { %v9090_v60 = vadd.f32 %v9089_v20, %v8986_v61 }
 0xc24   : > { %v9175_v34 = vpack.c.bf16 %v9090_v60, %v9090_v60 }
 0xc26   : > { %9251 = vst [vmem:[%s16680_s26 + $0x104] sm:$0xf] %v9175_v34  ;;  %v9092_v59 = vpop.f32.mrf.mxu2 }
 0xc27   : > { %v8988_v63 = vpop.f32.mrf.mxu1 }
 0xc28   : > { %v8989_v3 = vadd.f32 %v8988_v63, %v17020_v33 }
 0xc2a   : > { %v9093_v54 = vadd.f32 %v9092_v59, %v8989_v3 }
 0xc2c   : > { %v9177_v51 = vpack.c.bf16 %v9093_v54, %v9093_v54 }
 0xc2e   : > { %9253 = vst [vmem:[%s16680_s26 + $0x110] sm:$0xf] %v9177_v51  ;;  %v9094_v25 = vpop.f32.mrf.mxu2 }
 0xc2f   : > { %v8990_v16 = vpop.f32.mrf.mxu1 }
 0xc30   : > { %v8991_v15 = vadd.f32 %v8990_v16, %v17020_v33 }
 0xc32   : > { %v9095_v26 = vadd.f32 %v9094_v25, %v8991_v15 }
 0xc34   : > { %v9179_v31 = vpack.c.bf16 %v9095_v26, %v9095_v26 }
 0xc36   : > { %9255 = vst [vmem:[%s16680_s26 + $0x11c] sm:$0xf] %v9179_v31  ;;  %v9097_v32 = vpop.f32.mrf.mxu2 }
 0xc37   : > { %v8993_v38 = vpop.f32.mrf.mxu1 }
 0xc38   : > { %v8994_v52 = vadd.f32 %v8993_v38, %v17020_v33 }
 0xc3a   : > { %v9098_v35 = vadd.f32 %v9097_v32, %v8994_v52 }
 0xc3c   : > { %v9181_v55 = vpack.c.bf16 %v9098_v35, %v9098_v35 }
 0xc3e   : > { %9257 = vst [vmem:[%s16680_s26 + $0x128] sm:$0xf] %v9181_v55  ;;  %v9099_v36 = vpop.f32.mrf.mxu2 }
 0xc3f   : > { %v8995_v11 = vpop.f32.mrf.mxu1 }
 0xc40   : > { %v8996_v13 = vadd.f32 %v8995_v11, %v17020_v33 }
 0xc42   : > { %v9100_v28 = vadd.f32 %v9099_v36, %v8996_v13 }
 0xc44   : > { %v9183_v41 = vpack.c.bf16 %v9100_v28, %v9100_v28 }
 0xc46   : > { %9259 = vst [vmem:[%s16680_s26 + $0x134] sm:$0xf] %v9183_v41  ;;  %v9102_v42 = vpop.f32.mrf.mxu2 }
 0xc47   : > { %v8998_v39 = vpop.f32.mrf.mxu1 }
 0xc48   : > { %v8999_v43 = vadd.f32 %v8998_v39, %v17020_v33 }
 0xc4a   : > { %v9103_v22 = vadd.f32 %v9102_v42, %v8999_v43 }
 0xc4c   : > { %v9185_v2 = vpack.c.bf16 %v9103_v22, %v9103_v22 }
 0xc4e   : > { %9261 = vst [vmem:[%s16680_s26 + $0x140] sm:$0xf] %v9185_v2  ;;  %v9104_v44 = vpop.f32.mrf.mxu2 }
 0xc4f   : > { %v9000_v17 = vpop.f32.mrf.mxu1 }
 0xc50   : > { %v9001_v14 = vadd.f32 %v9000_v17, %v17020_v33 }
 0xc52   : > { %v9105_v45 = vadd.f32 %v9104_v44, %v9001_v14 }
 0xc54   : > { %v9187_v19 = vpack.c.bf16 %v9105_v45, %v9105_v45 }
 0xc56   : > { %9263 = vst [vmem:[%s16680_s26 + $0x14c] sm:$0xf] %v9187_v19  ;;  %v9107_v62 = vpop.f32.mrf.mxu2 }
 0xc57   : > { %v9003_v23 = vpop.f32.mrf.mxu1 }
 0xc58   : > { %v9004_v48 = vadd.f32 %v9003_v23, %v17020_v33 }
 0xc5a   : > { %v9108_v50 = vadd.f32 %v9107_v62, %v9004_v48 }
 0xc5c   : > { %v9189_v5 = vpack.c.bf16 %v9108_v50, %v9108_v50 }
 0xc5e   : > { %9265 = vst [vmem:[%s16680_s26 + $0x158] sm:$0xf] %v9189_v5  ;;  %v9109_v18 = vpop.f32.mrf.mxu2 }
 0xc5f   : > { %v9005_v9 = vpop.f32.mrf.mxu1 }
 0xc60   : > { %v9006_v6 = vadd.f32 %v9005_v9, %v17020_v33 }
 0xc62   : > { %v9110_v47 = vadd.f32 %v9109_v18, %v9006_v6 }
 0xc64   : > { %v9191_v29 = vpack.c.bf16 %v9110_v47, %v9110_v47 }
 0xc66   : > { %9267 = vst [vmem:[%s16680_s26 + $0x164] sm:$0xf] %v9191_v29  ;;  %v9112_v21 = vpop.f32.mrf.mxu2 }
 0xc67   : > { %v9008_v57 = vpop.f32.mrf.mxu1 }
 0xc68   : > { %v9009_v58 = vadd.f32 %v9008_v57, %v17020_v33 }
 0xc6a   : > { %v9113_v46 = vadd.f32 %v9112_v21, %v9009_v58 }
 0xc6c   : > { %v9193_v30 = vpack.c.bf16 %v9113_v46, %v9113_v46 }
 0xc6e   : > { %9269 = vst [vmem:[%s16680_s26 + $0x170] sm:$0xf] %v9193_v30  ;;  %v9114_v56 = vpop.f32.mrf.mxu2 }
 0xc6f   : > { %v9010_v40 = vpop.f32.mrf.mxu1 }
 0xc70   : > { %v9011_v37 = vadd.f32 %v9010_v40, %v17020_v33 }
 0xc72   : > { %v9115_v24 = vadd.f32 %v9114_v56, %v9011_v37 }
 0xc74   : > { %v9195_v10 = vpack.c.bf16 %v9115_v24, %v9115_v24 }
 0xc76   : > { %9271 = vst [vmem:[%s16680_s26 + $0x17c] sm:$0xf] %v9195_v10  ;;  %v9117_v53 = vpop.f32.mrf.mxu2 }
 0xc77   : > { %v9013_v0 = vpop.f32.mrf.mxu1 }
 0xc78   : > { %v9014_v49 = vadd.f32 %v9013_v0, %v17020_v33 }
 0xc7a   : > { %v9118_v7 = vadd.f32 %v9117_v53, %v9014_v49 }
 0xc7c   : > { %v9197_v1 = vpack.c.bf16 %v9118_v7, %v9118_v7 }
 0xc7e   : > { %9273 = vst [vmem:[%s16680_s26 + $0x188] sm:$0xf] %v9197_v1  ;;  %v9119_v8 = vpop.f32.mrf.mxu2 }
 0xc7f   : > { %v9015_v4 = vpop.f32.mrf.mxu1 }
 0xc80   : > { %v9016_v12 = vadd.f32 %v9015_v4, %v17020_v33 }
 0xc82   : > { %v9120_v20 = vadd.f32 %v9119_v8, %v9016_v12 }
 0xc84   : > { %v9199_v27 = vpack.c.bf16 %v9120_v20, %v9120_v20 }
 0xc86   : > { %9275 = vst [vmem:[%s16680_s26 + $0x194] sm:$0xf] %v9199_v27  ;;  %v9122_v61 = vpop.f32.mrf.mxu2 }
 0xc87   : > { %v9018_v60 = vpop.f32.mrf.mxu1 }
 0xc88   : > { %v9019_v34 = vadd.f32 %v9018_v60, %v17020_v33 }
 0xc8a   : > { %v9123_v59 = vadd.f32 %v9122_v61, %v9019_v34 }
 0xc8c   : > { %v9201_v63 = vpack.c.bf16 %v9123_v59, %v9123_v59 }
 0xc8e   : > { %9277 = vst [vmem:[%s16680_s26 + $0x1a0] sm:$0xf] %v9201_v63  ;;  %v9124_v3 = vpop.f32.mrf.mxu2 }
 0xc8f   : > { %v9020_v54 = vpop.f32.mrf.mxu1 }
 0xc90   : > { %v9021_v51 = vadd.f32 %v9020_v54, %v17020_v33 }
 0xc92   : > { %v9125_v25 = vadd.f32 %v9124_v3, %v9021_v51 }
 0xc94   : > { %v9203_v16 = vpack.c.bf16 %v9125_v25, %v9125_v25 }
 0xc96   : > { %9279 = vst [vmem:[%s16680_s26 + $0x1ac] sm:$0xf] %v9203_v16  ;;  %v9127_v26 = vpop.f32.mrf.mxu2 }
 0xc97   : > { %v9023_v15 = vpop.f32.mrf.mxu1 }
 0xc98   : > { %v9024_v31 = vadd.f32 %v9023_v15, %v17020_v33 }
 0xc9a   : > { %v9128_v32 = vadd.f32 %v9127_v26, %v9024_v31 }
 0xc9c   : > { %v9205_v38 = vpack.c.bf16 %v9128_v32, %v9128_v32 }
 0xc9e   : > { %9281 = vst [vmem:[%s16680_s26 + $0x1b8] sm:$0xf] %v9205_v38  ;;  %v9129_v55 = vpop.f32.mrf.mxu2 }
 0xc9f   : > { %v9025_v52 = vpop.f32.mrf.mxu1 }
 0xca0   : > { %v9026_v35 = vadd.f32 %v9025_v52, %v17020_v33 }
 0xca2   : > { %v9130_v36 = vadd.f32 %v9129_v55, %v9026_v35 }
 0xca4   : > { %v9207_v11 = vpack.c.bf16 %v9130_v36, %v9130_v36 }
 0xca6   : > { %9283 = vst [vmem:[%s16680_s26 + $0x1c4] sm:$0xf] %v9207_v11 }
 0xca7 PF: > { %s21_s13 = sadd.s32 1, %s11652_s13  }
 0xca8   : > { %p18_p4 = scmp.ge.s32.totalorder %s21_s13, 4  }
 0xcaa   :  { %20 = sbr.rel (!%p18_p4) target bundleno = 1 (0x1), region = 109 }

</bundles_post_ra>
